<compile_context>
chip_gen: v6e
topology: v6e:2x2x1
jax: 0.10.0
libtpu: 0.0.40
codegen_flags: <defaults>
</compile_context>

<pallas_src>
import functools

import jax
import jax.numpy as jnp
from jax import lax
from jax.experimental import pallas as pl
from jax.experimental.pallas import tpu as pltpu


def _round_up(v, m):
    return (v + m - 1) // m * m


# ----------------------------------------------------------------------------
# Highway kernel: all layers fused, packed (E, 3E) weights per layer.
# ----------------------------------------------------------------------------
def highway_kernel(x_ref, w_ref, b_ref, o_ref, *, n_layers, n_embed):
    """x_ref: (tm, E); w_ref: (L, E, 3E) packed [gate|nl|lin]; b_ref: (L, 1, 3E)."""
    E = n_embed
    x = x_ref[...].astype(jnp.float32)
    # n_layers is a trace-time constant -> static unroll (cross-layer visibility
    # for the LLO scheduler, no dynamic per-layer ref addressing).
    for l in range(n_layers):
        z = jnp.dot(x, w_ref[l], preferred_element_type=jnp.float32) + b_ref[l]
        gate = jax.nn.sigmoid(z[:, 0:E])          # lane offsets 0 / E / 2E are
        nl = jnp.maximum(z[:, E:2 * E], 0.0)      # 128-aligned -> free slices
        lin = z[:, 2 * E:3 * E]
        x = lin + gate * (nl - lin)               # == gate*nl + (1-gate)*lin
    o_ref[...] = x.astype(o_ref.dtype)


def highway_forward(x2d, w_cat, b_cat, *, tile_m=256):
    """x2d: (M, E) rows (M = batch*seq); w_cat: (L, E, 3E); b_cat: (L, 1, 3E)."""
    M, E = x2d.shape
    L = w_cat.shape[0]
    tm = min(tile_m, _round_up(M, 8))            # row tile (multiple of 8)
    m_pad = _round_up(M, tm)
    xp = x2d if m_pad == M else jnp.pad(x2d, ((0, m_pad - M), (0, 0)))
    # NOTE(vmem): resident weights are 3*L*E*E*4 bytes; at this config ~384 KiB.
    # If E/L scale up toward v7x's 32 MiB scoped limit, tile the 3E output dim
    # over a grid axis or raise vmem_limit_bytes.
    out = pl.pallas_call(
        functools.partial(highway_kernel, n_layers=L, n_embed=E),
        out_shape=jax.ShapeDtypeStruct((m_pad, E), x2d.dtype),
        grid=(m_pad // tm,),
        in_specs=[
            pl.BlockSpec((tm, E), lambda i: (i, 0)),
            pl.BlockSpec((L, E, 3 * E), lambda i: (0, 0, 0)),   # weights resident
            pl.BlockSpec((L, 1, 3 * E), lambda i: (0, 0, 0)),
        ],
        out_specs=pl.BlockSpec((tm, E), lambda i: (i, 0)),
        compiler_params=pltpu.CompilerParams(
            dimension_semantics=("parallel",)),
    )(xp, w_cat, b_cat)
    return out if m_pad == M else out[:M]


# ----------------------------------------------------------------------------
# One bidirectional LSTM layer (zero initial state), both directions fused.
# ----------------------------------------------------------------------------
def bilstm_layer_kernel(x_ref, wih_ref, whh_ref, b_ref, yf_ref, yb_ref, *,
                        seq_len, hidden):
    """x_ref: (T, B, D); wih_ref: (2, D, 4H); whh_ref: (2, H, 4H); b_ref: (2, 1, 4H).
    Writes per-step hidden states: yf_ref/yb_ref: (T, B, H)."""
    batch = x_ref.shape[1]
    H = hidden
    wih_f, wih_b = wih_ref[0], wih_ref[1]
    whh_f, whh_b = whh_ref[0], whh_ref[1]
    b_f, b_b = b_ref[0], b_ref[1]

    def cell(x_t, h, c, wih, whh, b):
        g = (jnp.dot(x_t, wih, preferred_element_type=jnp.float32)
             + jnp.dot(h, whh, preferred_element_type=jnp.float32) + b)
        i = jax.nn.sigmoid(g[:, 0:H])             # PyTorch gate order: i, f, g, o
        f = jax.nn.sigmoid(g[:, H:2 * H])
        gg = jnp.tanh(g[:, 2 * H:3 * H])
        o = jax.nn.sigmoid(g[:, 3 * H:4 * H])
        c_new = f * c + i * gg
        h_new = o * jnp.tanh(c_new)
        return h_new, c_new

    z = jnp.zeros((batch, H), jnp.float32)
    h_f, c_f, h_b, c_b = z, z, z, z
    # seq_len is a trace-time constant and small -> static unroll of the
    # recurrence; fwd/bwd directions interleaved per step.
    # TODO(synk): for long sequences, move time to a grid axis with the hidden
    # state in VMEM scratch so x can be streamed/double-buffered from HBM.
    for t in range(seq_len):
        x_f = x_ref[t].astype(jnp.float32)
        h_f, c_f = cell(x_f, h_f, c_f, wih_f, whh_f, b_f)
        yf_ref[t] = h_f.astype(yf_ref.dtype)

        tb = seq_len - 1 - t
        x_b = x_ref[tb].astype(jnp.float32)
        h_b, c_b = cell(x_b, h_b, c_b, wih_b, whh_b, b_b)
        yb_ref[tb] = h_b.astype(yb_ref.dtype)


def bilstm_layer(x_seq, wih, whh, b):
    """x_seq: (T, B, D) -> (y_fwd, y_bwd) each (T, B, H)."""
    T, B, _ = x_seq.shape
    H = whh.shape[1]
    vmem = pl.BlockSpec(memory_space=pltpu.MemorySpace.VMEM)
    y_shape = jax.ShapeDtypeStruct((T, B, H), jnp.float32)
    return pl.pallas_call(
        functools.partial(bilstm_layer_kernel, seq_len=T, hidden=H),
        out_shape=(y_shape, y_shape),
        in_specs=[vmem, vmem, vmem, vmem],
        out_specs=(vmem, vmem),
    )(x_seq, wih, whh, b)


# ----------------------------------------------------------------------------
# Full Encoder forward.
# ----------------------------------------------------------------------------
def encoder_forward(x, w_cat, b_cat, lstm_params):
    """x: (B, T, E). Returns e_hidden: (B, 2*H) = [h_fwd_last | h_bwd_last]."""
    B, T, E = x.shape
    xh = highway_forward(x.reshape(B * T, E), w_cat, b_cat)
    seq = jnp.transpose(xh.reshape(B, T, E), (1, 0, 2))      # (T, B, E)
    y_f = y_b = None
    for (wih, whh, b) in lstm_params:
        y_f, y_b = bilstm_layer(seq, wih, whh, b)
        seq = jnp.concatenate([y_f, y_b], axis=-1)           # input to next layer
    # Last layer: forward final hidden is y_f[T-1], backward final hidden is y_b[0].
    return jnp.concatenate([y_f[-1], y_b[0]], axis=-1)


# ----------------------------------------------------------------------------
# Parameter packing from PyTorch layouts.
# ----------------------------------------------------------------------------
def pack_highway(wg, bg, wn, bn, wl, bl):
    """PyTorch nn.Linear weights (L, out, in) / biases (L, out) -> packed."""
    w_cat = jnp.concatenate([jnp.swapaxes(wg, -1, -2),
                             jnp.swapaxes(wn, -1, -2),
                             jnp.swapaxes(wl, -1, -2)], axis=-1)   # (L, E, 3E)
    b_cat = jnp.concatenate([bg, bn, bl], axis=-1)[:, None, :]     # (L, 1, 3E)
    return w_cat, b_cat


def pack_lstm_layer(w_ih_f, w_hh_f, b_ih_f, b_hh_f,
                    w_ih_b, w_hh_b, b_ih_b, b_hh_b):
    """PyTorch LSTM weights (4H, D_in)/(4H, H), biases (4H,) per direction."""
    wih = jnp.stack([w_ih_f.T, w_ih_b.T], axis=0)                  # (2, D_in, 4H)
    whh = jnp.stack([w_hh_f.T, w_hh_b.T], axis=0)                  # (2, H, 4H)
    b = jnp.stack([b_ih_f + b_hh_f, b_ih_b + b_hh_b], axis=0)[:, None, :]
    return wih, whh, b                                             # b: (2, 1, 4H)


# ----------------------------------------------------------------------------
# Pure-JAX reference mirroring the PyTorch forward.
# ----------------------------------------------------------------------------
def encoder_reference(x, w_cat, b_cat, lstm_params):
    B, T, E = x.shape
    h = x.astype(jnp.float32)
    for l in range(w_cat.shape[0]):
        z = h @ w_cat[l] + b_cat[l]
        gate = jax.nn.sigmoid(z[..., :E])
        nl = jax.nn.relu(z[..., E:2 * E])
        lin = z[..., 2 * E:]
        h = gate * nl + (1.0 - gate) * lin
    seq = jnp.transpose(h, (1, 0, 2))                              # (T, B, E)
    y_f = y_b = None
    for (wih, whh, b) in lstm_params:
        Hh = whh.shape[1]
        outs = []
        for d, order in ((0, range(T)), (1, range(T - 1, -1, -1))):
            hs = jnp.zeros((B, Hh), jnp.float32)
            cs = jnp.zeros((B, Hh), jnp.float32)
            ys = [None] * T
            for t in order:
                g = seq[t] @ wih[d] + hs @ whh[d] + b[d]
                i = jax.nn.sigmoid(g[:, :Hh])
                f = jax.nn.sigmoid(g[:, Hh:2 * Hh])
                gg = jnp.tanh(g[:, 2 * Hh:3 * Hh])
                o = jax.nn.sigmoid(g[:, 3 * Hh:])
                cs = f * cs + i * gg
                hs = o * jnp.tanh(cs)
                ys[t] = hs
            outs.append(jnp.stack(ys, axis=0))
        y_f, y_b = outs
        seq = jnp.concatenate([y_f, y_b], axis=-1)
    return jnp.concatenate([y_f[-1], y_b[0]], axis=-1)


if __name__ == "__main__":
    # Config: n_highway_layers=2, n_embed=128, n_hidden_E=128, n_layers_E=1.
    n_highway_layers = 2
    n_embed = 128
    n_hidden_E = 128
    n_layers_E = 1
    batch = 4
    seq = 8

    key = jax.random.PRNGKey(0)
    k_hw, k_lstm, k_x = jax.random.split(key, 3)

    # Highway params in PyTorch nn.Linear layout: weight (out, in), bias (out,).
    hb = 1.0 / (n_embed ** 0.5)
    kg, kn, kl, kbg, kbn, kbl = jax.random.split(k_hw, 6)
    wshape = (n_highway_layers, n_embed, n_embed)
    bshape = (n_highway_layers, n_embed)
    wg = jax.random.uniform(kg, wshape, jnp.float32, -hb, hb)
    wn = jax.random.uniform(kn, wshape, jnp.float32, -hb, hb)
    wl = jax.random.uniform(kl, wshape, jnp.float32, -hb, hb)
    bg = jax.random.uniform(kbg, bshape, jnp.float32, -hb, hb)
    bn = jax.random.uniform(kbn, bshape, jnp.float32, -hb, hb)
    bl = jax.random.uniform(kbl, bshape, jnp.float32, -hb, hb)
    w_cat, b_cat = pack_highway(wg, bg, wn, bn, wl, bl)

    # Bidirectional LSTM params in PyTorch layout (per layer, per direction).
    lb = 1.0 / (n_hidden_E ** 0.5)
    lstm_params = []
    d_in = n_embed
    kk = k_lstm
    for _ in range(n_layers_E):
        kk, *ks = jax.random.split(kk, 9)
        w_ih_f = jax.random.uniform(ks[0], (4 * n_hidden_E, d_in), jnp.float32, -lb, lb)
        w_hh_f = jax.random.uniform(ks[1], (4 * n_hidden_E, n_hidden_E), jnp.float32, -lb, lb)
        b_ih_f = jax.random.uniform(ks[2], (4 * n_hidden_E,), jnp.float32, -lb, lb)
        b_hh_f = jax.random.uniform(ks[3], (4 * n_hidden_E,), jnp.float32, -lb, lb)
        w_ih_b = jax.random.uniform(ks[4], (4 * n_hidden_E, d_in), jnp.float32, -lb, lb)
        w_hh_b = jax.random.uniform(ks[5], (4 * n_hidden_E, n_hidden_E), jnp.float32, -lb, lb)
        b_ih_b = jax.random.uniform(ks[6], (4 * n_hidden_E,), jnp.float32, -lb, lb)
        b_hh_b = jax.random.uniform(ks[7], (4 * n_hidden_E,), jnp.float32, -lb, lb)
        lstm_params.append(pack_lstm_layer(w_ih_f, w_hh_f, b_ih_f, b_hh_f,
                                           w_ih_b, w_hh_b, b_ih_b, b_hh_b))
        d_in = 2 * n_hidden_E

    x = jax.random.normal(k_x, (batch, seq, n_embed), jnp.float32)

    fwd = jax.jit(encoder_forward)
    out = jax.block_until_ready(fwd(x, w_cat, b_cat, lstm_params))

    ref = encoder_reference(x, w_cat, b_cat, lstm_params)
    assert out.shape == (batch, 2 * n_hidden_E), out.shape
    max_err = float(jnp.max(jnp.abs(out - ref)))
    assert jnp.allclose(out, ref, atol=1e-3, rtol=1e-3), (
        f"mismatch vs reference (max |err|={max_err:.3e})")

    print("KERNEL_OK")
</pallas_src>

<mosaic_0001>
module attributes {stable_mosaic.version = 11 : i64} {
  func.func @highway_kernel(%arg0: i32, %arg1: memref<32x128xf32, #tpu.memory_space<vmem>>, %arg2: memref<2x128x384xf32, #tpu.memory_space<vmem>>, %arg3: memref<2x1x384xf32, #tpu.memory_space<vmem>>, %arg4: memref<32x128xf32, #tpu.memory_space<vmem>>) attributes {dimension_semantics = [#tpu.dimension_semantics<parallel>], iteration_bounds = array<i64: 1>, scalar_prefetch = 0 : i64, scratch_operands = 0 : i64, tpu.core_type = #tpu.core_type<tc>, window_params = [{transform_indices = @transform_0, window_bounds = array<i64: 32, 128>}, {pipeline_mode = #tpu.pipeline_mode<synchronous>, transform_indices = @transform_1, window_bounds = array<i64: 2, 128, 384>}, {pipeline_mode = #tpu.pipeline_mode<synchronous>, transform_indices = @transform_2, window_bounds = array<i64: 2, 1, 384>}, {transform_indices = @transform_3, window_bounds = array<i64: 32, 128>}]} {
    %c0 = arith.constant 0 : index
    %c0_0 = arith.constant 0 : index
    %0 = vector.load %arg1[%c0, %c0_0] : memref<32x128xf32, #tpu.memory_space<vmem>>, vector<32x128xf32>
    %c0_1 = arith.constant 0 : index
    %c0_2 = arith.constant 0 : index
    %c0_3 = arith.constant 0 : index
    %1 = vector.load %arg2[%c0_1, %c0_2, %c0_3] : memref<2x128x384xf32, #tpu.memory_space<vmem>>, vector<1x128x384xf32>
    %2 = vector.shape_cast %1 : vector<1x128x384xf32> to vector<128x384xf32>
    %cst = arith.constant dense<0.000000e+00> : vector<32x384xf32>
    %3 = tpu.matmul %0, %2, %cst {dimension_numbers = #tpu.dot_dimension_numbers<[1], [0], [0], [1], [0, 0, 1, 1], [], []>} : vector<32x128xf32>, vector<128x384xf32>, vector<32x384xf32> -> vector<32x384xf32>
    %c0_4 = arith.constant 0 : index
    %c0_5 = arith.constant 0 : index
    %c0_6 = arith.constant 0 : index
    %4 = vector.load %arg3[%c0_4, %c0_5, %c0_6] : memref<2x1x384xf32, #tpu.memory_space<vmem>>, vector<1x1x384xf32>
    %5 = vector.shape_cast %4 : vector<1x1x384xf32> to vector<1x384xf32>
    %6 = vector.broadcast %5 : vector<1x384xf32> to vector<32x384xf32>
    %7 = arith.addf %3, %6 : vector<32x384xf32>
    %8 = vector.extract_strided_slice %7 {offsets = [0, 0], sizes = [32, 128], strides = [1, 1]} : vector<32x384xf32> to vector<32x128xf32>
    %9 = arith.negf %8 : vector<32x128xf32>
    %10 = math.exp %9 : vector<32x128xf32>
    %cst_7 = arith.constant 1.000000e+00 : f32
    %11 = vector.broadcast %cst_7 : f32 to vector<32x128xf32>
    %12 = arith.addf %11, %10 : vector<32x128xf32>
    %13 = arith.divf %11, %12 : vector<32x128xf32>
    %14 = vector.extract_strided_slice %7 {offsets = [0, 128], sizes = [32, 128], strides = [1, 1]} : vector<32x384xf32> to vector<32x128xf32>
    %cst_8 = arith.constant 0.000000e+00 : f32
    %15 = vector.broadcast %cst_8 : f32 to vector<32x128xf32>
    %16 = arith.maximumf %14, %15 : vector<32x128xf32>
    %17 = vector.extract_strided_slice %7 {offsets = [0, 256], sizes = [32, 128], strides = [1, 1]} : vector<32x384xf32> to vector<32x128xf32>
    %18 = arith.subf %16, %17 : vector<32x128xf32>
    %19 = arith.mulf %13, %18 : vector<32x128xf32>
    %20 = arith.addf %17, %19 : vector<32x128xf32>
    %c1 = arith.constant 1 : index
    %c0_9 = arith.constant 0 : index
    %c0_10 = arith.constant 0 : index
    %21 = vector.load %arg2[%c1, %c0_9, %c0_10] : memref<2x128x384xf32, #tpu.memory_space<vmem>>, vector<1x128x384xf32>
    %22 = vector.shape_cast %21 : vector<1x128x384xf32> to vector<128x384xf32>
    %cst_11 = arith.constant dense<0.000000e+00> : vector<32x384xf32>
    %23 = tpu.matmul %20, %22, %cst_11 {dimension_numbers = #tpu.dot_dimension_numbers<[1], [0], [0], [1], [0, 0, 1, 1], [], []>} : vector<32x128xf32>, vector<128x384xf32>, vector<32x384xf32> -> vector<32x384xf32>
    %c1_12 = arith.constant 1 : index
    %c0_13 = arith.constant 0 : index
    %c0_14 = arith.constant 0 : index
    %24 = vector.load %arg3[%c1_12, %c0_13, %c0_14] : memref<2x1x384xf32, #tpu.memory_space<vmem>>, vector<1x1x384xf32>
    %25 = vector.shape_cast %24 : vector<1x1x384xf32> to vector<1x384xf32>
    %26 = vector.broadcast %25 : vector<1x384xf32> to vector<32x384xf32>
    %27 = arith.addf %23, %26 : vector<32x384xf32>
    %28 = vector.extract_strided_slice %27 {offsets = [0, 0], sizes = [32, 128], strides = [1, 1]} : vector<32x384xf32> to vector<32x128xf32>
    %29 = arith.negf %28 : vector<32x128xf32>
    %30 = math.exp %29 : vector<32x128xf32>
    %cst_15 = arith.constant 1.000000e+00 : f32
    %31 = vector.broadcast %cst_15 : f32 to vector<32x128xf32>
    %32 = arith.addf %31, %30 : vector<32x128xf32>
    %33 = arith.divf %31, %32 : vector<32x128xf32>
    %34 = vector.extract_strided_slice %27 {offsets = [0, 128], sizes = [32, 128], strides = [1, 1]} : vector<32x384xf32> to vector<32x128xf32>
    %cst_16 = arith.constant 0.000000e+00 : f32
    %35 = vector.broadcast %cst_16 : f32 to vector<32x128xf32>
    %36 = arith.maximumf %34, %35 : vector<32x128xf32>
    %37 = vector.extract_strided_slice %27 {offsets = [0, 256], sizes = [32, 128], strides = [1, 1]} : vector<32x384xf32> to vector<32x128xf32>
    %38 = arith.subf %36, %37 : vector<32x128xf32>
    %39 = arith.mulf %33, %38 : vector<32x128xf32>
    %40 = arith.addf %37, %39 : vector<32x128xf32>
    %c0_17 = arith.constant 0 : index
    %c0_18 = arith.constant 0 : index
    %41 = vector.load %arg4[%c0_17, %c0_18] : memref<32x128xf32, #tpu.memory_space<vmem>>, vector<32x128xf32>
    tpu.vector_store %arg4[%c0_17, %c0_18], %40 {strides = array<i32>} : memref<32x128xf32, #tpu.memory_space<vmem>>, vector<32x128xf32>,
    return
  }
  func.func @transform_0(%arg0: i32) -> (i32, i32) {
    %c0_i32 = arith.constant 0 : i32
    %c0_i32_0 = arith.constant 0 : i32
    return %arg0, %c0_i32 : i32, i32
  }
  func.func @transform_1(%arg0: i32) -> (i32, i32, i32) {
    %c0_i32 = arith.constant 0 : i32
    %c0_i32_0 = arith.constant 0 : i32
    %c0_i32_1 = arith.constant 0 : i32
    %c0_i32_2 = arith.constant 0 : i32
    return %c0_i32, %c0_i32_0, %c0_i32_1 : i32, i32, i32
  }
  func.func @transform_2(%arg0: i32) -> (i32, i32, i32) {
    %c0_i32 = arith.constant 0 : i32
    %c0_i32_0 = arith.constant 0 : i32
    %c0_i32_1 = arith.constant 0 : i32
    %c0_i32_2 = arith.constant 0 : i32
    return %c0_i32, %c0_i32_0, %c0_i32_1 : i32, i32, i32
  }
  func.func @transform_3(%arg0: i32) -> (i32, i32) {
    %c0_i32 = arith.constant 0 : i32
    %c0_i32_0 = arith.constant 0 : i32
    return %arg0, %c0_i32 : i32, i32
  }
}

module attributes {stable_mosaic.version = 11 : i64} {
  func.func @bilstm_layer_kernel(%arg0: memref<8x4x128xf32, #tpu.memory_space<vmem>>, %arg1: memref<2x128x512xf32, #tpu.memory_space<vmem>>, %arg2: memref<2x128x512xf32, #tpu.memory_space<vmem>>, %arg3: memref<2x1x512xf32, #tpu.memory_space<vmem>>, %arg4: memref<8x4x128xf32, #tpu.memory_space<vmem>>, %arg5: memref<8x4x128xf32, #tpu.memory_space<vmem>>) attributes {dimension_semantics = [], scalar_prefetch = 0 : i64, scratch_operands = 0 : i64, tpu.core_type = #tpu.core_type<tc>} {
    %c0 = arith.constant 0 : index
    %c0_0 = arith.constant 0 : index
    %c0_1 = arith.constant 0 : index
    %0 = vector.load %arg1[%c0, %c0_0, %c0_1] : memref<2x128x512xf32, #tpu.memory_space<vmem>>, vector<1x128x512xf32>
    %1 = vector.shape_cast %0 : vector<1x128x512xf32> to vector<128x512xf32>
    %c1 = arith.constant 1 : index
    %c0_2 = arith.constant 0 : index
    %c0_3 = arith.constant 0 : index
    %2 = vector.load %arg1[%c1, %c0_2, %c0_3] : memref<2x128x512xf32, #tpu.memory_space<vmem>>, vector<1x128x512xf32>
    %3 = vector.shape_cast %2 : vector<1x128x512xf32> to vector<128x512xf32>
    %c0_4 = arith.constant 0 : index
    %c0_5 = arith.constant 0 : index
    %c0_6 = arith.constant 0 : index
    %4 = vector.load %arg2[%c0_4, %c0_5, %c0_6] : memref<2x128x512xf32, #tpu.memory_space<vmem>>, vector<1x128x512xf32>
    %5 = vector.shape_cast %4 : vector<1x128x512xf32> to vector<128x512xf32>
    %c1_7 = arith.constant 1 : index
    %c0_8 = arith.constant 0 : index
    %c0_9 = arith.constant 0 : index
    %6 = vector.load %arg2[%c1_7, %c0_8, %c0_9] : memref<2x128x512xf32, #tpu.memory_space<vmem>>, vector<1x128x512xf32>
    %7 = vector.shape_cast %6 : vector<1x128x512xf32> to vector<128x512xf32>
    %c0_10 = arith.constant 0 : index
    %c0_11 = arith.constant 0 : index
    %c0_12 = arith.constant 0 : index
    %8 = vector.load %arg3[%c0_10, %c0_11, %c0_12] : memref<2x1x512xf32, #tpu.memory_space<vmem>>, vector<1x1x512xf32>
    %9 = vector.shape_cast %8 : vector<1x1x512xf32> to vector<1x512xf32>
    %c1_13 = arith.constant 1 : index
    %c0_14 = arith.constant 0 : index
    %c0_15 = arith.constant 0 : index
    %10 = vector.load %arg3[%c1_13, %c0_14, %c0_15] : memref<2x1x512xf32, #tpu.memory_space<vmem>>, vector<1x1x512xf32>
    %11 = vector.shape_cast %10 : vector<1x1x512xf32> to vector<1x512xf32>
    %cst = arith.constant 0.000000e+00 : f32
    %12 = vector.broadcast %cst : f32 to vector<4x128xf32>
    %c0_16 = arith.constant 0 : index
    %c0_17 = arith.constant 0 : index
    %c0_18 = arith.constant 0 : index
    %13 = vector.load %arg0[%c0_16, %c0_17, %c0_18] : memref<8x4x128xf32, #tpu.memory_space<vmem>>, vector<1x4x128xf32>
    %14 = vector.shape_cast %13 : vector<1x4x128xf32> to vector<4x128xf32>
    %cst_19 = arith.constant dense<0.000000e+00> : vector<4x512xf32>
    %15 = tpu.matmul %14, %1, %cst_19 {dimension_numbers = #tpu.dot_dimension_numbers<[1], [0], [0], [1], [0, 0, 1, 1], [], []>} : vector<4x128xf32>, vector<128x512xf32>, vector<4x512xf32> -> vector<4x512xf32>
    %cst_20 = arith.constant dense<0.000000e+00> : vector<4x512xf32>
    %16 = tpu.matmul %12, %5, %cst_20 {dimension_numbers = #tpu.dot_dimension_numbers<[1], [0], [0], [1], [0, 0, 1, 1], [], []>} : vector<4x128xf32>, vector<128x512xf32>, vector<4x512xf32> -> vector<4x512xf32>
    %17 = arith.addf %15, %16 : vector<4x512xf32>
    %18 = vector.broadcast %9 : vector<1x512xf32> to vector<4x512xf32>
    %19 = arith.addf %17, %18 : vector<4x512xf32>
    %20 = vector.extract_strided_slice %19 {offsets = [0, 0], sizes = [4, 128], strides = [1, 1]} : vector<4x512xf32> to vector<4x128xf32>
    %21 = arith.negf %20 : vector<4x128xf32>
    %22 = math.exp %21 : vector<4x128xf32>
    %cst_21 = arith.constant 1.000000e+00 : f32
    %23 = vector.broadcast %cst_21 : f32 to vector<4x128xf32>
    %24 = arith.addf %23, %22 : vector<4x128xf32>
    %25 = arith.divf %23, %24 : vector<4x128xf32>
    %26 = vector.extract_strided_slice %19 {offsets = [0, 128], sizes = [4, 128], strides = [1, 1]} : vector<4x512xf32> to vector<4x128xf32>
    %27 = arith.negf %26 : vector<4x128xf32>
    %28 = math.exp %27 : vector<4x128xf32>
    %cst_22 = arith.constant 1.000000e+00 : f32
    %29 = vector.broadcast %cst_22 : f32 to vector<4x128xf32>
    %30 = arith.addf %29, %28 : vector<4x128xf32>
    %31 = arith.divf %29, %30 : vector<4x128xf32>
    %32 = vector.extract_strided_slice %19 {offsets = [0, 256], sizes = [4, 128], strides = [1, 1]} : vector<4x512xf32> to vector<4x128xf32>
    %33 = math.tanh %32 : vector<4x128xf32>
    %34 = vector.extract_strided_slice %19 {offsets = [0, 384], sizes = [4, 128], strides = [1, 1]} : vector<4x512xf32> to vector<4x128xf32>
    %35 = arith.negf %34 : vector<4x128xf32>
    %36 = math.exp %35 : vector<4x128xf32>
    %cst_23 = arith.constant 1.000000e+00 : f32
    %37 = vector.broadcast %cst_23 : f32 to vector<4x128xf32>
    %38 = arith.addf %37, %36 : vector<4x128xf32>
    %39 = arith.divf %37, %38 : vector<4x128xf32>
    %40 = arith.mulf %31, %12 : vector<4x128xf32>
    %41 = arith.mulf %25, %33 : vector<4x128xf32>
    %42 = arith.addf %40, %41 : vector<4x128xf32>
    %43 = math.tanh %42 : vector<4x128xf32>
    %44 = arith.mulf %39, %43 : vector<4x128xf32>
    %c0_24 = arith.constant 0 : index
    %c0_25 = arith.constant 0 : index
    %c0_26 = arith.constant 0 : index
    %45 = vector.load %arg4[%c0_24, %c0_25, %c0_26] : memref<8x4x128xf32, #tpu.memory_space<vmem>>, vector<1x4x128xf32>
    %46 = vector.shape_cast %45 : vector<1x4x128xf32> to vector<4x128xf32>
    %47 = vector.shape_cast %44 : vector<4x128xf32> to vector<1x4x128xf32>
    tpu.vector_store %arg4[%c0_24, %c0_25, %c0_26], %47 {strides = array<i32>} : memref<8x4x128xf32, #tpu.memory_space<vmem>>, vector<1x4x128xf32>,
    %c7 = arith.constant 7 : index
    %c0_27 = arith.constant 0 : index
    %c0_28 = arith.constant 0 : index
    %48 = vector.load %arg0[%c7, %c0_27, %c0_28] : memref<8x4x128xf32, #tpu.memory_space<vmem>>, vector<1x4x128xf32>
    %49 = vector.shape_cast %48 : vector<1x4x128xf32> to vector<4x128xf32>
    %cst_29 = arith.constant dense<0.000000e+00> : vector<4x512xf32>
    %50 = tpu.matmul %49, %3, %cst_29 {dimension_numbers = #tpu.dot_dimension_numbers<[1], [0], [0], [1], [0, 0, 1, 1], [], []>} : vector<4x128xf32>, vector<128x512xf32>, vector<4x512xf32> -> vector<4x512xf32>
    %cst_30 = arith.constant dense<0.000000e+00> : vector<4x512xf32>
    %51 = tpu.matmul %12, %7, %cst_30 {dimension_numbers = #tpu.dot_dimension_numbers<[1], [0], [0], [1], [0, 0, 1, 1], [], []>} : vector<4x128xf32>, vector<128x512xf32>, vector<4x512xf32> -> vector<4x512xf32>
    %52 = arith.addf %50, %51 : vector<4x512xf32>
    %53 = vector.broadcast %11 : vector<1x512xf32> to vector<4x512xf32>
    %54 = arith.addf %52, %53 : vector<4x512xf32>
    %55 = vector.extract_strided_slice %54 {offsets = [0, 0], sizes = [4, 128], strides = [1, 1]} : vector<4x512xf32> to vector<4x128xf32>
    %56 = arith.negf %55 : vector<4x128xf32>
    %57 = math.exp %56 : vector<4x128xf32>
    %cst_31 = arith.constant 1.000000e+00 : f32
    %58 = vector.broadcast %cst_31 : f32 to vector<4x128xf32>
    %59 = arith.addf %58, %57 : vector<4x128xf32>
    %60 = arith.divf %58, %59 : vector<4x128xf32>
    %61 = vector.extract_strided_slice %54 {offsets = [0, 128], sizes = [4, 128], strides = [1, 1]} : vector<4x512xf32> to vector<4x128xf32>
    %62 = arith.negf %61 : vector<4x128xf32>
    %63 = math.exp %62 : vector<4x128xf32>
    %cst_32 = arith.constant 1.000000e+00 : f32
    %64 = vector.broadcast %cst_32 : f32 to vector<4x128xf32>
    %65 = arith.addf %64, %63 : vector<4x128xf32>
    %66 = arith.divf %64, %65 : vector<4x128xf32>
    %67 = vector.extract_strided_slice %54 {offsets = [0, 256], sizes = [4, 128], strides = [1, 1]} : vector<4x512xf32> to vector<4x128xf32>
    %68 = math.tanh %67 : vector<4x128xf32>
    %69 = vector.extract_strided_slice %54 {offsets = [0, 384], sizes = [4, 128], strides = [1, 1]} : vector<4x512xf32> to vector<4x128xf32>
    %70 = arith.negf %69 : vector<4x128xf32>
    %71 = math.exp %70 : vector<4x128xf32>
    %cst_33 = arith.constant 1.000000e+00 : f32
    %72 = vector.broadcast %cst_33 : f32 to vector<4x128xf32>
    %73 = arith.addf %72, %71 : vector<4x128xf32>
    %74 = arith.divf %72, %73 : vector<4x128xf32>
    %75 = arith.mulf %66, %12 : vector<4x128xf32>
    %76 = arith.mulf %60, %68 : vector<4x128xf32>
    %77 = arith.addf %75, %76 : vector<4x128xf32>
    %78 = math.tanh %77 : vector<4x128xf32>
    %79 = arith.mulf %74, %78 : vector<4x128xf32>
    %c7_34 = arith.constant 7 : index
    %c0_35 = arith.constant 0 : index
    %c0_36 = arith.constant 0 : index
    %80 = vector.load %arg5[%c7_34, %c0_35, %c0_36] : memref<8x4x128xf32, #tpu.memory_space<vmem>>, vector<1x4x128xf32>
    %81 = vector.shape_cast %80 : vector<1x4x128xf32> to vector<4x128xf32>
    %82 = vector.shape_cast %79 : vector<4x128xf32> to vector<1x4x128xf32>
    tpu.vector_store %arg5[%c7_34, %c0_35, %c0_36], %82 {strides = array<i32>} : memref<8x4x128xf32, #tpu.memory_space<vmem>>, vector<1x4x128xf32>,
    %c1_37 = arith.constant 1 : index
    %c0_38 = arith.constant 0 : index
    %c0_39 = arith.constant 0 : index
    %83 = vector.load %arg0[%c1_37, %c0_38, %c0_39] : memref<8x4x128xf32, #tpu.memory_space<vmem>>, vector<1x4x128xf32>
    %84 = vector.shape_cast %83 : vector<1x4x128xf32> to vector<4x128xf32>
    %cst_40 = arith.constant dense<0.000000e+00> : vector<4x512xf32>
    %85 = tpu.matmul %84, %1, %cst_40 {dimension_numbers = #tpu.dot_dimension_numbers<[1], [0], [0], [1], [0, 0, 1, 1], [], []>} : vector<4x128xf32>, vector<128x512xf32>, vector<4x512xf32> -> vector<4x512xf32>
    %cst_41 = arith.constant dense<0.000000e+00> : vector<4x512xf32>
    %86 = tpu.matmul %44, %5, %cst_41 {dimension_numbers = #tpu.dot_dimension_numbers<[1], [0], [0], [1], [0, 0, 1, 1], [], []>} : vector<4x128xf32>, vector<128x512xf32>, vector<4x512xf32> -> vector<4x512xf32>
    %87 = arith.addf %85, %86 : vector<4x512xf32>
    %88 = vector.broadcast %9 : vector<1x512xf32> to vector<4x512xf32>
    %89 = arith.addf %87, %88 : vector<4x512xf32>
    %90 = vector.extract_strided_slice %89 {offsets = [0, 0], sizes = [4, 128], strides = [1, 1]} : vector<4x512xf32> to vector<4x128xf32>
    %91 = arith.negf %90 : vector<4x128xf32>
    %92 = math.exp %91 : vector<4x128xf32>
    %cst_42 = arith.constant 1.000000e+00 : f32
    %93 = vector.broadcast %cst_42 : f32 to vector<4x128xf32>
    %94 = arith.addf %93, %92 : vector<4x128xf32>
    %95 = arith.divf %93, %94 : vector<4x128xf32>
    %96 = vector.extract_strided_slice %89 {offsets = [0, 128], sizes = [4, 128], strides = [1, 1]} : vector<4x512xf32> to vector<4x128xf32>
    %97 = arith.negf %96 : vector<4x128xf32>
    %98 = math.exp %97 : vector<4x128xf32>
    %cst_43 = arith.constant 1.000000e+00 : f32
    %99 = vector.broadcast %cst_43 : f32 to vector<4x128xf32>
    %100 = arith.addf %99, %98 : vector<4x128xf32>
    %101 = arith.divf %99, %100 : vector<4x128xf32>
    %102 = vector.extract_strided_slice %89 {offsets = [0, 256], sizes = [4, 128], strides = [1, 1]} : vector<4x512xf32> to vector<4x128xf32>
    %103 = math.tanh %102 : vector<4x128xf32>
    %104 = vector.extract_strided_slice %89 {offsets = [0, 384], sizes = [4, 128], strides = [1, 1]} : vector<4x512xf32> to vector<4x128xf32>
    %105 = arith.negf %104 : vector<4x128xf32>
    %106 = math.exp %105 : vector<4x128xf32>
    %cst_44 = arith.constant 1.000000e+00 : f32
    %107 = vector.broadcast %cst_44 : f32 to vector<4x128xf32>
    %108 = arith.addf %107, %106 : vector<4x128xf32>
    %109 = arith.divf %107, %108 : vector<4x128xf32>
    %110 = arith.mulf %101, %42 : vector<4x128xf32>
    %111 = arith.mulf %95, %103 : vector<4x128xf32>
    %112 = arith.addf %110, %111 : vector<4x128xf32>
    %113 = math.tanh %112 : vector<4x128xf32>
    %114 = arith.mulf %109, %113 : vector<4x128xf32>
    %c1_45 = arith.constant 1 : index
    %c0_46 = arith.constant 0 : index
    %c0_47 = arith.constant 0 : index
    %115 = vector.load %arg4[%c1_45, %c0_46, %c0_47] : memref<8x4x128xf32, #tpu.memory_space<vmem>>, vector<1x4x128xf32>
    %116 = vector.shape_cast %115 : vector<1x4x128xf32> to vector<4x128xf32>
    %117 = vector.shape_cast %114 : vector<4x128xf32> to vector<1x4x128xf32>
    tpu.vector_store %arg4[%c1_45, %c0_46, %c0_47], %117 {strides = array<i32>} : memref<8x4x128xf32, #tpu.memory_space<vmem>>, vector<1x4x128xf32>,
    %c6 = arith.constant 6 : index
    %c0_48 = arith.constant 0 : index
    %c0_49 = arith.constant 0 : index
    %118 = vector.load %arg0[%c6, %c0_48, %c0_49] : memref<8x4x128xf32, #tpu.memory_space<vmem>>, vector<1x4x128xf32>
    %119 = vector.shape_cast %118 : vector<1x4x128xf32> to vector<4x128xf32>
    %cst_50 = arith.constant dense<0.000000e+00> : vector<4x512xf32>
    %120 = tpu.matmul %119, %3, %cst_50 {dimension_numbers = #tpu.dot_dimension_numbers<[1], [0], [0], [1], [0, 0, 1, 1], [], []>} : vector<4x128xf32>, vector<128x512xf32>, vector<4x512xf32> -> vector<4x512xf32>
    %cst_51 = arith.constant dense<0.000000e+00> : vector<4x512xf32>
    %121 = tpu.matmul %79, %7, %cst_51 {dimension_numbers = #tpu.dot_dimension_numbers<[1], [0], [0], [1], [0, 0, 1, 1], [], []>} : vector<4x128xf32>, vector<128x512xf32>, vector<4x512xf32> -> vector<4x512xf32>
    %122 = arith.addf %120, %121 : vector<4x512xf32>
    %123 = vector.broadcast %11 : vector<1x512xf32> to vector<4x512xf32>
    %124 = arith.addf %122, %123 : vector<4x512xf32>
    %125 = vector.extract_strided_slice %124 {offsets = [0, 0], sizes = [4, 128], strides = [1, 1]} : vector<4x512xf32> to vector<4x128xf32>
    %126 = arith.negf %125 : vector<4x128xf32>
    %127 = math.exp %126 : vector<4x128xf32>
    %cst_52 = arith.constant 1.000000e+00 : f32
    %128 = vector.broadcast %cst_52 : f32 to vector<4x128xf32>
    %129 = arith.addf %128, %127 : vector<4x128xf32>
    %130 = arith.divf %128, %129 : vector<4x128xf32>
    %131 = vector.extract_strided_slice %124 {offsets = [0, 128], sizes = [4, 128], strides = [1, 1]} : vector<4x512xf32> to vector<4x128xf32>
    %132 = arith.negf %131 : vector<4x128xf32>
    %133 = math.exp %132 : vector<4x128xf32>
    %cst_53 = arith.constant 1.000000e+00 : f32
    %134 = vector.broadcast %cst_53 : f32 to vector<4x128xf32>
    %135 = arith.addf %134, %133 : vector<4x128xf32>
    %136 = arith.divf %134, %135 : vector<4x128xf32>
    %137 = vector.extract_strided_slice %124 {offsets = [0, 256], sizes = [4, 128], strides = [1, 1]} : vector<4x512xf32> to vector<4x128xf32>
    %138 = math.tanh %137 : vector<4x128xf32>
    %139 = vector.extract_strided_slice %124 {offsets = [0, 384], sizes = [4, 128], strides = [1, 1]} : vector<4x512xf32> to vector<4x128xf32>
    %140 = arith.negf %139 : vector<4x128xf32>
    %141 = math.exp %140 : vector<4x128xf32>
    %cst_54 = arith.constant 1.000000e+00 : f32
    %142 = vector.broadcast %cst_54 : f32 to vector<4x128xf32>
    %143 = arith.addf %142, %141 : vector<4x128xf32>
    %144 = arith.divf %142, %143 : vector<4x128xf32>
    %145 = arith.mulf %136, %77 : vector<4x128xf32>
    %146 = arith.mulf %130, %138 : vector<4x128xf32>
    %147 = arith.addf %145, %146 : vector<4x128xf32>
    %148 = math.tanh %147 : vector<4x128xf32>
    %149 = arith.mulf %144, %148 : vector<4x128xf32>
    %c6_55 = arith.constant 6 : index
    %c0_56 = arith.constant 0 : index
    %c0_57 = arith.constant 0 : index
    %150 = vector.load %arg5[%c6_55, %c0_56, %c0_57] : memref<8x4x128xf32, #tpu.memory_space<vmem>>, vector<1x4x128xf32>
    %151 = vector.shape_cast %150 : vector<1x4x128xf32> to vector<4x128xf32>
    %152 = vector.shape_cast %149 : vector<4x128xf32> to vector<1x4x128xf32>
    tpu.vector_store %arg5[%c6_55, %c0_56, %c0_57], %152 {strides = array<i32>} : memref<8x4x128xf32, #tpu.memory_space<vmem>>, vector<1x4x128xf32>,
    %c2 = arith.constant 2 : index
    %c0_58 = arith.constant 0 : index
    %c0_59 = arith.constant 0 : index
    %153 = vector.load %arg0[%c2, %c0_58, %c0_59] : memref<8x4x128xf32, #tpu.memory_space<vmem>>, vector<1x4x128xf32>
    %154 = vector.shape_cast %153 : vector<1x4x128xf32> to vector<4x128xf32>
    %cst_60 = arith.constant dense<0.000000e+00> : vector<4x512xf32>
    %155 = tpu.matmul %154, %1, %cst_60 {dimension_numbers = #tpu.dot_dimension_numbers<[1], [0], [0], [1], [0, 0, 1, 1], [], []>} : vector<4x128xf32>, vector<128x512xf32>, vector<4x512xf32> -> vector<4x512xf32>
    %cst_61 = arith.constant dense<0.000000e+00> : vector<4x512xf32>
    %156 = tpu.matmul %114, %5, %cst_61 {dimension_numbers = #tpu.dot_dimension_numbers<[1], [0], [0], [1], [0, 0, 1, 1], [], []>} : vector<4x128xf32>, vector<128x512xf32>, vector<4x512xf32> -> vector<4x512xf32>
    %157 = arith.addf %155, %156 : vector<4x512xf32>
    %158 = vector.broadcast %9 : vector<1x512xf32> to vector<4x512xf32>
    %159 = arith.addf %157, %158 : vector<4x512xf32>
    %160 = vector.extract_strided_slice %159 {offsets = [0, 0], sizes = [4, 128], strides = [1, 1]} : vector<4x512xf32> to vector<4x128xf32>
    %161 = arith.negf %160 : vector<4x128xf32>
    %162 = math.exp %161 : vector<4x128xf32>
    %cst_62 = arith.constant 1.000000e+00 : f32
    %163 = vector.broadcast %cst_62 : f32 to vector<4x128xf32>
    %164 = arith.addf %163, %162 : vector<4x128xf32>
    %165 = arith.divf %163, %164 : vector<4x128xf32>
    %166 = vector.extract_strided_slice %159 {offsets = [0, 128], sizes = [4, 128], strides = [1, 1]} : vector<4x512xf32> to vector<4x128xf32>
    %167 = arith.negf %166 : vector<4x128xf32>
    %168 = math.exp %167 : vector<4x128xf32>
    %cst_63 = arith.constant 1.000000e+00 : f32
    %169 = vector.broadcast %cst_63 : f32 to vector<4x128xf32>
    %170 = arith.addf %169, %168 : vector<4x128xf32>
    %171 = arith.divf %169, %170 : vector<4x128xf32>
    %172 = vector.extract_strided_slice %159 {offsets = [0, 256], sizes = [4, 128], strides = [1, 1]} : vector<4x512xf32> to vector<4x128xf32>
    %173 = math.tanh %172 : vector<4x128xf32>
    %174 = vector.extract_strided_slice %159 {offsets = [0, 384], sizes = [4, 128], strides = [1, 1]} : vector<4x512xf32> to vector<4x128xf32>
    %175 = arith.negf %174 : vector<4x128xf32>
    %176 = math.exp %175 : vector<4x128xf32>
    %cst_64 = arith.constant 1.000000e+00 : f32
    %177 = vector.broadcast %cst_64 : f32 to vector<4x128xf32>
    %178 = arith.addf %177, %176 : vector<4x128xf32>
    %179 = arith.divf %177, %178 : vector<4x128xf32>
    %180 = arith.mulf %171, %112 : vector<4x128xf32>
    %181 = arith.mulf %165, %173 : vector<4x128xf32>
    %182 = arith.addf %180, %181 : vector<4x128xf32>
    %183 = math.tanh %182 : vector<4x128xf32>
    %184 = arith.mulf %179, %183 : vector<4x128xf32>
    %c2_65 = arith.constant 2 : index
    %c0_66 = arith.constant 0 : index
    %c0_67 = arith.constant 0 : index
    %185 = vector.load %arg4[%c2_65, %c0_66, %c0_67] : memref<8x4x128xf32, #tpu.memory_space<vmem>>, vector<1x4x128xf32>
    %186 = vector.shape_cast %185 : vector<1x4x128xf32> to vector<4x128xf32>
    %187 = vector.shape_cast %184 : vector<4x128xf32> to vector<1x4x128xf32>
    tpu.vector_store %arg4[%c2_65, %c0_66, %c0_67], %187 {strides = array<i32>} : memref<8x4x128xf32, #tpu.memory_space<vmem>>, vector<1x4x128xf32>,
    %c5 = arith.constant 5 : index
    %c0_68 = arith.constant 0 : index
    %c0_69 = arith.constant 0 : index
    %188 = vector.load %arg0[%c5, %c0_68, %c0_69] : memref<8x4x128xf32, #tpu.memory_space<vmem>>, vector<1x4x128xf32>
    %189 = vector.shape_cast %188 : vector<1x4x128xf32> to vector<4x128xf32>
    %cst_70 = arith.constant dense<0.000000e+00> : vector<4x512xf32>
    %190 = tpu.matmul %189, %3, %cst_70 {dimension_numbers = #tpu.dot_dimension_numbers<[1], [0], [0], [1], [0, 0, 1, 1], [], []>} : vector<4x128xf32>, vector<128x512xf32>, vector<4x512xf32> -> vector<4x512xf32>
    %cst_71 = arith.constant dense<0.000000e+00> : vector<4x512xf32>
    %191 = tpu.matmul %149, %7, %cst_71 {dimension_numbers = #tpu.dot_dimension_numbers<[1], [0], [0], [1], [0, 0, 1, 1], [], []>} : vector<4x128xf32>, vector<128x512xf32>, vector<4x512xf32> -> vector<4x512xf32>
    %192 = arith.addf %190, %191 : vector<4x512xf32>
    %193 = vector.broadcast %11 : vector<1x512xf32> to vector<4x512xf32>
    %194 = arith.addf %192, %193 : vector<4x512xf32>
    %195 = vector.extract_strided_slice %194 {offsets = [0, 0], sizes = [4, 128], strides = [1, 1]} : vector<4x512xf32> to vector<4x128xf32>
    %196 = arith.negf %195 : vector<4x128xf32>
    %197 = math.exp %196 : vector<4x128xf32>
    %cst_72 = arith.constant 1.000000e+00 : f32
    %198 = vector.broadcast %cst_72 : f32 to vector<4x128xf32>
    %199 = arith.addf %198, %197 : vector<4x128xf32>
    %200 = arith.divf %198, %199 : vector<4x128xf32>
    %201 = vector.extract_strided_slice %194 {offsets = [0, 128], sizes = [4, 128], strides = [1, 1]} : vector<4x512xf32> to vector<4x128xf32>
    %202 = arith.negf %201 : vector<4x128xf32>
    %203 = math.exp %202 : vector<4x128xf32>
    %cst_73 = arith.constant 1.000000e+00 : f32
    %204 = vector.broadcast %cst_73 : f32 to vector<4x128xf32>
    %205 = arith.addf %204, %203 : vector<4x128xf32>
    %206 = arith.divf %204, %205 : vector<4x128xf32>
    %207 = vector.extract_strided_slice %194 {offsets = [0, 256], sizes = [4, 128], strides = [1, 1]} : vector<4x512xf32> to vector<4x128xf32>
    %208 = math.tanh %207 : vector<4x128xf32>
    %209 = vector.extract_strided_slice %194 {offsets = [0, 384], sizes = [4, 128], strides = [1, 1]} : vector<4x512xf32> to vector<4x128xf32>
    %210 = arith.negf %209 : vector<4x128xf32>
    %211 = math.exp %210 : vector<4x128xf32>
    %cst_74 = arith.constant 1.000000e+00 : f32
    %212 = vector.broadcast %cst_74 : f32 to vector<4x128xf32>
    %213 = arith.addf %212, %211 : vector<4x128xf32>
    %214 = arith.divf %212, %213 : vector<4x128xf32>
    %215 = arith.mulf %206, %147 : vector<4x128xf32>
    %216 = arith.mulf %200, %208 : vector<4x128xf32>
    %217 = arith.addf %215, %216 : vector<4x128xf32>
    %218 = math.tanh %217 : vector<4x128xf32>
    %219 = arith.mulf %214, %218 : vector<4x128xf32>
    %c5_75 = arith.constant 5 : index
    %c0_76 = arith.constant 0 : index
    %c0_77 = arith.constant 0 : index
    %220 = vector.load %arg5[%c5_75, %c0_76, %c0_77] : memref<8x4x128xf32, #tpu.memory_space<vmem>>, vector<1x4x128xf32>
    %221 = vector.shape_cast %220 : vector<1x4x128xf32> to vector<4x128xf32>
    %222 = vector.shape_cast %219 : vector<4x128xf32> to vector<1x4x128xf32>
    tpu.vector_store %arg5[%c5_75, %c0_76, %c0_77], %222 {strides = array<i32>} : memref<8x4x128xf32, #tpu.memory_space<vmem>>, vector<1x4x128xf32>,
    %c3 = arith.constant 3 : index
    %c0_78 = arith.constant 0 : index
    %c0_79 = arith.constant 0 : index
    %223 = vector.load %arg0[%c3, %c0_78, %c0_79] : memref<8x4x128xf32, #tpu.memory_space<vmem>>, vector<1x4x128xf32>
    %224 = vector.shape_cast %223 : vector<1x4x128xf32> to vector<4x128xf32>
    %cst_80 = arith.constant dense<0.000000e+00> : vector<4x512xf32>
    %225 = tpu.matmul %224, %1, %cst_80 {dimension_numbers = #tpu.dot_dimension_numbers<[1], [0], [0], [1], [0, 0, 1, 1], [], []>} : vector<4x128xf32>, vector<128x512xf32>, vector<4x512xf32> -> vector<4x512xf32>
    %cst_81 = arith.constant dense<0.000000e+00> : vector<4x512xf32>
    %226 = tpu.matmul %184, %5, %cst_81 {dimension_numbers = #tpu.dot_dimension_numbers<[1], [0], [0], [1], [0, 0, 1, 1], [], []>} : vector<4x128xf32>, vector<128x512xf32>, vector<4x512xf32> -> vector<4x512xf32>
    %227 = arith.addf %225, %226 : vector<4x512xf32>
    %228 = vector.broadcast %9 : vector<1x512xf32> to vector<4x512xf32>
    %229 = arith.addf %227, %228 : vector<4x512xf32>
    %230 = vector.extract_strided_slice %229 {offsets = [0, 0], sizes = [4, 128], strides = [1, 1]} : vector<4x512xf32> to vector<4x128xf32>
    %231 = arith.negf %230 : vector<4x128xf32>
    %232 = math.exp %231 : vector<4x128xf32>
    %cst_82 = arith.constant 1.000000e+00 : f32
    %233 = vector.broadcast %cst_82 : f32 to vector<4x128xf32>
    %234 = arith.addf %233, %232 : vector<4x128xf32>
    %235 = arith.divf %233, %234 : vector<4x128xf32>
    %236 = vector.extract_strided_slice %229 {offsets = [0, 128], sizes = [4, 128], strides = [1, 1]} : vector<4x512xf32> to vector<4x128xf32>
    %237 = arith.negf %236 : vector<4x128xf32>
    %238 = math.exp %237 : vector<4x128xf32>
    %cst_83 = arith.constant 1.000000e+00 : f32
    %239 = vector.broadcast %cst_83 : f32 to vector<4x128xf32>
    %240 = arith.addf %239, %238 : vector<4x128xf32>
    %241 = arith.divf %239, %240 : vector<4x128xf32>
    %242 = vector.extract_strided_slice %229 {offsets = [0, 256], sizes = [4, 128], strides = [1, 1]} : vector<4x512xf32> to vector<4x128xf32>
    %243 = math.tanh %242 : vector<4x128xf32>
    %244 = vector.extract_strided_slice %229 {offsets = [0, 384], sizes = [4, 128], strides = [1, 1]} : vector<4x512xf32> to vector<4x128xf32>
    %245 = arith.negf %244 : vector<4x128xf32>
    %246 = math.exp %245 : vector<4x128xf32>
    %cst_84 = arith.constant 1.000000e+00 : f32
    %247 = vector.broadcast %cst_84 : f32 to vector<4x128xf32>
    %248 = arith.addf %247, %246 : vector<4x128xf32>
    %249 = arith.divf %247, %248 : vector<4x128xf32>
    %250 = arith.mulf %241, %182 : vector<4x128xf32>
    %251 = arith.mulf %235, %243 : vector<4x128xf32>
    %252 = arith.addf %250, %251 : vector<4x128xf32>
    %253 = math.tanh %252 : vector<4x128xf32>
    %254 = arith.mulf %249, %253 : vector<4x128xf32>
    %c3_85 = arith.constant 3 : index
    %c0_86 = arith.constant 0 : index
    %c0_87 = arith.constant 0 : index
    %255 = vector.load %arg4[%c3_85, %c0_86, %c0_87] : memref<8x4x128xf32, #tpu.memory_space<vmem>>, vector<1x4x128xf32>
    %256 = vector.shape_cast %255 : vector<1x4x128xf32> to vector<4x128xf32>
    %257 = vector.shape_cast %254 : vector<4x128xf32> to vector<1x4x128xf32>
    tpu.vector_store %arg4[%c3_85, %c0_86, %c0_87], %257 {strides = array<i32>} : memref<8x4x128xf32, #tpu.memory_space<vmem>>, vector<1x4x128xf32>,
    %c4 = arith.constant 4 : index
    %c0_88 = arith.constant 0 : index
    %c0_89 = arith.constant 0 : index
    %258 = vector.load %arg0[%c4, %c0_88, %c0_89] : memref<8x4x128xf32, #tpu.memory_space<vmem>>, vector<1x4x128xf32>
    %259 = vector.shape_cast %258 : vector<1x4x128xf32> to vector<4x128xf32>
    %cst_90 = arith.constant dense<0.000000e+00> : vector<4x512xf32>
    %260 = tpu.matmul %259, %3, %cst_90 {dimension_numbers = #tpu.dot_dimension_numbers<[1], [0], [0], [1], [0, 0, 1, 1], [], []>} : vector<4x128xf32>, vector<128x512xf32>, vector<4x512xf32> -> vector<4x512xf32>
    %cst_91 = arith.constant dense<0.000000e+00> : vector<4x512xf32>
    %261 = tpu.matmul %219, %7, %cst_91 {dimension_numbers = #tpu.dot_dimension_numbers<[1], [0], [0], [1], [0, 0, 1, 1], [], []>} : vector<4x128xf32>, vector<128x512xf32>, vector<4x512xf32> -> vector<4x512xf32>
    %262 = arith.addf %260, %261 : vector<4x512xf32>
    %263 = vector.broadcast %11 : vector<1x512xf32> to vector<4x512xf32>
    %264 = arith.addf %262, %263 : vector<4x512xf32>
    %265 = vector.extract_strided_slice %264 {offsets = [0, 0], sizes = [4, 128], strides = [1, 1]} : vector<4x512xf32> to vector<4x128xf32>
    %266 = arith.negf %265 : vector<4x128xf32>
    %267 = math.exp %266 : vector<4x128xf32>
    %cst_92 = arith.constant 1.000000e+00 : f32
    %268 = vector.broadcast %cst_92 : f32 to vector<4x128xf32>
    %269 = arith.addf %268, %267 : vector<4x128xf32>
    %270 = arith.divf %268, %269 : vector<4x128xf32>
    %271 = vector.extract_strided_slice %264 {offsets = [0, 128], sizes = [4, 128], strides = [1, 1]} : vector<4x512xf32> to vector<4x128xf32>
    %272 = arith.negf %271 : vector<4x128xf32>
    %273 = math.exp %272 : vector<4x128xf32>
    %cst_93 = arith.constant 1.000000e+00 : f32
    %274 = vector.broadcast %cst_93 : f32 to vector<4x128xf32>
    %275 = arith.addf %274, %273 : vector<4x128xf32>
    %276 = arith.divf %274, %275 : vector<4x128xf32>
    %277 = vector.extract_strided_slice %264 {offsets = [0, 256], sizes = [4, 128], strides = [1, 1]} : vector<4x512xf32> to vector<4x128xf32>
    %278 = math.tanh %277 : vector<4x128xf32>
    %279 = vector.extract_strided_slice %264 {offsets = [0, 384], sizes = [4, 128], strides = [1, 1]} : vector<4x512xf32> to vector<4x128xf32>
    %280 = arith.negf %279 : vector<4x128xf32>
    %281 = math.exp %280 : vector<4x128xf32>
    %cst_94 = arith.constant 1.000000e+00 : f32
    %282 = vector.broadcast %cst_94 : f32 to vector<4x128xf32>
    %283 = arith.addf %282, %281 : vector<4x128xf32>
    %284 = arith.divf %282, %283 : vector<4x128xf32>
    %285 = arith.mulf %276, %217 : vector<4x128xf32>
    %286 = arith.mulf %270, %278 : vector<4x128xf32>
    %287 = arith.addf %285, %286 : vector<4x128xf32>
    %288 = math.tanh %287 : vector<4x128xf32>
    %289 = arith.mulf %284, %288 : vector<4x128xf32>
    %c4_95 = arith.constant 4 : index
    %c0_96 = arith.constant 0 : index
    %c0_97 = arith.constant 0 : index
    %290 = vector.load %arg5[%c4_95, %c0_96, %c0_97] : memref<8x4x128xf32, #tpu.memory_space<vmem>>, vector<1x4x128xf32>
    %291 = vector.shape_cast %290 : vector<1x4x128xf32> to vector<4x128xf32>
    %292 = vector.shape_cast %289 : vector<4x128xf32> to vector<1x4x128xf32>
    tpu.vector_store %arg5[%c4_95, %c0_96, %c0_97], %292 {strides = array<i32>} : memref<8x4x128xf32, #tpu.memory_space<vmem>>, vector<1x4x128xf32>,
    %c4_98 = arith.constant 4 : index
    %c0_99 = arith.constant 0 : index
    %c0_100 = arith.constant 0 : index
    %293 = vector.load %arg0[%c4_98, %c0_99, %c0_100] : memref<8x4x128xf32, #tpu.memory_space<vmem>>, vector<1x4x128xf32>
    %294 = vector.shape_cast %293 : vector<1x4x128xf32> to vector<4x128xf32>
    %cst_101 = arith.constant dense<0.000000e+00> : vector<4x512xf32>
    %295 = tpu.matmul %294, %1, %cst_101 {dimension_numbers = #tpu.dot_dimension_numbers<[1], [0], [0], [1], [0, 0, 1, 1], [], []>} : vector<4x128xf32>, vector<128x512xf32>, vector<4x512xf32> -> vector<4x512xf32>
    %cst_102 = arith.constant dense<0.000000e+00> : vector<4x512xf32>
    %296 = tpu.matmul %254, %5, %cst_102 {dimension_numbers = #tpu.dot_dimension_numbers<[1], [0], [0], [1], [0, 0, 1, 1], [], []>} : vector<4x128xf32>, vector<128x512xf32>, vector<4x512xf32> -> vector<4x512xf32>
    %297 = arith.addf %295, %296 : vector<4x512xf32>
    %298 = vector.broadcast %9 : vector<1x512xf32> to vector<4x512xf32>
    %299 = arith.addf %297, %298 : vector<4x512xf32>
    %300 = vector.extract_strided_slice %299 {offsets = [0, 0], sizes = [4, 128], strides = [1, 1]} : vector<4x512xf32> to vector<4x128xf32>
    %301 = arith.negf %300 : vector<4x128xf32>
    %302 = math.exp %301 : vector<4x128xf32>
    %cst_103 = arith.constant 1.000000e+00 : f32
    %303 = vector.broadcast %cst_103 : f32 to vector<4x128xf32>
    %304 = arith.addf %303, %302 : vector<4x128xf32>
    %305 = arith.divf %303, %304 : vector<4x128xf32>
    %306 = vector.extract_strided_slice %299 {offsets = [0, 128], sizes = [4, 128], strides = [1, 1]} : vector<4x512xf32> to vector<4x128xf32>
    %307 = arith.negf %306 : vector<4x128xf32>
    %308 = math.exp %307 : vector<4x128xf32>
    %cst_104 = arith.constant 1.000000e+00 : f32
    %309 = vector.broadcast %cst_104 : f32 to vector<4x128xf32>
    %310 = arith.addf %309, %308 : vector<4x128xf32>
    %311 = arith.divf %309, %310 : vector<4x128xf32>
    %312 = vector.extract_strided_slice %299 {offsets = [0, 256], sizes = [4, 128], strides = [1, 1]} : vector<4x512xf32> to vector<4x128xf32>
    %313 = math.tanh %312 : vector<4x128xf32>
    %314 = vector.extract_strided_slice %299 {offsets = [0, 384], sizes = [4, 128], strides = [1, 1]} : vector<4x512xf32> to vector<4x128xf32>
    %315 = arith.negf %314 : vector<4x128xf32>
    %316 = math.exp %315 : vector<4x128xf32>
    %cst_105 = arith.constant 1.000000e+00 : f32
    %317 = vector.broadcast %cst_105 : f32 to vector<4x128xf32>
    %318 = arith.addf %317, %316 : vector<4x128xf32>
    %319 = arith.divf %317, %318 : vector<4x128xf32>
    %320 = arith.mulf %311, %252 : vector<4x128xf32>
    %321 = arith.mulf %305, %313 : vector<4x128xf32>
    %322 = arith.addf %320, %321 : vector<4x128xf32>
    %323 = math.tanh %322 : vector<4x128xf32>
    %324 = arith.mulf %319, %323 : vector<4x128xf32>
    %c4_106 = arith.constant 4 : index
    %c0_107 = arith.constant 0 : index
    %c0_108 = arith.constant 0 : index
    %325 = vector.load %arg4[%c4_106, %c0_107, %c0_108] : memref<8x4x128xf32, #tpu.memory_space<vmem>>, vector<1x4x128xf32>
    %326 = vector.shape_cast %325 : vector<1x4x128xf32> to vector<4x128xf32>
    %327 = vector.shape_cast %324 : vector<4x128xf32> to vector<1x4x128xf32>
    tpu.vector_store %arg4[%c4_106, %c0_107, %c0_108], %327 {strides = array<i32>} : memref<8x4x128xf32, #tpu.memory_space<vmem>>, vector<1x4x128xf32>,
    %c3_109 = arith.constant 3 : index
    %c0_110 = arith.constant 0 : index
    %c0_111 = arith.constant 0 : index
    %328 = vector.load %arg0[%c3_109, %c0_110, %c0_111] : memref<8x4x128xf32, #tpu.memory_space<vmem>>, vector<1x4x128xf32>
    %329 = vector.shape_cast %328 : vector<1x4x128xf32> to vector<4x128xf32>
    %cst_112 = arith.constant dense<0.000000e+00> : vector<4x512xf32>
    %330 = tpu.matmul %329, %3, %cst_112 {dimension_numbers = #tpu.dot_dimension_numbers<[1], [0], [0], [1], [0, 0, 1, 1], [], []>} : vector<4x128xf32>, vector<128x512xf32>, vector<4x512xf32> -> vector<4x512xf32>
    %cst_113 = arith.constant dense<0.000000e+00> : vector<4x512xf32>
    %331 = tpu.matmul %289, %7, %cst_113 {dimension_numbers = #tpu.dot_dimension_numbers<[1], [0], [0], [1], [0, 0, 1, 1], [], []>} : vector<4x128xf32>, vector<128x512xf32>, vector<4x512xf32> -> vector<4x512xf32>
    %332 = arith.addf %330, %331 : vector<4x512xf32>
    %333 = vector.broadcast %11 : vector<1x512xf32> to vector<4x512xf32>
    %334 = arith.addf %332, %333 : vector<4x512xf32>
    %335 = vector.extract_strided_slice %334 {offsets = [0, 0], sizes = [4, 128], strides = [1, 1]} : vector<4x512xf32> to vector<4x128xf32>
    %336 = arith.negf %335 : vector<4x128xf32>
    %337 = math.exp %336 : vector<4x128xf32>
    %cst_114 = arith.constant 1.000000e+00 : f32
    %338 = vector.broadcast %cst_114 : f32 to vector<4x128xf32>
    %339 = arith.addf %338, %337 : vector<4x128xf32>
    %340 = arith.divf %338, %339 : vector<4x128xf32>
    %341 = vector.extract_strided_slice %334 {offsets = [0, 128], sizes = [4, 128], strides = [1, 1]} : vector<4x512xf32> to vector<4x128xf32>
    %342 = arith.negf %341 : vector<4x128xf32>
    %343 = math.exp %342 : vector<4x128xf32>
    %cst_115 = arith.constant 1.000000e+00 : f32
    %344 = vector.broadcast %cst_115 : f32 to vector<4x128xf32>
    %345 = arith.addf %344, %343 : vector<4x128xf32>
    %346 = arith.divf %344, %345 : vector<4x128xf32>
    %347 = vector.extract_strided_slice %334 {offsets = [0, 256], sizes = [4, 128], strides = [1, 1]} : vector<4x512xf32> to vector<4x128xf32>
    %348 = math.tanh %347 : vector<4x128xf32>
    %349 = vector.extract_strided_slice %334 {offsets = [0, 384], sizes = [4, 128], strides = [1, 1]} : vector<4x512xf32> to vector<4x128xf32>
    %350 = arith.negf %349 : vector<4x128xf32>
    %351 = math.exp %350 : vector<4x128xf32>
    %cst_116 = arith.constant 1.000000e+00 : f32
    %352 = vector.broadcast %cst_116 : f32 to vector<4x128xf32>
    %353 = arith.addf %352, %351 : vector<4x128xf32>
    %354 = arith.divf %352, %353 : vector<4x128xf32>
    %355 = arith.mulf %346, %287 : vector<4x128xf32>
    %356 = arith.mulf %340, %348 : vector<4x128xf32>
    %357 = arith.addf %355, %356 : vector<4x128xf32>
    %358 = math.tanh %357 : vector<4x128xf32>
    %359 = arith.mulf %354, %358 : vector<4x128xf32>
    %c3_117 = arith.constant 3 : index
    %c0_118 = arith.constant 0 : index
    %c0_119 = arith.constant 0 : index
    %360 = vector.load %arg5[%c3_117, %c0_118, %c0_119] : memref<8x4x128xf32, #tpu.memory_space<vmem>>, vector<1x4x128xf32>
    %361 = vector.shape_cast %360 : vector<1x4x128xf32> to vector<4x128xf32>
    %362 = vector.shape_cast %359 : vector<4x128xf32> to vector<1x4x128xf32>
    tpu.vector_store %arg5[%c3_117, %c0_118, %c0_119], %362 {strides = array<i32>} : memref<8x4x128xf32, #tpu.memory_space<vmem>>, vector<1x4x128xf32>,
    %c5_120 = arith.constant 5 : index
    %c0_121 = arith.constant 0 : index
    %c0_122 = arith.constant 0 : index
    %363 = vector.load %arg0[%c5_120, %c0_121, %c0_122] : memref<8x4x128xf32, #tpu.memory_space<vmem>>, vector<1x4x128xf32>
    %364 = vector.shape_cast %363 : vector<1x4x128xf32> to vector<4x128xf32>
    %cst_123 = arith.constant dense<0.000000e+00> : vector<4x512xf32>
    %365 = tpu.matmul %364, %1, %cst_123 {dimension_numbers = #tpu.dot_dimension_numbers<[1], [0], [0], [1], [0, 0, 1, 1], [], []>} : vector<4x128xf32>, vector<128x512xf32>, vector<4x512xf32> -> vector<4x512xf32>
    %cst_124 = arith.constant dense<0.000000e+00> : vector<4x512xf32>
    %366 = tpu.matmul %324, %5, %cst_124 {dimension_numbers = #tpu.dot_dimension_numbers<[1], [0], [0], [1], [0, 0, 1, 1], [], []>} : vector<4x128xf32>, vector<128x512xf32>, vector<4x512xf32> -> vector<4x512xf32>
    %367 = arith.addf %365, %366 : vector<4x512xf32>
    %368 = vector.broadcast %9 : vector<1x512xf32> to vector<4x512xf32>
    %369 = arith.addf %367, %368 : vector<4x512xf32>
    %370 = vector.extract_strided_slice %369 {offsets = [0, 0], sizes = [4, 128], strides = [1, 1]} : vector<4x512xf32> to vector<4x128xf32>
    %371 = arith.negf %370 : vector<4x128xf32>
    %372 = math.exp %371 : vector<4x128xf32>
    %cst_125 = arith.constant 1.000000e+00 : f32
    %373 = vector.broadcast %cst_125 : f32 to vector<4x128xf32>
    %374 = arith.addf %373, %372 : vector<4x128xf32>
    %375 = arith.divf %373, %374 : vector<4x128xf32>
    %376 = vector.extract_strided_slice %369 {offsets = [0, 128], sizes = [4, 128], strides = [1, 1]} : vector<4x512xf32> to vector<4x128xf32>
    %377 = arith.negf %376 : vector<4x128xf32>
    %378 = math.exp %377 : vector<4x128xf32>
    %cst_126 = arith.constant 1.000000e+00 : f32
    %379 = vector.broadcast %cst_126 : f32 to vector<4x128xf32>
    %380 = arith.addf %379, %378 : vector<4x128xf32>
    %381 = arith.divf %379, %380 : vector<4x128xf32>
    %382 = vector.extract_strided_slice %369 {offsets = [0, 256], sizes = [4, 128], strides = [1, 1]} : vector<4x512xf32> to vector<4x128xf32>
    %383 = math.tanh %382 : vector<4x128xf32>
    %384 = vector.extract_strided_slice %369 {offsets = [0, 384], sizes = [4, 128], strides = [1, 1]} : vector<4x512xf32> to vector<4x128xf32>
    %385 = arith.negf %384 : vector<4x128xf32>
    %386 = math.exp %385 : vector<4x128xf32>
    %cst_127 = arith.constant 1.000000e+00 : f32
    %387 = vector.broadcast %cst_127 : f32 to vector<4x128xf32>
    %388 = arith.addf %387, %386 : vector<4x128xf32>
    %389 = arith.divf %387, %388 : vector<4x128xf32>
    %390 = arith.mulf %381, %322 : vector<4x128xf32>
    %391 = arith.mulf %375, %383 : vector<4x128xf32>
    %392 = arith.addf %390, %391 : vector<4x128xf32>
    %393 = math.tanh %392 : vector<4x128xf32>
    %394 = arith.mulf %389, %393 : vector<4x128xf32>
    %c5_128 = arith.constant 5 : index
    %c0_129 = arith.constant 0 : index
    %c0_130 = arith.constant 0 : index
    %395 = vector.load %arg4[%c5_128, %c0_129, %c0_130] : memref<8x4x128xf32, #tpu.memory_space<vmem>>, vector<1x4x128xf32>
    %396 = vector.shape_cast %395 : vector<1x4x128xf32> to vector<4x128xf32>
    %397 = vector.shape_cast %394 : vector<4x128xf32> to vector<1x4x128xf32>
    tpu.vector_store %arg4[%c5_128, %c0_129, %c0_130], %397 {strides = array<i32>} : memref<8x4x128xf32, #tpu.memory_space<vmem>>, vector<1x4x128xf32>,
    %c2_131 = arith.constant 2 : index
    %c0_132 = arith.constant 0 : index
    %c0_133 = arith.constant 0 : index
    %398 = vector.load %arg0[%c2_131, %c0_132, %c0_133] : memref<8x4x128xf32, #tpu.memory_space<vmem>>, vector<1x4x128xf32>
    %399 = vector.shape_cast %398 : vector<1x4x128xf32> to vector<4x128xf32>
    %cst_134 = arith.constant dense<0.000000e+00> : vector<4x512xf32>
    %400 = tpu.matmul %399, %3, %cst_134 {dimension_numbers = #tpu.dot_dimension_numbers<[1], [0], [0], [1], [0, 0, 1, 1], [], []>} : vector<4x128xf32>, vector<128x512xf32>, vector<4x512xf32> -> vector<4x512xf32>
    %cst_135 = arith.constant dense<0.000000e+00> : vector<4x512xf32>
    %401 = tpu.matmul %359, %7, %cst_135 {dimension_numbers = #tpu.dot_dimension_numbers<[1], [0], [0], [1], [0, 0, 1, 1], [], []>} : vector<4x128xf32>, vector<128x512xf32>, vector<4x512xf32> -> vector<4x512xf32>
    %402 = arith.addf %400, %401 : vector<4x512xf32>
    %403 = vector.broadcast %11 : vector<1x512xf32> to vector<4x512xf32>
    %404 = arith.addf %402, %403 : vector<4x512xf32>
    %405 = vector.extract_strided_slice %404 {offsets = [0, 0], sizes = [4, 128], strides = [1, 1]} : vector<4x512xf32> to vector<4x128xf32>
    %406 = arith.negf %405 : vector<4x128xf32>
    %407 = math.exp %406 : vector<4x128xf32>
    %cst_136 = arith.constant 1.000000e+00 : f32
    %408 = vector.broadcast %cst_136 : f32 to vector<4x128xf32>
    %409 = arith.addf %408, %407 : vector<4x128xf32>
    %410 = arith.divf %408, %409 : vector<4x128xf32>
    %411 = vector.extract_strided_slice %404 {offsets = [0, 128], sizes = [4, 128], strides = [1, 1]} : vector<4x512xf32> to vector<4x128xf32>
    %412 = arith.negf %411 : vector<4x128xf32>
    %413 = math.exp %412 : vector<4x128xf32>
    %cst_137 = arith.constant 1.000000e+00 : f32
    %414 = vector.broadcast %cst_137 : f32 to vector<4x128xf32>
    %415 = arith.addf %414, %413 : vector<4x128xf32>
    %416 = arith.divf %414, %415 : vector<4x128xf32>
    %417 = vector.extract_strided_slice %404 {offsets = [0, 256], sizes = [4, 128], strides = [1, 1]} : vector<4x512xf32> to vector<4x128xf32>
    %418 = math.tanh %417 : vector<4x128xf32>
    %419 = vector.extract_strided_slice %404 {offsets = [0, 384], sizes = [4, 128], strides = [1, 1]} : vector<4x512xf32> to vector<4x128xf32>
    %420 = arith.negf %419 : vector<4x128xf32>
    %421 = math.exp %420 : vector<4x128xf32>
    %cst_138 = arith.constant 1.000000e+00 : f32
    %422 = vector.broadcast %cst_138 : f32 to vector<4x128xf32>
    %423 = arith.addf %422, %421 : vector<4x128xf32>
    %424 = arith.divf %422, %423 : vector<4x128xf32>
    %425 = arith.mulf %416, %357 : vector<4x128xf32>
    %426 = arith.mulf %410, %418 : vector<4x128xf32>
    %427 = arith.addf %425, %426 : vector<4x128xf32>
    %428 = math.tanh %427 : vector<4x128xf32>
    %429 = arith.mulf %424, %428 : vector<4x128xf32>
    %c2_139 = arith.constant 2 : index
    %c0_140 = arith.constant 0 : index
    %c0_141 = arith.constant 0 : index
    %430 = vector.load %arg5[%c2_139, %c0_140, %c0_141] : memref<8x4x128xf32, #tpu.memory_space<vmem>>, vector<1x4x128xf32>
    %431 = vector.shape_cast %430 : vector<1x4x128xf32> to vector<4x128xf32>
    %432 = vector.shape_cast %429 : vector<4x128xf32> to vector<1x4x128xf32>
    tpu.vector_store %arg5[%c2_139, %c0_140, %c0_141], %432 {strides = array<i32>} : memref<8x4x128xf32, #tpu.memory_space<vmem>>, vector<1x4x128xf32>,
    %c6_142 = arith.constant 6 : index
    %c0_143 = arith.constant 0 : index
    %c0_144 = arith.constant 0 : index
    %433 = vector.load %arg0[%c6_142, %c0_143, %c0_144] : memref<8x4x128xf32, #tpu.memory_space<vmem>>, vector<1x4x128xf32>
    %434 = vector.shape_cast %433 : vector<1x4x128xf32> to vector<4x128xf32>
    %cst_145 = arith.constant dense<0.000000e+00> : vector<4x512xf32>
    %435 = tpu.matmul %434, %1, %cst_145 {dimension_numbers = #tpu.dot_dimension_numbers<[1], [0], [0], [1], [0, 0, 1, 1], [], []>} : vector<4x128xf32>, vector<128x512xf32>, vector<4x512xf32> -> vector<4x512xf32>
    %cst_146 = arith.constant dense<0.000000e+00> : vector<4x512xf32>
    %436 = tpu.matmul %394, %5, %cst_146 {dimension_numbers = #tpu.dot_dimension_numbers<[1], [0], [0], [1], [0, 0, 1, 1], [], []>} : vector<4x128xf32>, vector<128x512xf32>, vector<4x512xf32> -> vector<4x512xf32>
    %437 = arith.addf %435, %436 : vector<4x512xf32>
    %438 = vector.broadcast %9 : vector<1x512xf32> to vector<4x512xf32>
    %439 = arith.addf %437, %438 : vector<4x512xf32>
    %440 = vector.extract_strided_slice %439 {offsets = [0, 0], sizes = [4, 128], strides = [1, 1]} : vector<4x512xf32> to vector<4x128xf32>
    %441 = arith.negf %440 : vector<4x128xf32>
    %442 = math.exp %441 : vector<4x128xf32>
    %cst_147 = arith.constant 1.000000e+00 : f32
    %443 = vector.broadcast %cst_147 : f32 to vector<4x128xf32>
    %444 = arith.addf %443, %442 : vector<4x128xf32>
    %445 = arith.divf %443, %444 : vector<4x128xf32>
    %446 = vector.extract_strided_slice %439 {offsets = [0, 128], sizes = [4, 128], strides = [1, 1]} : vector<4x512xf32> to vector<4x128xf32>
    %447 = arith.negf %446 : vector<4x128xf32>
    %448 = math.exp %447 : vector<4x128xf32>
    %cst_148 = arith.constant 1.000000e+00 : f32
    %449 = vector.broadcast %cst_148 : f32 to vector<4x128xf32>
    %450 = arith.addf %449, %448 : vector<4x128xf32>
    %451 = arith.divf %449, %450 : vector<4x128xf32>
    %452 = vector.extract_strided_slice %439 {offsets = [0, 256], sizes = [4, 128], strides = [1, 1]} : vector<4x512xf32> to vector<4x128xf32>
    %453 = math.tanh %452 : vector<4x128xf32>
    %454 = vector.extract_strided_slice %439 {offsets = [0, 384], sizes = [4, 128], strides = [1, 1]} : vector<4x512xf32> to vector<4x128xf32>
    %455 = arith.negf %454 : vector<4x128xf32>
    %456 = math.exp %455 : vector<4x128xf32>
    %cst_149 = arith.constant 1.000000e+00 : f32
    %457 = vector.broadcast %cst_149 : f32 to vector<4x128xf32>
    %458 = arith.addf %457, %456 : vector<4x128xf32>
    %459 = arith.divf %457, %458 : vector<4x128xf32>
    %460 = arith.mulf %451, %392 : vector<4x128xf32>
    %461 = arith.mulf %445, %453 : vector<4x128xf32>
    %462 = arith.addf %460, %461 : vector<4x128xf32>
    %463 = math.tanh %462 : vector<4x128xf32>
    %464 = arith.mulf %459, %463 : vector<4x128xf32>
    %c6_150 = arith.constant 6 : index
    %c0_151 = arith.constant 0 : index
    %c0_152 = arith.constant 0 : index
    %465 = vector.load %arg4[%c6_150, %c0_151, %c0_152] : memref<8x4x128xf32, #tpu.memory_space<vmem>>, vector<1x4x128xf32>
    %466 = vector.shape_cast %465 : vector<1x4x128xf32> to vector<4x128xf32>
    %467 = vector.shape_cast %464 : vector<4x128xf32> to vector<1x4x128xf32>
    tpu.vector_store %arg4[%c6_150, %c0_151, %c0_152], %467 {strides = array<i32>} : memref<8x4x128xf32, #tpu.memory_space<vmem>>, vector<1x4x128xf32>,
    %c1_153 = arith.constant 1 : index
    %c0_154 = arith.constant 0 : index
    %c0_155 = arith.constant 0 : index
    %468 = vector.load %arg0[%c1_153, %c0_154, %c0_155] : memref<8x4x128xf32, #tpu.memory_space<vmem>>, vector<1x4x128xf32>
    %469 = vector.shape_cast %468 : vector<1x4x128xf32> to vector<4x128xf32>
    %cst_156 = arith.constant dense<0.000000e+00> : vector<4x512xf32>
    %470 = tpu.matmul %469, %3, %cst_156 {dimension_numbers = #tpu.dot_dimension_numbers<[1], [0], [0], [1], [0, 0, 1, 1], [], []>} : vector<4x128xf32>, vector<128x512xf32>, vector<4x512xf32> -> vector<4x512xf32>
    %cst_157 = arith.constant dense<0.000000e+00> : vector<4x512xf32>
    %471 = tpu.matmul %429, %7, %cst_157 {dimension_numbers = #tpu.dot_dimension_numbers<[1], [0], [0], [1], [0, 0, 1, 1], [], []>} : vector<4x128xf32>, vector<128x512xf32>, vector<4x512xf32> -> vector<4x512xf32>
    %472 = arith.addf %470, %471 : vector<4x512xf32>
    %473 = vector.broadcast %11 : vector<1x512xf32> to vector<4x512xf32>
    %474 = arith.addf %472, %473 : vector<4x512xf32>
    %475 = vector.extract_strided_slice %474 {offsets = [0, 0], sizes = [4, 128], strides = [1, 1]} : vector<4x512xf32> to vector<4x128xf32>
    %476 = arith.negf %475 : vector<4x128xf32>
    %477 = math.exp %476 : vector<4x128xf32>
    %cst_158 = arith.constant 1.000000e+00 : f32
    %478 = vector.broadcast %cst_158 : f32 to vector<4x128xf32>
    %479 = arith.addf %478, %477 : vector<4x128xf32>
    %480 = arith.divf %478, %479 : vector<4x128xf32>
    %481 = vector.extract_strided_slice %474 {offsets = [0, 128], sizes = [4, 128], strides = [1, 1]} : vector<4x512xf32> to vector<4x128xf32>
    %482 = arith.negf %481 : vector<4x128xf32>
    %483 = math.exp %482 : vector<4x128xf32>
    %cst_159 = arith.constant 1.000000e+00 : f32
    %484 = vector.broadcast %cst_159 : f32 to vector<4x128xf32>
    %485 = arith.addf %484, %483 : vector<4x128xf32>
    %486 = arith.divf %484, %485 : vector<4x128xf32>
    %487 = vector.extract_strided_slice %474 {offsets = [0, 256], sizes = [4, 128], strides = [1, 1]} : vector<4x512xf32> to vector<4x128xf32>
    %488 = math.tanh %487 : vector<4x128xf32>
    %489 = vector.extract_strided_slice %474 {offsets = [0, 384], sizes = [4, 128], strides = [1, 1]} : vector<4x512xf32> to vector<4x128xf32>
    %490 = arith.negf %489 : vector<4x128xf32>
    %491 = math.exp %490 : vector<4x128xf32>
    %cst_160 = arith.constant 1.000000e+00 : f32
    %492 = vector.broadcast %cst_160 : f32 to vector<4x128xf32>
    %493 = arith.addf %492, %491 : vector<4x128xf32>
    %494 = arith.divf %492, %493 : vector<4x128xf32>
    %495 = arith.mulf %486, %427 : vector<4x128xf32>
    %496 = arith.mulf %480, %488 : vector<4x128xf32>
    %497 = arith.addf %495, %496 : vector<4x128xf32>
    %498 = math.tanh %497 : vector<4x128xf32>
    %499 = arith.mulf %494, %498 : vector<4x128xf32>
    %c1_161 = arith.constant 1 : index
    %c0_162 = arith.constant 0 : index
    %c0_163 = arith.constant 0 : index
    %500 = vector.load %arg5[%c1_161, %c0_162, %c0_163] : memref<8x4x128xf32, #tpu.memory_space<vmem>>, vector<1x4x128xf32>
    %501 = vector.shape_cast %500 : vector<1x4x128xf32> to vector<4x128xf32>
    %502 = vector.shape_cast %499 : vector<4x128xf32> to vector<1x4x128xf32>
    tpu.vector_store %arg5[%c1_161, %c0_162, %c0_163], %502 {strides = array<i32>} : memref<8x4x128xf32, #tpu.memory_space<vmem>>, vector<1x4x128xf32>,
    %c7_164 = arith.constant 7 : index
    %c0_165 = arith.constant 0 : index
    %c0_166 = arith.constant 0 : index
    %503 = vector.load %arg0[%c7_164, %c0_165, %c0_166] : memref<8x4x128xf32, #tpu.memory_space<vmem>>, vector<1x4x128xf32>
    %504 = vector.shape_cast %503 : vector<1x4x128xf32> to vector<4x128xf32>
    %cst_167 = arith.constant dense<0.000000e+00> : vector<4x512xf32>
    %505 = tpu.matmul %504, %1, %cst_167 {dimension_numbers = #tpu.dot_dimension_numbers<[1], [0], [0], [1], [0, 0, 1, 1], [], []>} : vector<4x128xf32>, vector<128x512xf32>, vector<4x512xf32> -> vector<4x512xf32>
    %cst_168 = arith.constant dense<0.000000e+00> : vector<4x512xf32>
    %506 = tpu.matmul %464, %5, %cst_168 {dimension_numbers = #tpu.dot_dimension_numbers<[1], [0], [0], [1], [0, 0, 1, 1], [], []>} : vector<4x128xf32>, vector<128x512xf32>, vector<4x512xf32> -> vector<4x512xf32>
    %507 = arith.addf %505, %506 : vector<4x512xf32>
    %508 = vector.broadcast %9 : vector<1x512xf32> to vector<4x512xf32>
    %509 = arith.addf %507, %508 : vector<4x512xf32>
    %510 = vector.extract_strided_slice %509 {offsets = [0, 0], sizes = [4, 128], strides = [1, 1]} : vector<4x512xf32> to vector<4x128xf32>
    %511 = arith.negf %510 : vector<4x128xf32>
    %512 = math.exp %511 : vector<4x128xf32>
    %cst_169 = arith.constant 1.000000e+00 : f32
    %513 = vector.broadcast %cst_169 : f32 to vector<4x128xf32>
    %514 = arith.addf %513, %512 : vector<4x128xf32>
    %515 = arith.divf %513, %514 : vector<4x128xf32>
    %516 = vector.extract_strided_slice %509 {offsets = [0, 128], sizes = [4, 128], strides = [1, 1]} : vector<4x512xf32> to vector<4x128xf32>
    %517 = arith.negf %516 : vector<4x128xf32>
    %518 = math.exp %517 : vector<4x128xf32>
    %cst_170 = arith.constant 1.000000e+00 : f32
    %519 = vector.broadcast %cst_170 : f32 to vector<4x128xf32>
    %520 = arith.addf %519, %518 : vector<4x128xf32>
    %521 = arith.divf %519, %520 : vector<4x128xf32>
    %522 = vector.extract_strided_slice %509 {offsets = [0, 256], sizes = [4, 128], strides = [1, 1]} : vector<4x512xf32> to vector<4x128xf32>
    %523 = math.tanh %522 : vector<4x128xf32>
    %524 = vector.extract_strided_slice %509 {offsets = [0, 384], sizes = [4, 128], strides = [1, 1]} : vector<4x512xf32> to vector<4x128xf32>
    %525 = arith.negf %524 : vector<4x128xf32>
    %526 = math.exp %525 : vector<4x128xf32>
    %cst_171 = arith.constant 1.000000e+00 : f32
    %527 = vector.broadcast %cst_171 : f32 to vector<4x128xf32>
    %528 = arith.addf %527, %526 : vector<4x128xf32>
    %529 = arith.divf %527, %528 : vector<4x128xf32>
    %530 = arith.mulf %521, %462 : vector<4x128xf32>
    %531 = arith.mulf %515, %523 : vector<4x128xf32>
    %532 = arith.addf %530, %531 : vector<4x128xf32>
    %533 = math.tanh %532 : vector<4x128xf32>
    %534 = arith.mulf %529, %533 : vector<4x128xf32>
    %c7_172 = arith.constant 7 : index
    %c0_173 = arith.constant 0 : index
    %c0_174 = arith.constant 0 : index
    %535 = vector.load %arg4[%c7_172, %c0_173, %c0_174] : memref<8x4x128xf32, #tpu.memory_space<vmem>>, vector<1x4x128xf32>
    %536 = vector.shape_cast %535 : vector<1x4x128xf32> to vector<4x128xf32>
    %537 = vector.shape_cast %534 : vector<4x128xf32> to vector<1x4x128xf32>
    tpu.vector_store %arg4[%c7_172, %c0_173, %c0_174], %537 {strides = array<i32>} : memref<8x4x128xf32, #tpu.memory_space<vmem>>, vector<1x4x128xf32>,
    %c0_175 = arith.constant 0 : index
    %c0_176 = arith.constant 0 : index
    %c0_177 = arith.constant 0 : index
    %538 = vector.load %arg0[%c0_175, %c0_176, %c0_177] : memref<8x4x128xf32, #tpu.memory_space<vmem>>, vector<1x4x128xf32>
    %539 = vector.shape_cast %538 : vector<1x4x128xf32> to vector<4x128xf32>
    %cst_178 = arith.constant dense<0.000000e+00> : vector<4x512xf32>
    %540 = tpu.matmul %539, %3, %cst_178 {dimension_numbers = #tpu.dot_dimension_numbers<[1], [0], [0], [1], [0, 0, 1, 1], [], []>} : vector<4x128xf32>, vector<128x512xf32>, vector<4x512xf32> -> vector<4x512xf32>
    %cst_179 = arith.constant dense<0.000000e+00> : vector<4x512xf32>
    %541 = tpu.matmul %499, %7, %cst_179 {dimension_numbers = #tpu.dot_dimension_numbers<[1], [0], [0], [1], [0, 0, 1, 1], [], []>} : vector<4x128xf32>, vector<128x512xf32>, vector<4x512xf32> -> vector<4x512xf32>
    %542 = arith.addf %540, %541 : vector<4x512xf32>
    %543 = vector.broadcast %11 : vector<1x512xf32> to vector<4x512xf32>
    %544 = arith.addf %542, %543 : vector<4x512xf32>
    %545 = vector.extract_strided_slice %544 {offsets = [0, 0], sizes = [4, 128], strides = [1, 1]} : vector<4x512xf32> to vector<4x128xf32>
    %546 = arith.negf %545 : vector<4x128xf32>
    %547 = math.exp %546 : vector<4x128xf32>
    %cst_180 = arith.constant 1.000000e+00 : f32
    %548 = vector.broadcast %cst_180 : f32 to vector<4x128xf32>
    %549 = arith.addf %548, %547 : vector<4x128xf32>
    %550 = arith.divf %548, %549 : vector<4x128xf32>
    %551 = vector.extract_strided_slice %544 {offsets = [0, 128], sizes = [4, 128], strides = [1, 1]} : vector<4x512xf32> to vector<4x128xf32>
    %552 = arith.negf %551 : vector<4x128xf32>
    %553 = math.exp %552 : vector<4x128xf32>
    %cst_181 = arith.constant 1.000000e+00 : f32
    %554 = vector.broadcast %cst_181 : f32 to vector<4x128xf32>
    %555 = arith.addf %554, %553 : vector<4x128xf32>
    %556 = arith.divf %554, %555 : vector<4x128xf32>
    %557 = vector.extract_strided_slice %544 {offsets = [0, 256], sizes = [4, 128], strides = [1, 1]} : vector<4x512xf32> to vector<4x128xf32>
    %558 = math.tanh %557 : vector<4x128xf32>
    %559 = vector.extract_strided_slice %544 {offsets = [0, 384], sizes = [4, 128], strides = [1, 1]} : vector<4x512xf32> to vector<4x128xf32>
    %560 = arith.negf %559 : vector<4x128xf32>
    %561 = math.exp %560 : vector<4x128xf32>
    %cst_182 = arith.constant 1.000000e+00 : f32
    %562 = vector.broadcast %cst_182 : f32 to vector<4x128xf32>
    %563 = arith.addf %562, %561 : vector<4x128xf32>
    %564 = arith.divf %562, %563 : vector<4x128xf32>
    %565 = arith.mulf %556, %497 : vector<4x128xf32>
    %566 = arith.mulf %550, %558 : vector<4x128xf32>
    %567 = arith.addf %565, %566 : vector<4x128xf32>
    %568 = math.tanh %567 : vector<4x128xf32>
    %569 = arith.mulf %564, %568 : vector<4x128xf32>
    %c0_183 = arith.constant 0 : index
    %c0_184 = arith.constant 0 : index
    %c0_185 = arith.constant 0 : index
    %570 = vector.load %arg5[%c0_183, %c0_184, %c0_185] : memref<8x4x128xf32, #tpu.memory_space<vmem>>, vector<1x4x128xf32>
    %571 = vector.shape_cast %570 : vector<1x4x128xf32> to vector<4x128xf32>
    %572 = vector.shape_cast %569 : vector<4x128xf32> to vector<1x4x128xf32>
    tpu.vector_store %arg5[%c0_183, %c0_184, %c0_185], %572 {strides = array<i32>} : memref<8x4x128xf32, #tpu.memory_space<vmem>>, vector<1x4x128xf32>,
    return
  }
}

</mosaic_0001>

<bundles_post_ra>
// kernel: encoder_forward.2
= control target key start
LH: loop header
LB: loop body
LE: loop exit
PB: predicated region body
PF: predicated region fallthrough
CT: control target
= control target key end

     0   :  { %8 = vsyncpa [#allocation3], 0  ;;  %s935_s0 = inlined_call_operand.hbm [shape: f32[32,128], index: 0, kind: input, shape index: {}]   ;;  %s936_s1 = inlined_call_operand.hbm [shape: f32[2,128,384], index: 1, kind: input, shape index: {}]   ;;  %s937_s2 = inlined_call_operand.hbm [shape: f32[2,1,384], index: 2, kind: input, shape index: {}]   ;;  %s938_s3 = inlined_call_operand.vmem [shape: f32[32,128], index: 3, kind: output, shape index: {}]  }
   0x1   :  { %9 = vsyncpa [#allocation5], 0  ;;  %s859_s12 = smov [#allocation4]  }
   0x2   :  { %s27_s13 = sshll.u32 %s859_s12, 4  ;;  %s28_s13 = int_to_ptr.vmem [resolvable:$true] %s27_s13 }
   0x3   :  { %s803_s14 = scalar_lea.vmem %s28_s13, 12288  ;;  %p808_p1 = scmp.lt.s32.totalorder %s28_s13, %s28_s13 }
   0x4   :  { %p804_p0 = scmp.ne.s32.totalorder %s28_s13, %s803_s14  ;;  %p809_p2 = scmp.lt.s32.totalorder %s803_s14, %s803_s14 }
   0x6   :  { %p810_p3 = por %p809_p2, %p808_p1 }
   0x8   :  { %p811_p4 = pnand %p810_p3, %p804_p0 }
   0xa   :  { %814 = shalt.err (!%p811_p4)
}
   0xb   :  { %s860_s15 = smov 384   ;;  %s861_s16 = smov 24  }
   0xc   :  { %33 = dma.hbm_to_vmem [thread:$0]  %s936_s1, 12288, %s28_s13, [#allocation5], %s860_s15, %s860_s15, %s861_s16  }
   0xd   :  { %s862_s19 = smov [#allocation2]  }
   0xe   :  { %s15_s20 = sshll.u32 %s862_s19, 4  ;;  %s16_s20 = int_to_ptr.vmem [resolvable:$true] %s15_s20 }
   0xf   :  { %s823_s21 = scalar_lea.vmem %s16_s20, 512  ;;  %p828_p6 = scmp.lt.s32.totalorder %s16_s20, %s16_s20 }
  0x10   :  { %p824_p5 = scmp.ne.s32.totalorder %s16_s20, %s823_s21  ;;  %p829_p7 = scmp.lt.s32.totalorder %s823_s21, %s823_s21 }
  0x12   :  { %p830_p8 = por %p829_p7, %p828_p6 }
  0x14   :  { %p831_p9 = pnand %p830_p8, %p824_p5 }
  0x16   :  { %834 = shalt.err (!%p831_p9)
}
  0x17   :  { %s863_s22 = smov 128   ;;  %s864_s23 = smov 8  }
  0x18   :  { %21 = dma.hbm_to_vmem [thread:$0]  %s935_s0, 512, %s16_s20, [#allocation3], %s863_s22, %s863_s22, %s864_s23  }
  0x19   :  { %s865_s26 = smov [#allocation6]  }
  0x1a   :  { %s39_s27 = sshll.u32 %s865_s26, 4  ;;  %s40_s27 = int_to_ptr.vmem [resolvable:$true] %s39_s27 }
  0x1b   :  { %s843_s1 = scalar_lea.vmem %s40_s27, 96  ;;  %p848_p11 = scmp.lt.s32.totalorder %s40_s27, %s40_s27 }
  0x1c   :  { %p844_p10 = scmp.ne.s32.totalorder %s40_s27, %s843_s1  ;;  %p849_p12 = scmp.lt.s32.totalorder %s843_s1, %s843_s1 }
  0x1e   :  { %p850_p13 = por %p849_p12, %p848_p11 }
  0x20   :  { %p851_p0 = pnand %p850_p13, %p844_p10 }
  0x22   :  { %854 = shalt.err (!%p851_p0)
}
  0x23   :  { %s866_s28 = smov 48   ;;  %s867_s29 = smov 3  }
  0x24   :  { %45 = dma.hbm_to_vmem [thread:$0]  %s937_s2, 96, %s40_s27, [#allocation5], %s866_s28, %s866_s28, %s867_s29  }
  0x25   :  { %855 = dma.done.wait [#allocation3], 512  }
  0x26   :  { %856 = vsyncadd [#allocation3], 4294966784 }
  0x27   :  { %857 = dma.done.wait [#allocation5], 12384  }
  0x28   :  { %858 = vsyncadd [#allocation5], 4294954912  ;;  %v868_v0 = vmov 0.0   ;;  %v105_v1 = vld [vmem:[#allocation4 + $0x170] sm:$0xff]  ;;  %v104_v2 = vld [vmem:[#allocation4 + $0x168] sm:$0xff] }
  0x29   :  { %188 = vmatprep.mubr.f32.mxu0 %v868_v0  ;;  %v102_v3 = vld [vmem:[#allocation4 + $0x158] sm:$0xff]  ;;  %124 = vmatprep.subr.mxu0 %v105_v1  ;;  %v101_v5 = vld [vmem:[#allocation4 + $0x150] sm:$0xff]  ;;  %v99_v6 = vld [vmem:[#allocation4 + $0x140] sm:$0xff] }
  0x2a   :  { %v106_v4 = vld [vmem:[#allocation4 + $0x178] sm:$0xff]  ;;  %125 = vmatpush1.msra.mxu0 %v104_v2  ;;  %v103_v7 = vld [vmem:[#allocation4 + $0x160] sm:$0xff]  ;;  %v100_v9 = vld [vmem:[#allocation4 + $0x148] sm:$0xff] }
  0x2b   :  { %677 = vmatprep.subr.mxu1 %v106_v4  ;;  %126 = vmatprep.subr.mxu0 %v102_v3  ;;  %v98_v8 = vld [vmem:[#allocation4 + $0x138] sm:$0xff]  ;;  %v96_v10 = vld [vmem:[#allocation4 + $0x128] sm:$0xff]  ;;  %v95_v11 = vld [vmem:[#allocation4 + $0x120] sm:$0xff] }
  0x2c   :  { %678 = vmatpush3.msra.mxu1 %v106_v4  ;;  %127 = vmatpush1.msra.mxu0 %v101_v5  ;;  %v97_v12 = vld [vmem:[#allocation4 + $0x130] sm:$0xff]  ;;  %v92_v14 = vld [vmem:[#allocation4 + $0x108] sm:$0xff]  ;;  %v94_v15 = vld [vmem:[#allocation4 + $0x118] sm:$0xff] }
  0x2d   :  { %679 = vmatprep.subr.mxu1 %v103_v7  ;;  %128 = vmatprep.subr.mxu0 %v99_v6  ;;  %v93_v13 = vld [vmem:[#allocation4 + $0x110] sm:$0xff]  ;;  %v90_v16 = vld [vmem:[#allocation4 + $0xf8] sm:$0xff]  ;;  %v91_v18 = vld [vmem:[#allocation4 + $0x100] sm:$0xff] }
  0x2e   :  { %680 = vmatpush3.msra.mxu1 %v103_v7  ;;  %129 = vmatpush1.msra.mxu0 %v98_v8  ;;  %v89_v17 = vld [vmem:[#allocation4 + $0xf0] sm:$0xff]  ;;  %v87_v19 = vld [vmem:[#allocation4 + $0xe0] sm:$0xff]  ;;  %v86_v20 = vld [vmem:[#allocation4 + $0xd8] sm:$0xff] }
  0x2f   :  { %681 = vmatprep.subr.mxu1 %v100_v9  ;;  %130 = vmatprep.subr.mxu0 %v96_v10  ;;  %v88_v21 = vld [vmem:[#allocation4 + $0xe8] sm:$0xff]  ;;  %v83_v23 = vld [vmem:[#allocation4 + $0xc0] sm:$0xff]  ;;  %v85_v24 = vld [vmem:[#allocation4 + $0xd0] sm:$0xff] }
  0x30   :  { %682 = vmatpush3.msra.mxu1 %v100_v9  ;;  %131 = vmatpush1.msra.mxu0 %v95_v11  ;;  %v84_v22 = vld [vmem:[#allocation4 + $0xc8] sm:$0xff]  ;;  %v81_v25 = vld [vmem:[#allocation4 + $0xb0] sm:$0xff]  ;;  %v82_v27 = vld [vmem:[#allocation4 + $0xb8] sm:$0xff] }
  0x31   :  { %683 = vmatprep.subr.mxu1 %v97_v12  ;;  %132 = vmatprep.subr.mxu0 %v93_v13  ;;  %v80_v26 = vld [vmem:[#allocation4 + $0xa8] sm:$0xff]  ;;  %v78_v28 = vld [vmem:[#allocation4 + $0x98] sm:$0xff]  ;;  %v77_v29 = vld [vmem:[#allocation4 + $0x90] sm:$0xff] }
  0x32   :  { %684 = vmatpush3.msra.mxu1 %v97_v12  ;;  %133 = vmatpush1.msra.mxu0 %v92_v14  ;;  %v79_v30 = vld [vmem:[#allocation4 + $0xa0] sm:$0xff]  ;;  %v74_v32 = vld [vmem:[#allocation4 + $0x78] sm:$0xff]  ;;  %v76_v33 = vld [vmem:[#allocation4 + $0x88] sm:$0xff] }
  0x33   :  { %685 = vmatprep.subr.mxu1 %v94_v15  ;;  %134 = vmatprep.subr.mxu0 %v90_v16  ;;  %v75_v31 = vld [vmem:[#allocation4 + $0x80] sm:$0xff]  ;;  %v72_v34 = vld [vmem:[#allocation4 + $0x68] sm:$0xff]  ;;  %v73_v36 = vld [vmem:[#allocation4 + $0x70] sm:$0xff] }
  0x34   :  { %686 = vmatpush3.msra.mxu1 %v94_v15  ;;  %135 = vmatpush1.msra.mxu0 %v89_v17  ;;  %v71_v35 = vld [vmem:[#allocation4 + $0x60] sm:$0xff]  ;;  %v69_v37 = vld [vmem:[#allocation4 + $0x50] sm:$0xff]  ;;  %v68_v38 = vld [vmem:[#allocation4 + $0x48] sm:$0xff] }
  0x35   :  { %687 = vmatprep.subr.mxu1 %v91_v18  ;;  %136 = vmatprep.subr.mxu0 %v87_v19  ;;  %v70_v39 = vld [vmem:[#allocation4 + $0x58] sm:$0xff]  ;;  %v65_v41 = vld [vmem:[#allocation4 + $0x30] sm:$0xff]  ;;  %v67_v42 = vld [vmem:[#allocation4 + $0x40] sm:$0xff] }
  0x36   :  { %688 = vmatpush3.msra.mxu1 %v91_v18  ;;  %137 = vmatpush1.msra.mxu0 %v86_v20  ;;  %v66_v40 = vld [vmem:[#allocation4 + $0x38] sm:$0xff]  ;;  %v63_v43 = vld [vmem:[#allocation4 + $0x20] sm:$0xff]  ;;  %v64_v45 = vld [vmem:[#allocation4 + $0x28] sm:$0xff] }
  0x37   :  { %689 = vmatprep.subr.mxu1 %v88_v21  ;;  %138 = vmatprep.subr.mxu0 %v84_v22  ;;  %v62_v44 = vld [vmem:[#allocation4 + $0x18] sm:$0xff]  ;;  %v60_v46 = vld [vmem:[#allocation4 + $0x8] sm:$0xff]  ;;  %v59_v47 = vld [vmem:[#allocation4] sm:$0xff] }
  0x38   :  { %690 = vmatpush3.msra.mxu1 %v88_v21  ;;  %139 = vmatpush1.msra.mxu0 %v83_v23  ;;  %v61_v48 = vld [vmem:[#allocation4 + $0x10] sm:$0xff]  ;;  %v55_v49 = vld [vmem:[#allocation2] sm:$0xff]  ;;  %v56_v50 = vld [vmem:[#allocation2 + $0x8] sm:$0xff] }
  0x39   :  { %691 = vmatprep.subr.mxu1 %v85_v24  ;;  %140 = vmatprep.subr.mxu0 %v81_v25  ;;  %v57_v51 = vld [vmem:[#allocation2 + $0x10] sm:$0xff]  ;;  %v58_v52 = vld [vmem:[#allocation2 + $0x18] sm:$0xff]  ;;  %v384_v54 = vld [vmem:[#allocation4 + $0x2e8] sm:$0xff] }
  0x3a   :  { %692 = vmatpush3.msra.mxu1 %v85_v24  ;;  %141 = vmatpush1.msra.mxu0 %v80_v26  ;;  %v385_v53 = vld [vmem:[#allocation4 + $0x2f0] sm:$0xff]  ;;  %v382_v55 = vld [vmem:[#allocation4 + $0x2d8] sm:$0xff]  ;;  %v379_v57 = vld [vmem:[#allocation4 + $0x2c0] sm:$0xff] }
  0x3b   :  { %693 = vmatprep.subr.mxu1 %v82_v27  ;;  %142 = vmatprep.subr.mxu0 %v78_v28  ;;  %v381_v56 = vld [vmem:[#allocation4 + $0x2d0] sm:$0xff]  ;;  %v386_v58 = vld [vmem:[#allocation4 + $0x2f8] sm:$0xff]  ;;  %v376_v60 = vld [vmem:[#allocation4 + $0x2a8] sm:$0xff] }
  0x3c   :  { %694 = vmatpush3.msra.mxu1 %v82_v27  ;;  %143 = vmatpush1.msra.mxu0 %v77_v29  ;;  %v378_v59 = vld [vmem:[#allocation4 + $0x2b8] sm:$0xff]  ;;  %v383_v61 = vld [vmem:[#allocation4 + $0x2e0] sm:$0xff]  ;;  %v373_v63 = vld [vmem:[#allocation4 + $0x290] sm:$0xff] }
  0x3d   :  { %695 = vmatprep.subr.mxu1 %v79_v30  ;;  %144 = vmatprep.subr.mxu0 %v75_v31  ;;  %v375_v62 = vld [vmem:[#allocation4 + $0x2a0] sm:$0xff]  ;;  %v380_v1 = vld [vmem:[#allocation4 + $0x2c8] sm:$0xff]  ;;  %v370_v3 = vld [vmem:[#allocation4 + $0x278] sm:$0xff] }
  0x3e   :  { %696 = vmatpush3.msra.mxu1 %v79_v30  ;;  %145 = vmatpush1.msra.mxu0 %v74_v32  ;;  %v372_v2 = vld [vmem:[#allocation4 + $0x288] sm:$0xff]  ;;  %v377_v4 = vld [vmem:[#allocation4 + $0x2b0] sm:$0xff]  ;;  %v367_v6 = vld [vmem:[#allocation4 + $0x260] sm:$0xff] }
  0x3f   :  { %697 = vmatprep.subr.mxu1 %v76_v33  ;;  %146 = vmatprep.subr.mxu0 %v72_v34  ;;  %v369_v5 = vld [vmem:[#allocation4 + $0x270] sm:$0xff]  ;;  %v374_v7 = vld [vmem:[#allocation4 + $0x298] sm:$0xff]  ;;  %v364_v9 = vld [vmem:[#allocation4 + $0x248] sm:$0xff] }
  0x40   :  { %698 = vmatpush3.msra.mxu1 %v76_v33  ;;  %147 = vmatpush1.msra.mxu0 %v71_v35  ;;  %v366_v8 = vld [vmem:[#allocation4 + $0x258] sm:$0xff]  ;;  %v371_v10 = vld [vmem:[#allocation4 + $0x280] sm:$0xff]  ;;  %v361_v12 = vld [vmem:[#allocation4 + $0x230] sm:$0xff] }
  0x41   :  { %699 = vmatprep.subr.mxu1 %v73_v36  ;;  %148 = vmatprep.subr.mxu0 %v69_v37  ;;  %v363_v11 = vld [vmem:[#allocation4 + $0x240] sm:$0xff]  ;;  %v368_v13 = vld [vmem:[#allocation4 + $0x268] sm:$0xff]  ;;  %v358_v15 = vld [vmem:[#allocation4 + $0x218] sm:$0xff] }
  0x42   :  { %700 = vmatpush3.msra.mxu1 %v73_v36  ;;  %149 = vmatpush1.msra.mxu0 %v68_v38  ;;  %v360_v14 = vld [vmem:[#allocation4 + $0x228] sm:$0xff]  ;;  %v365_v16 = vld [vmem:[#allocation4 + $0x250] sm:$0xff]  ;;  %v355_v18 = vld [vmem:[#allocation4 + $0x200] sm:$0xff]  ;;  %v109_v38 = vlaneseq }
  0x43   :  { %701 = vmatprep.subr.mxu1 %v70_v39  ;;  %150 = vmatprep.subr.mxu0 %v66_v40  ;;  %v357_v17 = vld [vmem:[#allocation4 + $0x210] sm:$0xff]  ;;  %v362_v19 = vld [vmem:[#allocation4 + $0x238] sm:$0xff]  ;;  %v352_v21 = vld [vmem:[#allocation4 + $0x1e8] sm:$0xff] }
  0x44   :  { %702 = vmatpush3.msra.mxu1 %v70_v39  ;;  %151 = vmatpush1.msra.mxu0 %v65_v41  ;;  %v354_v20 = vld [vmem:[#allocation4 + $0x1f8] sm:$0xff]  ;;  %v359_v22 = vld [vmem:[#allocation4 + $0x220] sm:$0xff]  ;;  %v349_v24 = vld [vmem:[#allocation4 + $0x1d0] sm:$0xff]  ;;  %v903_v39 = vshrl.u32 %v109_v38, 7 }
  0x45   :  { %703 = vmatprep.subr.mxu1 %v67_v42  ;;  %152 = vmatprep.subr.mxu0 %v63_v43  ;;  %v351_v23 = vld [vmem:[#allocation4 + $0x1e0] sm:$0xff]  ;;  %v356_v25 = vld [vmem:[#allocation4 + $0x208] sm:$0xff]  ;;  %v346_v27 = vld [vmem:[#allocation4 + $0x1b8] sm:$0xff] }
  0x46   :  { %704 = vmatpush3.msra.mxu1 %v67_v42  ;;  %153 = vmatpush1.msra.mxu0 %v62_v44  ;;  %v348_v26 = vld [vmem:[#allocation4 + $0x1c8] sm:$0xff]  ;;  %v353_v28 = vld [vmem:[#allocation4 + $0x1f0] sm:$0xff]  ;;  %v343_v30 = vld [vmem:[#allocation4 + $0x1a0] sm:$0xff]  ;;  %v111_v40 = vsub.s32 0, %v903_v39 }
  0x47   :  { %705 = vmatprep.subr.mxu1 %v64_v45  ;;  %154 = vmatprep.subr.mxu0 %v60_v46  ;;  %v345_v29 = vld [vmem:[#allocation4 + $0x1b0] sm:$0xff]  ;;  %v350_v31 = vld [vmem:[#allocation4 + $0x1d8] sm:$0xff]  ;;  %v340_v33 = vld [vmem:[#allocation4 + $0x188] sm:$0xff] }
  0x48   :  { %706 = vmatpush3.msra.mxu1 %v64_v45  ;;  %155 = vmatpush1.msra.mxu0 %v59_v47  ;;  %v342_v32 = vld [vmem:[#allocation4 + $0x198] sm:$0xff]  ;;  %v347_v34 = vld [vmem:[#allocation4 + $0x1c0] sm:$0xff]  ;;  %v344_v36 = vld [vmem:[#allocation4 + $0x1a8] sm:$0xff] }
  0x49   :  { %707 = vmatprep.subr.mxu1 %v61_v48  ;;  %189 = vmatmul.mubr.f32.vlgmr.msra.gmra.mxu0 %v55_v49  ;;  %v339_v35 = vld [vmem:[#allocation4 + $0x180] sm:$0xff]  ;;  %v341_v37 = vld [vmem:[#allocation4 + $0x190] sm:$0xff] }
  0x4a   :  { %708 = vmatpush3.msra.mxu1 %v61_v48  ;;  %709 = vmatprep.mubr.f32.mxu1 %v55_v49  ;;  %v107_v41 = vld [vmem:[#allocation6] sm:$0x7] }
  0x4b   :  { %194 = vmatprep.mubr.f32.mxu0 %v868_v0  ;;  %710 = vmatmul.mubr.f32.vlgmr.msra.gmra.mxu1 %v56_v50  ;;  %v112_v42 = vrot.slane %v107_v41, %v111_v40 }
  0x4c   :  { %712 = vmatprep.mubr.f32.mxu1 %v57_v51  ;;  %405 = vmatprep.subr.mxu0 %v385_v53 }
  0x4d   :  { %195 = vmatmul.mubr.f32.gmra.mxu0 %v56_v50  ;;  %715 = vmatprep.subr.mxu1 %v386_v58 }
  0x4e   :  { %200 = vmatprep.mubr.f32.mxu0 %v868_v0  ;;  %406 = vmatpush1.msra.mxu0 %v384_v54 }
  0x4f   :  { %713 = vmatmul.mubr.f32.gmra.mxu1 %v58_v52  ;;  %407 = vmatprep.subr.mxu0 %v382_v55 }
  0x50   :  { %408 = vmatpush1.msra.mxu0 %v381_v56  ;;  %716 = vmatpush3.msra.mxu1 %v386_v58  ;;  %v115_v58 = vsub.s32 1, %v903_v39 }
  0x51   :  { %201 = vmatmul.mubr.f32.gmra.mxu0 %v57_v51  ;;  %409 = vmatprep.subr.mxu0 %v379_v57 }
  0x52   :  { %206 = vmatprep.mubr.f32.mxu0 %v868_v0  ;;  %410 = vmatpush1.msra.mxu0 %v378_v59 }
  0x53   :  { %411 = vmatprep.subr.mxu0 %v376_v60  ;;  %717 = vmatprep.subr.mxu1 %v383_v61 }
  0x54   :  { %412 = vmatpush1.msra.mxu0 %v375_v62  ;;  %718 = vmatpush3.msra.mxu1 %v383_v61  ;;  %v116_v61 = vrot.slane %v107_v41, %v115_v58  ;;  %v119_v62 = vsub.s32 2, %v903_v39 }
  0x55   :  { %207 = vmatmul.mubr.f32.gmra.mxu0 %v58_v52  ;;  %413 = vmatprep.subr.mxu0 %v373_v63 }
  0x56   :  { %469 = vmatprep.mubr.f32.mxu0 %v868_v0  ;;  %719 = vmatprep.subr.mxu1 %v380_v1 }
  0x57   :  { %414 = vmatpush1.msra.mxu0 %v372_v2  ;;  %720 = vmatpush3.msra.mxu1 %v380_v1 }
  0x58   :  { %415 = vmatprep.subr.mxu0 %v370_v3  ;;  %721 = vmatprep.subr.mxu1 %v377_v4 }
  0x59   :  { %416 = vmatpush1.msra.mxu0 %v369_v5  ;;  %722 = vmatpush3.msra.mxu1 %v377_v4  ;;  %v120_v4 = vrot.slane %v107_v41, %v119_v62 }
  0x5a   :  { %417 = vmatprep.subr.mxu0 %v367_v6  ;;  %723 = vmatprep.subr.mxu1 %v374_v7 }
  0x5b   :  { %418 = vmatpush1.msra.mxu0 %v366_v8  ;;  %724 = vmatpush3.msra.mxu1 %v374_v7 }
  0x5c   :  { %419 = vmatprep.subr.mxu0 %v364_v9  ;;  %725 = vmatprep.subr.mxu1 %v371_v10 }
  0x5d   :  { %420 = vmatpush1.msra.mxu0 %v363_v11  ;;  %726 = vmatpush3.msra.mxu1 %v371_v10 }
  0x5e   :  { %421 = vmatprep.subr.mxu0 %v361_v12  ;;  %727 = vmatprep.subr.mxu1 %v368_v13 }
  0x5f   :  { %422 = vmatpush1.msra.mxu0 %v360_v14  ;;  %728 = vmatpush3.msra.mxu1 %v368_v13 }
  0x60   :  { %423 = vmatprep.subr.mxu0 %v358_v15  ;;  %729 = vmatprep.subr.mxu1 %v365_v16 }
  0x61   :  { %424 = vmatpush1.msra.mxu0 %v357_v17  ;;  %730 = vmatpush3.msra.mxu1 %v365_v16 }
  0x62   :  { %425 = vmatprep.subr.mxu0 %v355_v18  ;;  %731 = vmatprep.subr.mxu1 %v362_v19 }
  0x63   :  { %426 = vmatpush1.msra.mxu0 %v354_v20  ;;  %732 = vmatpush3.msra.mxu1 %v362_v19 }
  0x64   :  { %427 = vmatprep.subr.mxu0 %v352_v21  ;;  %733 = vmatprep.subr.mxu1 %v359_v22 }
  0x65   :  { %428 = vmatpush1.msra.mxu0 %v351_v23  ;;  %734 = vmatpush3.msra.mxu1 %v359_v22 }
  0x66   :  { %429 = vmatprep.subr.mxu0 %v349_v24  ;;  %735 = vmatprep.subr.mxu1 %v356_v25 }
  0x67   :  { %430 = vmatpush1.msra.mxu0 %v348_v26  ;;  %736 = vmatpush3.msra.mxu1 %v356_v25 }
  0x68   :  { %431 = vmatprep.subr.mxu0 %v346_v27  ;;  %737 = vmatprep.subr.mxu1 %v353_v28 }
  0x69   :  { %432 = vmatpush1.msra.mxu0 %v345_v29  ;;  %738 = vmatpush3.msra.mxu1 %v353_v28 }
  0x6a   :  { %433 = vmatprep.subr.mxu0 %v343_v30  ;;  %739 = vmatprep.subr.mxu1 %v350_v31 }
  0x6b   :  { %434 = vmatpush1.msra.mxu0 %v342_v32  ;;  %740 = vmatpush3.msra.mxu1 %v350_v31 }
  0x6c   :  { %435 = vmatprep.subr.mxu0 %v340_v33  ;;  %741 = vmatprep.subr.mxu1 %v347_v34 }
  0x6d   :  { %436 = vmatpush1.msra.mxu0 %v339_v35  ;;  %742 = vmatpush3.msra.mxu1 %v347_v34 }
  0x6e   :  { %743 = vmatprep.subr.mxu1 %v344_v36 }
  0x6f   :  { %744 = vmatpush3.msra.mxu1 %v344_v36 }
  0x70   :  { %745 = vmatprep.subr.mxu1 %v341_v37 }
  0x71   :  { %746 = vmatpush3.msra.mxu1 %v341_v37 }
 0x109   :  { %v190_v43 = vpop.f32.mrf.mxu0 }
 0x10a   :  { %v191_v44 = vadd.f32 %v190_v43, %v112_v42 }
 0x10b   :  { %v192_v45 = vpop.f32.mrf.mxu0  ;;  %v711_v1 = vpop.f32.mrf.mxu1 }
 0x10c   :  { %v629_v46 = vmul.f32 -1.442695, %v191_v44  ;;  %v193_v3 = vadd.f32 %v192_v45, %v116_v61  ;;  %v285_v14 = vadd.f32 %v711_v1, %v120_v4 }
 0x10d   :  { %v196_v47 = vpop.f32.mrf.mxu0  ;;  %v279_v6 = vpop.f32.mrf.mxu1 }
 0x10e   :  { %763 = vpow2.f32 %v629_v46  ;;  %v197_v48 = vadd.f32 %v196_v47, %v112_v42  ;;  %v322_v8 = vmax.f32 %v193_v3, 0.0  ;;  %v280_v9 = vadd.f32 %v279_v6, %v120_v4 }
 0x10f   :  { %v198_v49 = vpop.f32.mrf.mxu0  ;;  %v714_v11 = vpop.f32.mrf.mxu1 }
 0x110   :  { %v630_v50 = vmul.f32 -1.442695, %v197_v48  ;;  %v199_v10 = vadd.f32 %v198_v49, %v116_v61  ;;  %v326_v15 = vsub.f32 %v322_v8, %v280_v9  ;;  %v295_v29 = vadd.f32 %v714_v11, %v120_v4 }
 0x111   :  { %v202_v51 = vpop.f32.mrf.mxu0  ;;  %v289_v18 = vpop.f32.mrf.mxu1 }
 0x112   :  { %765 = vpow2.f32 %v630_v50  ;;  %v203_v52 = vadd.f32 %v202_v51, %v112_v42  ;;  %v323_v16 = vmax.f32 %v199_v10, 0.0  ;;  %v290_v22 = vadd.f32 %v289_v18, %v120_v4 }
 0x113   :  { %v204_v53 = vpop.f32.mrf.mxu0 }
 0x114   :  { %v631_v54 = vmul.f32 -1.442695, %v203_v52  ;;  %v205_v17 = vadd.f32 %v204_v53, %v116_v61  ;;  %v327_v24 = vsub.f32 %v323_v16, %v285_v14 }
 0x115   :  { %v208_v55 = vpop.f32.mrf.mxu0 }
 0x116   :  { %767 = vpow2.f32 %v631_v54  ;;  %v209_v56 = vadd.f32 %v208_v55, %v112_v42  ;;  %v324_v25 = vmax.f32 %v205_v17, 0.0  ;;  %v388_v42 = vld [vmem:[#allocation6 + $0x3] sm:$0x7] }
 0x117   :  { %v210_v20 = vpop.f32.mrf.mxu0  ;;  %v393_v43 = vrot.slane %v388_v42, %v111_v40 }
 0x118   :  { %v632_v57 = vmul.f32 -1.442695, %v209_v56  ;;  %v211_v26 = vadd.f32 %v210_v20, %v116_v61  ;;  %v328_v30 = vsub.f32 %v324_v25, %v290_v22 }
 0x11a   :  { %769 = vpow2.f32 %v632_v57  ;;  %v325_v31 = vmax.f32 %v211_v26, 0.0 }
 0x11b   :  { %v764_v59 = vpop.eup %763 }
 0x11c   :  { %v310_v60 = vadd.f32 1.0, %v764_v59  ;;  %v329_v36 = vsub.f32 %v325_v31, %v295_v29 }
 0x11e   :  { %771 = vrcp.f32 %v310_v60 }
 0x11f   :  { %v766_v63 = vpop.eup %765 }
 0x120   :  { %v311_v2 = vadd.f32 1.0, %v766_v63  ;;  %v397_v63 = vrot.slane %v388_v42, %v115_v58 }
 0x122   :  { %773 = vrcp.f32 %v311_v2 }
 0x123   :  { %v768_v5 = vpop.eup %767 }
 0x124   :  { %v312_v7 = vadd.f32 1.0, %v768_v5  ;;  %v401_v5 = vrot.slane %v388_v42, %v119_v62 }
 0x126   :  { %775 = vrcp.f32 %v312_v7 }
 0x127   :  { %v770_v12 = vpop.eup %769 }
 0x128   :  { %v313_v13 = vadd.f32 1.0, %v770_v12 }
 0x12a   :  { %777 = vrcp.f32 %v313_v13 }
 0x12b   :  { %v772_v19 = vpop.eup %771 }
 0x12c   :  { %v330_v21 = vmul.f32 %v772_v19, %v326_v15 }
 0x12e   :  { %v334_v23 = vadd.f32 %v330_v21, %v280_v9 }
 0x12f   :  { %v774_v27 = vpop.eup %773 }
 0x130   :  { %v331_v28 = vmul.f32 %v774_v27, %v327_v24  ;;  %470 = vmatmul.mubr.f32.vlgmr.msra.gmra.mxu0 %v334_v23  ;;  %747 = vmatprep.mubr.f32.mxu1 %v334_v23 }
 0x131   :  { %475 = vmatprep.mubr.f32.mxu0 %v868_v0 }
 0x132   :  { %v335_v32 = vadd.f32 %v331_v28, %v285_v14 }
 0x133   :  { %v776_v33 = vpop.eup %775 }
 0x134   :  { %v332_v34 = vmul.f32 %v776_v33, %v328_v30  ;;  %476 = vmatmul.mubr.f32.gmra.mxu0 %v335_v32  ;;  %748 = vmatmul.mubr.f32.vlgmr.msra.gmra.mxu1 %v335_v32 }
 0x135   :  { %481 = vmatprep.mubr.f32.mxu0 %v868_v0 }
 0x136   :  { %v336_v35 = vadd.f32 %v332_v34, %v290_v22 }
 0x137   :  { %v778_v37 = vpop.eup %777 }
 0x138   :  { %v333_v38 = vmul.f32 %v778_v37, %v329_v36  ;;  %482 = vmatmul.mubr.f32.gmra.mxu0 %v336_v35  ;;  %750 = vmatprep.mubr.f32.mxu1 %v336_v35 }
 0x139   :  { %487 = vmatprep.mubr.f32.mxu0 %v868_v0 }
 0x13a   :  { %v337_v41 = vadd.f32 %v333_v38, %v295_v29 }
 0x13c   :  { %488 = vmatmul.mubr.f32.gmra.mxu0 %v337_v41  ;;  %751 = vmatmul.mubr.f32.gmra.mxu1 %v337_v41 }
 0x1f0   :  { %v471_v44 = vpop.f32.mrf.mxu0 }
 0x1f1   :  { %v472_v45 = vadd.f32 %v471_v44, %v393_v43 }
 0x1f2   :  { %v473_v46 = vpop.f32.mrf.mxu0 }
 0x1f3   :  { %v633_v47 = vmul.f32 -1.442695, %v472_v45  ;;  %v474_v4 = vadd.f32 %v473_v46, %v397_v63 }
 0x1f4   :  { %v477_v48 = vpop.f32.mrf.mxu0  ;;  %v749_v61 = vpop.f32.mrf.mxu1 }
 0x1f5   :  { %779 = vpow2.f32 %v633_v47  ;;  %v478_v49 = vadd.f32 %v477_v48, %v393_v43  ;;  %v603_v11 = vmax.f32 %v474_v4, 0.0  ;;  %v566_v17 = vadd.f32 %v749_v61, %v401_v5 }
 0x1f6   :  { %v479_v50 = vpop.f32.mrf.mxu0  ;;  %v560_v3 = vpop.f32.mrf.mxu1 }
 0x1f7   :  { %v634_v51 = vmul.f32 -1.442695, %v478_v49  ;;  %v480_v7 = vadd.f32 %v479_v50, %v397_v63  ;;  %v561_v8 = vadd.f32 %v560_v3, %v401_v5 }
 0x1f8   :  { %v483_v52 = vpop.f32.mrf.mxu0 }
 0x1f9   :  { %781 = vpow2.f32 %v634_v51  ;;  %v484_v53 = vadd.f32 %v483_v52, %v393_v43  ;;  %v604_v13 = vmax.f32 %v480_v7, 0.0  ;;  %v607_v14 = vsub.f32 %v603_v11, %v561_v8 }
 0x1fa   :  { %v485_v0 = vpop.f32.mrf.mxu0 }
 0x1fb   :  { %v635_v54 = vmul.f32 -1.442695, %v484_v53  ;;  %v486_v19 = vadd.f32 %v485_v0, %v397_v63  ;;  %v608_v20 = vsub.f32 %v604_v13, %v566_v17 }
 0x1fc   :  { %v489_v55 = vpop.f32.mrf.mxu0  ;;  %v752_v10 = vpop.f32.mrf.mxu1 }
 0x1fd   :  { %783 = vpow2.f32 %v635_v54  ;;  %v490_v56 = vadd.f32 %v489_v55, %v393_v43  ;;  %v605_v24 = vmax.f32 %v486_v19, 0.0  ;;  %v576_v29 = vadd.f32 %v752_v10, %v401_v5 }
 0x1fe   :  { %v491_v15 = vpop.f32.mrf.mxu0  ;;  %v570_v16 = vpop.f32.mrf.mxu1 }
 0x1ff   :  { %v636_v57 = vmul.f32 -1.442695, %v490_v56  ;;  %v492_v62 = vadd.f32 %v491_v15, %v397_v63  ;;  %v571_v21 = vadd.f32 %v570_v16, %v401_v5 }
 0x201   :  { %785 = vpow2.f32 %v636_v57  ;;  %v606_v26 = vmax.f32 %v492_v62, 0.0  ;;  %v609_v27 = vsub.f32 %v605_v24, %v571_v21 }
 0x202   :  { %v780_v40 = vpop.eup %779 }
 0x203   :  { %v591_v59 = vadd.f32 1.0, %v780_v40  ;;  %v610_v31 = vsub.f32 %v606_v26, %v576_v29 }
 0x205   :  { %787 = vrcp.f32 %v591_v59 }
 0x206   :  { %v782_v60 = vpop.eup %781 }
 0x207   :  { %v592_v1 = vadd.f32 1.0, %v782_v60 }
 0x209   :  { %789 = vrcp.f32 %v592_v1 }
 0x20a   :  { %v784_v2 = vpop.eup %783 }
 0x20b   :  { %v593_v6 = vadd.f32 1.0, %v784_v2 }
 0x20d   :  { %791 = vrcp.f32 %v593_v6 }
 0x20e   :  { %v786_v9 = vpop.eup %785 }
 0x20f   :  { %v594_v12 = vadd.f32 1.0, %v786_v9 }
 0x211   :  { %793 = vrcp.f32 %v594_v12 }
 0x212   :  { %v788_v58 = vpop.eup %787 }
 0x213   :  { %v611_v18 = vmul.f32 %v788_v58, %v607_v14 }
 0x215   :  { %v615_v39 = vadd.f32 %v611_v18, %v561_v8 }
 0x216   :  { %v790_v22 = vpop.eup %789 }
 0x217   :  { %v612_v23 = vmul.f32 %v790_v22, %v608_v20  ;;  %619 = vst [vmem:[%s938_s3] sm:$0xff] %v615_v39 }
 0x219   :  { %v616_v25 = vadd.f32 %v612_v23, %v566_v17 }
 0x21a   :  { %v792_v28 = vpop.eup %791 }
 0x21b   :  { %620 = vst [vmem:[%s938_s3 + $0x8] sm:$0xff] %v616_v25  ;;  %v613_v30 = vmul.f32 %v792_v28, %v609_v27 }
 0x21d   :  { %v617_v32 = vadd.f32 %v613_v30, %v571_v21 }
 0x21e   :  { %v794_v33 = vpop.eup %793 }
 0x21f   :  { %v614_v34 = vmul.f32 %v794_v33, %v610_v31  ;;  %621 = vst [vmem:[%s938_s3 + $0x10] sm:$0xff] %v617_v32 }
 0x221   :  { %v618_v35 = vadd.f32 %v614_v34, %v576_v29 }
 0x223   :  { %622 = vst [vmem:[%s938_s3 + $0x18] sm:$0xff] %v618_v35 }
 0x224   :  { %627 = vsyncpa [#allocation3], 1 }
 0x225   :  { %628 = vsyncpa [#allocation5], 1 }

// kernel: encoder_forward.3
= control target key start
LH: loop header
LB: loop body
LE: loop exit
PB: predicated region body
PF: predicated region fallthrough
CT: control target
= control target key end

     0   :  { %11 = vsyncpa [#allocation3], 0  ;;  %s10903_s0 = inlined_call_operand.vmem [shape: f32[8,4,128], index: 0, kind: input, shape index: {}]   ;;  %s10904_s1 = inlined_call_operand.hbm [shape: f32[2,128,512], index: 1, kind: input, shape index: {}]   ;;  %s10905_s2 = inlined_call_operand.hbm [shape: f32[2,128,512], index: 2, kind: input, shape index: {}]   ;;  %s10906_s3 = inlined_call_operand.vmem [shape: f32[2,1,512], index: 3, kind: input, shape index: {}]   ;;  %s10907_s4 = inlined_call_operand.vmem [shape: f32[8,4,128], index: 4, kind: output, shape index: {0}]   ;;  %s10908_s5 = inlined_call_operand.vmem [shape: f32[8,4,128], index: 5, kind: output, shape index: {1}]  }
   0x1   :  { %12 = vsyncpa [#allocation5], 0  ;;  %s6603_s18 = smov [#allocation2]  }
   0x2   :  { %s20_s19 = sshll.u32 %s6603_s18, 4  ;;  %s21_s19 = int_to_ptr.vmem [resolvable:$true] %s20_s19 }
   0x3   :  { %s6567_s20 = scalar_lea.vmem %s21_s19, 16384  ;;  %p6572_p1 = scmp.lt.s32.totalorder %s21_s19, %s21_s19 }
   0x4   :  { %p6568_p0 = scmp.ne.s32.totalorder %s21_s19, %s6567_s20  ;;  %p6573_p2 = scmp.lt.s32.totalorder %s6567_s20, %s6567_s20 }
   0x6   :  { %p6574_p3 = por %p6573_p2, %p6572_p1 }
   0x8   :  { %p6575_p4 = pnand %p6574_p3, %p6568_p0 }
   0xa   :  { %6578 = shalt.err (!%p6575_p4)
}
   0xb   :  { %s6604_s21 = smov 512   ;;  %s6605_s22 = smov 32  }
   0xc   :  { %26 = dma.hbm_to_vmem [thread:$0]  %s10904_s1, 16384, %s21_s19, [#allocation3], %s6604_s21, %s6604_s21, %s6605_s22  }
   0xd   :  { %s6606_s25 = smov [#allocation4]  }
   0xe   :  { %s32_s26 = sshll.u32 %s6606_s25, 4  ;;  %s33_s26 = int_to_ptr.vmem [resolvable:$true] %s32_s26 }
   0xf   :  { %s6587_s27 = scalar_lea.vmem %s33_s26, 16384  ;;  %p6592_p6 = scmp.lt.s32.totalorder %s33_s26, %s33_s26 }
  0x10   :  { %p6588_p5 = scmp.ne.s32.totalorder %s33_s26, %s6587_s27  ;;  %p6593_p7 = scmp.lt.s32.totalorder %s6587_s27, %s6587_s27 }
  0x12   :  { %p6594_p8 = por %p6593_p7, %p6592_p6 }
  0x14   :  { %p6595_p9 = pnand %p6594_p8, %p6588_p5 }
  0x16   :  { %6598 = shalt.err (!%p6595_p9)
}
  0x17   :  { %38 = dma.hbm_to_vmem [thread:$0]  %s10905_s2, 16384, %s33_s26, [#allocation5], %s6604_s21, %s6604_s21, %s6605_s22  }
  0x18   :  { %6599 = dma.done.wait [#allocation3], 16384  }
  0x19   :  { %6600 = vsyncadd [#allocation3], 4294950912 }
  0x1a   :  { %6601 = dma.done.wait [#allocation5], 16384  }
  0x1b   :  { %6602 = vsyncadd [#allocation5], 4294950912  ;;  %v10909_v0 = vmov 0.0   ;;  %v237_v1 = vld [vmem:[#allocation4 + $0x1e8] sm:$0xff]  ;;  %v239_v2 = vld [vmem:[#allocation4 + $0x1f8] sm:$0xff] }
  0x1c   :  { %373 = vmatprep.mubr.f32.mxu0 %v10909_v0  ;;  %444 = vmatprep.mubr.f32.mxu1 %v10909_v0  ;;  %v236_v3 = vld [vmem:[#allocation4 + $0x1e0] sm:$0xff]  ;;  %v238_v4 = vld [vmem:[#allocation4 + $0x1f0] sm:$0xff]  ;;  %v233_v5 = vld [vmem:[#allocation4 + $0x1c8] sm:$0xff] }
  0x1d   :  { %309 = vmatprep.subr.mxu0 %v237_v1  ;;  %380 = vmatprep.subr.mxu1 %v239_v2  ;;  %v235_v6 = vld [vmem:[#allocation4 + $0x1d8] sm:$0xff]  ;;  %v232_v7 = vld [vmem:[#allocation4 + $0x1c0] sm:$0xff]  ;;  %v234_v8 = vld [vmem:[#allocation4 + $0x1d0] sm:$0xff] }
  0x1e   :  { %310 = vmatpush1.msra.mxu0 %v236_v3  ;;  %381 = vmatpush1.msra.mxu1 %v238_v4  ;;  %v229_v9 = vld [vmem:[#allocation4 + $0x1a8] sm:$0xff]  ;;  %v231_v10 = vld [vmem:[#allocation4 + $0x1b8] sm:$0xff]  ;;  %v228_v11 = vld [vmem:[#allocation4 + $0x1a0] sm:$0xff] }
  0x1f   :  { %311 = vmatprep.subr.mxu0 %v233_v5  ;;  %382 = vmatprep.subr.mxu1 %v235_v6  ;;  %v230_v12 = vld [vmem:[#allocation4 + $0x1b0] sm:$0xff]  ;;  %v225_v13 = vld [vmem:[#allocation4 + $0x188] sm:$0xff]  ;;  %v227_v14 = vld [vmem:[#allocation4 + $0x198] sm:$0xff] }
  0x20   :  { %312 = vmatpush1.msra.mxu0 %v232_v7  ;;  %383 = vmatpush1.msra.mxu1 %v234_v8  ;;  %v224_v15 = vld [vmem:[#allocation4 + $0x180] sm:$0xff]  ;;  %v226_v16 = vld [vmem:[#allocation4 + $0x190] sm:$0xff]  ;;  %v221_v17 = vld [vmem:[#allocation4 + $0x168] sm:$0xff] }
  0x21   :  { %313 = vmatprep.subr.mxu0 %v229_v9  ;;  %384 = vmatprep.subr.mxu1 %v231_v10  ;;  %v223_v18 = vld [vmem:[#allocation4 + $0x178] sm:$0xff]  ;;  %v220_v19 = vld [vmem:[#allocation4 + $0x160] sm:$0xff]  ;;  %v222_v20 = vld [vmem:[#allocation4 + $0x170] sm:$0xff] }
  0x22   :  { %314 = vmatpush1.msra.mxu0 %v228_v11  ;;  %385 = vmatpush1.msra.mxu1 %v230_v12  ;;  %v217_v21 = vld [vmem:[#allocation4 + $0x148] sm:$0xff]  ;;  %v219_v22 = vld [vmem:[#allocation4 + $0x158] sm:$0xff]  ;;  %v6646_v23 = vld [vmem:[#allocation4 + $0x140] sm:$0xff] }
  0x23   :  { %315 = vmatprep.subr.mxu0 %v225_v13  ;;  %386 = vmatprep.subr.mxu1 %v227_v14  ;;  %v6648_v24 = vld [vmem:[#allocation4 + $0x150] sm:$0xff]  ;;  %v6650_v25 = vld [vmem:[#allocation4 + $0x128] sm:$0xff]  ;;  %v6652_v26 = vld [vmem:[#allocation4 + $0x138] sm:$0xff] }
  0x24   :  { %316 = vmatpush1.msra.mxu0 %v224_v15  ;;  %387 = vmatpush1.msra.mxu1 %v226_v16  ;;  %v6654_v27 = vld [vmem:[#allocation4 + $0x120] sm:$0xff]  ;;  %v6656_v28 = vld [vmem:[#allocation4 + $0x130] sm:$0xff]  ;;  %v6660_v29 = vld [vmem:[#allocation4 + $0x108] sm:$0xff] }
  0x25   :  { %317 = vmatprep.subr.mxu0 %v221_v17  ;;  %388 = vmatprep.subr.mxu1 %v223_v18  ;;  %v6662_v30 = vld [vmem:[#allocation4 + $0x118] sm:$0xff]  ;;  %v6666_v31 = vld [vmem:[#allocation4 + $0x100] sm:$0xff]  ;;  %v6668_v32 = vld [vmem:[#allocation4 + $0x110] sm:$0xff] }
  0x26   :  { %318 = vmatpush1.msra.mxu0 %v220_v19  ;;  %389 = vmatpush1.msra.mxu1 %v222_v20  ;;  %v6672_v33 = vld [vmem:[#allocation4 + $0xe8] sm:$0xff]  ;;  %v6674_v34 = vld [vmem:[#allocation4 + $0xf8] sm:$0xff]  ;;  %v6678_v35 = vld [vmem:[#allocation4 + $0xe0] sm:$0xff] }
  0x27   :  { %319 = vmatprep.subr.mxu0 %v217_v21  ;;  %390 = vmatprep.subr.mxu1 %v219_v22  ;;  %v6680_v36 = vld [vmem:[#allocation4 + $0xf0] sm:$0xff]  ;;  %v6684_v37 = vld [vmem:[#allocation4 + $0xc8] sm:$0xff]  ;;  %v6686_v38 = vld [vmem:[#allocation4 + $0xd8] sm:$0xff] }
  0x28   :  { %320 = vmatpush1.msra.mxu0 %v6646_v23  ;;  %391 = vmatpush1.msra.mxu1 %v6648_v24  ;;  %v6690_v39 = vld [vmem:[#allocation4 + $0xc0] sm:$0xff]  ;;  %v6692_v40 = vld [vmem:[#allocation4 + $0xd0] sm:$0xff]  ;;  %v6696_v41 = vld [vmem:[#allocation4 + $0xa8] sm:$0xff] }
  0x29   :  { %321 = vmatprep.subr.mxu0 %v6650_v25  ;;  %392 = vmatprep.subr.mxu1 %v6652_v26  ;;  %v6698_v42 = vld [vmem:[#allocation4 + $0xb8] sm:$0xff]  ;;  %v6702_v43 = vld [vmem:[#allocation4 + $0xa0] sm:$0xff]  ;;  %v6704_v44 = vld [vmem:[#allocation4 + $0xb0] sm:$0xff] }
  0x2a   :  { %322 = vmatpush1.msra.mxu0 %v6654_v27  ;;  %393 = vmatpush1.msra.mxu1 %v6656_v28  ;;  %v6708_v45 = vld [vmem:[#allocation4 + $0x88] sm:$0xff]  ;;  %v6710_v46 = vld [vmem:[#allocation4 + $0x98] sm:$0xff]  ;;  %v6714_v47 = vld [vmem:[#allocation4 + $0x80] sm:$0xff] }
  0x2b   :  { %323 = vmatprep.subr.mxu0 %v6660_v29  ;;  %394 = vmatprep.subr.mxu1 %v6662_v30  ;;  %v6716_v48 = vld [vmem:[#allocation4 + $0x90] sm:$0xff]  ;;  %v6720_v49 = vld [vmem:[#allocation4 + $0x68] sm:$0xff]  ;;  %v6722_v50 = vld [vmem:[#allocation4 + $0x78] sm:$0xff] }
  0x2c   :  { %324 = vmatpush1.msra.mxu0 %v6666_v31  ;;  %395 = vmatpush1.msra.mxu1 %v6668_v32  ;;  %v6726_v51 = vld [vmem:[#allocation4 + $0x60] sm:$0xff]  ;;  %v6728_v52 = vld [vmem:[#allocation4 + $0x70] sm:$0xff]  ;;  %v6732_v53 = vld [vmem:[#allocation4 + $0x48] sm:$0xff] }
  0x2d   :  { %325 = vmatprep.subr.mxu0 %v6672_v33  ;;  %396 = vmatprep.subr.mxu1 %v6674_v34  ;;  %v6734_v54 = vld [vmem:[#allocation4 + $0x58] sm:$0xff]  ;;  %v6738_v55 = vld [vmem:[#allocation4 + $0x40] sm:$0xff]  ;;  %v6740_v56 = vld [vmem:[#allocation4 + $0x50] sm:$0xff] }
  0x2e   :  { %326 = vmatpush1.msra.mxu0 %v6678_v35  ;;  %397 = vmatpush1.msra.mxu1 %v6680_v36  ;;  %v6744_v57 = vld [vmem:[#allocation4 + $0x28] sm:$0xff]  ;;  %v6746_v58 = vld [vmem:[#allocation4 + $0x38] sm:$0xff]  ;;  %v6750_v59 = vld [vmem:[#allocation4 + $0x20] sm:$0xff] }
  0x2f   :  { %327 = vmatprep.subr.mxu0 %v6684_v37  ;;  %398 = vmatprep.subr.mxu1 %v6686_v38  ;;  %v6752_v60 = vld [vmem:[#allocation4 + $0x30] sm:$0xff]  ;;  %v6756_v61 = vld [vmem:[#allocation4 + $0x8] sm:$0xff]  ;;  %v6758_v62 = vld [vmem:[#allocation4 + $0x18] sm:$0xff] }
  0x30   :  { %328 = vmatpush1.msra.mxu0 %v6690_v39  ;;  %399 = vmatpush1.msra.mxu1 %v6692_v40  ;;  %v6762_v63 = vld [vmem:[#allocation4] sm:$0xff]  ;;  %v6764_v1 = vld [vmem:[#allocation4 + $0x10] sm:$0xff]  ;;  %v6768_v2 = vld [vmem:[#allocation2 + $0x1e8] sm:$0xff] }
  0x31   :  { %329 = vmatprep.subr.mxu0 %v6696_v41  ;;  %400 = vmatprep.subr.mxu1 %v6698_v42  ;;  %v6772_v3 = vld [vmem:[#allocation2 + $0x1f8] sm:$0xff]  ;;  %v107_v4 = vld [vmem:[#allocation2 + $0x1e0] sm:$0xff]  ;;  %v109_v5 = vld [vmem:[#allocation2 + $0x1f0] sm:$0xff] }
  0x32   :  { %330 = vmatpush1.msra.mxu0 %v6702_v43  ;;  %401 = vmatpush1.msra.mxu1 %v6704_v44  ;;  %v104_v6 = vld [vmem:[#allocation2 + $0x1c8] sm:$0xff]  ;;  %v106_v7 = vld [vmem:[#allocation2 + $0x1d8] sm:$0xff]  ;;  %v103_v8 = vld [vmem:[#allocation2 + $0x1c0] sm:$0xff] }
  0x33   :  { %331 = vmatprep.subr.mxu0 %v6708_v45  ;;  %402 = vmatprep.subr.mxu1 %v6710_v46  ;;  %v105_v9 = vld [vmem:[#allocation2 + $0x1d0] sm:$0xff]  ;;  %v100_v10 = vld [vmem:[#allocation2 + $0x1a8] sm:$0xff]  ;;  %v102_v11 = vld [vmem:[#allocation2 + $0x1b8] sm:$0xff] }
  0x34   :  { %332 = vmatpush1.msra.mxu0 %v6714_v47  ;;  %403 = vmatpush1.msra.mxu1 %v6716_v48  ;;  %v99_v12 = vld [vmem:[#allocation2 + $0x1a0] sm:$0xff]  ;;  %v101_v13 = vld [vmem:[#allocation2 + $0x1b0] sm:$0xff]  ;;  %v96_v14 = vld [vmem:[#allocation2 + $0x188] sm:$0xff] }
  0x35   :  { %333 = vmatprep.subr.mxu0 %v6720_v49  ;;  %404 = vmatprep.subr.mxu1 %v6722_v50  ;;  %v98_v15 = vld [vmem:[#allocation2 + $0x198] sm:$0xff]  ;;  %v95_v16 = vld [vmem:[#allocation2 + $0x180] sm:$0xff]  ;;  %v97_v17 = vld [vmem:[#allocation2 + $0x190] sm:$0xff] }
  0x36   :  { %334 = vmatpush1.msra.mxu0 %v6726_v51  ;;  %405 = vmatpush1.msra.mxu1 %v6728_v52  ;;  %v92_v18 = vld [vmem:[#allocation2 + $0x168] sm:$0xff]  ;;  %v94_v19 = vld [vmem:[#allocation2 + $0x178] sm:$0xff]  ;;  %v91_v20 = vld [vmem:[#allocation2 + $0x160] sm:$0xff] }
  0x37   :  { %335 = vmatprep.subr.mxu0 %v6732_v53  ;;  %406 = vmatprep.subr.mxu1 %v6734_v54  ;;  %v93_v21 = vld [vmem:[#allocation2 + $0x170] sm:$0xff]  ;;  %v88_v22 = vld [vmem:[#allocation2 + $0x148] sm:$0xff] }
  0x38   :  { %336 = vmatpush1.msra.mxu0 %v6738_v55  ;;  %407 = vmatpush1.msra.mxu1 %v6740_v56 }
  0x39   :  { %337 = vmatprep.subr.mxu0 %v6744_v57  ;;  %408 = vmatprep.subr.mxu1 %v6746_v58 }
  0x3a   :  { %338 = vmatpush1.msra.mxu0 %v6750_v59  ;;  %409 = vmatpush1.msra.mxu1 %v6752_v60 }
  0x3b   :  { %339 = vmatprep.subr.mxu0 %v6756_v61  ;;  %410 = vmatprep.subr.mxu1 %v6758_v62 }
  0x3c   :  { %340 = vmatpush1.msra.mxu0 %v6762_v63  ;;  %411 = vmatpush1.msra.mxu1 %v6764_v1 }
  0x3d   :  { %374 = vmatmul.mubr.f32.vlgmr.msra.gmra.mxu0 %v10909_v0  ;;  %451 = vmatprep.subr.mxu0 %v6768_v2 }
  0x3e   :  { %522 = vmatprep.subr.mxu1 %v6772_v3  ;;  %445 = vmatmul.mubr.f32.vlgmr.msra.gmra.mxu1 %v10909_v0  ;;  %v6832_v0 = vld [vmem:[#allocation2 + $0x90] sm:$0xff] }
  0x3f   :  { %452 = vmatpush1.msra.mxu0 %v107_v4  ;;  %523 = vmatpush1.msra.mxu1 %v109_v5  ;;  %v90_v4 = vld [vmem:[#allocation2 + $0x158] sm:$0xff]  ;;  %v87_v5 = vld [vmem:[#allocation2 + $0x140] sm:$0xff]  ;;  %11653 = vst [vmem:[#allocation19_spill] sm:$0xff] %v6832_v0 }
  0x40   :  { %453 = vmatprep.subr.mxu0 %v104_v6  ;;  %524 = vmatprep.subr.mxu1 %v106_v7  ;;  %v89_v6 = vld [vmem:[#allocation2 + $0x150] sm:$0xff]  ;;  %v84_v7 = vld [vmem:[#allocation2 + $0x128] sm:$0xff] }
  0x41   :  { %454 = vmatpush1.msra.mxu0 %v103_v8  ;;  %525 = vmatpush1.msra.mxu1 %v105_v9  ;;  %v86_v8 = vld [vmem:[#allocation2 + $0x138] sm:$0xff]  ;;  %v6780_v9 = vld [vmem:[#allocation2 + $0x120] sm:$0xff] }
  0x42   :  { %455 = vmatprep.subr.mxu0 %v100_v10  ;;  %526 = vmatprep.subr.mxu1 %v102_v11  ;;  %v85_v10 = vld [vmem:[#allocation2 + $0x130] sm:$0xff]  ;;  %v6782_v11 = vld [vmem:[#allocation2 + $0x108] sm:$0xff] }
  0x43   :  { %456 = vmatpush1.msra.mxu0 %v99_v12  ;;  %527 = vmatpush1.msra.mxu1 %v101_v13  ;;  %v6784_v12 = vld [vmem:[#allocation2 + $0x118] sm:$0xff]  ;;  %v6786_v13 = vld [vmem:[#allocation2 + $0x100] sm:$0xff] }
  0x44   :  { %457 = vmatprep.subr.mxu0 %v96_v14  ;;  %528 = vmatprep.subr.mxu1 %v98_v15  ;;  %v81_v14 = vld [vmem:[#allocation2 + $0x110] sm:$0xff]  ;;  %v6789_v15 = vld [vmem:[#allocation2 + $0xe8] sm:$0xff] }
  0x45   :  { %458 = vmatpush1.msra.mxu0 %v95_v16  ;;  %529 = vmatpush1.msra.mxu1 %v97_v17  ;;  %v6791_v16 = vld [vmem:[#allocation2 + $0xf8] sm:$0xff]  ;;  %v6795_v17 = vld [vmem:[#allocation2 + $0xe0] sm:$0xff] }
  0x46   :  { %459 = vmatprep.subr.mxu0 %v92_v18  ;;  %530 = vmatprep.subr.mxu1 %v94_v19  ;;  %v6797_v18 = vld [vmem:[#allocation2 + $0xf0] sm:$0xff]  ;;  %v6800_v19 = vld [vmem:[#allocation2 + $0xc8] sm:$0xff] }
  0x47   :  { %460 = vmatpush1.msra.mxu0 %v91_v20  ;;  %531 = vmatpush1.msra.mxu1 %v93_v21  ;;  %11642 = vst [vmem:[#allocation8_spill] sm:$0xff] %v6800_v19  ;;  %v6802_v20 = vld [vmem:[#allocation2 + $0xd8] sm:$0xff]  ;;  %v6806_v21 = vld [vmem:[#allocation2 + $0xc0] sm:$0xff] }
  0x48   :  { %461 = vmatprep.subr.mxu0 %v88_v22  ;;  %532 = vmatprep.subr.mxu1 %v90_v4  ;;  %11643 = vst [vmem:[#allocation9_spill] sm:$0xff] %v6802_v20  ;;  %11644 = vst [vmem:[#allocation10_spill] sm:$0xff] %v6806_v21  ;;  %v6808_v22 = vld [vmem:[#allocation2 + $0xd0] sm:$0xff]  ;;  %v6812_v4 = vld [vmem:[#allocation2 + $0xa8] sm:$0xff] }
  0x49   :  { %462 = vmatpush1.msra.mxu0 %v87_v5  ;;  %533 = vmatpush1.msra.mxu1 %v89_v6  ;;  %11645 = vst [vmem:[#allocation11_spill] sm:$0xff] %v6808_v22  ;;  %11646 = vst [vmem:[#allocation12_spill] sm:$0xff] %v6812_v4  ;;  %v6814_v5 = vld [vmem:[#allocation2 + $0xb8] sm:$0xff]  ;;  %v6818_v6 = vld [vmem:[#allocation2 + $0xa0] sm:$0xff] }
  0x4a   :  { %463 = vmatprep.subr.mxu0 %v84_v7  ;;  %534 = vmatprep.subr.mxu1 %v86_v8  ;;  %11647 = vst [vmem:[#allocation13_spill] sm:$0xff] %v6814_v5  ;;  %11648 = vst [vmem:[#allocation14_spill] sm:$0xff] %v6818_v6  ;;  %v6820_v7 = vld [vmem:[#allocation2 + $0xb0] sm:$0xff]  ;;  %v6824_v8 = vld [vmem:[#allocation2 + $0x88] sm:$0xff] }
  0x4b   :  { %464 = vmatpush1.msra.mxu0 %v6780_v9  ;;  %535 = vmatpush1.msra.mxu1 %v85_v10  ;;  %11649 = vst [vmem:[#allocation15_spill] sm:$0xff] %v6820_v7  ;;  %11650 = vst [vmem:[#allocation16_spill] sm:$0xff] %v6824_v8  ;;  %v6826_v10 = vld [vmem:[#allocation2 + $0x98] sm:$0xff] }
  0x4c   :  { %465 = vmatprep.subr.mxu0 %v6782_v11  ;;  %536 = vmatprep.subr.mxu1 %v6784_v12  ;;  %11651 = vst [vmem:[#allocation17_spill] sm:$0xff] %v6826_v10 }
  0x4d   :  { %466 = vmatpush1.msra.mxu0 %v6786_v13  ;;  %537 = vmatpush1.msra.mxu1 %v81_v14  ;;  %v6830_v14 = vld [vmem:[#allocation2 + $0x80] sm:$0xff] }
  0x4e   :  { %467 = vmatprep.subr.mxu0 %v6789_v15  ;;  %538 = vmatprep.subr.mxu1 %v6791_v16  ;;  %11652 = vst [vmem:[#allocation18_spill] sm:$0xff] %v6830_v14 }
  0x4f   :  { %468 = vmatpush1.msra.mxu0 %v6795_v17  ;;  %539 = vmatpush1.msra.mxu1 %v6797_v18 }
  0x50   :  { %469 = vmatprep.subr.mxu0 %v6800_v19  ;;  %540 = vmatprep.subr.mxu1 %v6802_v20  ;;  %v6836_v20 = vld [vmem:[#allocation2 + $0x68] sm:$0xff]  ;;  %v6915_v19 = vld [vmem:[#allocation4 + $0x3b8] sm:$0xff] }
  0x51   :  { %470 = vmatpush1.msra.mxu0 %v6806_v21  ;;  %541 = vmatpush1.msra.mxu1 %v6808_v22  ;;  %11654 = vst [vmem:[#allocation20_spill] sm:$0xff] %v6836_v20  ;;  %v6838_v21 = vld [vmem:[#allocation2 + $0x78] sm:$0xff]  ;;  %v6842_v22 = vld [vmem:[#allocation2 + $0x60] sm:$0xff]  ;;  %11680 = vst [vmem:[#allocation45_spill] sm:$0xff] %v6915_v19 }
  0x52   :  { %471 = vmatprep.subr.mxu0 %v6812_v4  ;;  %542 = vmatprep.subr.mxu1 %v6814_v5  ;;  %11655 = vst [vmem:[#allocation21_spill] sm:$0xff] %v6838_v21  ;;  %11656 = vst [vmem:[#allocation22_spill] sm:$0xff] %v6842_v22  ;;  %v6844_v4 = vld [vmem:[#allocation2 + $0x70] sm:$0xff]  ;;  %v6848_v5 = vld [vmem:[#allocation2 + $0x48] sm:$0xff] }
  0x53   :  { %472 = vmatpush1.msra.mxu0 %v6818_v6  ;;  %543 = vmatpush1.msra.mxu1 %v6820_v7  ;;  %11657 = vst [vmem:[#allocation23_spill] sm:$0xff] %v6844_v4  ;;  %11658 = vst [vmem:[#allocation24_spill] sm:$0xff] %v6848_v5  ;;  %v6850_v6 = vld [vmem:[#allocation2 + $0x58] sm:$0xff]  ;;  %v6854_v7 = vld [vmem:[#allocation2 + $0x40] sm:$0xff] }
  0x54   :  { %473 = vmatprep.subr.mxu0 %v6824_v8  ;;  %544 = vmatprep.subr.mxu1 %v6826_v10  ;;  %11659 = vst [vmem:[#allocation25_spill] sm:$0xff] %v6850_v6  ;;  %11660 = vst [vmem:[#allocation26_spill] sm:$0xff] %v6854_v7  ;;  %v6856_v8 = vld [vmem:[#allocation2 + $0x50] sm:$0xff]  ;;  %v6860_v10 = vld [vmem:[#allocation2 + $0x28] sm:$0xff] }
  0x55   :  { %474 = vmatpush1.msra.mxu0 %v6830_v14  ;;  %545 = vmatpush1.msra.mxu1 %v6832_v0  ;;  %11661 = vst [vmem:[#allocation27_spill] sm:$0xff] %v6856_v8  ;;  %11662 = vst [vmem:[#allocation28_spill] sm:$0xff] %v6860_v10  ;;  %v6862_v14 = vld [vmem:[#allocation2 + $0x38] sm:$0xff]  ;;  %v6866_v0 = vld [vmem:[#allocation2 + $0x20] sm:$0xff] }
  0x56   :  { %475 = vmatprep.subr.mxu0 %v6836_v20  ;;  %546 = vmatprep.subr.mxu1 %v6838_v21  ;;  %11663 = vst [vmem:[#allocation29_spill] sm:$0xff] %v6862_v14  ;;  %11664 = vst [vmem:[#allocation30_spill] sm:$0xff] %v6866_v0  ;;  %v6868_v20 = vld [vmem:[#allocation2 + $0x30] sm:$0xff]  ;;  %v6872_v21 = vld [vmem:[#allocation2 + $0x8] sm:$0xff] }
  0x57   :  { %476 = vmatpush1.msra.mxu0 %v6842_v22  ;;  %547 = vmatpush1.msra.mxu1 %v6844_v4  ;;  %11665 = vst [vmem:[#allocation31_spill] sm:$0xff] %v6868_v20  ;;  %11666 = vst [vmem:[#allocation32_spill] sm:$0xff] %v6872_v21  ;;  %v6874_v22 = vld [vmem:[#allocation2 + $0x18] sm:$0xff]  ;;  %v6878_v4 = vld [vmem:[#allocation2] sm:$0xff] }
  0x58   :  { %477 = vmatprep.subr.mxu0 %v6848_v5  ;;  %548 = vmatprep.subr.mxu1 %v6850_v6  ;;  %11667 = vst [vmem:[#allocation33_spill] sm:$0xff] %v6874_v22  ;;  %11668 = vst [vmem:[#allocation34_spill] sm:$0xff] %v6878_v4  ;;  %v6882_v6 = vld [vmem:[#allocation2 + $0x10] sm:$0xff] }
  0x59   :  { %478 = vmatpush1.msra.mxu0 %v6854_v7  ;;  %549 = vmatpush1.msra.mxu1 %v6856_v8  ;;  %11669 = vst [vmem:[#allocation35_spill] sm:$0xff] %v6882_v6  ;;  %v308_v8 = vld [vmem:[%s10903_s0] sm:$0xf]  ;;  %v6893_v7 = vld [vmem:[#allocation4 + $0x3f8] sm:$0xff]  ;;  %v6909_v5 = vld [vmem:[#allocation4 + $0x3d0] sm:$0xff] }
  0x5a   :  { %479 = vmatprep.subr.mxu0 %v6860_v10  ;;  %550 = vmatprep.subr.mxu1 %v6862_v14  ;;  %v11670_v10 = vmov 0.0   ;;  %v6891_v14 = vld [vmem:[#allocation4 + $0x3e8] sm:$0xff]  ;;  %11672 = vst [vmem:[#allocation37_spill] sm:$0xff] %v6893_v7  ;;  %11678 = vst [vmem:[#allocation43_spill] sm:$0xff] %v6909_v5 }
  0x5b   :  { %480 = vmatpush1.msra.mxu0 %v6866_v0  ;;  %551 = vmatpush1.msra.mxu1 %v6868_v20  ;;  %11671 = vst [vmem:[#allocation36_spill] sm:$0xff] %v6891_v14  ;;  %v6897_v20 = vld [vmem:[#allocation4 + $0x3e0] sm:$0xff]  ;;  %v6903_v0 = vld [vmem:[#allocation4 + $0x3d8] sm:$0xff] }
  0x5c   :  { %481 = vmatprep.subr.mxu0 %v6872_v21  ;;  %552 = vmatprep.subr.mxu1 %v6874_v22  ;;  %11673 = vst [vmem:[#allocation38_spill] sm:$0xff] %v6897_v20  ;;  %v6899_v21 = vld [vmem:[#allocation4 + $0x3f0] sm:$0xff]  ;;  %v6901_v22 = vld [vmem:[#allocation4 + $0x3c8] sm:$0xff]  ;;  %11676 = vst [vmem:[#allocation41_spill] sm:$0xff] %v6903_v0 }
  0x5d   :  { %482 = vmatpush1.msra.mxu0 %v6878_v4  ;;  %515 = vmatprep.mubr.f32.mxu0 %v11670_v10  ;;  %11674 = vst [vmem:[#allocation39_spill] sm:$0xff] %v6899_v21  ;;  %11675 = vst [vmem:[#allocation40_spill] sm:$0xff] %v6901_v22  ;;  %v6907_v4 = vld [vmem:[#allocation4 + $0x3c0] sm:$0xff] }
  0x5e   :  { %553 = vmatpush1.msra.mxu1 %v6882_v6  ;;  %586 = vmatprep.mubr.f32.mxu1 %v11670_v10  ;;  %11677 = vst [vmem:[#allocation42_spill] sm:$0xff] %v6907_v4  ;;  %v6913_v6 = vld [vmem:[#allocation4 + $0x3a8] sm:$0xff] }
  0x5f   :  { %516 = vmatmul.mubr.f32.vlgmr.msra.gmra.mxu0 %v308_v8  ;;  %587 = vmatmul.mubr.f32.vlgmr.msra.gmra.mxu1 %v308_v8  ;;  %11679 = vst [vmem:[#allocation44_spill] sm:$0xff] %v6913_v6  ;;  %v6919_v8 = vld [vmem:[#allocation4 + $0x3a0] sm:$0xff] }
  0x60   :  { %645 = vmatprep.subr.mxu0 %v6891_v14  ;;  %716 = vmatprep.subr.mxu1 %v6893_v7  ;;  %11681 = vst [vmem:[#allocation46_spill] sm:$0xff] %v6919_v8  ;;  %v6921_v14 = vld [vmem:[#allocation4 + $0x3b0] sm:$0xff]  ;;  %v6925_v7 = vld [vmem:[#allocation4 + $0x388] sm:$0xff] }
  0x61   :  { %646 = vmatpush1.msra.mxu0 %v6897_v20  ;;  %717 = vmatpush1.msra.mxu1 %v6899_v21  ;;  %11682 = vst [vmem:[#allocation47_spill] sm:$0xff] %v6921_v14  ;;  %11683 = vst [vmem:[#allocation48_spill] sm:$0xff] %v6925_v7  ;;  %v6927_v20 = vld [vmem:[#allocation4 + $0x398] sm:$0xff]  ;;  %v6931_v21 = vld [vmem:[#allocation4 + $0x380] sm:$0xff] }
  0x62   :  { %647 = vmatprep.subr.mxu0 %v6901_v22  ;;  %718 = vmatprep.subr.mxu1 %v6903_v0  ;;  %11684 = vst [vmem:[#allocation49_spill] sm:$0xff] %v6927_v20  ;;  %11685 = vst [vmem:[#allocation50_spill] sm:$0xff] %v6931_v21  ;;  %v6933_v22 = vld [vmem:[#allocation4 + $0x390] sm:$0xff]  ;;  %v6937_v0 = vld [vmem:[#allocation4 + $0x368] sm:$0xff] }
  0x63   :  { %648 = vmatpush1.msra.mxu0 %v6907_v4  ;;  %719 = vmatpush1.msra.mxu1 %v6909_v5  ;;  %11686 = vst [vmem:[#allocation51_spill] sm:$0xff] %v6933_v22  ;;  %11687 = vst [vmem:[#allocation52_spill] sm:$0xff] %v6937_v0  ;;  %v6939_v4 = vld [vmem:[#allocation4 + $0x378] sm:$0xff]  ;;  %v6943_v5 = vld [vmem:[#allocation4 + $0x360] sm:$0xff] }
  0x64   :  { %649 = vmatprep.subr.mxu0 %v6913_v6  ;;  %720 = vmatprep.subr.mxu1 %v6915_v19  ;;  %11688 = vst [vmem:[#allocation53_spill] sm:$0xff] %v6939_v4  ;;  %11689 = vst [vmem:[#allocation54_spill] sm:$0xff] %v6943_v5  ;;  %v6945_v6 = vld [vmem:[#allocation4 + $0x370] sm:$0xff]  ;;  %v6949_v19 = vld [vmem:[#allocation4 + $0x348] sm:$0xff] }
  0x65   :  { %650 = vmatpush1.msra.mxu0 %v6919_v8  ;;  %721 = vmatpush1.msra.mxu1 %v6921_v14  ;;  %11690 = vst [vmem:[#allocation55_spill] sm:$0xff] %v6945_v6  ;;  %11691 = vst [vmem:[#allocation56_spill] sm:$0xff] %v6949_v19  ;;  %v6951_v8 = vld [vmem:[#allocation4 + $0x358] sm:$0xff]  ;;  %v6955_v14 = vld [vmem:[#allocation4 + $0x340] sm:$0xff] }
  0x66   :  { %651 = vmatprep.subr.mxu0 %v6925_v7  ;;  %722 = vmatprep.subr.mxu1 %v6927_v20  ;;  %11692 = vst [vmem:[#allocation57_spill] sm:$0xff] %v6951_v8  ;;  %11693 = vst [vmem:[#allocation58_spill] sm:$0xff] %v6955_v14  ;;  %v6957_v7 = vld [vmem:[#allocation4 + $0x350] sm:$0xff]  ;;  %v6961_v20 = vld [vmem:[#allocation4 + $0x328] sm:$0xff] }
  0x67   :  { %652 = vmatpush1.msra.mxu0 %v6931_v21  ;;  %723 = vmatpush1.msra.mxu1 %v6933_v22  ;;  %11694 = vst [vmem:[#allocation59_spill] sm:$0xff] %v6957_v7  ;;  %11695 = vst [vmem:[#allocation60_spill] sm:$0xff] %v6961_v20  ;;  %v6963_v21 = vld [vmem:[#allocation4 + $0x338] sm:$0xff]  ;;  %v6967_v22 = vld [vmem:[#allocation4 + $0x320] sm:$0xff] }
  0x68   :  { %653 = vmatprep.subr.mxu0 %v6937_v0  ;;  %724 = vmatprep.subr.mxu1 %v6939_v4  ;;  %11696 = vst [vmem:[#allocation61_spill] sm:$0xff] %v6963_v21  ;;  %11697 = vst [vmem:[#allocation62_spill] sm:$0xff] %v6967_v22  ;;  %v6969_v0 = vld [vmem:[#allocation4 + $0x330] sm:$0xff]  ;;  %v6973_v4 = vld [vmem:[#allocation4 + $0x308] sm:$0xff] }
  0x69   :  { %654 = vmatpush1.msra.mxu0 %v6943_v5  ;;  %725 = vmatpush1.msra.mxu1 %v6945_v6  ;;  %11698 = vst [vmem:[#allocation63_spill] sm:$0xff] %v6969_v0  ;;  %11699 = vst [vmem:[#allocation64_spill] sm:$0xff] %v6973_v4  ;;  %v6975_v5 = vld [vmem:[#allocation4 + $0x318] sm:$0xff]  ;;  %v6979_v6 = vld [vmem:[#allocation4 + $0x300] sm:$0xff] }
  0x6a   :  { %655 = vmatprep.subr.mxu0 %v6949_v19  ;;  %726 = vmatprep.subr.mxu1 %v6951_v8  ;;  %11700 = vst [vmem:[#allocation65_spill] sm:$0xff] %v6975_v5  ;;  %11701 = vst [vmem:[#allocation66_spill] sm:$0xff] %v6979_v6  ;;  %v6981_v19 = vld [vmem:[#allocation4 + $0x310] sm:$0xff]  ;;  %v6985_v8 = vld [vmem:[#allocation4 + $0x2e8] sm:$0xff] }
  0x6b   :  { %656 = vmatpush1.msra.mxu0 %v6955_v14  ;;  %727 = vmatpush1.msra.mxu1 %v6957_v7  ;;  %11702 = vst [vmem:[#allocation67_spill] sm:$0xff] %v6981_v19  ;;  %11703 = vst [vmem:[#allocation68_spill] sm:$0xff] %v6985_v8  ;;  %v6987_v14 = vld [vmem:[#allocation4 + $0x2f8] sm:$0xff]  ;;  %v6991_v7 = vld [vmem:[#allocation4 + $0x2e0] sm:$0xff] }
  0x6c   :  { %657 = vmatprep.subr.mxu0 %v6961_v20  ;;  %728 = vmatprep.subr.mxu1 %v6963_v21  ;;  %11704 = vst [vmem:[#allocation69_spill] sm:$0xff] %v6987_v14  ;;  %11705 = vst [vmem:[#allocation70_spill] sm:$0xff] %v6991_v7  ;;  %v6993_v20 = vld [vmem:[#allocation4 + $0x2f0] sm:$0xff]  ;;  %v6997_v21 = vld [vmem:[#allocation4 + $0x2c8] sm:$0xff] }
  0x6d   :  { %658 = vmatpush1.msra.mxu0 %v6967_v22  ;;  %729 = vmatpush1.msra.mxu1 %v6969_v0  ;;  %11706 = vst [vmem:[#allocation71_spill] sm:$0xff] %v6993_v20  ;;  %11707 = vst [vmem:[#allocation72_spill] sm:$0xff] %v6997_v21  ;;  %v6999_v22 = vld [vmem:[#allocation4 + $0x2d8] sm:$0xff]  ;;  %v7003_v0 = vld [vmem:[#allocation4 + $0x2c0] sm:$0xff] }
  0x6e   :  { %659 = vmatprep.subr.mxu0 %v6973_v4  ;;  %730 = vmatprep.subr.mxu1 %v6975_v5  ;;  %11708 = vst [vmem:[#allocation73_spill] sm:$0xff] %v6999_v22  ;;  %11709 = vst [vmem:[#allocation74_spill] sm:$0xff] %v7003_v0  ;;  %v7005_v4 = vld [vmem:[#allocation4 + $0x2d0] sm:$0xff]  ;;  %v7009_v5 = vld [vmem:[#allocation4 + $0x2a8] sm:$0xff] }
  0x6f   :  { %660 = vmatpush1.msra.mxu0 %v6979_v6  ;;  %731 = vmatpush1.msra.mxu1 %v6981_v19  ;;  %11710 = vst [vmem:[#allocation75_spill] sm:$0xff] %v7005_v4  ;;  %11711 = vst [vmem:[#allocation76_spill] sm:$0xff] %v7009_v5  ;;  %v7011_v6 = vld [vmem:[#allocation4 + $0x2b8] sm:$0xff]  ;;  %v7015_v19 = vld [vmem:[#allocation4 + $0x2a0] sm:$0xff] }
  0x70   :  { %661 = vmatprep.subr.mxu0 %v6985_v8  ;;  %732 = vmatprep.subr.mxu1 %v6987_v14  ;;  %11712 = vst [vmem:[#allocation77_spill] sm:$0xff] %v7011_v6  ;;  %11713 = vst [vmem:[#allocation78_spill] sm:$0xff] %v7015_v19  ;;  %v7017_v8 = vld [vmem:[#allocation4 + $0x2b0] sm:$0xff]  ;;  %v7021_v14 = vld [vmem:[#allocation4 + $0x288] sm:$0xff] }
  0x71   :  { %662 = vmatpush1.msra.mxu0 %v6991_v7  ;;  %733 = vmatpush1.msra.mxu1 %v6993_v20  ;;  %11714 = vst [vmem:[#allocation79_spill] sm:$0xff] %v7017_v8  ;;  %11715 = vst [vmem:[#allocation80_spill] sm:$0xff] %v7021_v14  ;;  %v7023_v7 = vld [vmem:[#allocation4 + $0x298] sm:$0xff]  ;;  %v7027_v20 = vld [vmem:[#allocation4 + $0x280] sm:$0xff] }
  0x72   :  { %663 = vmatprep.subr.mxu0 %v6997_v21  ;;  %734 = vmatprep.subr.mxu1 %v6999_v22  ;;  %11716 = vst [vmem:[#allocation81_spill] sm:$0xff] %v7023_v7  ;;  %11717 = vst [vmem:[#allocation82_spill] sm:$0xff] %v7027_v20  ;;  %v7029_v21 = vld [vmem:[#allocation4 + $0x290] sm:$0xff]  ;;  %v7033_v22 = vld [vmem:[#allocation4 + $0x268] sm:$0xff] }
  0x73   :  { %664 = vmatpush1.msra.mxu0 %v7003_v0  ;;  %735 = vmatpush1.msra.mxu1 %v7005_v4  ;;  %11718 = vst [vmem:[#allocation83_spill] sm:$0xff] %v7029_v21  ;;  %11719 = vst [vmem:[#allocation84_spill] sm:$0xff] %v7033_v22  ;;  %v7035_v0 = vld [vmem:[#allocation4 + $0x278] sm:$0xff]  ;;  %v7039_v4 = vld [vmem:[#allocation4 + $0x260] sm:$0xff] }
  0x74   :  { %665 = vmatprep.subr.mxu0 %v7009_v5  ;;  %736 = vmatprep.subr.mxu1 %v7011_v6  ;;  %11720 = vst [vmem:[#allocation85_spill] sm:$0xff] %v7035_v0  ;;  %11721 = vst [vmem:[#allocation86_spill] sm:$0xff] %v7039_v4  ;;  %v7041_v5 = vld [vmem:[#allocation4 + $0x270] sm:$0xff]  ;;  %v7045_v6 = vld [vmem:[#allocation4 + $0x248] sm:$0xff] }
  0x75   :  { %666 = vmatpush1.msra.mxu0 %v7015_v19  ;;  %737 = vmatpush1.msra.mxu1 %v7017_v8  ;;  %11722 = vst [vmem:[#allocation87_spill] sm:$0xff] %v7041_v5  ;;  %11723 = vst [vmem:[#allocation88_spill] sm:$0xff] %v7045_v6  ;;  %v7047_v19 = vld [vmem:[#allocation4 + $0x258] sm:$0xff]  ;;  %v7051_v8 = vld [vmem:[#allocation4 + $0x240] sm:$0xff] }
  0x76   :  { %667 = vmatprep.subr.mxu0 %v7021_v14  ;;  %738 = vmatprep.subr.mxu1 %v7023_v7  ;;  %11724 = vst [vmem:[#allocation89_spill] sm:$0xff] %v7047_v19  ;;  %11725 = vst [vmem:[#allocation90_spill] sm:$0xff] %v7051_v8  ;;  %v7053_v14 = vld [vmem:[#allocation4 + $0x250] sm:$0xff]  ;;  %v7057_v7 = vld [vmem:[#allocation4 + $0x228] sm:$0xff] }
  0x77   :  { %668 = vmatpush1.msra.mxu0 %v7027_v20  ;;  %739 = vmatpush1.msra.mxu1 %v7029_v21  ;;  %11726 = vst [vmem:[#allocation91_spill] sm:$0xff] %v7053_v14  ;;  %11727 = vst [vmem:[#allocation92_spill] sm:$0xff] %v7057_v7  ;;  %v7059_v20 = vld [vmem:[#allocation4 + $0x238] sm:$0xff]  ;;  %v7063_v21 = vld [vmem:[#allocation4 + $0x220] sm:$0xff] }
  0x78   :  { %669 = vmatprep.subr.mxu0 %v7033_v22  ;;  %740 = vmatprep.subr.mxu1 %v7035_v0  ;;  %11728 = vst [vmem:[#allocation93_spill] sm:$0xff] %v7059_v20  ;;  %11729 = vst [vmem:[#allocation94_spill] sm:$0xff] %v7063_v21  ;;  %v7065_v22 = vld [vmem:[#allocation4 + $0x230] sm:$0xff]  ;;  %v7069_v0 = vld [vmem:[#allocation4 + $0x208] sm:$0xff] }
  0x79   :  { %670 = vmatpush1.msra.mxu0 %v7039_v4  ;;  %741 = vmatpush1.msra.mxu1 %v7041_v5  ;;  %11730 = vst [vmem:[#allocation95_spill] sm:$0xff] %v7065_v22  ;;  %11731 = vst [vmem:[#allocation96_spill] sm:$0xff] %v7069_v0  ;;  %v7071_v4 = vld [vmem:[#allocation4 + $0x218] sm:$0xff]  ;;  %v7075_v5 = vld [vmem:[#allocation4 + $0x200] sm:$0xff] }
  0x7a   :  { %671 = vmatprep.subr.mxu0 %v7045_v6  ;;  %742 = vmatprep.subr.mxu1 %v7047_v19  ;;  %11732 = vst [vmem:[#allocation97_spill] sm:$0xff] %v7071_v4  ;;  %11733 = vst [vmem:[#allocation98_spill] sm:$0xff] %v7075_v5  ;;  %v7079_v19 = vld [vmem:[#allocation4 + $0x210] sm:$0xff]  ;;  %v7121_v6 = vld [vmem:[#allocation2 + $0x388] sm:$0xff] }
  0x7b   :  { %672 = vmatpush1.msra.mxu0 %v7051_v8  ;;  %743 = vmatpush1.msra.mxu1 %v7053_v14  ;;  %11734 = vst [vmem:[#allocation99_spill] sm:$0xff] %v7079_v19  ;;  %v7083_v14 = vld [vmem:[#allocation2 + $0x3e8] sm:$0xff]  ;;  %v7111_v8 = vld [vmem:[#allocation2 + $0x3b8] sm:$0xff]  ;;  %11747 = vst [vmem:[#allocation112_spill] sm:$0xff] %v7121_v6 }
  0x7c   :  { %673 = vmatprep.subr.mxu0 %v7057_v7  ;;  %744 = vmatprep.subr.mxu1 %v7059_v20  ;;  %11735 = vst [vmem:[#allocation100_spill] sm:$0xff] %v7083_v14  ;;  %v7087_v7 = vld [vmem:[#allocation2 + $0x3f8] sm:$0xff]  ;;  %v7109_v20 = vld [vmem:[#allocation2 + $0x3a8] sm:$0xff]  ;;  %11744 = vst [vmem:[#allocation109_spill] sm:$0xff] %v7111_v8 }
  0x7d   :  { %674 = vmatpush1.msra.mxu0 %v7063_v21  ;;  %745 = vmatpush1.msra.mxu1 %v7065_v22  ;;  %11736 = vst [vmem:[#allocation101_spill] sm:$0xff] %v7087_v7  ;;  %v7091_v21 = vld [vmem:[#allocation2 + $0x3e0] sm:$0xff]  ;;  %v7093_v22 = vld [vmem:[#allocation2 + $0x3f0] sm:$0xff]  ;;  %11743 = vst [vmem:[#allocation108_spill] sm:$0xff] %v7109_v20 }
  0x7e   :  { %675 = vmatprep.subr.mxu0 %v7069_v0  ;;  %746 = vmatprep.subr.mxu1 %v7071_v4  ;;  %11737 = vst [vmem:[#allocation102_spill] sm:$0xff] %v7091_v21  ;;  %11738 = vst [vmem:[#allocation103_spill] sm:$0xff] %v7093_v22  ;;  %v7097_v4 = vld [vmem:[#allocation2 + $0x3c8] sm:$0xff]  ;;  %v7099_v0 = vld [vmem:[#allocation2 + $0x3d8] sm:$0xff] }
  0x7f   :  { %676 = vmatpush1.msra.mxu0 %v7075_v5  ;;  %709 = vmatprep.mubr.f32.mxu0 %v11670_v10  ;;  %11739 = vst [vmem:[#allocation104_spill] sm:$0xff] %v7097_v4  ;;  %11740 = vst [vmem:[#allocation105_spill] sm:$0xff] %v7099_v0  ;;  %v7103_v5 = vld [vmem:[#allocation2 + $0x3c0] sm:$0xff] }
  0x80   :  { %747 = vmatpush1.msra.mxu1 %v7079_v19  ;;  %710 = vmatmul.mubr.f32.vlgmr.msra.gmra.mxu0 %v11670_v10  ;;  %11741 = vst [vmem:[#allocation106_spill] sm:$0xff] %v7103_v5  ;;  %v7105_v19 = vld [vmem:[#allocation2 + $0x3d0] sm:$0xff] }
  0x81   :  { %780 = vmatprep.mubr.f32.mxu1 %v11670_v10  ;;  %787 = vmatprep.subr.mxu0 %v7083_v14  ;;  %11742 = vst [vmem:[#allocation107_spill] sm:$0xff] %v7105_v19  ;;  %v7115_v14 = vld [vmem:[#allocation2 + $0x3a0] sm:$0xff] }
  0x82   :  { %858 = vmatprep.subr.mxu1 %v7087_v7  ;;  %781 = vmatmul.mubr.f32.vlgmr.msra.gmra.mxu1 %v11670_v10  ;;  %11745 = vst [vmem:[#allocation110_spill] sm:$0xff] %v7115_v14  ;;  %v7117_v7 = vld [vmem:[#allocation2 + $0x3b0] sm:$0xff] }
  0x83   :  { %788 = vmatpush1.msra.mxu0 %v7091_v21  ;;  %859 = vmatpush1.msra.mxu1 %v7093_v22  ;;  %11746 = vst [vmem:[#allocation111_spill] sm:$0xff] %v7117_v7  ;;  %v7123_v21 = vld [vmem:[#allocation2 + $0x398] sm:$0xff]  ;;  %v7127_v22 = vld [vmem:[#allocation2 + $0x380] sm:$0xff] }
  0x84   :  { %789 = vmatprep.subr.mxu0 %v7097_v4  ;;  %860 = vmatprep.subr.mxu1 %v7099_v0  ;;  %11748 = vst [vmem:[#allocation113_spill] sm:$0xff] %v7123_v21  ;;  %11749 = vst [vmem:[#allocation114_spill] sm:$0xff] %v7127_v22  ;;  %v7129_v4 = vld [vmem:[#allocation2 + $0x390] sm:$0xff]  ;;  %v7133_v0 = vld [vmem:[#allocation2 + $0x368] sm:$0xff] }
  0x85   :  { %790 = vmatpush1.msra.mxu0 %v7103_v5  ;;  %861 = vmatpush1.msra.mxu1 %v7105_v19  ;;  %11750 = vst [vmem:[#allocation115_spill] sm:$0xff] %v7129_v4  ;;  %11751 = vst [vmem:[#allocation116_spill] sm:$0xff] %v7133_v0  ;;  %v7135_v5 = vld [vmem:[#allocation2 + $0x378] sm:$0xff]  ;;  %v7139_v19 = vld [vmem:[#allocation2 + $0x360] sm:$0xff] }
  0x86   :  { %791 = vmatprep.subr.mxu0 %v7109_v20  ;;  %862 = vmatprep.subr.mxu1 %v7111_v8  ;;  %11752 = vst [vmem:[#allocation117_spill] sm:$0xff] %v7135_v5  ;;  %11753 = vst [vmem:[#allocation118_spill] sm:$0xff] %v7139_v19  ;;  %v7141_v20 = vld [vmem:[#allocation2 + $0x370] sm:$0xff]  ;;  %v7145_v8 = vld [vmem:[#allocation2 + $0x348] sm:$0xff] }
  0x87   :  { %792 = vmatpush1.msra.mxu0 %v7115_v14  ;;  %863 = vmatpush1.msra.mxu1 %v7117_v7  ;;  %11754 = vst [vmem:[#allocation119_spill] sm:$0xff] %v7141_v20  ;;  %11755 = vst [vmem:[#allocation120_spill] sm:$0xff] %v7145_v8  ;;  %v7147_v14 = vld [vmem:[#allocation2 + $0x358] sm:$0xff]  ;;  %v7151_v7 = vld [vmem:[#allocation2 + $0x340] sm:$0xff] }
  0x88   :  { %793 = vmatprep.subr.mxu0 %v7121_v6  ;;  %864 = vmatprep.subr.mxu1 %v7123_v21  ;;  %11756 = vst [vmem:[#allocation121_spill] sm:$0xff] %v7147_v14  ;;  %11757 = vst [vmem:[#allocation122_spill] sm:$0xff] %v7151_v7  ;;  %v7153_v6 = vld [vmem:[#allocation2 + $0x350] sm:$0xff]  ;;  %v7157_v21 = vld [vmem:[#allocation2 + $0x328] sm:$0xff] }
  0x89   :  { %794 = vmatpush1.msra.mxu0 %v7127_v22  ;;  %865 = vmatpush1.msra.mxu1 %v7129_v4  ;;  %11758 = vst [vmem:[#allocation123_spill] sm:$0xff] %v7153_v6  ;;  %11759 = vst [vmem:[#allocation124_spill] sm:$0xff] %v7157_v21  ;;  %v7159_v22 = vld [vmem:[#allocation2 + $0x338] sm:$0xff]  ;;  %v7163_v4 = vld [vmem:[#allocation2 + $0x320] sm:$0xff] }
  0x8a   :  { %795 = vmatprep.subr.mxu0 %v7133_v0  ;;  %866 = vmatprep.subr.mxu1 %v7135_v5  ;;  %11760 = vst [vmem:[#allocation125_spill] sm:$0xff] %v7159_v22  ;;  %11761 = vst [vmem:[#allocation126_spill] sm:$0xff] %v7163_v4  ;;  %v7165_v0 = vld [vmem:[#allocation2 + $0x330] sm:$0xff]  ;;  %v7169_v5 = vld [vmem:[#allocation2 + $0x308] sm:$0xff] }
  0x8b   :  { %796 = vmatpush1.msra.mxu0 %v7139_v19  ;;  %867 = vmatpush1.msra.mxu1 %v7141_v20  ;;  %11762 = vst [vmem:[#allocation127_spill] sm:$0xff] %v7165_v0  ;;  %11763 = vst [vmem:[#allocation128_spill] sm:$0xff] %v7169_v5  ;;  %v7171_v19 = vld [vmem:[#allocation2 + $0x318] sm:$0xff]  ;;  %v7175_v20 = vld [vmem:[#allocation2 + $0x300] sm:$0xff] }
  0x8c   :  { %797 = vmatprep.subr.mxu0 %v7145_v8  ;;  %868 = vmatprep.subr.mxu1 %v7147_v14  ;;  %11764 = vst [vmem:[#allocation129_spill] sm:$0xff] %v7171_v19  ;;  %11765 = vst [vmem:[#allocation130_spill] sm:$0xff] %v7175_v20  ;;  %v7177_v8 = vld [vmem:[#allocation2 + $0x310] sm:$0xff]  ;;  %v7181_v14 = vld [vmem:[#allocation2 + $0x2e8] sm:$0xff] }
  0x8d   :  { %798 = vmatpush1.msra.mxu0 %v7151_v7  ;;  %869 = vmatpush1.msra.mxu1 %v7153_v6  ;;  %11766 = vst [vmem:[#allocation131_spill] sm:$0xff] %v7177_v8  ;;  %11767 = vst [vmem:[#allocation132_spill] sm:$0xff] %v7181_v14  ;;  %v7183_v7 = vld [vmem:[#allocation2 + $0x2f8] sm:$0xff]  ;;  %v7187_v6 = vld [vmem:[#allocation2 + $0x2e0] sm:$0xff] }
  0x8e   :  { %799 = vmatprep.subr.mxu0 %v7157_v21  ;;  %870 = vmatprep.subr.mxu1 %v7159_v22  ;;  %11768 = vst [vmem:[#allocation133_spill] sm:$0xff] %v7183_v7  ;;  %11769 = vst [vmem:[#allocation134_spill] sm:$0xff] %v7187_v6  ;;  %v7189_v21 = vld [vmem:[#allocation2 + $0x2f0] sm:$0xff]  ;;  %v7193_v22 = vld [vmem:[#allocation2 + $0x2c8] sm:$0xff] }
  0x8f   :  { %800 = vmatpush1.msra.mxu0 %v7163_v4  ;;  %871 = vmatpush1.msra.mxu1 %v7165_v0  ;;  %11770 = vst [vmem:[#allocation135_spill] sm:$0xff] %v7189_v21  ;;  %11771 = vst [vmem:[#allocation136_spill] sm:$0xff] %v7193_v22  ;;  %v7195_v4 = vld [vmem:[#allocation2 + $0x2d8] sm:$0xff]  ;;  %v7199_v0 = vld [vmem:[#allocation2 + $0x2c0] sm:$0xff] }
  0x90   :  { %801 = vmatprep.subr.mxu0 %v7169_v5  ;;  %872 = vmatprep.subr.mxu1 %v7171_v19  ;;  %11772 = vst [vmem:[#allocation137_spill] sm:$0xff] %v7195_v4  ;;  %11773 = vst [vmem:[#allocation138_spill] sm:$0xff] %v7199_v0  ;;  %v7201_v5 = vld [vmem:[#allocation2 + $0x2d0] sm:$0xff]  ;;  %v7205_v19 = vld [vmem:[#allocation2 + $0x2a8] sm:$0xff] }
  0x91   :  { %802 = vmatpush1.msra.mxu0 %v7175_v20  ;;  %873 = vmatpush1.msra.mxu1 %v7177_v8  ;;  %11774 = vst [vmem:[#allocation139_spill] sm:$0xff] %v7201_v5  ;;  %11775 = vst [vmem:[#allocation140_spill] sm:$0xff] %v7205_v19  ;;  %v7207_v20 = vld [vmem:[#allocation2 + $0x2b8] sm:$0xff]  ;;  %v7211_v8 = vld [vmem:[#allocation2 + $0x2a0] sm:$0xff] }
  0x92   :  { %803 = vmatprep.subr.mxu0 %v7181_v14  ;;  %874 = vmatprep.subr.mxu1 %v7183_v7  ;;  %11776 = vst [vmem:[#allocation141_spill] sm:$0xff] %v7207_v20  ;;  %11777 = vst [vmem:[#allocation142_spill] sm:$0xff] %v7211_v8  ;;  %v7213_v14 = vld [vmem:[#allocation2 + $0x2b0] sm:$0xff]  ;;  %v7217_v7 = vld [vmem:[#allocation2 + $0x288] sm:$0xff] }
  0x93   :  { %804 = vmatpush1.msra.mxu0 %v7187_v6  ;;  %875 = vmatpush1.msra.mxu1 %v7189_v21  ;;  %11778 = vst [vmem:[#allocation143_spill] sm:$0xff] %v7213_v14  ;;  %11779 = vst [vmem:[#allocation144_spill] sm:$0xff] %v7217_v7  ;;  %v7219_v6 = vld [vmem:[#allocation2 + $0x298] sm:$0xff]  ;;  %v7223_v21 = vld [vmem:[#allocation2 + $0x280] sm:$0xff] }
  0x94   :  { %805 = vmatprep.subr.mxu0 %v7193_v22  ;;  %876 = vmatprep.subr.mxu1 %v7195_v4  ;;  %11780 = vst [vmem:[#allocation145_spill] sm:$0xff] %v7219_v6  ;;  %11781 = vst [vmem:[#allocation146_spill] sm:$0xff] %v7223_v21  ;;  %v7225_v22 = vld [vmem:[#allocation2 + $0x290] sm:$0xff]  ;;  %v7229_v4 = vld [vmem:[#allocation2 + $0x268] sm:$0xff] }
  0x95   :  { %806 = vmatpush1.msra.mxu0 %v7199_v0  ;;  %877 = vmatpush1.msra.mxu1 %v7201_v5  ;;  %11782 = vst [vmem:[#allocation147_spill] sm:$0xff] %v7225_v22  ;;  %11783 = vst [vmem:[#allocation148_spill] sm:$0xff] %v7229_v4  ;;  %v7231_v0 = vld [vmem:[#allocation2 + $0x278] sm:$0xff]  ;;  %v7235_v5 = vld [vmem:[#allocation2 + $0x260] sm:$0xff] }
  0x96   :  { %807 = vmatprep.subr.mxu0 %v7205_v19  ;;  %878 = vmatprep.subr.mxu1 %v7207_v20  ;;  %11784 = vst [vmem:[#allocation149_spill] sm:$0xff] %v7231_v0  ;;  %11785 = vst [vmem:[#allocation150_spill] sm:$0xff] %v7235_v5  ;;  %v7237_v19 = vld [vmem:[#allocation2 + $0x270] sm:$0xff]  ;;  %v7241_v20 = vld [vmem:[#allocation2 + $0x248] sm:$0xff] }
  0x97   :  { %808 = vmatpush1.msra.mxu0 %v7211_v8  ;;  %879 = vmatpush1.msra.mxu1 %v7213_v14  ;;  %11786 = vst [vmem:[#allocation151_spill] sm:$0xff] %v7237_v19  ;;  %v7243_v8 = vld [vmem:[#allocation2 + $0x258] sm:$0xff]  ;;  %v7247_v14 = vld [vmem:[#allocation2 + $0x240] sm:$0xff] }
  0x98   :  { %809 = vmatprep.subr.mxu0 %v7217_v7  ;;  %880 = vmatprep.subr.mxu1 %v7219_v6  ;;  %11787 = vst [vmem:[#allocation152_spill] sm:$0xff] %v7243_v8  ;;  %v7249_v7 = vld [vmem:[#allocation2 + $0x250] sm:$0xff]  ;;  %v7253_v6 = vld [vmem:[#allocation2 + $0x228] sm:$0xff] }
  0x99   :  { %810 = vmatpush1.msra.mxu0 %v7223_v21  ;;  %881 = vmatpush1.msra.mxu1 %v7225_v22  ;;  %11788 = vst [vmem:[#allocation153_spill] sm:$0xff] %v7249_v7  ;;  %v7255_v21 = vld [vmem:[#allocation2 + $0x238] sm:$0xff]  ;;  %v7259_v22 = vld [vmem:[#allocation2 + $0x220] sm:$0xff] }
  0x9a   :  { %811 = vmatprep.subr.mxu0 %v7229_v4  ;;  %882 = vmatprep.subr.mxu1 %v7231_v0  ;;  %v7261_v4 = vld [vmem:[#allocation2 + $0x230] sm:$0xff]  ;;  %v7265_v0 = vld [vmem:[#allocation2 + $0x208] sm:$0xff] }
  0x9b   :  { %812 = vmatpush1.msra.mxu0 %v7235_v5  ;;  %883 = vmatpush1.msra.mxu1 %v7237_v19  ;;  %11789 = vst [vmem:[#allocation154_spill] sm:$0xff] %v7261_v4  ;;  %11790 = vst [vmem:[#allocation155_spill] sm:$0xff] %v7265_v0  ;;  %v7267_v5 = vld [vmem:[#allocation2 + $0x218] sm:$0xff]  ;;  %v7271_v19 = vld [vmem:[#allocation2 + $0x200] sm:$0xff] }
  0x9c   :  { %813 = vmatprep.subr.mxu0 %v7241_v20  ;;  %884 = vmatprep.subr.mxu1 %v7243_v8  ;;  %11791 = vst [vmem:[#allocation156_spill] sm:$0xff] %v7267_v5  ;;  %11792 = vst [vmem:[#allocation157_spill] sm:$0xff] %v7271_v19  ;;  %v7275_v8 = vld [vmem:[#allocation2 + $0x210] sm:$0xff] }
  0x9d   :  { %814 = vmatpush1.msra.mxu0 %v7247_v14  ;;  %885 = vmatpush1.msra.mxu1 %v7249_v7  ;;  %11793 = vst [vmem:[#allocation158_spill] sm:$0xff] %v7275_v8  ;;  %v5409_v7 = vld [vmem:[%s10903_s0 + $0x1c] sm:$0xf] }
  0x9e   :  { %815 = vmatprep.subr.mxu0 %v7253_v6  ;;  %886 = vmatprep.subr.mxu1 %v7255_v21 }
  0x9f   :  { %816 = vmatpush1.msra.mxu0 %v7259_v22  ;;  %887 = vmatpush1.msra.mxu1 %v7261_v4  ;;  %v7286_v4 = vld [vmem:[#allocation4 + $0x1e8] sm:$0xff] }
  0xa0   :  { %817 = vmatprep.subr.mxu0 %v7265_v0  ;;  %888 = vmatprep.subr.mxu1 %v7267_v5  ;;  %11794 = vst [vmem:[#allocation159_spill] sm:$0xff] %v7286_v4  ;;  %v7289_v0 = vld [vmem:[#allocation4 + $0x1f8] sm:$0xff]  ;;  %v7292_v5 = vld [vmem:[#allocation4 + $0x1e0] sm:$0xff] }
  0xa1   :  { %818 = vmatpush1.msra.mxu0 %v7271_v19  ;;  %851 = vmatprep.mubr.f32.mxu0 %v11670_v10  ;;  %11795 = vst [vmem:[#allocation160_spill] sm:$0xff] %v7289_v0  ;;  %11796 = vst [vmem:[#allocation161_spill] sm:$0xff] %v7292_v5  ;;  %v7295_v19 = vld [vmem:[#allocation4 + $0x1f0] sm:$0xff] }
  0xa2   :  { %889 = vmatpush1.msra.mxu1 %v7275_v8  ;;  %922 = vmatprep.mubr.f32.mxu1 %v11670_v10  ;;  %11797 = vst [vmem:[#allocation162_spill] sm:$0xff] %v7295_v19  ;;  %v7298_v8 = vld [vmem:[#allocation4 + $0x1c8] sm:$0xff] }
  0xa3   :  { %852 = vmatmul.mubr.f32.vlgmr.msra.gmra.mxu0 %v5409_v7  ;;  %923 = vmatmul.mubr.f32.vlgmr.msra.gmra.mxu1 %v5409_v7  ;;  %11798 = vst [vmem:[#allocation163_spill] sm:$0xff] %v7298_v8  ;;  %v7301_v7 = vld [vmem:[#allocation4 + $0x1d8] sm:$0xff] }
  0xa4   :  { %982 = vmatprep.subr.mxu0 %v7286_v4  ;;  %1053 = vmatprep.subr.mxu1 %v7289_v0  ;;  %11799 = vst [vmem:[#allocation164_spill] sm:$0xff] %v7301_v7  ;;  %v7304_v4 = vld [vmem:[#allocation4 + $0x1c0] sm:$0xff]  ;;  %v7307_v0 = vld [vmem:[#allocation4 + $0x1d0] sm:$0xff] }
  0xa5   :  { %983 = vmatpush1.msra.mxu0 %v7292_v5  ;;  %1054 = vmatpush1.msra.mxu1 %v7295_v19  ;;  %11800 = vst [vmem:[#allocation165_spill] sm:$0xff] %v7304_v4  ;;  %11801 = vst [vmem:[#allocation166_spill] sm:$0xff] %v7307_v0  ;;  %v7310_v5 = vld [vmem:[#allocation4 + $0x1a8] sm:$0xff]  ;;  %v7313_v19 = vld [vmem:[#allocation4 + $0x1b8] sm:$0xff] }
  0xa6   :  { %984 = vmatprep.subr.mxu0 %v7298_v8  ;;  %1055 = vmatprep.subr.mxu1 %v7301_v7  ;;  %11802 = vst [vmem:[#allocation167_spill] sm:$0xff] %v7310_v5  ;;  %11803 = vst [vmem:[#allocation168_spill] sm:$0xff] %v7313_v19  ;;  %v7316_v8 = vld [vmem:[#allocation4 + $0x1a0] sm:$0xff]  ;;  %v7319_v7 = vld [vmem:[#allocation4 + $0x1b0] sm:$0xff] }
  0xa7   :  { %985 = vmatpush1.msra.mxu0 %v7304_v4  ;;  %1056 = vmatpush1.msra.mxu1 %v7307_v0  ;;  %11804 = vst [vmem:[#allocation169_spill] sm:$0xff] %v7316_v8  ;;  %11805 = vst [vmem:[#allocation170_spill] sm:$0xff] %v7319_v7  ;;  %v7322_v4 = vld [vmem:[#allocation4 + $0x188] sm:$0xff]  ;;  %v7325_v0 = vld [vmem:[#allocation4 + $0x198] sm:$0xff] }
  0xa8   :  { %986 = vmatprep.subr.mxu0 %v7310_v5  ;;  %1057 = vmatprep.subr.mxu1 %v7313_v19  ;;  %11806 = vst [vmem:[#allocation171_spill] sm:$0xff] %v7322_v4  ;;  %11807 = vst [vmem:[#allocation172_spill] sm:$0xff] %v7325_v0  ;;  %v7328_v5 = vld [vmem:[#allocation4 + $0x180] sm:$0xff]  ;;  %v7331_v19 = vld [vmem:[#allocation4 + $0x190] sm:$0xff] }
  0xa9   :  { %987 = vmatpush1.msra.mxu0 %v7316_v8  ;;  %1058 = vmatpush1.msra.mxu1 %v7319_v7  ;;  %11808 = vst [vmem:[#allocation173_spill] sm:$0xff] %v7328_v5  ;;  %11809 = vst [vmem:[#allocation174_spill] sm:$0xff] %v7331_v19  ;;  %v7334_v8 = vld [vmem:[#allocation4 + $0x168] sm:$0xff]  ;;  %v7337_v7 = vld [vmem:[#allocation4 + $0x178] sm:$0xff] }
  0xaa   :  { %988 = vmatprep.subr.mxu0 %v7322_v4  ;;  %1059 = vmatprep.subr.mxu1 %v7325_v0  ;;  %v7340_v4 = vld [vmem:[#allocation4 + $0x160] sm:$0xff]  ;;  %v7343_v0 = vld [vmem:[#allocation4 + $0x170] sm:$0xff] }
  0xab   :  { %989 = vmatpush1.msra.mxu0 %v7328_v5  ;;  %1060 = vmatpush1.msra.mxu1 %v7331_v19  ;;  %v7346_v5 = vld [vmem:[#allocation4 + $0x148] sm:$0xff]  ;;  %v7349_v19 = vld [vmem:[#allocation4 + $0x158] sm:$0xff] }
  0xac   :  { %990 = vmatprep.subr.mxu0 %v7334_v8  ;;  %1061 = vmatprep.subr.mxu1 %v7337_v7 }
  0xad   :  { %991 = vmatpush1.msra.mxu0 %v7340_v4  ;;  %1062 = vmatpush1.msra.mxu1 %v7343_v0 }
  0xae   :  { %992 = vmatprep.subr.mxu0 %v7346_v5  ;;  %1063 = vmatprep.subr.mxu1 %v7349_v19 }
  0xaf   :  { %993 = vmatpush1.msra.mxu0 %v6646_v23  ;;  %1064 = vmatpush1.msra.mxu1 %v6648_v24  ;;  %v594_v23 = vlaneseq }
  0xb0   :  { %994 = vmatprep.subr.mxu0 %v6650_v25  ;;  %1065 = vmatprep.subr.mxu1 %v6652_v26 }
  0xb1   :  { %995 = vmatpush1.msra.mxu0 %v6654_v27  ;;  %1066 = vmatpush1.msra.mxu1 %v6656_v28  ;;  %v7398_v24 = vshrl.u32 %v594_v23, 7  ;;  %v305_v27 = vld [vmem:[%s10906_s3] sm:$0xf] }
  0xb2   :  { %996 = vmatprep.subr.mxu0 %v6660_v29  ;;  %1067 = vmatprep.subr.mxu1 %v6662_v30 }
  0xb3   :  { %997 = vmatpush1.msra.mxu0 %v6666_v31  ;;  %1068 = vmatpush1.msra.mxu1 %v6668_v32  ;;  %v596_v26 = vsub.s32 0, %v7398_v24  ;;  %v600_v29 = vsub.s32 1, %v7398_v24 }
  0xb4   :  { %998 = vmatprep.subr.mxu0 %v6672_v33  ;;  %1069 = vmatprep.subr.mxu1 %v6674_v34 }
  0xb5   :  { %999 = vmatpush1.msra.mxu0 %v6678_v35  ;;  %1070 = vmatpush1.msra.mxu1 %v6680_v36  ;;  %v7407_v31 = vrot.slane %v305_v27, %v596_v26  ;;  %v7411_v35 = vrot.slane %v305_v27, %v600_v29 }
  0xb6   :  { %1000 = vmatprep.subr.mxu0 %v6684_v37  ;;  %1071 = vmatprep.subr.mxu1 %v6686_v38 }
  0xb7   :  { %1001 = vmatpush1.msra.mxu0 %v6690_v39  ;;  %1072 = vmatpush1.msra.mxu1 %v6692_v40 }
  0xb8   :  { %1002 = vmatprep.subr.mxu0 %v6696_v41  ;;  %1073 = vmatprep.subr.mxu1 %v6698_v42  ;;  %v11079_v42 = vsub.s32 3, %v7398_v24 }
  0xb9   :  { %1003 = vmatpush1.msra.mxu0 %v6702_v43  ;;  %1074 = vmatpush1.msra.mxu1 %v6704_v44 }
  0xba   :  { %1004 = vmatprep.subr.mxu0 %v6708_v45  ;;  %1075 = vmatprep.subr.mxu1 %v6710_v46  ;;  %v7418_v46 = vrot.slane %v305_v27, %v11079_v42  ;;  %v7525_v42 = vld [vmem:[#allocation2 + $0x130] sm:$0xff] }
  0xbb   :  { %1005 = vmatpush1.msra.mxu0 %v6714_v47  ;;  %1076 = vmatpush1.msra.mxu1 %v6716_v48  ;;  %v11078_v47 = vsub.s32 2, %v7398_v24 }
  0xbc   :  { %1006 = vmatprep.subr.mxu0 %v6720_v49  ;;  %1077 = vmatprep.subr.mxu1 %v6722_v50 }
  0xbd   :  { %1007 = vmatpush1.msra.mxu0 %v6726_v51  ;;  %1078 = vmatpush1.msra.mxu1 %v6728_v52  ;;  %v7424_v50 = vrot.slane %v305_v27, %v11078_v47  ;;  %v7436_v27 = vld [vmem:[#allocation2 + $0x1f0] sm:$0xff] }
  0xbe   :  { %1008 = vmatprep.subr.mxu0 %v6732_v53  ;;  %1079 = vmatprep.subr.mxu1 %v6734_v54 }
  0xbf   :  { %1009 = vmatpush1.msra.mxu0 %v6738_v55  ;;  %1080 = vmatpush1.msra.mxu1 %v6740_v56 }
  0xc0   :  { %1010 = vmatprep.subr.mxu0 %v6744_v57  ;;  %1081 = vmatprep.subr.mxu1 %v6746_v58 }
  0xc1   :  { %1011 = vmatpush1.msra.mxu0 %v6750_v59  ;;  %1082 = vmatpush1.msra.mxu1 %v6752_v60 }
  0xc2   :  { %1012 = vmatprep.subr.mxu0 %v6756_v61  ;;  %1083 = vmatprep.subr.mxu1 %v6758_v62 }
  0xc3   :  { %1013 = vmatpush1.msra.mxu0 %v6762_v63  ;;  %1084 = vmatpush1.msra.mxu1 %v6764_v1 }
  0xc4   :  { %1046 = vmatprep.mubr.f32.mxu0 %v11670_v10  ;;  %1117 = vmatprep.mubr.f32.mxu1 %v11670_v10 }
  0xc5   :  { %1124 = vmatprep.subr.mxu0 %v6768_v2  ;;  %1195 = vmatprep.subr.mxu1 %v6772_v3 }
  0xfd   :  { %v375_v25 = vpop.f32.mrf.mxu0 }
  0xfe   :  { %v446_v28 = vpop.f32.mrf.mxu1 }
  0xff   :  { %v377_v30 = vpop.f32.mrf.mxu0 }
 0x100   :  { %v448_v33 = vpop.f32.mrf.mxu1 }
 0x11f   :  { %v517_v32 = vpop.f32.mrf.mxu0  ;;  %v588_v38 = vpop.f32.mrf.mxu1 }
 0x120   :  { %v518_v34 = vadd.f32 %v517_v32, %v375_v25  ;;  %v589_v49 = vadd.f32 %v588_v38, %v446_v28  ;;  %v7433_v25 = vld [vmem:[#allocation2 + $0x1e0] sm:$0xff]  ;;  %v7439_v28 = vld [vmem:[#allocation2 + $0x1c8] sm:$0xff] }
 0x121   :  { %v519_v36 = vpop.f32.mrf.mxu0  ;;  %v590_v44 = vpop.f32.mrf.mxu1  ;;  %v7457_v38 = vld [vmem:[#allocation2 + $0x1a0] sm:$0xff] }
 0x122   :  { %v614_v37 = vadd.f32 %v7407_v31, %v518_v34  ;;  %v520_v39 = vadd.f32 %v519_v36, %v377_v30  ;;  %v591_v45 = vadd.f32 %v590_v44, %v448_v33  ;;  %v616_v53 = vadd.f32 %v7424_v50, %v589_v49  ;;  %v7442_v30 = vld [vmem:[#allocation2 + $0x1d8] sm:$0xff]  ;;  %v7445_v33 = vld [vmem:[#allocation2 + $0x1c0] sm:$0xff]  ;;  %v7448_v34 = vld [vmem:[#allocation2 + $0x1d0] sm:$0xff] }
 0x123   :  { %v7451_v36 = vld [vmem:[#allocation2 + $0x1a8] sm:$0xff]  ;;  %v7473_v44 = vld [vmem:[#allocation2 + $0x198] sm:$0xff]  ;;  %v7479_v49 = vld [vmem:[#allocation2 + $0x190] sm:$0xff] }
 0x124   :  { %v5406_v40 = vmul.f32 -1.442695, %v614_v37  ;;  %v615_v41 = vadd.f32 %v7411_v35, %v520_v39  ;;  %v617_v48 = vadd.f32 %v7418_v46, %v591_v45  ;;  %v7454_v37 = vld [vmem:[#allocation2 + $0x1b8] sm:$0xff]  ;;  %v7460_v39 = vld [vmem:[#allocation2 + $0x1b0] sm:$0xff] }
 0x126   :  { %5487 = vpow2.f32 %v5406_v40  ;;  %v5407_v43 = vmul.f32 -1.442695, %v615_v41  ;;  %v5408_v51 = vmul.f32 -1.442695, %v617_v48  ;;  %v7466_v40 = vld [vmem:[%s10906_s3 + $0x4] sm:$0xf] }
 0x127   :  { %v7476_v48 = vld [vmem:[#allocation2 + $0x180] sm:$0xff] }
 0x128   :  { %5489 = vpow2.f32 %v5407_v43  ;;  %v7470_v43 = vld [vmem:[#allocation2 + $0x188] sm:$0xff] }
 0x129   :  { %5491 = vpow2.f32 %v5408_v51  ;;  %v7485_v51 = vrot.slane %v7466_v40, %v596_v26 }
 0x133   :  { %v5488_v52 = vpop.eup %5487 }
 0x134   :  { %v621_v54 = vadd.f32 1.0, %v5488_v52  ;;  %v7487_v52 = vld [vmem:[#allocation2 + $0x168] sm:$0xff] }
 0x135   :  { %v5490_v55 = vpop.eup %5489 }
 0x136   :  { %5493 = vrcp.f32 %v621_v54  ;;  %v627_v56 = vadd.f32 1.0, %v5490_v55  ;;  %v5492_v57 = vpop.eup %5491  ;;  %v7493_v55 = vld [vmem:[#allocation2 + $0x160] sm:$0xff] }
 0x137   :  { %5495 = vtanh.f32 %v616_v53  ;;  %v634_v61 = vadd.f32 1.0, %v5492_v57  ;;  %v7490_v53 = vld [vmem:[#allocation2 + $0x178] sm:$0xff] }
 0x138   :  { %5497 = vrcp.f32 %v627_v56  ;;  %v7496_v56 = vld [vmem:[#allocation2 + $0x170] sm:$0xff] }
 0x139   :  { %5499 = vrcp.f32 %v634_v61 }
 0x140   :  { %v711_v32 = vpop.f32.mrf.mxu0 }
 0x142   :  { %v7468_v41 = vpop.f32.mrf.mxu1  ;;  %v713_v45 = vpop.f32.mrf.mxu0 }
 0x143   :  { %v5494_v58 = vpop.eup %5493 }
 0x144   :  { %v5496_v59 = vpop.eup %5495  ;;  %v784_v57 = vpop.f32.mrf.mxu1 }
 0x145   :  { %v5498_v60 = vpop.eup %5497  ;;  %v638_v63 = vmul.f32 %v5496_v59, %v5494_v58  ;;  %v7502_v58 = vrot.slane %v7466_v40, %v600_v29  ;;  %v7504_v59 = vld [vmem:[#allocation2 + $0x148] sm:$0xff] }
 0x146   :  { %v637_v62 = vmul.f32 0.0, %v5498_v60  ;;  %v5500_v2 = vpop.eup %5499  ;;  %v7507_v60 = vld [vmem:[#allocation2 + $0x158] sm:$0xff] }
 0x148   :  { %v7427_v1 = vadd.f32 %v638_v63, %v637_v62  ;;  %v7510_v62 = vld [vmem:[#allocation2 + $0x140] sm:$0xff]  ;;  %v7513_v63 = vld [vmem:[#allocation2 + $0x150] sm:$0xff] }
 0x14a   :  { %5501 = vtanh.f32 %v7427_v1 }
 0x157   :  { %v5502_v3 = vpop.eup %5501 }
 0x158   :  { %v641_v23 = vmul.f32 %v5502_v3, %v5500_v2 }
 0x15a   :  { %642 = vst [vmem:[%s10907_s4] sm:$0xf] %v641_v23  ;;  %1047 = vmatmul.mubr.f32.vlgmr.msra.gmra.mxu0 %v641_v23  ;;  %1118 = vmatmul.mubr.f32.vlgmr.msra.gmra.mxu1 %v641_v23  ;;  %v7517_v23 = vld [vmem:[#allocation2 + $0x128] sm:$0xff] }
 0x15b   :  { %1125 = vmatpush1.msra.mxu0 %v7433_v25  ;;  %1196 = vmatpush1.msra.mxu1 %v7436_v27 }
 0x15c   :  { %1126 = vmatprep.subr.mxu0 %v7439_v28  ;;  %1197 = vmatprep.subr.mxu1 %v7442_v30 }
 0x15d   :  { %1127 = vmatpush1.msra.mxu0 %v7445_v33  ;;  %1198 = vmatpush1.msra.mxu1 %v7448_v34 }
 0x15e   :  { %1128 = vmatprep.subr.mxu0 %v7451_v36  ;;  %1199 = vmatprep.subr.mxu1 %v7454_v37 }
 0x15f   :  { %1129 = vmatpush1.msra.mxu0 %v7457_v38  ;;  %1200 = vmatpush1.msra.mxu1 %v7460_v39 }
 0x160   :  { %1130 = vmatprep.subr.mxu0 %v7470_v43  ;;  %1201 = vmatprep.subr.mxu1 %v7473_v44 }
 0x161   :  { %1131 = vmatpush1.msra.mxu0 %v7476_v48  ;;  %1202 = vmatpush1.msra.mxu1 %v7479_v49 }
 0x162   :  { %1132 = vmatprep.subr.mxu0 %v7487_v52  ;;  %1203 = vmatprep.subr.mxu1 %v7490_v53 }
 0x163   :  { %v853_v54 = vpop.f32.mrf.mxu0  ;;  %1133 = vmatpush1.msra.mxu0 %v7493_v55  ;;  %1204 = vmatpush1.msra.mxu1 %v7496_v56  ;;  %v924_v2 = vpop.f32.mrf.mxu1 }
 0x164   :  { %v854_v26 = vadd.f32 %v853_v54, %v711_v32  ;;  %1134 = vmatprep.subr.mxu0 %v7504_v59  ;;  %1205 = vmatprep.subr.mxu1 %v7507_v60  ;;  %v7520_v32 = vld [vmem:[#allocation2 + $0x138] sm:$0xff] }
 0x165   :  { %v855_v61 = vpop.f32.mrf.mxu0  ;;  %1135 = vmatpush1.msra.mxu0 %v7510_v62  ;;  %1206 = vmatpush1.msra.mxu1 %v7513_v63 }
 0x166   :  { %v950_v29 = vadd.f32 %v7485_v51, %v854_v26  ;;  %v856_v3 = vadd.f32 %v855_v61, %v713_v45  ;;  %1136 = vmatprep.subr.mxu0 %v7517_v23  ;;  %1207 = vmatprep.subr.mxu1 %v7520_v32  ;;  %v926_v26 = vpop.f32.mrf.mxu1  ;;  %v7531_v61 = vld [vmem:[#allocation2 + $0x110] sm:$0xff] }
 0x167   :  { %1137 = vmatpush1.msra.mxu0 %v6780_v9  ;;  %1208 = vmatpush1.msra.mxu1 %v7525_v42  ;;  %v11810_v9 = vld [vmem:[#allocation8_spill] sm:$0xff] }
 0x168   :  { %v5410_v54 = vmul.f32 -1.442695, %v950_v29  ;;  %v951_v47 = vadd.f32 %v7502_v58, %v856_v3  ;;  %1138 = vmatprep.subr.mxu0 %v6782_v11  ;;  %1209 = vmatprep.subr.mxu1 %v6784_v12  ;;  %v927_v11 = vadd.f32 %v926_v26, %v784_v57  ;;  %v11811_v12 = vsub.s32 3, %v7398_v24  ;;  %v11813_v29 = vld [vmem:[#allocation10_spill] sm:$0xff]  ;;  %v11819_v57 = vld [vmem:[#allocation16_spill] sm:$0xff] }
 0x169   :  { %1139 = vmatpush1.msra.mxu0 %v6786_v13  ;;  %1210 = vmatpush1.msra.mxu1 %v7531_v61  ;;  %v11817_v3 = vld [vmem:[#allocation14_spill] sm:$0xff] }
 0x16a   :  { %5503 = vpow2.f32 %v5410_v54  ;;  %v5411_v45 = vmul.f32 -1.442695, %v951_v47  ;;  %1140 = vmatprep.subr.mxu0 %v6789_v15  ;;  %1211 = vmatprep.subr.mxu1 %v6791_v16  ;;  %v7542_v13 = vrot.slane %v7466_v40, %v11811_v12  ;;  %v11812_v47 = vld [vmem:[#allocation9_spill] sm:$0xff]  ;;  %v11814_v15 = vld [vmem:[#allocation11_spill] sm:$0xff]  ;;  %v11815_v16 = vld [vmem:[#allocation12_spill] sm:$0xff] }
 0x16b   :  { %1141 = vmatpush1.msra.mxu0 %v6795_v17  ;;  %1212 = vmatpush1.msra.mxu1 %v6797_v18  ;;  %v11816_v17 = vld [vmem:[#allocation13_spill] sm:$0xff]  ;;  %v11818_v18 = vld [vmem:[#allocation15_spill] sm:$0xff]  ;;  %v11821_v26 = vld [vmem:[#allocation18_spill] sm:$0xff] }
 0x16c   :  { %5505 = vpow2.f32 %v5411_v45  ;;  %1142 = vmatprep.subr.mxu0 %v11810_v9  ;;  %1213 = vmatprep.subr.mxu1 %v11812_v47  ;;  %v953_v54 = vadd.f32 %v7542_v13, %v927_v11  ;;  %v11820_v45 = vld [vmem:[#allocation17_spill] sm:$0xff]  ;;  %v11822_v9 = vld [vmem:[#allocation19_spill] sm:$0xff]  ;;  %v11823_v12 = vld [vmem:[#allocation20_spill] sm:$0xff]  ;;  %v925_v47 = vadd.f32 %v924_v2, %v7468_v41 }
 0x16d   :  { %1143 = vmatpush1.msra.mxu0 %v11813_v29  ;;  %1214 = vmatpush1.msra.mxu1 %v11814_v15  ;;  %v11824_v29 = vsub.s32 2, %v7398_v24  ;;  %v11828_v11 = vld [vmem:[#allocation23_spill] sm:$0xff]  ;;  %v11833_v41 = vld [vmem:[#allocation28_spill] sm:$0xff]  ;;  %v11834_v2 = vld [vmem:[#allocation29_spill] sm:$0xff] }
 0x16e   :  { %1144 = vmatprep.subr.mxu0 %v11815_v16  ;;  %1215 = vmatprep.subr.mxu1 %v11816_v17  ;;  %v11826_v16 = vld [vmem:[#allocation21_spill] sm:$0xff]  ;;  %v11827_v17 = vld [vmem:[#allocation22_spill] sm:$0xff] }
 0x16f   :  { %1145 = vmatpush1.msra.mxu0 %v11817_v3  ;;  %1216 = vmatpush1.msra.mxu1 %v11818_v18  ;;  %v7561_v15 = vrot.slane %v7466_v40, %v11824_v29  ;;  %v11829_v3 = vld [vmem:[#allocation24_spill] sm:$0xff]  ;;  %v5412_v18 = vmul.f32 -1.442695, %v953_v54  ;;  %v11836_v29 = vld [vmem:[#allocation31_spill] sm:$0xff] }
 0x170   :  { %1146 = vmatprep.subr.mxu0 %v11819_v57  ;;  %1217 = vmatprep.subr.mxu1 %v11820_v45  ;;  %v11830_v57 = vld [vmem:[#allocation25_spill] sm:$0xff]  ;;  %v11831_v45 = vld [vmem:[#allocation26_spill] sm:$0xff]  ;;  %v5414_v54 = vld [vmem:[%s10903_s0 + $0x4] sm:$0xf] }
 0x171   :  { %1147 = vmatpush1.msra.mxu0 %v11821_v26  ;;  %1218 = vmatpush1.msra.mxu1 %v11822_v9  ;;  %11825 = vst [vmem:[#allocation8_spill] sm:$0xff] %v7561_v15  ;;  %v11832_v26 = vld [vmem:[#allocation27_spill] sm:$0xff]  ;;  %v952_v40 = vadd.f32 %v7561_v15, %v925_v47  ;;  %v11835_v9 = vld [vmem:[#allocation30_spill] sm:$0xff]  ;;  %5507 = vpow2.f32 %v5412_v18 }
 0x172   :  { %1148 = vmatprep.subr.mxu0 %v11823_v12  ;;  %1219 = vmatprep.subr.mxu1 %v11826_v16  ;;  %v11837_v16 = vld [vmem:[#allocation32_spill] sm:$0xff]  ;;  %v11843_v18 = vld [vmem:[#allocation38_spill] sm:$0xff] }
 0x173   :  { %1149 = vmatpush1.msra.mxu0 %v11827_v17  ;;  %1220 = vmatpush1.msra.mxu1 %v11828_v11  ;;  %v11838_v11 = vld [vmem:[#allocation33_spill] sm:$0xff] }
 0x174   :  { %1150 = vmatprep.subr.mxu0 %v11829_v3  ;;  %1221 = vmatprep.subr.mxu1 %v11830_v57  ;;  %v11839_v3 = vld [vmem:[#allocation34_spill] sm:$0xff]  ;;  %v11840_v57 = vld [vmem:[#allocation35_spill] sm:$0xff] }
 0x175   :  { %1151 = vmatpush1.msra.mxu0 %v11831_v45  ;;  %1222 = vmatpush1.msra.mxu1 %v11832_v26  ;;  %v11841_v45 = vld [vmem:[#allocation36_spill] sm:$0xff]  ;;  %v11842_v26 = vld [vmem:[#allocation37_spill] sm:$0xff] }
 0x176   :  { %1152 = vmatprep.subr.mxu0 %v11833_v41  ;;  %1223 = vmatprep.subr.mxu1 %v11834_v2  ;;  %v11844_v41 = vld [vmem:[#allocation39_spill] sm:$0xff]  ;;  %v11846_v2 = vld [vmem:[#allocation41_spill] sm:$0xff] }
 0x177   :  { %v5504_v24 = vpop.eup %5503  ;;  %1153 = vmatpush1.msra.mxu0 %v11835_v9  ;;  %1224 = vmatpush1.msra.mxu1 %v11836_v29  ;;  %v11847_v9 = vld [vmem:[#allocation42_spill] sm:$0xff]  ;;  %v11850_v29 = vld [vmem:[#allocation45_spill] sm:$0xff] }
 0x178   :  { %v957_v12 = vadd.f32 1.0, %v5504_v24  ;;  %1154 = vmatprep.subr.mxu0 %v11837_v16  ;;  %1225 = vmatprep.subr.mxu1 %v11838_v11  ;;  %v11845_v24 = vld [vmem:[#allocation40_spill] sm:$0xff]  ;;  %v11851_v16 = vld [vmem:[#allocation46_spill] sm:$0xff]  ;;  %v11854_v11 = vld [vmem:[#allocation49_spill] sm:$0xff] }
 0x179   :  { %v5506_v17 = vpop.eup %5505  ;;  %1155 = vmatpush1.msra.mxu0 %v11839_v3  ;;  %1188 = vmatprep.mubr.f32.mxu0 %v11670_v10  ;;  %v11855_v3 = vld [vmem:[#allocation50_spill] sm:$0xff] }
 0x17a   :  { %5509 = vrcp.f32 %v957_v12  ;;  %v963_v47 = vadd.f32 1.0, %v5506_v17  ;;  %1226 = vmatpush1.msra.mxu1 %v11840_v57  ;;  %1259 = vmatprep.mubr.f32.mxu1 %v11670_v10  ;;  %v11849_v12 = vld [vmem:[#allocation44_spill] sm:$0xff] }
 0x17b   :  { %5511 = vtanh.f32 %v952_v40  ;;  %1189 = vmatmul.mubr.f32.vlgmr.msra.gmra.mxu0 %v5414_v54  ;;  %1260 = vmatmul.mubr.f32.vlgmr.msra.gmra.mxu1 %v5414_v54  ;;  %v11848_v40 = vld [vmem:[#allocation43_spill] sm:$0xff]  ;;  %v11853_v17 = vld [vmem:[#allocation48_spill] sm:$0xff] }
 0x17c   :  { %5513 = vrcp.f32 %v963_v47  ;;  %1298 = vmatprep.subr.mxu0 %v11841_v45  ;;  %1369 = vmatprep.subr.mxu1 %v11842_v26  ;;  %v11852_v54 = vld [vmem:[#allocation47_spill] sm:$0xff]  ;;  %v11857_v57 = vld [vmem:[#allocation52_spill] sm:$0xff]  ;;  %v11858_v45 = vld [vmem:[#allocation53_spill] sm:$0xff] }
 0x17d   :  { %1299 = vmatpush1.msra.mxu0 %v11843_v18  ;;  %1370 = vmatpush1.msra.mxu1 %v11844_v41  ;;  %v11856_v47 = vld [vmem:[#allocation51_spill] sm:$0xff]  ;;  %v11859_v26 = vld [vmem:[#allocation54_spill] sm:$0xff] }
 0x17e   :  { %1300 = vmatprep.subr.mxu0 %v11845_v24  ;;  %1371 = vmatprep.subr.mxu1 %v11846_v2  ;;  %v5508_v18 = vpop.eup %5507  ;;  %v11860_v41 = vld [vmem:[#allocation55_spill] sm:$0xff]  ;;  %v11861_v24 = vld [vmem:[#allocation56_spill] sm:$0xff] }
 0x17f   :  { %1301 = vmatpush1.msra.mxu0 %v11847_v9  ;;  %1372 = vmatpush1.msra.mxu1 %v11848_v40  ;;  %v11862_v9 = vld [vmem:[#allocation57_spill] sm:$0xff]  ;;  %v11863_v40 = vld [vmem:[#allocation58_spill] sm:$0xff] }
 0x180   :  { %1302 = vmatprep.subr.mxu0 %v11849_v12  ;;  %1373 = vmatprep.subr.mxu1 %v11850_v29  ;;  %v11864_v29 = vld [vmem:[#allocation59_spill] sm:$0xff] }
 0x181   :  { %1303 = vmatpush1.msra.mxu0 %v11851_v16  ;;  %1374 = vmatpush1.msra.mxu1 %v11852_v54  ;;  %v11865_v16 = vld [vmem:[#allocation60_spill] sm:$0xff] }
 0x182   :  { %1304 = vmatprep.subr.mxu0 %v11853_v17  ;;  %1375 = vmatprep.subr.mxu1 %v11854_v11  ;;  %v970_v17 = vadd.f32 1.0, %v5508_v18  ;;  %v11866_v11 = vld [vmem:[#allocation61_spill] sm:$0xff] }
 0x183   :  { %1305 = vmatpush1.msra.mxu0 %v11855_v3  ;;  %1376 = vmatpush1.msra.mxu1 %v11856_v47  ;;  %v11867_v3 = vld [vmem:[#allocation62_spill] sm:$0xff]  ;;  %v11874_v18 = vld [vmem:[#allocation69_spill] sm:$0xff] }
 0x184   :  { %1306 = vmatprep.subr.mxu0 %v11857_v57  ;;  %1377 = vmatprep.subr.mxu1 %v11858_v45  ;;  %v11868_v45 = vld [vmem:[#allocation63_spill] sm:$0xff]  ;;  %5515 = vrcp.f32 %v970_v17  ;;  %v11883_v17 = vld [vmem:[#allocation78_spill] sm:$0xff] }
 0x185   :  { %1307 = vmatpush1.msra.mxu0 %v11859_v26  ;;  %1378 = vmatpush1.msra.mxu1 %v11860_v41  ;;  %v11869_v26 = vld [vmem:[#allocation64_spill] sm:$0xff]  ;;  %v11870_v41 = vld [vmem:[#allocation65_spill] sm:$0xff] }
 0x186   :  { %1308 = vmatprep.subr.mxu0 %v11861_v24  ;;  %1379 = vmatprep.subr.mxu1 %v11862_v9  ;;  %v11871_v24 = vld [vmem:[#allocation66_spill] sm:$0xff] }
 0x187   :  { %v5510_v2 = vpop.eup %5509  ;;  %1309 = vmatpush1.msra.mxu0 %v11863_v40  ;;  %1380 = vmatpush1.msra.mxu1 %v11864_v29  ;;  %v11872_v40 = vld [vmem:[#allocation67_spill] sm:$0xff]  ;;  %v11873_v29 = vld [vmem:[#allocation68_spill] sm:$0xff] }
 0x188   :  { %v5512_v12 = vpop.eup %5511  ;;  %1310 = vmatprep.subr.mxu0 %v11865_v16  ;;  %1381 = vmatprep.subr.mxu1 %v11866_v11  ;;  %v11875_v16 = vld [vmem:[#allocation70_spill] sm:$0xff] }
 0x189   :  { %v5514_v54 = vpop.eup %5513  ;;  %1311 = vmatpush1.msra.mxu0 %v11867_v3  ;;  %v974_v57 = vmul.f32 %v5512_v12, %v5510_v2  ;;  %1382 = vmatpush1.msra.mxu1 %v11868_v45  ;;  %v11876_v2 = vld [vmem:[#allocation71_spill] sm:$0xff]  ;;  %v11877_v12 = vld [vmem:[#allocation72_spill] sm:$0xff]  ;;  %v11879_v11 = vld [vmem:[#allocation74_spill] sm:$0xff] }
 0x18a   :  { %v973_v47 = vmul.f32 0.0, %v5514_v54  ;;  %1312 = vmatprep.subr.mxu0 %v11869_v26  ;;  %1383 = vmatprep.subr.mxu1 %v11870_v41  ;;  %v11878_v54 = vld [vmem:[#allocation73_spill] sm:$0xff]  ;;  %v11880_v3 = vld [vmem:[#allocation75_spill] sm:$0xff]  ;;  %v11885_v26 = vld [vmem:[#allocation80_spill] sm:$0xff] }
 0x18b   :  { %1313 = vmatpush1.msra.mxu0 %v11871_v24  ;;  %1384 = vmatpush1.msra.mxu1 %v11872_v40  ;;  %v11884_v45 = vld [vmem:[#allocation79_spill] sm:$0xff]  ;;  %v11886_v41 = vld [vmem:[#allocation81_spill] sm:$0xff]  ;;  %v11887_v24 = vld [vmem:[#allocation82_spill] sm:$0xff] }
 0x18c   :  { %v7615_v9 = vadd.f32 %v974_v57, %v973_v47  ;;  %1314 = vmatprep.subr.mxu0 %v11873_v29  ;;  %1385 = vmatprep.subr.mxu1 %v11874_v18  ;;  %v11881_v47 = vld [vmem:[#allocation76_spill] sm:$0xff]  ;;  %v11882_v57 = vld [vmem:[#allocation77_spill] sm:$0xff]  ;;  %v11888_v40 = vld [vmem:[#allocation83_spill] sm:$0xff] }
 0x18d   :  { %1315 = vmatpush1.msra.mxu0 %v11875_v16  ;;  %1386 = vmatpush1.msra.mxu1 %v11876_v2  ;;  %v11889_v29 = vld [vmem:[#allocation84_spill] sm:$0xff]  ;;  %v11890_v18 = vld [vmem:[#allocation85_spill] sm:$0xff]  ;;  %v11891_v16 = vld [vmem:[#allocation86_spill] sm:$0xff] }
 0x18e   :  { %5517 = vtanh.f32 %v7615_v9  ;;  %1316 = vmatprep.subr.mxu0 %v11877_v12  ;;  %1387 = vmatprep.subr.mxu1 %v11878_v54  ;;  %v11892_v2 = vld [vmem:[#allocation87_spill] sm:$0xff]  ;;  %v11893_v12 = vld [vmem:[#allocation88_spill] sm:$0xff]  ;;  %v11894_v54 = vld [vmem:[#allocation89_spill] sm:$0xff] }
 0x18f   :  { %1317 = vmatpush1.msra.mxu0 %v11879_v11  ;;  %1388 = vmatpush1.msra.mxu1 %v11880_v3  ;;  %v11895_v11 = vld [vmem:[#allocation90_spill] sm:$0xff]  ;;  %v11896_v3 = vld [vmem:[#allocation91_spill] sm:$0xff] }
 0x190   :  { %1318 = vmatprep.subr.mxu0 %v11881_v47  ;;  %1389 = vmatprep.subr.mxu1 %v11882_v57  ;;  %v11897_v47 = vld [vmem:[#allocation92_spill] sm:$0xff]  ;;  %v11898_v57 = vld [vmem:[#allocation93_spill] sm:$0xff] }
 0x191   :  { %1319 = vmatpush1.msra.mxu0 %v11883_v17  ;;  %1390 = vmatpush1.msra.mxu1 %v11884_v45  ;;  %v11899_v17 = vld [vmem:[#allocation94_spill] sm:$0xff]  ;;  %v5516_v45 = vpop.eup %5515 }
 0x192   :  { %1320 = vmatprep.subr.mxu0 %v11885_v26  ;;  %1391 = vmatprep.subr.mxu1 %v11886_v41  ;;  %v11900_v26 = vld [vmem:[#allocation95_spill] sm:$0xff]  ;;  %v11901_v41 = vld [vmem:[#allocation96_spill] sm:$0xff] }
 0x193   :  { %1321 = vmatpush1.msra.mxu0 %v11887_v24  ;;  %1392 = vmatpush1.msra.mxu1 %v11888_v40  ;;  %v11902_v40 = vld [vmem:[#allocation97_spill] sm:$0xff] }
 0x194   :  { %1322 = vmatprep.subr.mxu0 %v11889_v29  ;;  %1393 = vmatprep.subr.mxu1 %v11890_v18  ;;  %v11903_v29 = vld [vmem:[#allocation98_spill] sm:$0xff]  ;;  %v11904_v18 = vld [vmem:[#allocation99_spill] sm:$0xff] }
 0x195   :  { %1323 = vmatpush1.msra.mxu0 %v11891_v16  ;;  %1394 = vmatpush1.msra.mxu1 %v11892_v2  ;;  %v11905_v2 = vld [vmem:[#allocation100_spill] sm:$0xff] }
 0x196   :  { %1324 = vmatprep.subr.mxu0 %v11893_v12  ;;  %1395 = vmatprep.subr.mxu1 %v11894_v54  ;;  %v11906_v12 = vld [vmem:[#allocation101_spill] sm:$0xff]  ;;  %v11907_v54 = vld [vmem:[#allocation102_spill] sm:$0xff] }
 0x197   :  { %1325 = vmatpush1.msra.mxu0 %v11895_v11  ;;  %1396 = vmatpush1.msra.mxu1 %v11896_v3  ;;  %v11908_v11 = vld [vmem:[#allocation103_spill] sm:$0xff]  ;;  %v11909_v3 = vld [vmem:[#allocation104_spill] sm:$0xff] }
 0x198   :  { %1326 = vmatprep.subr.mxu0 %v11897_v47  ;;  %1397 = vmatprep.subr.mxu1 %v11898_v57  ;;  %v11910_v47 = vld [vmem:[#allocation105_spill] sm:$0xff]  ;;  %v11911_v57 = vld [vmem:[#allocation106_spill] sm:$0xff] }
 0x199   :  { %1327 = vmatpush1.msra.mxu0 %v11899_v17  ;;  %1398 = vmatpush1.msra.mxu1 %v11900_v26  ;;  %v11912_v17 = vld [vmem:[#allocation107_spill] sm:$0xff]  ;;  %v11914_v26 = vld [vmem:[#allocation109_spill] sm:$0xff] }
 0x19a   :  { %1328 = vmatprep.subr.mxu0 %v11901_v41  ;;  %1399 = vmatprep.subr.mxu1 %v11902_v40  ;;  %v11915_v41 = vld [vmem:[#allocation110_spill] sm:$0xff]  ;;  %v11917_v40 = vld [vmem:[#allocation112_spill] sm:$0xff] }
 0x19b   :  { %v5518_v24 = vpop.eup %5517  ;;  %1329 = vmatpush1.msra.mxu0 %v11903_v29  ;;  %1400 = vmatpush1.msra.mxu1 %v11904_v18  ;;  %v11918_v29 = vld [vmem:[#allocation113_spill] sm:$0xff]  ;;  %v11919_v18 = vld [vmem:[#allocation114_spill] sm:$0xff] }
 0x19c   :  { %1362 = vmatprep.mubr.f32.mxu0 %v11670_v10  ;;  %v977_v16 = vmul.f32 %v5518_v24, %v5516_v45  ;;  %1433 = vmatprep.mubr.f32.mxu1 %v11670_v10  ;;  %v11913_v45 = vld [vmem:[#allocation108_spill] sm:$0xff]  ;;  %v11916_v24 = vld [vmem:[#allocation111_spill] sm:$0xff] }
 0x19d   :  { %1440 = vmatprep.subr.mxu0 %v11905_v2  ;;  %1511 = vmatprep.subr.mxu1 %v11906_v12  ;;  %v11921_v2 = vld [vmem:[#allocation116_spill] sm:$0xff]  ;;  %v11922_v12 = vld [vmem:[#allocation117_spill] sm:$0xff] }
 0x19e   :  { %5413 = vst [vmem:[%s10908_s5 + $0x1c] sm:$0xf] %v977_v16  ;;  %1363 = vmatmul.mubr.f32.vlgmr.msra.gmra.mxu0 %v977_v16  ;;  %1434 = vmatmul.mubr.f32.vlgmr.msra.gmra.mxu1 %v977_v16  ;;  %v11920_v16 = vld [vmem:[#allocation115_spill] sm:$0xff] }
 0x19f   :  { %1441 = vmatpush1.msra.mxu0 %v11907_v54  ;;  %1512 = vmatpush1.msra.mxu1 %v11908_v11  ;;  %v11923_v54 = vld [vmem:[#allocation118_spill] sm:$0xff]  ;;  %v11924_v11 = vld [vmem:[#allocation119_spill] sm:$0xff] }
 0x1a0   :  { %1442 = vmatprep.subr.mxu0 %v11909_v3  ;;  %1513 = vmatprep.subr.mxu1 %v11910_v47  ;;  %v11925_v3 = vld [vmem:[#allocation120_spill] sm:$0xff]  ;;  %v11926_v47 = vld [vmem:[#allocation121_spill] sm:$0xff] }
 0x1a1   :  { %1443 = vmatpush1.msra.mxu0 %v11911_v57  ;;  %1514 = vmatpush1.msra.mxu1 %v11912_v17  ;;  %v11927_v57 = vld [vmem:[#allocation122_spill] sm:$0xff]  ;;  %v11928_v17 = vld [vmem:[#allocation123_spill] sm:$0xff] }
 0x1a2   :  { %1444 = vmatprep.subr.mxu0 %v11913_v45  ;;  %1515 = vmatprep.subr.mxu1 %v11914_v26  ;;  %v11929_v45 = vld [vmem:[#allocation124_spill] sm:$0xff]  ;;  %v11930_v26 = vld [vmem:[#allocation125_spill] sm:$0xff] }
 0x1a3   :  { %1445 = vmatpush1.msra.mxu0 %v11915_v41  ;;  %1516 = vmatpush1.msra.mxu1 %v11916_v24  ;;  %v11931_v41 = vld [vmem:[#allocation126_spill] sm:$0xff]  ;;  %v11932_v24 = vld [vmem:[#allocation127_spill] sm:$0xff] }
 0x1a4   :  { %1446 = vmatprep.subr.mxu0 %v11917_v40  ;;  %1517 = vmatprep.subr.mxu1 %v11918_v29  ;;  %v11933_v40 = vld [vmem:[#allocation128_spill] sm:$0xff]  ;;  %v11934_v29 = vld [vmem:[#allocation129_spill] sm:$0xff] }
 0x1a5   :  { %1447 = vmatpush1.msra.mxu0 %v11919_v18  ;;  %1518 = vmatpush1.msra.mxu1 %v11920_v16  ;;  %v11935_v18 = vld [vmem:[#allocation130_spill] sm:$0xff]  ;;  %v11936_v16 = vld [vmem:[#allocation131_spill] sm:$0xff] }
 0x1a6   :  { %1448 = vmatprep.subr.mxu0 %v11921_v2  ;;  %1519 = vmatprep.subr.mxu1 %v11922_v12  ;;  %v11937_v2 = vld [vmem:[#allocation132_spill] sm:$0xff]  ;;  %v11938_v12 = vld [vmem:[#allocation133_spill] sm:$0xff] }
 0x1a7   :  { %1449 = vmatpush1.msra.mxu0 %v11923_v54  ;;  %1520 = vmatpush1.msra.mxu1 %v11924_v11  ;;  %v11939_v54 = vld [vmem:[#allocation134_spill] sm:$0xff]  ;;  %v11940_v11 = vld [vmem:[#allocation135_spill] sm:$0xff] }
 0x1a8   :  { %1450 = vmatprep.subr.mxu0 %v11925_v3  ;;  %1521 = vmatprep.subr.mxu1 %v11926_v47  ;;  %v11941_v3 = vld [vmem:[#allocation136_spill] sm:$0xff]  ;;  %v11942_v47 = vld [vmem:[#allocation137_spill] sm:$0xff] }
 0x1a9   :  { %1451 = vmatpush1.msra.mxu0 %v11927_v57  ;;  %1522 = vmatpush1.msra.mxu1 %v11928_v17  ;;  %v11943_v57 = vld [vmem:[#allocation138_spill] sm:$0xff]  ;;  %v11944_v17 = vld [vmem:[#allocation139_spill] sm:$0xff] }
 0x1aa   :  { %1452 = vmatprep.subr.mxu0 %v11929_v45  ;;  %1523 = vmatprep.subr.mxu1 %v11930_v26  ;;  %v11945_v45 = vld [vmem:[#allocation140_spill] sm:$0xff]  ;;  %v11946_v26 = vld [vmem:[#allocation141_spill] sm:$0xff] }
 0x1ab   :  { %1453 = vmatpush1.msra.mxu0 %v11931_v41  ;;  %1524 = vmatpush1.msra.mxu1 %v11932_v24  ;;  %v11947_v41 = vld [vmem:[#allocation142_spill] sm:$0xff]  ;;  %v11948_v24 = vld [vmem:[#allocation143_spill] sm:$0xff] }
 0x1ac   :  { %1454 = vmatprep.subr.mxu0 %v11933_v40  ;;  %1525 = vmatprep.subr.mxu1 %v11934_v29  ;;  %v11949_v40 = vld [vmem:[#allocation144_spill] sm:$0xff]  ;;  %v11950_v29 = vld [vmem:[#allocation145_spill] sm:$0xff] }
 0x1ad   :  { %1455 = vmatpush1.msra.mxu0 %v11935_v18  ;;  %1526 = vmatpush1.msra.mxu1 %v11936_v16  ;;  %v11951_v18 = vld [vmem:[#allocation146_spill] sm:$0xff]  ;;  %v11952_v16 = vld [vmem:[#allocation147_spill] sm:$0xff] }
 0x1ae   :  { %1456 = vmatprep.subr.mxu0 %v11937_v2  ;;  %1527 = vmatprep.subr.mxu1 %v11938_v12  ;;  %v11953_v2 = vld [vmem:[#allocation148_spill] sm:$0xff]  ;;  %v11954_v12 = vld [vmem:[#allocation149_spill] sm:$0xff] }
 0x1af   :  { %1457 = vmatpush1.msra.mxu0 %v11939_v54  ;;  %1528 = vmatpush1.msra.mxu1 %v11940_v11  ;;  %v11955_v54 = vld [vmem:[#allocation150_spill] sm:$0xff]  ;;  %v11956_v11 = vld [vmem:[#allocation151_spill] sm:$0xff] }
 0x1b0   :  { %1458 = vmatprep.subr.mxu0 %v11941_v3  ;;  %1529 = vmatprep.subr.mxu1 %v11942_v47  ;;  %v11957_v3 = vld [vmem:[#allocation152_spill] sm:$0xff]  ;;  %v11958_v47 = vld [vmem:[#allocation153_spill] sm:$0xff] }
 0x1b1   :  { %1459 = vmatpush1.msra.mxu0 %v11943_v57  ;;  %1530 = vmatpush1.msra.mxu1 %v11944_v17  ;;  %v11959_v57 = vld [vmem:[#allocation154_spill] sm:$0xff]  ;;  %v11960_v17 = vld [vmem:[#allocation155_spill] sm:$0xff] }
 0x1b2   :  { %1460 = vmatprep.subr.mxu0 %v11945_v45  ;;  %1531 = vmatprep.subr.mxu1 %v11946_v26  ;;  %v11961_v45 = vld [vmem:[#allocation156_spill] sm:$0xff]  ;;  %v11962_v26 = vld [vmem:[#allocation157_spill] sm:$0xff] }
 0x1b3   :  { %1461 = vmatpush1.msra.mxu0 %v11947_v41  ;;  %1532 = vmatpush1.msra.mxu1 %v11948_v24  ;;  %v11967_v41 = vld [vmem:[#allocation162_spill] sm:$0xff]  ;;  %v11968_v24 = vld [vmem:[#allocation163_spill] sm:$0xff] }
 0x1b4   :  { %1462 = vmatprep.subr.mxu0 %v11949_v40  ;;  %1533 = vmatprep.subr.mxu1 %v11950_v29  ;;  %v11969_v40 = vld [vmem:[#allocation164_spill] sm:$0xff]  ;;  %v11970_v29 = vld [vmem:[#allocation165_spill] sm:$0xff] }
 0x1b5   :  { %1463 = vmatpush1.msra.mxu0 %v11951_v18  ;;  %1534 = vmatpush1.msra.mxu1 %v11952_v16  ;;  %v11971_v18 = vld [vmem:[#allocation166_spill] sm:$0xff]  ;;  %v11972_v16 = vld [vmem:[#allocation167_spill] sm:$0xff] }
 0x1b6   :  { %1464 = vmatprep.subr.mxu0 %v11953_v2  ;;  %1535 = vmatprep.subr.mxu1 %v11954_v12  ;;  %v11973_v2 = vld [vmem:[#allocation168_spill] sm:$0xff]  ;;  %v11974_v12 = vld [vmem:[#allocation169_spill] sm:$0xff] }
 0x1b7   :  { %1465 = vmatpush1.msra.mxu0 %v11955_v54  ;;  %1536 = vmatpush1.msra.mxu1 %v11956_v11  ;;  %v11975_v54 = vld [vmem:[#allocation170_spill] sm:$0xff]  ;;  %v11976_v11 = vld [vmem:[#allocation171_spill] sm:$0xff] }
 0x1b8   :  { %1466 = vmatprep.subr.mxu0 %v7241_v20  ;;  %1537 = vmatprep.subr.mxu1 %v11957_v3  ;;  %v5419_v20 = vld [vmem:[%s10903_s0 + $0x18] sm:$0xf]  ;;  %v11977_v3 = vld [vmem:[#allocation172_spill] sm:$0xff] }
 0x1b9   :  { %1467 = vmatpush1.msra.mxu0 %v7247_v14  ;;  %1538 = vmatpush1.msra.mxu1 %v11958_v47  ;;  %v11963_v14 = vld [vmem:[#allocation158_spill] sm:$0xff]  ;;  %v11978_v47 = vld [vmem:[#allocation173_spill] sm:$0xff] }
 0x1ba   :  { %1468 = vmatprep.subr.mxu0 %v7253_v6  ;;  %1539 = vmatprep.subr.mxu1 %v7255_v21  ;;  %v11964_v21 = vld [vmem:[#allocation159_spill] sm:$0xff]  ;;  %v11966_v6 = vld [vmem:[#allocation161_spill] sm:$0xff] }
 0x1bb   :  { %1469 = vmatpush1.msra.mxu0 %v7259_v22  ;;  %1540 = vmatpush1.msra.mxu1 %v11959_v57  ;;  %v11965_v22 = vld [vmem:[#allocation160_spill] sm:$0xff]  ;;  %v11979_v57 = vld [vmem:[#allocation174_spill] sm:$0xff] }
 0x1bc   :  { %1470 = vmatprep.subr.mxu0 %v11960_v17  ;;  %1541 = vmatprep.subr.mxu1 %v11961_v45  ;;  %v7747_v17 = vld [vmem:[#allocation4 + $0x140] sm:$0xff]  ;;  %v7753_v45 = vld [vmem:[#allocation4 + $0x128] sm:$0xff] }
 0x1bd   :  { %1471 = vmatpush1.msra.mxu0 %v11962_v26  ;;  %1504 = vmatprep.mubr.f32.mxu0 %v11670_v10  ;;  %v7774_v26 = vld [vmem:[#allocation4 + $0x110] sm:$0xff] }
 0x1be   :  { %1542 = vmatpush1.msra.mxu1 %v11963_v14  ;;  %1575 = vmatprep.mubr.f32.mxu1 %v11670_v10  ;;  %11982 = vst [vmem:[#allocation11_spill] sm:$0xff] %v7774_v26  ;;  %v7777_v14 = vld [vmem:[#allocation4 + $0xe8] sm:$0xff] }
 0x1bf   :  { %1505 = vmatmul.mubr.f32.vlgmr.msra.gmra.mxu0 %v5419_v20  ;;  %1576 = vmatmul.mubr.f32.vlgmr.msra.gmra.mxu1 %v5419_v20  ;;  %v7750_v20 = vld [vmem:[#allocation4 + $0x150] sm:$0xff]  ;;  %11983 = vst [vmem:[#allocation12_spill] sm:$0xff] %v7777_v14 }
 0x1c0   :  { %1614 = vmatprep.subr.mxu0 %v11964_v21  ;;  %1685 = vmatprep.subr.mxu1 %v11965_v22  ;;  %v7780_v21 = vld [vmem:[#allocation4 + $0xf8] sm:$0xff]  ;;  %v7783_v22 = vld [vmem:[#allocation4 + $0xe0] sm:$0xff] }
 0x1c1   :  { %1615 = vmatpush1.msra.mxu0 %v11966_v6  ;;  %1686 = vmatpush1.msra.mxu1 %v11967_v41  ;;  %11984 = vst [vmem:[#allocation13_spill] sm:$0xff] %v7780_v21  ;;  %11985 = vst [vmem:[#allocation14_spill] sm:$0xff] %v7783_v22  ;;  %v7786_v6 = vld [vmem:[#allocation4 + $0xf0] sm:$0xff]  ;;  %v7789_v41 = vld [vmem:[#allocation4 + $0xc8] sm:$0xff] }
 0x1c2   :  { %1616 = vmatprep.subr.mxu0 %v11968_v24  ;;  %1687 = vmatprep.subr.mxu1 %v11969_v40  ;;  %11986 = vst [vmem:[#allocation15_spill] sm:$0xff] %v7786_v6  ;;  %11987 = vst [vmem:[#allocation16_spill] sm:$0xff] %v7789_v41  ;;  %v7792_v24 = vld [vmem:[#allocation4 + $0xd8] sm:$0xff]  ;;  %v7795_v40 = vld [vmem:[#allocation4 + $0xc0] sm:$0xff] }
 0x1c3   :  { %1617 = vmatpush1.msra.mxu0 %v11970_v29  ;;  %1688 = vmatpush1.msra.mxu1 %v11971_v18  ;;  %11988 = vst [vmem:[#allocation17_spill] sm:$0xff] %v7792_v24  ;;  %11989 = vst [vmem:[#allocation18_spill] sm:$0xff] %v7795_v40  ;;  %v7798_v29 = vld [vmem:[#allocation4 + $0xd0] sm:$0xff]  ;;  %v7801_v18 = vld [vmem:[#allocation4 + $0xa8] sm:$0xff] }
 0x1c4   :  { %1618 = vmatprep.subr.mxu0 %v11972_v16  ;;  %1689 = vmatprep.subr.mxu1 %v11973_v2  ;;  %11990 = vst [vmem:[#allocation19_spill] sm:$0xff] %v7798_v29  ;;  %11991 = vst [vmem:[#allocation20_spill] sm:$0xff] %v7801_v18  ;;  %v7804_v16 = vld [vmem:[#allocation4 + $0xb8] sm:$0xff]  ;;  %v7807_v2 = vld [vmem:[#allocation4 + $0xa0] sm:$0xff] }
 0x1c5   :  { %1619 = vmatpush1.msra.mxu0 %v11974_v12  ;;  %1690 = vmatpush1.msra.mxu1 %v11975_v54  ;;  %11992 = vst [vmem:[#allocation21_spill] sm:$0xff] %v7804_v16  ;;  %11993 = vst [vmem:[#allocation22_spill] sm:$0xff] %v7807_v2  ;;  %v7810_v12 = vld [vmem:[#allocation4 + $0xb0] sm:$0xff]  ;;  %v7813_v54 = vld [vmem:[#allocation4 + $0x88] sm:$0xff] }
 0x1c6   :  { %1620 = vmatprep.subr.mxu0 %v11976_v11  ;;  %1691 = vmatprep.subr.mxu1 %v11977_v3  ;;  %11994 = vst [vmem:[#allocation23_spill] sm:$0xff] %v7810_v12  ;;  %11995 = vst [vmem:[#allocation24_spill] sm:$0xff] %v7813_v54  ;;  %v7816_v11 = vld [vmem:[#allocation4 + $0x98] sm:$0xff]  ;;  %v7819_v3 = vld [vmem:[#allocation4 + $0x80] sm:$0xff] }
 0x1c7   :  { %1621 = vmatpush1.msra.mxu0 %v11978_v47  ;;  %1692 = vmatpush1.msra.mxu1 %v11979_v57  ;;  %11996 = vst [vmem:[#allocation25_spill] sm:$0xff] %v7816_v11  ;;  %11997 = vst [vmem:[#allocation26_spill] sm:$0xff] %v7819_v3  ;;  %v7822_v47 = vld [vmem:[#allocation4 + $0x90] sm:$0xff]  ;;  %v7825_v57 = vld [vmem:[#allocation4 + $0x68] sm:$0xff] }
 0x1c8   :  { %1622 = vmatprep.subr.mxu0 %v7334_v8  ;;  %1693 = vmatprep.subr.mxu1 %v7337_v7  ;;  %v7756_v8 = vld [vmem:[#allocation4 + $0x138] sm:$0xff]  ;;  %v7771_v7 = vld [vmem:[#allocation4 + $0x100] sm:$0xff]  ;;  %11998 = vst [vmem:[#allocation27_spill] sm:$0xff] %v7822_v47  ;;  %11999 = vst [vmem:[#allocation28_spill] sm:$0xff] %v7825_v57 }
 0x1c9   :  { %1623 = vmatpush1.msra.mxu0 %v7340_v4  ;;  %1694 = vmatpush1.msra.mxu1 %v7343_v0  ;;  %v7759_v0 = vld [vmem:[#allocation4 + $0x120] sm:$0xff]  ;;  %v7765_v4 = vld [vmem:[#allocation4 + $0x108] sm:$0xff]  ;;  %11981 = vst [vmem:[#allocation10_spill] sm:$0xff] %v7771_v7 }
 0x1ca   :  { %1624 = vmatprep.subr.mxu0 %v7346_v5  ;;  %1695 = vmatprep.subr.mxu1 %v7349_v19  ;;  %v7762_v19 = vld [vmem:[#allocation4 + $0x130] sm:$0xff]  ;;  %v7768_v5 = vld [vmem:[#allocation4 + $0x118] sm:$0xff] }
 0x1cb   :  { %1625 = vmatpush1.msra.mxu0 %v7747_v17  ;;  %1696 = vmatpush1.msra.mxu1 %v7750_v20  ;;  %11980 = vst [vmem:[#allocation9_spill] sm:$0xff] %v7768_v5 }
 0x1cc   :  { %1626 = vmatprep.subr.mxu0 %v7753_v45  ;;  %1697 = vmatprep.subr.mxu1 %v7756_v8 }
 0x1cd   :  { %1627 = vmatpush1.msra.mxu0 %v7759_v0  ;;  %1698 = vmatpush1.msra.mxu1 %v7762_v19 }
 0x1ce   :  { %1628 = vmatprep.subr.mxu0 %v7765_v4  ;;  %1699 = vmatprep.subr.mxu1 %v7768_v5 }
 0x1cf   :  { %1629 = vmatpush1.msra.mxu0 %v7771_v7  ;;  %1700 = vmatpush1.msra.mxu1 %v7774_v26 }
 0x1d0   :  { %1630 = vmatprep.subr.mxu0 %v7777_v14  ;;  %1701 = vmatprep.subr.mxu1 %v7780_v21 }
 0x1d1   :  { %1631 = vmatpush1.msra.mxu0 %v7783_v22  ;;  %1702 = vmatpush1.msra.mxu1 %v7786_v6 }
 0x1d2   :  { %1632 = vmatprep.subr.mxu0 %v7789_v41  ;;  %1703 = vmatprep.subr.mxu1 %v7792_v24 }
 0x1d3   :  { %1633 = vmatpush1.msra.mxu0 %v7795_v40  ;;  %1704 = vmatpush1.msra.mxu1 %v7798_v29 }
 0x1d4   :  { %1634 = vmatprep.subr.mxu0 %v7801_v18  ;;  %1705 = vmatprep.subr.mxu1 %v7804_v16 }
 0x1d5   :  { %1635 = vmatpush1.msra.mxu0 %v7807_v2  ;;  %1706 = vmatpush1.msra.mxu1 %v7810_v12  ;;  %v7828_v12 = vld [vmem:[#allocation4 + $0x78] sm:$0xff] }
 0x1d6   :  { %1636 = vmatprep.subr.mxu0 %v7813_v54  ;;  %1707 = vmatprep.subr.mxu1 %v7816_v11  ;;  %12000 = vst [vmem:[#allocation29_spill] sm:$0xff] %v7828_v12  ;;  %v7831_v54 = vld [vmem:[#allocation4 + $0x60] sm:$0xff]  ;;  %v7834_v11 = vld [vmem:[#allocation4 + $0x70] sm:$0xff] }
 0x1d7   :  { %1637 = vmatpush1.msra.mxu0 %v7819_v3  ;;  %1708 = vmatpush1.msra.mxu1 %v7822_v47  ;;  %12001 = vst [vmem:[#allocation30_spill] sm:$0xff] %v7831_v54  ;;  %12002 = vst [vmem:[#allocation31_spill] sm:$0xff] %v7834_v11  ;;  %v7837_v3 = vld [vmem:[#allocation4 + $0x48] sm:$0xff]  ;;  %v7840_v47 = vld [vmem:[#allocation4 + $0x58] sm:$0xff] }
 0x1d8   :  { %1638 = vmatprep.subr.mxu0 %v7825_v57  ;;  %1709 = vmatprep.subr.mxu1 %v7828_v12  ;;  %12003 = vst [vmem:[#allocation32_spill] sm:$0xff] %v7837_v3  ;;  %12004 = vst [vmem:[#allocation33_spill] sm:$0xff] %v7840_v47  ;;  %v7843_v57 = vld [vmem:[#allocation4 + $0x40] sm:$0xff]  ;;  %v7846_v12 = vld [vmem:[#allocation4 + $0x50] sm:$0xff] }
 0x1d9   :  { %1639 = vmatpush1.msra.mxu0 %v7831_v54  ;;  %1710 = vmatpush1.msra.mxu1 %v7834_v11  ;;  %12005 = vst [vmem:[#allocation34_spill] sm:$0xff] %v7843_v57  ;;  %12006 = vst [vmem:[#allocation35_spill] sm:$0xff] %v7846_v12  ;;  %v7849_v54 = vld [vmem:[#allocation4 + $0x28] sm:$0xff]  ;;  %v7852_v11 = vld [vmem:[#allocation4 + $0x38] sm:$0xff] }
 0x1da   :  { %1640 = vmatprep.subr.mxu0 %v7837_v3  ;;  %1711 = vmatprep.subr.mxu1 %v7840_v47  ;;  %12007 = vst [vmem:[#allocation36_spill] sm:$0xff] %v7849_v54  ;;  %12008 = vst [vmem:[#allocation37_spill] sm:$0xff] %v7852_v11  ;;  %v7855_v3 = vld [vmem:[#allocation4 + $0x20] sm:$0xff]  ;;  %v7858_v47 = vld [vmem:[#allocation4 + $0x30] sm:$0xff] }
 0x1db   :  { %1641 = vmatpush1.msra.mxu0 %v7843_v57  ;;  %1712 = vmatpush1.msra.mxu1 %v7846_v12  ;;  %12009 = vst [vmem:[#allocation38_spill] sm:$0xff] %v7855_v3  ;;  %12010 = vst [vmem:[#allocation39_spill] sm:$0xff] %v7858_v47  ;;  %v7861_v57 = vld [vmem:[#allocation4 + $0x8] sm:$0xff]  ;;  %v7864_v12 = vld [vmem:[#allocation4 + $0x18] sm:$0xff] }
 0x1dc   :  { %1642 = vmatprep.subr.mxu0 %v7849_v54  ;;  %1713 = vmatprep.subr.mxu1 %v7852_v11  ;;  %12011 = vst [vmem:[#allocation40_spill] sm:$0xff] %v7861_v57  ;;  %12012 = vst [vmem:[#allocation41_spill] sm:$0xff] %v7864_v12  ;;  %v7867_v54 = vld [vmem:[#allocation4] sm:$0xff]  ;;  %v7870_v11 = vld [vmem:[#allocation4 + $0x10] sm:$0xff] }
 0x1dd   :  { %1643 = vmatpush1.msra.mxu0 %v7855_v3  ;;  %1714 = vmatpush1.msra.mxu1 %v7858_v47  ;;  %12013 = vst [vmem:[#allocation42_spill] sm:$0xff] %v7867_v54  ;;  %12014 = vst [vmem:[#allocation43_spill] sm:$0xff] %v7870_v11  ;;  %v7875_v47 = vld [vmem:[#allocation2 + $0x1e8] sm:$0xff] }
 0x1de   :  { %1644 = vmatprep.subr.mxu0 %v7861_v57  ;;  %1715 = vmatprep.subr.mxu1 %v7864_v12  ;;  %12015 = vst [vmem:[#allocation44_spill] sm:$0xff] %v7875_v47  ;;  %v7878_v57 = vld [vmem:[#allocation2 + $0x1f8] sm:$0xff] }
 0x1df   :  { %1645 = vmatpush1.msra.mxu0 %v7867_v54  ;;  %1716 = vmatpush1.msra.mxu1 %v7870_v11  ;;  %12016 = vst [vmem:[#allocation45_spill] sm:$0xff] %v7878_v57 }
 0x1e0   :  { %1678 = vmatprep.mubr.f32.mxu0 %v11670_v10  ;;  %1749 = vmatprep.mubr.f32.mxu1 %v11670_v10 }
 0x1e1   :  { %1756 = vmatprep.subr.mxu0 %v7875_v47  ;;  %1827 = vmatprep.subr.mxu1 %v7878_v57 }
 0x21a   :  { %v1048_v12 = vpop.f32.mrf.mxu0  ;;  %v1119_v3 = vpop.f32.mrf.mxu1 }
 0x21c   :  { %v1050_v2 = vpop.f32.mrf.mxu0  ;;  %v1121_v16 = vpop.f32.mrf.mxu1 }
 0x23b   :  { %v1190_v54 = vpop.f32.mrf.mxu0  ;;  %v1261_v40 = vpop.f32.mrf.mxu1 }
 0x23c   :  { %v1191_v18 = vadd.f32 %v1190_v54, %v1048_v12  ;;  %v1262_v14 = vadd.f32 %v1261_v40, %v1119_v3  ;;  %v7967_v3 = vld [vmem:[#allocation2 + $0xb0] sm:$0xff] }
 0x23d   :  { %v1192_v29 = vpop.f32.mrf.mxu0  ;;  %v1263_v22 = vpop.f32.mrf.mxu1 }
 0x23e   :  { %v1266_v11 = vadd.f32 %v1191_v18, %v7407_v31  ;;  %v1193_v24 = vadd.f32 %v1192_v29, %v1050_v2  ;;  %v1264_v21 = vadd.f32 %v1263_v22, %v1121_v16  ;;  %v1268_v12 = vadd.f32 %v1262_v14, %v7424_v50  ;;  %v7961_v16 = vld [vmem:[#allocation2 + $0xb8] sm:$0xff] }
 0x240   :  { %v5415_v41 = vmul.f32 -1.442695, %v1266_v11  ;;  %v1267_v6 = vadd.f32 %v1193_v24, %v7411_v35  ;;  %v1269_v57 = vadd.f32 %v1264_v21, %v7418_v46  ;;  %v7964_v11 = vld [vmem:[#allocation2 + $0xa0] sm:$0xff] }
 0x242   :  { %5519 = vpow2.f32 %v5415_v41  ;;  %v5416_v47 = vmul.f32 -1.442695, %v1267_v6  ;;  %v5417_v26 = vmul.f32 -1.442695, %v1269_v57  ;;  %v7973_v57 = vld [vmem:[#allocation2 + $0x98] sm:$0xff] }
 0x244   :  { %5521 = vpow2.f32 %v5416_v47  ;;  %v7970_v47 = vld [vmem:[#allocation2 + $0x88] sm:$0xff] }
 0x245   :  { %5523 = vpow2.f32 %v5417_v26 }
 0x24f   :  { %v5520_v7 = vpop.eup %5519 }
 0x250   :  { %v1273_v54 = vadd.f32 1.0, %v5520_v7 }
 0x251   :  { %v5522_v5 = vpop.eup %5521 }
 0x252   :  { %5525 = vrcp.f32 %v1273_v54  ;;  %v1279_v29 = vadd.f32 1.0, %v5522_v5  ;;  %v5524_v24 = vpop.eup %5523  ;;  %v7958_v5 = vld [vmem:[#allocation2 + $0xa8] sm:$0xff]  ;;  %v7977_v54 = vld [vmem:[#allocation2 + $0x80] sm:$0xff] }
 0x253   :  { %5527 = vtanh.f32 %v1268_v12  ;;  %v1286_v2 = vadd.f32 1.0, %v5524_v24  ;;  %v7983_v24 = vld [vmem:[#allocation2 + $0x68] sm:$0xff] }
 0x254   :  { %5529 = vrcp.f32 %v1279_v29  ;;  %v7980_v29 = vld [vmem:[#allocation2 + $0x90] sm:$0xff] }
 0x255   :  { %5531 = vrcp.f32 %v1286_v2  ;;  %v7993_v2 = vld [vmem:[#allocation2 + $0x70] sm:$0xff] }
 0x25f   :  { %v5526_v41 = vpop.eup %5525 }
 0x260   :  { %v5528_v6 = vpop.eup %5527 }
 0x261   :  { %v5530_v18 = vpop.eup %5529  ;;  %v1290_v22 = vmul.f32 %v5528_v6, %v5526_v41  ;;  %v7986_v41 = vld [vmem:[#allocation2 + $0x78] sm:$0xff] }
 0x262   :  { %v1289_v21 = vmul.f32 %v5530_v18, %v7427_v1  ;;  %v5532_v7 = vpop.eup %5531  ;;  %v1364_v1 = vpop.f32.mrf.mxu0  ;;  %v7990_v18 = vld [vmem:[#allocation2 + $0x60] sm:$0xff] }
 0x264   :  { %v7886_v40 = vadd.f32 %v1290_v22, %v1289_v21  ;;  %v7996_v22 = vld [vmem:[#allocation2 + $0x48] sm:$0xff]  ;;  %v7999_v21 = vld [vmem:[#allocation2 + $0x58] sm:$0xff] }
 0x266   :  { %5533 = vtanh.f32 %v7886_v40 }
 0x273   :  { %v5534_v14 = vpop.eup %5533 }
 0x274   :  { %v1293_v26 = vmul.f32 %v5534_v14, %v5532_v7  ;;  %v8002_v14 = vld [vmem:[#allocation2 + $0x40] sm:$0xff] }
 0x276   :  { %5418 = vst [vmem:[%s10907_s4 + $0x4] sm:$0xf] %v1293_v26  ;;  %1679 = vmatmul.mubr.f32.vlgmr.msra.gmra.mxu0 %v1293_v26  ;;  %1750 = vmatmul.mubr.f32.vlgmr.msra.gmra.mxu1 %v1293_v26  ;;  %v8005_v26 = vld [vmem:[#allocation2 + $0x50] sm:$0xff] }
 0x277   :  { %1757 = vmatpush1.msra.mxu0 %v7433_v25  ;;  %1828 = vmatpush1.msra.mxu1 %v7436_v27  ;;  %v7902_v25 = vpop.f32.mrf.mxu1  ;;  %v1366_v27 = vpop.f32.mrf.mxu0 }
 0x278   :  { %1758 = vmatprep.subr.mxu0 %v7439_v28  ;;  %1829 = vmatprep.subr.mxu1 %v7442_v30 }
 0x279   :  { %1759 = vmatpush1.msra.mxu0 %v7445_v33  ;;  %1830 = vmatpush1.msra.mxu1 %v7448_v34  ;;  %v1437_v30 = vpop.f32.mrf.mxu1 }
 0x27a   :  { %1760 = vmatprep.subr.mxu0 %v7451_v36  ;;  %1831 = vmatprep.subr.mxu1 %v7454_v37 }
 0x27b   :  { %1761 = vmatpush1.msra.mxu0 %v7457_v38  ;;  %1832 = vmatpush1.msra.mxu1 %v7460_v39  ;;  %v7919_v39 = vld [vmem:[#allocation2 + $0x120] sm:$0xff] }
 0x27c   :  { %1762 = vmatprep.subr.mxu0 %v7470_v43  ;;  %1833 = vmatprep.subr.mxu1 %v7473_v44 }
 0x27d   :  { %1763 = vmatpush1.msra.mxu0 %v7476_v48  ;;  %1834 = vmatpush1.msra.mxu1 %v7479_v49  ;;  %v7924_v48 = vld [vmem:[#allocation2 + $0x108] sm:$0xff]  ;;  %v7927_v49 = vld [vmem:[#allocation2 + $0x118] sm:$0xff] }
 0x27e   :  { %1764 = vmatprep.subr.mxu0 %v7487_v52  ;;  %1835 = vmatprep.subr.mxu1 %v7490_v53  ;;  %v7930_v52 = vld [vmem:[#allocation2 + $0x100] sm:$0xff] }
 0x27f   :  { %v1506_v28 = vpop.f32.mrf.mxu0  ;;  %1765 = vmatpush1.msra.mxu0 %v7493_v55  ;;  %1836 = vmatpush1.msra.mxu1 %v7496_v56  ;;  %v1577_v37 = vpop.f32.mrf.mxu1  ;;  %v7934_v55 = vld [vmem:[#allocation2 + $0xe8] sm:$0xff]  ;;  %v7937_v56 = vld [vmem:[#allocation2 + $0xf8] sm:$0xff] }
 0x280   :  { %v1507_v33 = vadd.f32 %v1506_v28, %v1364_v1  ;;  %1766 = vmatprep.subr.mxu0 %v7504_v59  ;;  %1837 = vmatprep.subr.mxu1 %v7507_v60  ;;  %v7940_v59 = vld [vmem:[#allocation2 + $0xe0] sm:$0xff]  ;;  %v7943_v60 = vld [vmem:[#allocation2 + $0xf0] sm:$0xff]  ;;  %v1578_v6 = vadd.f32 %v1577_v37, %v7902_v25  ;;  %v8008_v1 = vld [vmem:[#allocation2 + $0x28] sm:$0xff] }
 0x281   :  { %v1508_v34 = vpop.f32.mrf.mxu0  ;;  %1767 = vmatpush1.msra.mxu0 %v7510_v62  ;;  %1838 = vmatpush1.msra.mxu1 %v7513_v63  ;;  %v7946_v62 = vld [vmem:[#allocation2 + $0xc8] sm:$0xff]  ;;  %v7949_v63 = vld [vmem:[#allocation2 + $0xd8] sm:$0xff] }
 0x282   :  { %v1582_v36 = vadd.f32 %v1507_v33, %v7485_v51  ;;  %v1509_v38 = vadd.f32 %v1508_v34, %v1366_v27  ;;  %1768 = vmatprep.subr.mxu0 %v7517_v23  ;;  %1839 = vmatprep.subr.mxu1 %v7520_v32  ;;  %v7952_v32 = vld [vmem:[#allocation2 + $0xc0] sm:$0xff]  ;;  %v8011_v25 = vld [vmem:[#allocation2 + $0x38] sm:$0xff]  ;;  %v1584_v28 = vadd.f32 %v1578_v6, %v7561_v15  ;;  %v8018_v33 = vld [vmem:[#allocation2 + $0x30] sm:$0xff] }
 0x283   :  { %1769 = vmatpush1.msra.mxu0 %v7919_v39  ;;  %1840 = vmatpush1.msra.mxu1 %v7525_v42  ;;  %v1579_v42 = vpop.f32.mrf.mxu1  ;;  %v8024_v37 = vld [vmem:[#allocation2 + $0x18] sm:$0xff]  ;;  %v8044_v6 = vld [vmem:[#allocation4 + $0x3e0] sm:$0xff] }
 0x284   :  { %v5420_v43 = vmul.f32 -1.442695, %v1582_v36  ;;  %v1583_v44 = vadd.f32 %v1509_v38, %v7502_v58  ;;  %1770 = vmatprep.subr.mxu0 %v7924_v48  ;;  %1841 = vmatprep.subr.mxu1 %v7927_v49  ;;  %v1580_v23 = vadd.f32 %v1579_v42, %v1437_v30  ;;  %v8015_v30 = vld [vmem:[#allocation2 + $0x20] sm:$0xff]  ;;  %v8021_v36 = vld [vmem:[#allocation2 + $0x8] sm:$0xff]  ;;  %v8034_v42 = vld [vmem:[#allocation2 + $0x10] sm:$0xff]  ;;  %12021 = vst [vmem:[#allocation50_spill] sm:$0xff] %v8044_v6 }
 0x285   :  { %1771 = vmatpush1.msra.mxu0 %v7930_v52  ;;  %1842 = vmatpush1.msra.mxu1 %v7531_v61  ;;  %v7955_v61 = vld [vmem:[#allocation2 + $0xd0] sm:$0xff]  ;;  %v5424_v38 = vld [vmem:[%s10903_s0 + $0x8] sm:$0xf]  ;;  %12018 = vst [vmem:[#allocation47_spill] sm:$0xff] %v8034_v42 }
 0x286   :  { %5535 = vpow2.f32 %v5420_v43  ;;  %v5421_v53 = vmul.f32 -1.442695, %v1583_v44  ;;  %1772 = vmatprep.subr.mxu0 %v7934_v55  ;;  %1843 = vmatprep.subr.mxu1 %v7937_v56  ;;  %v1585_v12 = vadd.f32 %v1580_v23, %v7542_v13  ;;  %v8030_v44 = vld [vmem:[#allocation2] sm:$0xff]  ;;  %v8038_v23 = vld [vmem:[#allocation4 + $0x3e8] sm:$0xff] }
 0x287   :  { %1773 = vmatpush1.msra.mxu0 %v7940_v59  ;;  %1844 = vmatpush1.msra.mxu1 %v7943_v60  ;;  %12017 = vst [vmem:[#allocation46_spill] sm:$0xff] %v8030_v44  ;;  %12019 = vst [vmem:[#allocation48_spill] sm:$0xff] %v8038_v23 }
 0x288   :  { %5537 = vpow2.f32 %v5421_v53  ;;  %1774 = vmatprep.subr.mxu0 %v7946_v62  ;;  %1845 = vmatprep.subr.mxu1 %v7949_v63  ;;  %v5422_v7 = vmul.f32 -1.442695, %v1585_v12  ;;  %v8041_v12 = vld [vmem:[#allocation4 + $0x3f8] sm:$0xff] }
 0x289   :  { %1775 = vmatpush1.msra.mxu0 %v7952_v32  ;;  %1846 = vmatpush1.msra.mxu1 %v7955_v61  ;;  %12020 = vst [vmem:[#allocation49_spill] sm:$0xff] %v8041_v12 }
 0x28a   :  { %1776 = vmatprep.subr.mxu0 %v7958_v5  ;;  %1847 = vmatprep.subr.mxu1 %v7961_v16  ;;  %5539 = vpow2.f32 %v5422_v7  ;;  %v8047_v7 = vld [vmem:[#allocation4 + $0x3f0] sm:$0xff] }
 0x28b   :  { %1777 = vmatpush1.msra.mxu0 %v7964_v11  ;;  %1848 = vmatpush1.msra.mxu1 %v7967_v3  ;;  %12022 = vst [vmem:[#allocation51_spill] sm:$0xff] %v8047_v7 }
 0x28c   :  { %1778 = vmatprep.subr.mxu0 %v7970_v47  ;;  %1849 = vmatprep.subr.mxu1 %v7973_v57 }
 0x28d   :  { %1779 = vmatpush1.msra.mxu0 %v7977_v54  ;;  %1850 = vmatpush1.msra.mxu1 %v7980_v29 }
 0x28e   :  { %1780 = vmatprep.subr.mxu0 %v7983_v24  ;;  %1851 = vmatprep.subr.mxu1 %v7986_v41 }
 0x28f   :  { %1781 = vmatpush1.msra.mxu0 %v7990_v18  ;;  %1852 = vmatpush1.msra.mxu1 %v7993_v2 }
 0x290   :  { %1782 = vmatprep.subr.mxu0 %v7996_v22  ;;  %1853 = vmatprep.subr.mxu1 %v7999_v21 }
 0x291   :  { %1783 = vmatpush1.msra.mxu0 %v8002_v14  ;;  %1854 = vmatpush1.msra.mxu1 %v8005_v26 }
 0x292   :  { %1784 = vmatprep.subr.mxu0 %v8008_v1  ;;  %1855 = vmatprep.subr.mxu1 %v8011_v25 }
 0x293   :  { %v5536_v27 = vpop.eup %5535  ;;  %1785 = vmatpush1.msra.mxu0 %v8015_v30  ;;  %1856 = vmatpush1.msra.mxu1 %v8018_v33 }
 0x294   :  { %v1589_v34 = vadd.f32 1.0, %v5536_v27  ;;  %1786 = vmatprep.subr.mxu0 %v8021_v36  ;;  %1857 = vmatprep.subr.mxu1 %v8024_v37  ;;  %v8050_v27 = vld [vmem:[#allocation4 + $0x3c8] sm:$0xff] }
 0x295   :  { %v5538_v43 = vpop.eup %5537  ;;  %1787 = vmatpush1.msra.mxu0 %v8030_v44  ;;  %1820 = vmatprep.mubr.f32.mxu0 %v11670_v10  ;;  %12023 = vst [vmem:[#allocation52_spill] sm:$0xff] %v8050_v27  ;;  %v8123_v44 = vld [vmem:[#allocation4 + $0x308] sm:$0xff] }
 0x296   :  { %5541 = vrcp.f32 %v1589_v34  ;;  %v1595_v53 = vadd.f32 1.0, %v5538_v43  ;;  %1858 = vmatpush1.msra.mxu1 %v8034_v42  ;;  %1891 = vmatprep.mubr.f32.mxu1 %v11670_v10  ;;  %v8056_v34 = vld [vmem:[#allocation4 + $0x3c0] sm:$0xff]  ;;  %v8062_v43 = vld [vmem:[#allocation4 + $0x3a8] sm:$0xff]  ;;  %12047 = vst [vmem:[#allocation76_spill] sm:$0xff] %v8123_v44 }
 0x297   :  { %5543 = vtanh.f32 %v1584_v28  ;;  %1821 = vmatmul.mubr.f32.vlgmr.msra.gmra.mxu0 %v5424_v38  ;;  %1892 = vmatmul.mubr.f32.vlgmr.msra.gmra.mxu1 %v5424_v38  ;;  %v8053_v28 = vld [vmem:[#allocation4 + $0x3d8] sm:$0xff]  ;;  %12025 = vst [vmem:[#allocation54_spill] sm:$0xff] %v8056_v34  ;;  %v8059_v38 = vld [vmem:[#allocation4 + $0x3d0] sm:$0xff]  ;;  %12027 = vst [vmem:[#allocation56_spill] sm:$0xff] %v8062_v43 }
 0x298   :  { %5545 = vrcp.f32 %v1595_v53  ;;  %1930 = vmatprep.subr.mxu0 %v8038_v23  ;;  %2001 = vmatprep.subr.mxu1 %v8041_v12  ;;  %12024 = vst [vmem:[#allocation53_spill] sm:$0xff] %v8053_v28  ;;  %12026 = vst [vmem:[#allocation55_spill] sm:$0xff] %v8059_v38  ;;  %v8065_v53 = vld [vmem:[#allocation4 + $0x3b8] sm:$0xff]  ;;  %v8116_v23 = vld [vmem:[#allocation4 + $0x320] sm:$0xff] }
 0x299   :  { %1931 = vmatpush1.msra.mxu0 %v8044_v6  ;;  %2002 = vmatpush1.msra.mxu1 %v8047_v7  ;;  %12028 = vst [vmem:[#allocation57_spill] sm:$0xff] %v8065_v53  ;;  %v8098_v7 = vld [vmem:[#allocation4 + $0x348] sm:$0xff]  ;;  %v8104_v6 = vld [vmem:[#allocation4 + $0x340] sm:$0xff]  ;;  %v8113_v12 = vld [vmem:[#allocation4 + $0x338] sm:$0xff] }
 0x29a   :  { %1932 = vmatprep.subr.mxu0 %v8050_v27  ;;  %2003 = vmatprep.subr.mxu1 %v8053_v28  ;;  %v8068_v27 = vld [vmem:[#allocation4 + $0x3a0] sm:$0xff]  ;;  %v8071_v28 = vld [vmem:[#allocation4 + $0x3b0] sm:$0xff]  ;;  %12039 = vst [vmem:[#allocation68_spill] sm:$0xff] %v8098_v7  ;;  %12041 = vst [vmem:[#allocation70_spill] sm:$0xff] %v8104_v6 }
 0x29b   :  { %1933 = vmatpush1.msra.mxu0 %v8056_v34  ;;  %2004 = vmatpush1.msra.mxu1 %v8059_v38  ;;  %12029 = vst [vmem:[#allocation58_spill] sm:$0xff] %v8068_v27  ;;  %12030 = vst [vmem:[#allocation59_spill] sm:$0xff] %v8071_v28  ;;  %v8074_v34 = vld [vmem:[#allocation4 + $0x388] sm:$0xff]  ;;  %v8077_v38 = vld [vmem:[#allocation4 + $0x398] sm:$0xff] }
 0x29c   :  { %1934 = vmatprep.subr.mxu0 %v8062_v43  ;;  %2005 = vmatprep.subr.mxu1 %v8065_v53  ;;  %12031 = vst [vmem:[#allocation60_spill] sm:$0xff] %v8074_v34  ;;  %12032 = vst [vmem:[#allocation61_spill] sm:$0xff] %v8077_v38  ;;  %v8080_v43 = vld [vmem:[#allocation4 + $0x380] sm:$0xff]  ;;  %v8083_v53 = vld [vmem:[#allocation4 + $0x390] sm:$0xff] }
 0x29d   :  { %1935 = vmatpush1.msra.mxu0 %v8068_v27  ;;  %2006 = vmatpush1.msra.mxu1 %v8071_v28  ;;  %12033 = vst [vmem:[#allocation62_spill] sm:$0xff] %v8080_v43  ;;  %12034 = vst [vmem:[#allocation63_spill] sm:$0xff] %v8083_v53  ;;  %v8086_v27 = vld [vmem:[#allocation4 + $0x368] sm:$0xff]  ;;  %v8089_v28 = vld [vmem:[#allocation4 + $0x378] sm:$0xff] }
 0x29e   :  { %1936 = vmatprep.subr.mxu0 %v8074_v34  ;;  %2007 = vmatprep.subr.mxu1 %v8077_v38  ;;  %12035 = vst [vmem:[#allocation64_spill] sm:$0xff] %v8086_v27  ;;  %12036 = vst [vmem:[#allocation65_spill] sm:$0xff] %v8089_v28  ;;  %v8092_v34 = vld [vmem:[#allocation4 + $0x360] sm:$0xff]  ;;  %v8095_v38 = vld [vmem:[#allocation4 + $0x370] sm:$0xff] }
 0x29f   :  { %1937 = vmatpush1.msra.mxu0 %v8080_v43  ;;  %2008 = vmatpush1.msra.mxu1 %v8083_v53  ;;  %12037 = vst [vmem:[#allocation66_spill] sm:$0xff] %v8092_v34  ;;  %12038 = vst [vmem:[#allocation67_spill] sm:$0xff] %v8095_v38  ;;  %v5540_v43 = vpop.eup %5539  ;;  %v8101_v53 = vld [vmem:[#allocation4 + $0x358] sm:$0xff] }
 0x2a0   :  { %1938 = vmatprep.subr.mxu0 %v8086_v27  ;;  %2009 = vmatprep.subr.mxu1 %v8089_v28  ;;  %12040 = vst [vmem:[#allocation69_spill] sm:$0xff] %v8101_v53  ;;  %v8107_v28 = vld [vmem:[#allocation4 + $0x350] sm:$0xff]  ;;  %12044 = vst [vmem:[#allocation73_spill] sm:$0xff] %v8113_v12 }
 0x2a1   :  { %1939 = vmatpush1.msra.mxu0 %v8092_v34  ;;  %2010 = vmatpush1.msra.mxu1 %v8095_v38  ;;  %12042 = vst [vmem:[#allocation71_spill] sm:$0xff] %v8107_v28  ;;  %v8110_v38 = vld [vmem:[#allocation4 + $0x328] sm:$0xff]  ;;  %12045 = vst [vmem:[#allocation74_spill] sm:$0xff] %v8116_v23 }
 0x2a2   :  { %1940 = vmatprep.subr.mxu0 %v8098_v7  ;;  %2011 = vmatprep.subr.mxu1 %v8101_v53  ;;  %12043 = vst [vmem:[#allocation72_spill] sm:$0xff] %v8110_v38  ;;  %v1602_v53 = vadd.f32 1.0, %v5540_v43  ;;  %v8129_v43 = vld [vmem:[#allocation4 + $0x300] sm:$0xff] }
 0x2a3   :  { %v5542_v27 = vpop.eup %5541  ;;  %1941 = vmatpush1.msra.mxu0 %v8104_v6  ;;  %2012 = vmatpush1.msra.mxu1 %v8107_v28  ;;  %v8119_v6 = vld [vmem:[#allocation4 + $0x330] sm:$0xff]  ;;  %12049 = vst [vmem:[#allocation78_spill] sm:$0xff] %v8129_v43 }
 0x2a4   :  { %v5544_v34 = vpop.eup %5543  ;;  %1942 = vmatprep.subr.mxu0 %v8110_v38  ;;  %2013 = vmatprep.subr.mxu1 %v8113_v12  ;;  %12046 = vst [vmem:[#allocation75_spill] sm:$0xff] %v8119_v6  ;;  %v8126_v38 = vld [vmem:[#allocation4 + $0x318] sm:$0xff]  ;;  %5547 = vrcp.f32 %v1602_v53  ;;  %v8162_v53 = vld [vmem:[#allocation4 + $0x2a8] sm:$0xff] }
 0x2a5   :  { %v5546_v7 = vpop.eup %5545  ;;  %1943 = vmatpush1.msra.mxu0 %v8116_v23  ;;  %2014 = vmatpush1.msra.mxu1 %v8119_v6  ;;  %v1606_v28 = vmul.f32 %v5544_v34, %v5542_v27  ;;  %12048 = vst [vmem:[#allocation77_spill] sm:$0xff] %v8126_v38  ;;  %v8132_v23 = vld [vmem:[#allocation4 + $0x310] sm:$0xff]  ;;  %v8135_v6 = vld [vmem:[#allocation4 + $0x2e8] sm:$0xff]  ;;  %v8143_v27 = vld [vmem:[#allocation4 + $0x2e0] sm:$0xff] }
 0x2a6   :  { %v1605_v42 = vmul.f32 %v5546_v7, %v7615_v9  ;;  %1944 = vmatprep.subr.mxu0 %v8123_v44  ;;  %2015 = vmatprep.subr.mxu1 %v8126_v38  ;;  %12050 = vst [vmem:[#allocation79_spill] sm:$0xff] %v8132_v23  ;;  %12051 = vst [vmem:[#allocation80_spill] sm:$0xff] %v8135_v6  ;;  %v8138_v9 = vld [vmem:[#allocation4 + $0x2f8] sm:$0xff]  ;;  %v8146_v34 = vld [vmem:[#allocation4 + $0x2f0] sm:$0xff] }
 0x2a7   :  { %1945 = vmatpush1.msra.mxu0 %v8129_v43  ;;  %2016 = vmatpush1.msra.mxu1 %v8132_v23  ;;  %12052 = vst [vmem:[#allocation81_spill] sm:$0xff] %v8138_v9  ;;  %12054 = vst [vmem:[#allocation83_spill] sm:$0xff] %v8143_v27  ;;  %v8149_v23 = vld [vmem:[#allocation4 + $0x2c8] sm:$0xff] }
 0x2a8   :  { %1946 = vmatprep.subr.mxu0 %v8135_v6  ;;  %2017 = vmatprep.subr.mxu1 %v8138_v9  ;;  %v8141_v7 = vadd.f32 %v1606_v28, %v1605_v42  ;;  %12055 = vst [vmem:[#allocation84_spill] sm:$0xff] %v8146_v34  ;;  %12056 = vst [vmem:[#allocation85_spill] sm:$0xff] %v8149_v23  ;;  %v8152_v6 = vld [vmem:[#allocation4 + $0x2d8] sm:$0xff]  ;;  %v8156_v42 = vld [vmem:[#allocation4 + $0x2c0] sm:$0xff] }
 0x2a9   :  { %1947 = vmatpush1.msra.mxu0 %v8143_v27  ;;  %2018 = vmatpush1.msra.mxu1 %v8146_v34  ;;  %12057 = vst [vmem:[#allocation86_spill] sm:$0xff] %v8152_v6  ;;  %12058 = vst [vmem:[#allocation87_spill] sm:$0xff] %v8156_v42  ;;  %v8159_v28 = vld [vmem:[#allocation4 + $0x2d0] sm:$0xff]  ;;  %v8165_v34 = vld [vmem:[#allocation4 + $0x2b8] sm:$0xff] }
 0x2aa   :  { %12053 = vst [vmem:[#allocation82_spill] sm:$0xff] %v8141_v7  ;;  %1948 = vmatprep.subr.mxu0 %v8149_v23  ;;  %2019 = vmatprep.subr.mxu1 %v8152_v6  ;;  %5549 = vtanh.f32 %v8141_v7  ;;  %12059 = vst [vmem:[#allocation88_spill] sm:$0xff] %v8159_v28  ;;  %v8168_v23 = vld [vmem:[#allocation4 + $0x2a0] sm:$0xff]  ;;  %v8171_v6 = vld [vmem:[#allocation4 + $0x2b0] sm:$0xff] }
 0x2ab   :  { %1949 = vmatpush1.msra.mxu0 %v8156_v42  ;;  %2020 = vmatpush1.msra.mxu1 %v8159_v28  ;;  %12060 = vst [vmem:[#allocation89_spill] sm:$0xff] %v8162_v53  ;;  %12061 = vst [vmem:[#allocation90_spill] sm:$0xff] %v8165_v34  ;;  %v8174_v42 = vld [vmem:[#allocation4 + $0x288] sm:$0xff]  ;;  %v8177_v28 = vld [vmem:[#allocation4 + $0x298] sm:$0xff] }
 0x2ac   :  { %1950 = vmatprep.subr.mxu0 %v8162_v53  ;;  %2021 = vmatprep.subr.mxu1 %v8165_v34  ;;  %12062 = vst [vmem:[#allocation91_spill] sm:$0xff] %v8168_v23  ;;  %12063 = vst [vmem:[#allocation92_spill] sm:$0xff] %v8171_v6  ;;  %v8180_v53 = vld [vmem:[#allocation4 + $0x280] sm:$0xff]  ;;  %v8183_v34 = vld [vmem:[#allocation4 + $0x290] sm:$0xff] }
 0x2ad   :  { %1951 = vmatpush1.msra.mxu0 %v8168_v23  ;;  %2022 = vmatpush1.msra.mxu1 %v8171_v6  ;;  %12064 = vst [vmem:[#allocation93_spill] sm:$0xff] %v8174_v42  ;;  %12065 = vst [vmem:[#allocation94_spill] sm:$0xff] %v8177_v28  ;;  %v8186_v23 = vld [vmem:[#allocation4 + $0x268] sm:$0xff]  ;;  %v8189_v6 = vld [vmem:[#allocation4 + $0x278] sm:$0xff] }
 0x2ae   :  { %1952 = vmatprep.subr.mxu0 %v8174_v42  ;;  %2023 = vmatprep.subr.mxu1 %v8177_v28  ;;  %12066 = vst [vmem:[#allocation95_spill] sm:$0xff] %v8180_v53  ;;  %12067 = vst [vmem:[#allocation96_spill] sm:$0xff] %v8183_v34  ;;  %v8192_v42 = vld [vmem:[#allocation4 + $0x260] sm:$0xff]  ;;  %v8195_v28 = vld [vmem:[#allocation4 + $0x270] sm:$0xff] }
 0x2af   :  { %1953 = vmatpush1.msra.mxu0 %v8180_v53  ;;  %2024 = vmatpush1.msra.mxu1 %v8183_v34  ;;  %12068 = vst [vmem:[#allocation97_spill] sm:$0xff] %v8186_v23  ;;  %12069 = vst [vmem:[#allocation98_spill] sm:$0xff] %v8189_v6  ;;  %v8198_v53 = vld [vmem:[#allocation4 + $0x248] sm:$0xff]  ;;  %v8201_v34 = vld [vmem:[#allocation4 + $0x258] sm:$0xff] }
 0x2b0   :  { %1954 = vmatprep.subr.mxu0 %v8186_v23  ;;  %2025 = vmatprep.subr.mxu1 %v8189_v6  ;;  %12070 = vst [vmem:[#allocation99_spill] sm:$0xff] %v8192_v42  ;;  %12071 = vst [vmem:[#allocation100_spill] sm:$0xff] %v8195_v28  ;;  %v8204_v23 = vld [vmem:[#allocation4 + $0x240] sm:$0xff]  ;;  %v8207_v6 = vld [vmem:[#allocation4 + $0x250] sm:$0xff] }
 0x2b1   :  { %1955 = vmatpush1.msra.mxu0 %v8192_v42  ;;  %2026 = vmatpush1.msra.mxu1 %v8195_v28  ;;  %12072 = vst [vmem:[#allocation101_spill] sm:$0xff] %v8198_v53  ;;  %12073 = vst [vmem:[#allocation102_spill] sm:$0xff] %v8201_v34  ;;  %v8210_v42 = vld [vmem:[#allocation4 + $0x228] sm:$0xff]  ;;  %v8213_v28 = vld [vmem:[#allocation4 + $0x238] sm:$0xff] }
 0x2b2   :  { %1956 = vmatprep.subr.mxu0 %v8198_v53  ;;  %2027 = vmatprep.subr.mxu1 %v8201_v34  ;;  %12074 = vst [vmem:[#allocation103_spill] sm:$0xff] %v8204_v23  ;;  %12075 = vst [vmem:[#allocation104_spill] sm:$0xff] %v8207_v6  ;;  %v8216_v53 = vld [vmem:[#allocation4 + $0x220] sm:$0xff]  ;;  %v8219_v34 = vld [vmem:[#allocation4 + $0x230] sm:$0xff] }
 0x2b3   :  { %1957 = vmatpush1.msra.mxu0 %v8204_v23  ;;  %2028 = vmatpush1.msra.mxu1 %v8207_v6  ;;  %12076 = vst [vmem:[#allocation105_spill] sm:$0xff] %v8210_v42  ;;  %12077 = vst [vmem:[#allocation106_spill] sm:$0xff] %v8213_v28  ;;  %v5548_v23 = vpop.eup %5547  ;;  %v8222_v27 = vld [vmem:[#allocation4 + $0x208] sm:$0xff]  ;;  %v8225_v6 = vld [vmem:[#allocation4 + $0x218] sm:$0xff] }
 0x2b4   :  { %1958 = vmatprep.subr.mxu0 %v8210_v42  ;;  %2029 = vmatprep.subr.mxu1 %v8213_v28  ;;  %12078 = vst [vmem:[#allocation107_spill] sm:$0xff] %v8216_v53  ;;  %12079 = vst [vmem:[#allocation108_spill] sm:$0xff] %v8219_v34  ;;  %v8228_v9 = vld [vmem:[#allocation4 + $0x200] sm:$0xff]  ;;  %v8231_v28 = vld [vmem:[#allocation4 + $0x210] sm:$0xff] }
 0x2b5   :  { %1959 = vmatpush1.msra.mxu0 %v8216_v53  ;;  %2030 = vmatpush1.msra.mxu1 %v8219_v34  ;;  %12080 = vst [vmem:[#allocation109_spill] sm:$0xff] %v8222_v27  ;;  %12081 = vst [vmem:[#allocation110_spill] sm:$0xff] %v8225_v6  ;;  %v8236_v53 = vld [vmem:[#allocation2 + $0x3e8] sm:$0xff] }
 0x2b6   :  { %1960 = vmatprep.subr.mxu0 %v8222_v27  ;;  %2031 = vmatprep.subr.mxu1 %v8225_v6  ;;  %12082 = vst [vmem:[#allocation111_spill] sm:$0xff] %v8228_v9  ;;  %12083 = vst [vmem:[#allocation112_spill] sm:$0xff] %v8231_v28  ;;  %v8239_v27 = vld [vmem:[#allocation2 + $0x3f8] sm:$0xff] }
 0x2b7   :  { %v5550_v42 = vpop.eup %5549  ;;  %1961 = vmatpush1.msra.mxu0 %v8228_v9  ;;  %2032 = vmatpush1.msra.mxu1 %v8231_v28  ;;  %12084 = vst [vmem:[#allocation113_spill] sm:$0xff] %v8236_v53  ;;  %12085 = vst [vmem:[#allocation114_spill] sm:$0xff] %v8239_v27  ;;  %v8245_v28 = vld [vmem:[#allocation2 + $0x3e0] sm:$0xff]  ;;  %v8248_v9 = vld [vmem:[#allocation2 + $0x3f0] sm:$0xff] }
 0x2b8   :  { %1994 = vmatprep.mubr.f32.mxu0 %v11670_v10  ;;  %2065 = vmatprep.mubr.f32.mxu1 %v11670_v10  ;;  %v1609_v34 = vmul.f32 %v5550_v42, %v5548_v23  ;;  %12086 = vst [vmem:[#allocation115_spill] sm:$0xff] %v8245_v28  ;;  %12087 = vst [vmem:[#allocation116_spill] sm:$0xff] %v8248_v9  ;;  %v8251_v23 = vld [vmem:[#allocation2 + $0x3c8] sm:$0xff]  ;;  %v8254_v42 = vld [vmem:[#allocation2 + $0x3d8] sm:$0xff] }
 0x2b9   :  { %2072 = vmatprep.subr.mxu0 %v8236_v53  ;;  %2143 = vmatprep.subr.mxu1 %v8239_v27  ;;  %12088 = vst [vmem:[#allocation117_spill] sm:$0xff] %v8251_v23  ;;  %12089 = vst [vmem:[#allocation118_spill] sm:$0xff] %v8254_v42  ;;  %v8257_v27 = vld [vmem:[#allocation2 + $0x3c0] sm:$0xff] }
 0x2ba   :  { %5423 = vst [vmem:[%s10908_s5 + $0x18] sm:$0xf] %v1609_v34  ;;  %1995 = vmatmul.mubr.f32.vlgmr.msra.gmra.mxu0 %v1609_v34  ;;  %2066 = vmatmul.mubr.f32.vlgmr.msra.gmra.mxu1 %v1609_v34  ;;  %12090 = vst [vmem:[#allocation119_spill] sm:$0xff] %v8257_v27  ;;  %v8260_v34 = vld [vmem:[#allocation2 + $0x3d0] sm:$0xff] }
 0x2bb   :  { %2073 = vmatpush1.msra.mxu0 %v8245_v28  ;;  %2144 = vmatpush1.msra.mxu1 %v8248_v9  ;;  %12091 = vst [vmem:[#allocation120_spill] sm:$0xff] %v8260_v34  ;;  %v8263_v28 = vld [vmem:[#allocation2 + $0x3a8] sm:$0xff]  ;;  %v8266_v9 = vld [vmem:[#allocation2 + $0x3b8] sm:$0xff] }
 0x2bc   :  { %2074 = vmatprep.subr.mxu0 %v8251_v23  ;;  %2145 = vmatprep.subr.mxu1 %v8254_v42  ;;  %12092 = vst [vmem:[#allocation121_spill] sm:$0xff] %v8263_v28  ;;  %12093 = vst [vmem:[#allocation122_spill] sm:$0xff] %v8266_v9  ;;  %v8269_v23 = vld [vmem:[#allocation2 + $0x3a0] sm:$0xff]  ;;  %v8272_v42 = vld [vmem:[#allocation2 + $0x3b0] sm:$0xff] }
 0x2bd   :  { %2075 = vmatpush1.msra.mxu0 %v8257_v27  ;;  %2146 = vmatpush1.msra.mxu1 %v8260_v34  ;;  %12094 = vst [vmem:[#allocation123_spill] sm:$0xff] %v8269_v23  ;;  %12095 = vst [vmem:[#allocation124_spill] sm:$0xff] %v8272_v42  ;;  %v8275_v27 = vld [vmem:[#allocation2 + $0x388] sm:$0xff]  ;;  %v8278_v34 = vld [vmem:[#allocation2 + $0x398] sm:$0xff] }
 0x2be   :  { %2076 = vmatprep.subr.mxu0 %v8263_v28  ;;  %2147 = vmatprep.subr.mxu1 %v8266_v9  ;;  %12096 = vst [vmem:[#allocation125_spill] sm:$0xff] %v8275_v27  ;;  %12097 = vst [vmem:[#allocation126_spill] sm:$0xff] %v8278_v34  ;;  %v8281_v28 = vld [vmem:[#allocation2 + $0x380] sm:$0xff]  ;;  %v8284_v9 = vld [vmem:[#allocation2 + $0x390] sm:$0xff] }
 0x2bf   :  { %2077 = vmatpush1.msra.mxu0 %v8269_v23  ;;  %2148 = vmatpush1.msra.mxu1 %v8272_v42  ;;  %12098 = vst [vmem:[#allocation127_spill] sm:$0xff] %v8281_v28  ;;  %12099 = vst [vmem:[#allocation128_spill] sm:$0xff] %v8284_v9  ;;  %v8287_v23 = vld [vmem:[#allocation2 + $0x368] sm:$0xff]  ;;  %v8290_v42 = vld [vmem:[#allocation2 + $0x378] sm:$0xff] }
 0x2c0   :  { %2078 = vmatprep.subr.mxu0 %v8275_v27  ;;  %2149 = vmatprep.subr.mxu1 %v8278_v34  ;;  %12100 = vst [vmem:[#allocation129_spill] sm:$0xff] %v8287_v23  ;;  %12101 = vst [vmem:[#allocation130_spill] sm:$0xff] %v8290_v42  ;;  %v8293_v27 = vld [vmem:[#allocation2 + $0x360] sm:$0xff]  ;;  %v8296_v34 = vld [vmem:[#allocation2 + $0x370] sm:$0xff] }
 0x2c1   :  { %2079 = vmatpush1.msra.mxu0 %v8281_v28  ;;  %2150 = vmatpush1.msra.mxu1 %v8284_v9  ;;  %12102 = vst [vmem:[#allocation131_spill] sm:$0xff] %v8293_v27  ;;  %12103 = vst [vmem:[#allocation132_spill] sm:$0xff] %v8296_v34  ;;  %v8299_v28 = vld [vmem:[#allocation2 + $0x348] sm:$0xff]  ;;  %v8302_v9 = vld [vmem:[#allocation2 + $0x358] sm:$0xff] }
 0x2c2   :  { %2080 = vmatprep.subr.mxu0 %v8287_v23  ;;  %2151 = vmatprep.subr.mxu1 %v8290_v42  ;;  %12104 = vst [vmem:[#allocation133_spill] sm:$0xff] %v8299_v28  ;;  %12105 = vst [vmem:[#allocation134_spill] sm:$0xff] %v8302_v9  ;;  %v8305_v23 = vld [vmem:[#allocation2 + $0x340] sm:$0xff]  ;;  %v8308_v42 = vld [vmem:[#allocation2 + $0x350] sm:$0xff] }
 0x2c3   :  { %2081 = vmatpush1.msra.mxu0 %v8293_v27  ;;  %2152 = vmatpush1.msra.mxu1 %v8296_v34  ;;  %12106 = vst [vmem:[#allocation135_spill] sm:$0xff] %v8305_v23  ;;  %12107 = vst [vmem:[#allocation136_spill] sm:$0xff] %v8308_v42  ;;  %v8311_v27 = vld [vmem:[#allocation2 + $0x328] sm:$0xff]  ;;  %v8314_v34 = vld [vmem:[#allocation2 + $0x338] sm:$0xff] }
 0x2c4   :  { %2082 = vmatprep.subr.mxu0 %v8299_v28  ;;  %2153 = vmatprep.subr.mxu1 %v8302_v9  ;;  %12108 = vst [vmem:[#allocation137_spill] sm:$0xff] %v8311_v27  ;;  %12109 = vst [vmem:[#allocation138_spill] sm:$0xff] %v8314_v34  ;;  %v8317_v28 = vld [vmem:[#allocation2 + $0x320] sm:$0xff]  ;;  %v8320_v9 = vld [vmem:[#allocation2 + $0x330] sm:$0xff] }
 0x2c5   :  { %2083 = vmatpush1.msra.mxu0 %v8305_v23  ;;  %2154 = vmatpush1.msra.mxu1 %v8308_v42  ;;  %12110 = vst [vmem:[#allocation139_spill] sm:$0xff] %v8317_v28  ;;  %12111 = vst [vmem:[#allocation140_spill] sm:$0xff] %v8320_v9  ;;  %v8323_v23 = vld [vmem:[#allocation2 + $0x308] sm:$0xff]  ;;  %v8326_v42 = vld [vmem:[#allocation2 + $0x318] sm:$0xff] }
 0x2c6   :  { %2084 = vmatprep.subr.mxu0 %v8311_v27  ;;  %2155 = vmatprep.subr.mxu1 %v8314_v34  ;;  %12112 = vst [vmem:[#allocation141_spill] sm:$0xff] %v8323_v23  ;;  %12113 = vst [vmem:[#allocation142_spill] sm:$0xff] %v8326_v42  ;;  %v8329_v27 = vld [vmem:[#allocation2 + $0x300] sm:$0xff]  ;;  %v8332_v34 = vld [vmem:[#allocation2 + $0x310] sm:$0xff] }
 0x2c7   :  { %2085 = vmatpush1.msra.mxu0 %v8317_v28  ;;  %2156 = vmatpush1.msra.mxu1 %v8320_v9  ;;  %12114 = vst [vmem:[#allocation143_spill] sm:$0xff] %v8329_v27  ;;  %12115 = vst [vmem:[#allocation144_spill] sm:$0xff] %v8332_v34  ;;  %v8335_v28 = vld [vmem:[#allocation2 + $0x2e8] sm:$0xff]  ;;  %v8338_v9 = vld [vmem:[#allocation2 + $0x2f8] sm:$0xff] }
 0x2c8   :  { %2086 = vmatprep.subr.mxu0 %v8323_v23  ;;  %2157 = vmatprep.subr.mxu1 %v8326_v42  ;;  %12116 = vst [vmem:[#allocation145_spill] sm:$0xff] %v8335_v28  ;;  %12117 = vst [vmem:[#allocation146_spill] sm:$0xff] %v8338_v9  ;;  %v8341_v23 = vld [vmem:[#allocation2 + $0x2e0] sm:$0xff]  ;;  %v8344_v42 = vld [vmem:[#allocation2 + $0x2f0] sm:$0xff] }
 0x2c9   :  { %2087 = vmatpush1.msra.mxu0 %v8329_v27  ;;  %2158 = vmatpush1.msra.mxu1 %v8332_v34  ;;  %12118 = vst [vmem:[#allocation147_spill] sm:$0xff] %v8341_v23  ;;  %12119 = vst [vmem:[#allocation148_spill] sm:$0xff] %v8344_v42  ;;  %v8347_v27 = vld [vmem:[#allocation2 + $0x2c8] sm:$0xff]  ;;  %v8350_v34 = vld [vmem:[#allocation2 + $0x2d8] sm:$0xff] }
 0x2ca   :  { %2088 = vmatprep.subr.mxu0 %v8335_v28  ;;  %2159 = vmatprep.subr.mxu1 %v8338_v9  ;;  %12120 = vst [vmem:[#allocation149_spill] sm:$0xff] %v8347_v27  ;;  %12121 = vst [vmem:[#allocation150_spill] sm:$0xff] %v8350_v34  ;;  %v8353_v28 = vld [vmem:[#allocation2 + $0x2c0] sm:$0xff]  ;;  %v8356_v9 = vld [vmem:[#allocation2 + $0x2d0] sm:$0xff] }
 0x2cb   :  { %2089 = vmatpush1.msra.mxu0 %v8341_v23  ;;  %2160 = vmatpush1.msra.mxu1 %v8344_v42  ;;  %12122 = vst [vmem:[#allocation151_spill] sm:$0xff] %v8353_v28  ;;  %12123 = vst [vmem:[#allocation152_spill] sm:$0xff] %v8356_v9  ;;  %v8359_v23 = vld [vmem:[#allocation2 + $0x2a8] sm:$0xff]  ;;  %v8362_v42 = vld [vmem:[#allocation2 + $0x2b8] sm:$0xff] }
 0x2cc   :  { %2090 = vmatprep.subr.mxu0 %v8347_v27  ;;  %2161 = vmatprep.subr.mxu1 %v8350_v34  ;;  %12124 = vst [vmem:[#allocation153_spill] sm:$0xff] %v8359_v23  ;;  %12125 = vst [vmem:[#allocation154_spill] sm:$0xff] %v8362_v42  ;;  %v8365_v27 = vld [vmem:[#allocation2 + $0x2a0] sm:$0xff]  ;;  %v8368_v34 = vld [vmem:[#allocation2 + $0x2b0] sm:$0xff] }
 0x2cd   :  { %2091 = vmatpush1.msra.mxu0 %v8353_v28  ;;  %2162 = vmatpush1.msra.mxu1 %v8356_v9  ;;  %12126 = vst [vmem:[#allocation155_spill] sm:$0xff] %v8365_v27  ;;  %12127 = vst [vmem:[#allocation156_spill] sm:$0xff] %v8368_v34  ;;  %v8371_v28 = vld [vmem:[#allocation2 + $0x288] sm:$0xff]  ;;  %v8374_v9 = vld [vmem:[#allocation2 + $0x298] sm:$0xff] }
 0x2ce   :  { %2092 = vmatprep.subr.mxu0 %v8359_v23  ;;  %2163 = vmatprep.subr.mxu1 %v8362_v42  ;;  %12128 = vst [vmem:[#allocation157_spill] sm:$0xff] %v8371_v28  ;;  %12129 = vst [vmem:[#allocation158_spill] sm:$0xff] %v8374_v9  ;;  %v8377_v23 = vld [vmem:[#allocation2 + $0x280] sm:$0xff]  ;;  %v8380_v42 = vld [vmem:[#allocation2 + $0x290] sm:$0xff] }
 0x2cf   :  { %2093 = vmatpush1.msra.mxu0 %v8365_v27  ;;  %2164 = vmatpush1.msra.mxu1 %v8368_v34  ;;  %12130 = vst [vmem:[#allocation159_spill] sm:$0xff] %v8377_v23  ;;  %12131 = vst [vmem:[#allocation160_spill] sm:$0xff] %v8380_v42  ;;  %v8383_v27 = vld [vmem:[#allocation2 + $0x268] sm:$0xff]  ;;  %v8386_v34 = vld [vmem:[#allocation2 + $0x278] sm:$0xff] }
 0x2d0   :  { %2094 = vmatprep.subr.mxu0 %v8371_v28  ;;  %2165 = vmatprep.subr.mxu1 %v8374_v9  ;;  %12132 = vst [vmem:[#allocation161_spill] sm:$0xff] %v8383_v27  ;;  %12133 = vst [vmem:[#allocation162_spill] sm:$0xff] %v8386_v34  ;;  %v8389_v28 = vld [vmem:[#allocation2 + $0x260] sm:$0xff]  ;;  %v8392_v9 = vld [vmem:[#allocation2 + $0x270] sm:$0xff] }
 0x2d1   :  { %2095 = vmatpush1.msra.mxu0 %v8377_v23  ;;  %2166 = vmatpush1.msra.mxu1 %v8380_v42  ;;  %12134 = vst [vmem:[#allocation163_spill] sm:$0xff] %v8389_v28  ;;  %12135 = vst [vmem:[#allocation164_spill] sm:$0xff] %v8392_v9  ;;  %v8395_v23 = vld [vmem:[#allocation2 + $0x248] sm:$0xff]  ;;  %v8398_v42 = vld [vmem:[#allocation2 + $0x258] sm:$0xff] }
 0x2d2   :  { %2096 = vmatprep.subr.mxu0 %v8383_v27  ;;  %2167 = vmatprep.subr.mxu1 %v8386_v34  ;;  %12136 = vst [vmem:[#allocation165_spill] sm:$0xff] %v8395_v23  ;;  %12137 = vst [vmem:[#allocation166_spill] sm:$0xff] %v8398_v42  ;;  %v8401_v27 = vld [vmem:[#allocation2 + $0x240] sm:$0xff]  ;;  %v8404_v34 = vld [vmem:[#allocation2 + $0x250] sm:$0xff] }
 0x2d3   :  { %2097 = vmatpush1.msra.mxu0 %v8389_v28  ;;  %2168 = vmatpush1.msra.mxu1 %v8392_v9  ;;  %12138 = vst [vmem:[#allocation167_spill] sm:$0xff] %v8401_v27  ;;  %12139 = vst [vmem:[#allocation168_spill] sm:$0xff] %v8404_v34  ;;  %v8407_v28 = vld [vmem:[#allocation2 + $0x228] sm:$0xff]  ;;  %v8410_v9 = vld [vmem:[#allocation2 + $0x238] sm:$0xff] }
 0x2d4   :  { %2098 = vmatprep.subr.mxu0 %v8395_v23  ;;  %2169 = vmatprep.subr.mxu1 %v8398_v42  ;;  %12140 = vst [vmem:[#allocation169_spill] sm:$0xff] %v8407_v28  ;;  %12141 = vst [vmem:[#allocation170_spill] sm:$0xff] %v8410_v9  ;;  %v8413_v23 = vld [vmem:[#allocation2 + $0x220] sm:$0xff]  ;;  %v8416_v42 = vld [vmem:[#allocation2 + $0x230] sm:$0xff] }
 0x2d5   :  { %2099 = vmatpush1.msra.mxu0 %v8401_v27  ;;  %2170 = vmatpush1.msra.mxu1 %v8404_v34  ;;  %12142 = vst [vmem:[#allocation171_spill] sm:$0xff] %v8413_v23  ;;  %12143 = vst [vmem:[#allocation172_spill] sm:$0xff] %v8416_v42  ;;  %v8419_v27 = vld [vmem:[#allocation2 + $0x208] sm:$0xff]  ;;  %v8422_v34 = vld [vmem:[#allocation2 + $0x218] sm:$0xff] }
 0x2d6   :  { %2100 = vmatprep.subr.mxu0 %v8407_v28  ;;  %2171 = vmatprep.subr.mxu1 %v8410_v9  ;;  %12144 = vst [vmem:[#allocation173_spill] sm:$0xff] %v8419_v27  ;;  %12145 = vst [vmem:[#allocation174_spill] sm:$0xff] %v8422_v34  ;;  %v5429_v9 = vld [vmem:[%s10903_s0 + $0x14] sm:$0xf]  ;;  %v8428_v28 = vld [vmem:[#allocation2 + $0x200] sm:$0xff] }
 0x2d7   :  { %2101 = vmatpush1.msra.mxu0 %v8413_v23  ;;  %2172 = vmatpush1.msra.mxu1 %v8416_v42  ;;  %12146 = vst [vmem:[#allocation175_spill] sm:$0xff] %v8428_v28  ;;  %v8432_v23 = vld [vmem:[#allocation2 + $0x210] sm:$0xff]  ;;  %v8442_v42 = vld [vmem:[#allocation4 + $0x1e0] sm:$0xff] }
 0x2d8   :  { %2102 = vmatprep.subr.mxu0 %v8419_v27  ;;  %2173 = vmatprep.subr.mxu1 %v8422_v34  ;;  %12147 = vst [vmem:[#allocation176_spill] sm:$0xff] %v8432_v23  ;;  %v8436_v27 = vld [vmem:[#allocation4 + $0x1e8] sm:$0xff]  ;;  %v8439_v34 = vld [vmem:[#allocation4 + $0x1f8] sm:$0xff]  ;;  %12150 = vst [vmem:[#allocation179_spill] sm:$0xff] %v8442_v42 }
 0x2d9   :  { %2103 = vmatpush1.msra.mxu0 %v8428_v28  ;;  %2136 = vmatprep.mubr.f32.mxu0 %v11670_v10  ;;  %12148 = vst [vmem:[#allocation177_spill] sm:$0xff] %v8436_v27  ;;  %12149 = vst [vmem:[#allocation178_spill] sm:$0xff] %v8439_v34  ;;  %v8445_v28 = vld [vmem:[#allocation4 + $0x1f0] sm:$0xff] }
 0x2da   :  { %2174 = vmatpush1.msra.mxu1 %v8432_v23  ;;  %2207 = vmatprep.mubr.f32.mxu1 %v11670_v10  ;;  %12151 = vst [vmem:[#allocation180_spill] sm:$0xff] %v8445_v28  ;;  %v8448_v23 = vld [vmem:[#allocation4 + $0x1c8] sm:$0xff] }
 0x2db   :  { %2137 = vmatmul.mubr.f32.vlgmr.msra.gmra.mxu0 %v5429_v9  ;;  %2208 = vmatmul.mubr.f32.vlgmr.msra.gmra.mxu1 %v5429_v9  ;;  %12152 = vst [vmem:[#allocation181_spill] sm:$0xff] %v8448_v23  ;;  %v8451_v9 = vld [vmem:[#allocation4 + $0x1d8] sm:$0xff] }
 0x2dc   :  { %2246 = vmatprep.subr.mxu0 %v8436_v27  ;;  %2317 = vmatprep.subr.mxu1 %v8439_v34  ;;  %12153 = vst [vmem:[#allocation182_spill] sm:$0xff] %v8451_v9  ;;  %v8454_v27 = vld [vmem:[#allocation4 + $0x1c0] sm:$0xff]  ;;  %v8457_v34 = vld [vmem:[#allocation4 + $0x1d0] sm:$0xff] }
 0x2dd   :  { %2247 = vmatpush1.msra.mxu0 %v8442_v42  ;;  %2318 = vmatpush1.msra.mxu1 %v8445_v28  ;;  %12154 = vst [vmem:[#allocation183_spill] sm:$0xff] %v8454_v27  ;;  %12155 = vst [vmem:[#allocation184_spill] sm:$0xff] %v8457_v34  ;;  %v8460_v42 = vld [vmem:[#allocation4 + $0x1a8] sm:$0xff]  ;;  %v8463_v28 = vld [vmem:[#allocation4 + $0x1b8] sm:$0xff] }
 0x2de   :  { %2248 = vmatprep.subr.mxu0 %v8448_v23  ;;  %2319 = vmatprep.subr.mxu1 %v8451_v9  ;;  %12156 = vst [vmem:[#allocation185_spill] sm:$0xff] %v8460_v42  ;;  %12157 = vst [vmem:[#allocation186_spill] sm:$0xff] %v8463_v28  ;;  %v8466_v23 = vld [vmem:[#allocation4 + $0x1a0] sm:$0xff]  ;;  %v8469_v9 = vld [vmem:[#allocation4 + $0x1b0] sm:$0xff] }
 0x2df   :  { %2249 = vmatpush1.msra.mxu0 %v8454_v27  ;;  %2320 = vmatpush1.msra.mxu1 %v8457_v34  ;;  %12158 = vst [vmem:[#allocation187_spill] sm:$0xff] %v8466_v23  ;;  %12159 = vst [vmem:[#allocation188_spill] sm:$0xff] %v8469_v9  ;;  %v8472_v27 = vld [vmem:[#allocation4 + $0x188] sm:$0xff]  ;;  %v8475_v34 = vld [vmem:[#allocation4 + $0x198] sm:$0xff] }
 0x2e0   :  { %2250 = vmatprep.subr.mxu0 %v8460_v42  ;;  %2321 = vmatprep.subr.mxu1 %v8463_v28  ;;  %12160 = vst [vmem:[#allocation189_spill] sm:$0xff] %v8472_v27  ;;  %12161 = vst [vmem:[#allocation190_spill] sm:$0xff] %v8475_v34  ;;  %v8478_v42 = vld [vmem:[#allocation4 + $0x180] sm:$0xff]  ;;  %v8481_v28 = vld [vmem:[#allocation4 + $0x190] sm:$0xff] }
 0x2e1   :  { %2251 = vmatpush1.msra.mxu0 %v8466_v23  ;;  %2322 = vmatpush1.msra.mxu1 %v8469_v9  ;;  %12162 = vst [vmem:[#allocation191_spill] sm:$0xff] %v8478_v42  ;;  %12163 = vst [vmem:[#allocation192_spill] sm:$0xff] %v8481_v28  ;;  %v8484_v23 = vld [vmem:[#allocation4 + $0x168] sm:$0xff]  ;;  %v8487_v9 = vld [vmem:[#allocation4 + $0x178] sm:$0xff] }
 0x2e2   :  { %2252 = vmatprep.subr.mxu0 %v8472_v27  ;;  %2323 = vmatprep.subr.mxu1 %v8475_v34  ;;  %12164 = vst [vmem:[#allocation193_spill] sm:$0xff] %v8484_v23  ;;  %12165 = vst [vmem:[#allocation194_spill] sm:$0xff] %v8487_v9  ;;  %v8490_v27 = vld [vmem:[#allocation4 + $0x160] sm:$0xff]  ;;  %v8493_v34 = vld [vmem:[#allocation4 + $0x170] sm:$0xff] }
 0x2e3   :  { %2253 = vmatpush1.msra.mxu0 %v8478_v42  ;;  %2324 = vmatpush1.msra.mxu1 %v8481_v28  ;;  %12166 = vst [vmem:[#allocation195_spill] sm:$0xff] %v8490_v27  ;;  %12167 = vst [vmem:[#allocation196_spill] sm:$0xff] %v8493_v34  ;;  %v8496_v42 = vld [vmem:[#allocation4 + $0x148] sm:$0xff]  ;;  %v8499_v28 = vld [vmem:[#allocation4 + $0x158] sm:$0xff] }
 0x2e4   :  { %2254 = vmatprep.subr.mxu0 %v8484_v23  ;;  %2325 = vmatprep.subr.mxu1 %v8487_v9  ;;  %12168 = vst [vmem:[#allocation197_spill] sm:$0xff] %v8496_v42  ;;  %12169 = vst [vmem:[#allocation198_spill] sm:$0xff] %v8499_v28 }
 0x2e5   :  { %2255 = vmatpush1.msra.mxu0 %v8490_v27  ;;  %2326 = vmatpush1.msra.mxu1 %v8493_v34  ;;  %v12170_v34 = vld [vmem:[#allocation9_spill] sm:$0xff]  ;;  %v12172_v27 = vld [vmem:[#allocation11_spill] sm:$0xff] }
 0x2e6   :  { %2256 = vmatprep.subr.mxu0 %v8496_v42  ;;  %2327 = vmatprep.subr.mxu1 %v8499_v28  ;;  %v12171_v42 = vld [vmem:[#allocation10_spill] sm:$0xff]  ;;  %v12173_v28 = vld [vmem:[#allocation12_spill] sm:$0xff] }
 0x2e7   :  { %2257 = vmatpush1.msra.mxu0 %v7747_v17  ;;  %2328 = vmatpush1.msra.mxu1 %v7750_v20  ;;  %v12174_v17 = vld [vmem:[#allocation13_spill] sm:$0xff]  ;;  %v12175_v20 = vld [vmem:[#allocation14_spill] sm:$0xff] }
 0x2e8   :  { %2258 = vmatprep.subr.mxu0 %v7753_v45  ;;  %2329 = vmatprep.subr.mxu1 %v7756_v8  ;;  %v12176_v45 = vld [vmem:[#allocation15_spill] sm:$0xff]  ;;  %v12177_v8 = vld [vmem:[#allocation16_spill] sm:$0xff] }
 0x2e9   :  { %2259 = vmatpush1.msra.mxu0 %v7759_v0  ;;  %2330 = vmatpush1.msra.mxu1 %v7762_v19  ;;  %v12178_v0 = vld [vmem:[#allocation17_spill] sm:$0xff]  ;;  %v12179_v19 = vld [vmem:[#allocation18_spill] sm:$0xff] }
 0x2ea   :  { %2260 = vmatprep.subr.mxu0 %v7765_v4  ;;  %2331 = vmatprep.subr.mxu1 %v12170_v34  ;;  %v12180_v4 = vld [vmem:[#allocation19_spill] sm:$0xff]  ;;  %v12181_v34 = vld [vmem:[#allocation20_spill] sm:$0xff] }
 0x2eb   :  { %2261 = vmatpush1.msra.mxu0 %v12171_v42  ;;  %2332 = vmatpush1.msra.mxu1 %v12172_v27  ;;  %v12182_v42 = vld [vmem:[#allocation21_spill] sm:$0xff]  ;;  %v12183_v27 = vld [vmem:[#allocation22_spill] sm:$0xff] }
 0x2ec   :  { %2262 = vmatprep.subr.mxu0 %v12173_v28  ;;  %2333 = vmatprep.subr.mxu1 %v12174_v17  ;;  %v12184_v28 = vld [vmem:[#allocation23_spill] sm:$0xff]  ;;  %v12185_v17 = vld [vmem:[#allocation24_spill] sm:$0xff] }
 0x2ed   :  { %2263 = vmatpush1.msra.mxu0 %v12175_v20  ;;  %2334 = vmatpush1.msra.mxu1 %v12176_v45  ;;  %v12186_v20 = vld [vmem:[#allocation25_spill] sm:$0xff]  ;;  %v12187_v45 = vld [vmem:[#allocation26_spill] sm:$0xff] }
 0x2ee   :  { %2264 = vmatprep.subr.mxu0 %v12177_v8  ;;  %2335 = vmatprep.subr.mxu1 %v12178_v0  ;;  %v12188_v8 = vld [vmem:[#allocation27_spill] sm:$0xff]  ;;  %v12189_v0 = vld [vmem:[#allocation28_spill] sm:$0xff] }
 0x2ef   :  { %2265 = vmatpush1.msra.mxu0 %v12179_v19  ;;  %2336 = vmatpush1.msra.mxu1 %v12180_v4  ;;  %v12190_v19 = vld [vmem:[#allocation29_spill] sm:$0xff]  ;;  %v12191_v4 = vld [vmem:[#allocation30_spill] sm:$0xff] }
 0x2f0   :  { %2266 = vmatprep.subr.mxu0 %v12181_v34  ;;  %2337 = vmatprep.subr.mxu1 %v12182_v42  ;;  %v12192_v34 = vld [vmem:[#allocation31_spill] sm:$0xff]  ;;  %v12193_v42 = vld [vmem:[#allocation32_spill] sm:$0xff] }
 0x2f1   :  { %2267 = vmatpush1.msra.mxu0 %v12183_v27  ;;  %2338 = vmatpush1.msra.mxu1 %v12184_v28  ;;  %v12194_v27 = vld [vmem:[#allocation33_spill] sm:$0xff]  ;;  %v12195_v28 = vld [vmem:[#allocation34_spill] sm:$0xff] }
 0x2f2   :  { %2268 = vmatprep.subr.mxu0 %v12185_v17  ;;  %2339 = vmatprep.subr.mxu1 %v12186_v20  ;;  %v12196_v17 = vld [vmem:[#allocation35_spill] sm:$0xff]  ;;  %v12197_v20 = vld [vmem:[#allocation36_spill] sm:$0xff] }
 0x2f3   :  { %2269 = vmatpush1.msra.mxu0 %v12187_v45  ;;  %2340 = vmatpush1.msra.mxu1 %v12188_v8  ;;  %v12198_v45 = vld [vmem:[#allocation37_spill] sm:$0xff]  ;;  %v12199_v8 = vld [vmem:[#allocation38_spill] sm:$0xff] }
 0x2f4   :  { %2270 = vmatprep.subr.mxu0 %v12189_v0  ;;  %2341 = vmatprep.subr.mxu1 %v12190_v19  ;;  %v12200_v0 = vld [vmem:[#allocation39_spill] sm:$0xff]  ;;  %v12201_v19 = vld [vmem:[#allocation40_spill] sm:$0xff] }
 0x2f5   :  { %2271 = vmatpush1.msra.mxu0 %v12191_v4  ;;  %2342 = vmatpush1.msra.mxu1 %v12192_v34  ;;  %v12202_v4 = vld [vmem:[#allocation41_spill] sm:$0xff]  ;;  %v12203_v34 = vld [vmem:[#allocation42_spill] sm:$0xff] }
 0x2f6   :  { %2272 = vmatprep.subr.mxu0 %v12193_v42  ;;  %2343 = vmatprep.subr.mxu1 %v12194_v27  ;;  %v12204_v42 = vld [vmem:[#allocation43_spill] sm:$0xff]  ;;  %v12205_v27 = vld [vmem:[#allocation44_spill] sm:$0xff] }
 0x2f7   :  { %2273 = vmatpush1.msra.mxu0 %v12195_v28  ;;  %2344 = vmatpush1.msra.mxu1 %v12196_v17  ;;  %v12206_v28 = vld [vmem:[#allocation45_spill] sm:$0xff] }
 0x2f8   :  { %2274 = vmatprep.subr.mxu0 %v12197_v20  ;;  %2345 = vmatprep.subr.mxu1 %v12198_v45 }
 0x2f9   :  { %2275 = vmatpush1.msra.mxu0 %v12199_v8  ;;  %2346 = vmatpush1.msra.mxu1 %v12200_v0 }
 0x2fa   :  { %2276 = vmatprep.subr.mxu0 %v12201_v19  ;;  %2347 = vmatprep.subr.mxu1 %v12202_v4 }
 0x2fb   :  { %2277 = vmatpush1.msra.mxu0 %v12203_v34  ;;  %2348 = vmatpush1.msra.mxu1 %v12204_v42 }
 0x2fc   :  { %2310 = vmatprep.mubr.f32.mxu0 %v11670_v10  ;;  %2381 = vmatprep.mubr.f32.mxu1 %v11670_v10 }
 0x2fd   :  { %2388 = vmatprep.subr.mxu0 %v12205_v27  ;;  %2459 = vmatprep.subr.mxu1 %v12206_v28 }
 0x336   :  { %v1680_v17 = vpop.f32.mrf.mxu0  ;;  %v1751_v20 = vpop.f32.mrf.mxu1 }
 0x338   :  { %v1682_v45 = vpop.f32.mrf.mxu0  ;;  %v1753_v0 = vpop.f32.mrf.mxu1 }
 0x357   :  { %v1822_v8 = vpop.f32.mrf.mxu0  ;;  %v1893_v34 = vpop.f32.mrf.mxu1 }
 0x358   :  { %v1823_v19 = vadd.f32 %v1822_v8, %v1680_v17  ;;  %v1894_v38 = vadd.f32 %v1893_v34, %v1751_v20  ;;  %v8568_v34 = vld [vmem:[#allocation2 + $0x1d8] sm:$0xff] }
 0x359   :  { %v1824_v9 = vpop.f32.mrf.mxu0  ;;  %v1895_v43 = vpop.f32.mrf.mxu1 }
 0x35a   :  { %v1898_v4 = vadd.f32 %v1823_v19, %v7407_v31  ;;  %v1825_v23 = vadd.f32 %v1824_v9, %v1682_v45  ;;  %v1896_v27 = vadd.f32 %v1895_v43, %v1753_v0  ;;  %v1900_v17 = vadd.f32 %v1894_v38, %v7424_v50 }
 0x35c   :  { %v5425_v42 = vmul.f32 -1.442695, %v1898_v4  ;;  %v1899_v53 = vadd.f32 %v1825_v23, %v7411_v35  ;;  %v1901_v28 = vadd.f32 %v1896_v27, %v7418_v46  ;;  %v8562_v4 = vld [vmem:[#allocation2 + $0x1f0] sm:$0xff]  ;;  %v8571_v27 = vld [vmem:[#allocation2 + $0x1c0] sm:$0xff] }
 0x35e   :  { %5551 = vpow2.f32 %v5425_v42  ;;  %v5426_v6 = vmul.f32 -1.442695, %v1899_v53  ;;  %v5427_v44 = vmul.f32 -1.442695, %v1901_v28  ;;  %v8574_v28 = vld [vmem:[#allocation2 + $0x1d0] sm:$0xff] }
 0x360   :  { %5553 = vpow2.f32 %v5426_v6 }
 0x361   :  { %5555 = vpow2.f32 %v5427_v44 }
 0x36b   :  { %v5552_v7 = vpop.eup %5551 }
 0x36c   :  { %v1905_v8 = vadd.f32 1.0, %v5552_v7 }
 0x36d   :  { %v5554_v12 = vpop.eup %5553 }
 0x36e   :  { %5557 = vrcp.f32 %v1905_v8  ;;  %v1911_v9 = vadd.f32 1.0, %v5554_v12  ;;  %v5556_v23 = vpop.eup %5555  ;;  %v8559_v12 = vld [vmem:[#allocation2 + $0x1e0] sm:$0xff]  ;;  %v8580_v8 = vld [vmem:[#allocation2 + $0x1b8] sm:$0xff] }
 0x36f   :  { %5559 = vtanh.f32 %v1900_v17  ;;  %v1918_v6 = vadd.f32 1.0, %v5556_v23  ;;  %v8577_v17 = vld [vmem:[#allocation2 + $0x1a8] sm:$0xff]  ;;  %12208 = vst [vmem:[#allocation10_spill] sm:$0xff] %v8580_v8  ;;  %v8586_v23 = vld [vmem:[#allocation2 + $0x1b0] sm:$0xff] }
 0x370   :  { %5561 = vrcp.f32 %v1911_v9  ;;  %12207 = vst [vmem:[#allocation9_spill] sm:$0xff] %v8577_v17  ;;  %v8583_v9 = vld [vmem:[#allocation2 + $0x1a0] sm:$0xff]  ;;  %12210 = vst [vmem:[#allocation12_spill] sm:$0xff] %v8586_v23 }
 0x371   :  { %5563 = vrcp.f32 %v1918_v6  ;;  %12209 = vst [vmem:[#allocation11_spill] sm:$0xff] %v8583_v9 }
 0x37a   :  { %v1996_v42 = vpop.f32.mrf.mxu0 }
 0x37b   :  { %v5558_v45 = vpop.eup %5557 }
 0x37c   :  { %v5560_v53 = vpop.eup %5559  ;;  %v1998_v6 = vpop.f32.mrf.mxu0 }
 0x37d   :  { %v5562_v19 = vpop.eup %5561  ;;  %v1922_v43 = vmul.f32 %v5560_v53, %v5558_v45  ;;  %v8589_v45 = vpop.f32.mrf.mxu1  ;;  %v8591_v53 = vld [vmem:[#allocation2 + $0x188] sm:$0xff] }
 0x37e   :  { %v1921_v0 = vmul.f32 %v5562_v19, %v7886_v40  ;;  %v5564_v38 = vpop.eup %5563  ;;  %v8565_v40 = vld [vmem:[#allocation2 + $0x1c8] sm:$0xff]  ;;  %12211 = vst [vmem:[#allocation13_spill] sm:$0xff] %v8591_v53  ;;  %v8594_v19 = vld [vmem:[#allocation2 + $0x198] sm:$0xff] }
 0x37f   :  { %12212 = vst [vmem:[#allocation14_spill] sm:$0xff] %v8594_v19 }
 0x380   :  { %v8553_v20 = vadd.f32 %v1922_v43, %v1921_v0  ;;  %v8597_v43 = vld [vmem:[#allocation2 + $0x180] sm:$0xff]  ;;  %v8600_v0 = vld [vmem:[#allocation2 + $0x190] sm:$0xff] }
 0x381   :  { %12213 = vst [vmem:[#allocation15_spill] sm:$0xff] %v8597_v43  ;;  %12214 = vst [vmem:[#allocation16_spill] sm:$0xff] %v8600_v0 }
 0x382   :  { %5565 = vtanh.f32 %v8553_v20 }
 0x38f   :  { %v5566_v7 = vpop.eup %5565 }
 0x390   :  { %v1925_v44 = vmul.f32 %v5566_v7, %v5564_v38  ;;  %v8603_v38 = vld [vmem:[#allocation2 + $0x168] sm:$0xff]  ;;  %v8606_v7 = vld [vmem:[#allocation2 + $0x178] sm:$0xff] }
 0x391   :  { %12215 = vst [vmem:[#allocation17_spill] sm:$0xff] %v8603_v38  ;;  %12216 = vst [vmem:[#allocation18_spill] sm:$0xff] %v8606_v7 }
 0x392   :  { %5428 = vst [vmem:[%s10907_s4 + $0x8] sm:$0xf] %v1925_v44  ;;  %2311 = vmatmul.mubr.f32.vlgmr.msra.gmra.mxu0 %v1925_v44  ;;  %2382 = vmatmul.mubr.f32.vlgmr.msra.gmra.mxu1 %v1925_v44 }
 0x393   :  { %2389 = vmatpush1.msra.mxu0 %v8559_v12  ;;  %2460 = vmatpush1.msra.mxu1 %v8562_v4 }
 0x394   :  { %2390 = vmatprep.subr.mxu0 %v8565_v40  ;;  %2461 = vmatprep.subr.mxu1 %v8568_v34 }
 0x395   :  { %2391 = vmatpush1.msra.mxu0 %v8571_v27  ;;  %2462 = vmatpush1.msra.mxu1 %v8574_v28 }
 0x396   :  { %2392 = vmatprep.subr.mxu0 %v8577_v17  ;;  %2463 = vmatprep.subr.mxu1 %v8580_v8  ;;  %v8628_v8 = vld [vmem:[#allocation2 + $0x128] sm:$0xff]  ;;  %v8636_v17 = vld [vmem:[#allocation2 + $0x130] sm:$0xff] }
 0x397   :  { %2393 = vmatpush1.msra.mxu0 %v8583_v9  ;;  %2464 = vmatpush1.msra.mxu1 %v8586_v23  ;;  %v8621_v9 = vld [vmem:[#allocation2 + $0x140] sm:$0xff] }
 0x398   :  { %2394 = vmatprep.subr.mxu0 %v8591_v53  ;;  %2465 = vmatprep.subr.mxu1 %v8594_v19  ;;  %v8609_v53 = vld [vmem:[#allocation2 + $0x160] sm:$0xff]  ;;  %v8612_v19 = vld [vmem:[#allocation2 + $0x170] sm:$0xff]  ;;  %12221 = vst [vmem:[#allocation23_spill] sm:$0xff] %v8621_v9 }
 0x399   :  { %2395 = vmatpush1.msra.mxu0 %v8597_v43  ;;  %2466 = vmatpush1.msra.mxu1 %v8600_v0  ;;  %12217 = vst [vmem:[#allocation19_spill] sm:$0xff] %v8609_v53  ;;  %12218 = vst [vmem:[#allocation20_spill] sm:$0xff] %v8612_v19  ;;  %v2069_v43 = vpop.f32.mrf.mxu1  ;;  %v8615_v0 = vld [vmem:[#allocation2 + $0x148] sm:$0xff] }
 0x39a   :  { %2396 = vmatprep.subr.mxu0 %v8603_v38  ;;  %2467 = vmatprep.subr.mxu1 %v8606_v7  ;;  %12219 = vst [vmem:[#allocation21_spill] sm:$0xff] %v8615_v0  ;;  %v8618_v38 = vld [vmem:[#allocation2 + $0x158] sm:$0xff] }
 0x39b   :  { %v2138_v44 = vpop.f32.mrf.mxu0  ;;  %2397 = vmatpush1.msra.mxu0 %v8609_v53  ;;  %2468 = vmatpush1.msra.mxu1 %v8612_v19  ;;  %12220 = vst [vmem:[#allocation22_spill] sm:$0xff] %v8618_v38  ;;  %v8624_v53 = vld [vmem:[#allocation2 + $0x150] sm:$0xff] }
 0x39c   :  { %v2139_v23 = vadd.f32 %v2138_v44, %v1996_v42  ;;  %2398 = vmatprep.subr.mxu0 %v8615_v0  ;;  %2469 = vmatprep.subr.mxu1 %v8618_v38  ;;  %v2209_v42 = vpop.f32.mrf.mxu1  ;;  %v8631_v0 = vld [vmem:[#allocation2 + $0x138] sm:$0xff] }
 0x39d   :  { %v2140_v7 = vpop.f32.mrf.mxu0  ;;  %2399 = vmatpush1.msra.mxu0 %v8621_v9  ;;  %2470 = vmatpush1.msra.mxu1 %v8624_v53 }
 0x39e   :  { %v2214_v19 = vadd.f32 %v2139_v23, %v7485_v51  ;;  %v2141_v44 = vadd.f32 %v2140_v7, %v1998_v6  ;;  %2400 = vmatprep.subr.mxu0 %v8628_v8  ;;  %2471 = vmatprep.subr.mxu1 %v8631_v0  ;;  %v2211_v6 = vpop.f32.mrf.mxu1  ;;  %v8642_v7 = vld [vmem:[#allocation2 + $0x110] sm:$0xff] }
 0x39f   :  { %2401 = vmatpush1.msra.mxu0 %v7919_v39  ;;  %2472 = vmatpush1.msra.mxu1 %v8636_v17  ;;  %v2212_v39 = vadd.f32 %v2211_v6, %v2069_v43  ;;  %v12249_v6 = vld [vmem:[#allocation73_spill] sm:$0xff] }
 0x3a0   :  { %v5430_v38 = vmul.f32 -1.442695, %v2214_v19  ;;  %v2215_v9 = vadd.f32 %v2141_v44, %v7502_v58  ;;  %2402 = vmatprep.subr.mxu0 %v7924_v48  ;;  %2473 = vmatprep.subr.mxu1 %v7927_v49  ;;  %v2210_v49 = vadd.f32 %v2209_v42, %v8589_v45  ;;  %v12245_v45 = vld [vmem:[#allocation69_spill] sm:$0xff]  ;;  %v12246_v19 = vld [vmem:[#allocation70_spill] sm:$0xff]  ;;  %v12248_v42 = vld [vmem:[#allocation72_spill] sm:$0xff] }
 0x3a1   :  { %2403 = vmatpush1.msra.mxu0 %v7930_v52  ;;  %2474 = vmatpush1.msra.mxu1 %v8642_v7  ;;  %v2217_v48 = vadd.f32 %v2212_v39, %v7542_v13  ;;  %v12250_v39 = vld [vmem:[#allocation74_spill] sm:$0xff] }
 0x3a2   :  { %5567 = vpow2.f32 %v5430_v38  ;;  %v5431_v23 = vmul.f32 -1.442695, %v2215_v9  ;;  %2404 = vmatprep.subr.mxu0 %v7934_v55  ;;  %2475 = vmatprep.subr.mxu1 %v7937_v56  ;;  %v2216_v56 = vadd.f32 %v2210_v49, %v7561_v15  ;;  %v12247_v38 = vld [vmem:[#allocation71_spill] sm:$0xff]  ;;  %v12251_v49 = vld [vmem:[#allocation82_spill] sm:$0xff] }
 0x3a3   :  { %2405 = vmatpush1.msra.mxu0 %v7940_v59  ;;  %2476 = vmatpush1.msra.mxu1 %v7943_v60  ;;  %v5432_v52 = vmul.f32 -1.442695, %v2217_v48  ;;  %v5434_v60 = vld [vmem:[%s10903_s0 + $0xc] sm:$0xf] }
 0x3a4   :  { %5569 = vpow2.f32 %v5431_v23  ;;  %2406 = vmatprep.subr.mxu0 %v7946_v62  ;;  %2477 = vmatprep.subr.mxu1 %v7949_v63  ;;  %v12222_v63 = vld [vmem:[#allocation46_spill] sm:$0xff] }
 0x3a5   :  { %2407 = vmatpush1.msra.mxu0 %v7952_v32  ;;  %2478 = vmatpush1.msra.mxu1 %v7955_v61  ;;  %5571 = vpow2.f32 %v5432_v52  ;;  %v12223_v61 = vld [vmem:[#allocation47_spill] sm:$0xff] }
 0x3a6   :  { %2408 = vmatprep.subr.mxu0 %v7958_v5  ;;  %2479 = vmatprep.subr.mxu1 %v7961_v16  ;;  %v12224_v5 = vld [vmem:[#allocation48_spill] sm:$0xff]  ;;  %v12225_v16 = vld [vmem:[#allocation49_spill] sm:$0xff] }
 0x3a7   :  { %2409 = vmatpush1.msra.mxu0 %v7964_v11  ;;  %2480 = vmatpush1.msra.mxu1 %v7967_v3  ;;  %v12226_v11 = vld [vmem:[#allocation50_spill] sm:$0xff]  ;;  %v12227_v3 = vld [vmem:[#allocation51_spill] sm:$0xff] }
 0x3a8   :  { %2410 = vmatprep.subr.mxu0 %v7970_v47  ;;  %2481 = vmatprep.subr.mxu1 %v7973_v57  ;;  %v12228_v47 = vld [vmem:[#allocation52_spill] sm:$0xff]  ;;  %v12229_v57 = vld [vmem:[#allocation53_spill] sm:$0xff] }
 0x3a9   :  { %2411 = vmatpush1.msra.mxu0 %v7977_v54  ;;  %2482 = vmatpush1.msra.mxu1 %v7980_v29  ;;  %v12230_v54 = vld [vmem:[#allocation54_spill] sm:$0xff]  ;;  %v12231_v29 = vld [vmem:[#allocation55_spill] sm:$0xff] }
 0x3aa   :  { %2412 = vmatprep.subr.mxu0 %v7983_v24  ;;  %2483 = vmatprep.subr.mxu1 %v7986_v41  ;;  %v12232_v24 = vld [vmem:[#allocation56_spill] sm:$0xff]  ;;  %v12233_v41 = vld [vmem:[#allocation57_spill] sm:$0xff] }
 0x3ab   :  { %2413 = vmatpush1.msra.mxu0 %v7990_v18  ;;  %2484 = vmatpush1.msra.mxu1 %v7993_v2  ;;  %v12234_v18 = vld [vmem:[#allocation58_spill] sm:$0xff]  ;;  %v12235_v2 = vld [vmem:[#allocation59_spill] sm:$0xff] }
 0x3ac   :  { %2414 = vmatprep.subr.mxu0 %v7996_v22  ;;  %2485 = vmatprep.subr.mxu1 %v7999_v21  ;;  %v12236_v22 = vld [vmem:[#allocation60_spill] sm:$0xff]  ;;  %v12237_v21 = vld [vmem:[#allocation61_spill] sm:$0xff] }
 0x3ad   :  { %2415 = vmatpush1.msra.mxu0 %v8002_v14  ;;  %2486 = vmatpush1.msra.mxu1 %v8005_v26  ;;  %v12238_v14 = vld [vmem:[#allocation62_spill] sm:$0xff]  ;;  %v12239_v26 = vld [vmem:[#allocation63_spill] sm:$0xff] }
 0x3ae   :  { %2416 = vmatprep.subr.mxu0 %v8008_v1  ;;  %2487 = vmatprep.subr.mxu1 %v8011_v25  ;;  %v12240_v1 = vld [vmem:[#allocation64_spill] sm:$0xff]  ;;  %v12241_v25 = vld [vmem:[#allocation65_spill] sm:$0xff] }
 0x3af   :  { %v5568_v55 = vpop.eup %5567  ;;  %2417 = vmatpush1.msra.mxu0 %v8015_v30  ;;  %2488 = vmatpush1.msra.mxu1 %v8018_v33  ;;  %v12242_v30 = vld [vmem:[#allocation66_spill] sm:$0xff] }
 0x3b0   :  { %v2221_v59 = vadd.f32 1.0, %v5568_v55  ;;  %2418 = vmatprep.subr.mxu0 %v8021_v36  ;;  %2489 = vmatprep.subr.mxu1 %v8024_v37  ;;  %v12243_v36 = vld [vmem:[#allocation67_spill] sm:$0xff]  ;;  %v12244_v37 = vld [vmem:[#allocation68_spill] sm:$0xff] }
 0x3b1   :  { %v5570_v62 = vpop.eup %5569  ;;  %2419 = vmatpush1.msra.mxu0 %v12222_v63  ;;  %2452 = vmatprep.mubr.f32.mxu0 %v11670_v10  ;;  %v12252_v55 = vld [vmem:[#allocation75_spill] sm:$0xff]  ;;  %v12257_v63 = vld [vmem:[#allocation80_spill] sm:$0xff] }
 0x3b2   :  { %5573 = vrcp.f32 %v2221_v59  ;;  %v2227_v32 = vadd.f32 1.0, %v5570_v62  ;;  %2490 = vmatpush1.msra.mxu1 %v12223_v61  ;;  %2523 = vmatprep.mubr.f32.mxu1 %v11670_v10  ;;  %v5572_v33 = vpop.eup %5571  ;;  %v12254_v59 = vld [vmem:[#allocation77_spill] sm:$0xff]  ;;  %v12256_v62 = vld [vmem:[#allocation79_spill] sm:$0xff] }
 0x3b3   :  { %5575 = vtanh.f32 %v2216_v56  ;;  %2453 = vmatmul.mubr.f32.vlgmr.msra.gmra.mxu0 %v5434_v60  ;;  %2524 = vmatmul.mubr.f32.vlgmr.msra.gmra.mxu1 %v5434_v60  ;;  %v2234_v23 = vadd.f32 1.0, %v5572_v33  ;;  %v12253_v56 = vld [vmem:[#allocation76_spill] sm:$0xff]  ;;  %v12255_v60 = vld [vmem:[#allocation78_spill] sm:$0xff]  ;;  %v12258_v61 = vld [vmem:[#allocation81_spill] sm:$0xff] }
 0x3b4   :  { %5577 = vrcp.f32 %v2227_v32  ;;  %2562 = vmatprep.subr.mxu0 %v12224_v5  ;;  %2633 = vmatprep.subr.mxu1 %v12225_v16  ;;  %v12259_v5 = vld [vmem:[#allocation83_spill] sm:$0xff]  ;;  %v12260_v16 = vld [vmem:[#allocation84_spill] sm:$0xff]  ;;  %v12278_v33 = vld [vmem:[#allocation102_spill] sm:$0xff] }
 0x3b5   :  { %2563 = vmatpush1.msra.mxu0 %v12226_v11  ;;  %2634 = vmatpush1.msra.mxu1 %v12227_v3  ;;  %5579 = vrcp.f32 %v2234_v23  ;;  %v12261_v11 = vld [vmem:[#allocation85_spill] sm:$0xff]  ;;  %v12262_v3 = vld [vmem:[#allocation86_spill] sm:$0xff] }
 0x3b6   :  { %2564 = vmatprep.subr.mxu0 %v12228_v47  ;;  %2635 = vmatprep.subr.mxu1 %v12229_v57  ;;  %v12263_v47 = vld [vmem:[#allocation87_spill] sm:$0xff]  ;;  %v12264_v57 = vld [vmem:[#allocation88_spill] sm:$0xff]  ;;  %v12286_v23 = vld [vmem:[#allocation110_spill] sm:$0xff] }
 0x3b7   :  { %2565 = vmatpush1.msra.mxu0 %v12230_v54  ;;  %2636 = vmatpush1.msra.mxu1 %v12231_v29  ;;  %v12265_v54 = vld [vmem:[#allocation89_spill] sm:$0xff]  ;;  %v12266_v29 = vld [vmem:[#allocation90_spill] sm:$0xff] }
 0x3b8   :  { %2566 = vmatprep.subr.mxu0 %v12232_v24  ;;  %2637 = vmatprep.subr.mxu1 %v12233_v41  ;;  %v12267_v24 = vld [vmem:[#allocation91_spill] sm:$0xff]  ;;  %v12268_v41 = vld [vmem:[#allocation92_spill] sm:$0xff] }
 0x3b9   :  { %2567 = vmatpush1.msra.mxu0 %v12234_v18  ;;  %2638 = vmatpush1.msra.mxu1 %v12235_v2  ;;  %v12269_v18 = vld [vmem:[#allocation93_spill] sm:$0xff]  ;;  %v12270_v2 = vld [vmem:[#allocation94_spill] sm:$0xff] }
 0x3ba   :  { %2568 = vmatprep.subr.mxu0 %v12236_v22  ;;  %2639 = vmatprep.subr.mxu1 %v12237_v21  ;;  %v12271_v22 = vld [vmem:[#allocation95_spill] sm:$0xff]  ;;  %v12272_v21 = vld [vmem:[#allocation96_spill] sm:$0xff] }
 0x3bb   :  { %2569 = vmatpush1.msra.mxu0 %v12238_v14  ;;  %2640 = vmatpush1.msra.mxu1 %v12239_v26  ;;  %v12273_v14 = vld [vmem:[#allocation97_spill] sm:$0xff]  ;;  %v12274_v26 = vld [vmem:[#allocation98_spill] sm:$0xff] }
 0x3bc   :  { %2570 = vmatprep.subr.mxu0 %v12240_v1  ;;  %2641 = vmatprep.subr.mxu1 %v12241_v25  ;;  %v12275_v1 = vld [vmem:[#allocation99_spill] sm:$0xff]  ;;  %v12276_v25 = vld [vmem:[#allocation100_spill] sm:$0xff] }
 0x3bd   :  { %2571 = vmatpush1.msra.mxu0 %v12242_v30  ;;  %2642 = vmatpush1.msra.mxu1 %v12243_v36  ;;  %v12277_v30 = vld [vmem:[#allocation101_spill] sm:$0xff]  ;;  %v12279_v36 = vld [vmem:[#allocation103_spill] sm:$0xff] }
 0x3be   :  { %2572 = vmatprep.subr.mxu0 %v12244_v37  ;;  %2643 = vmatprep.subr.mxu1 %v12245_v45  ;;  %v12280_v37 = vld [vmem:[#allocation104_spill] sm:$0xff]  ;;  %v12282_v45 = vld [vmem:[#allocation106_spill] sm:$0xff] }
 0x3bf   :  { %v5574_v9 = vpop.eup %5573  ;;  %2573 = vmatpush1.msra.mxu0 %v12246_v19  ;;  %2644 = vmatpush1.msra.mxu1 %v12247_v38  ;;  %v12283_v19 = vld [vmem:[#allocation107_spill] sm:$0xff]  ;;  %v12284_v38 = vld [vmem:[#allocation108_spill] sm:$0xff] }
 0x3c0   :  { %v5576_v43 = vpop.eup %5575  ;;  %2574 = vmatprep.subr.mxu0 %v12248_v42  ;;  %2645 = vmatprep.subr.mxu1 %v12249_v6  ;;  %v12285_v42 = vld [vmem:[#allocation109_spill] sm:$0xff]  ;;  %v12287_v6 = vld [vmem:[#allocation111_spill] sm:$0xff] }
 0x3c1   :  { %v5578_v44 = vpop.eup %5577  ;;  %2575 = vmatpush1.msra.mxu0 %v12250_v39  ;;  %v2238_v48 = vmul.f32 %v5576_v43, %v5574_v9  ;;  %2646 = vmatpush1.msra.mxu1 %v12252_v55  ;;  %v12281_v9 = vld [vmem:[#allocation105_spill] sm:$0xff]  ;;  %v12288_v39 = vld [vmem:[#allocation112_spill] sm:$0xff]  ;;  %v12291_v55 = vld [vmem:[#allocation115_spill] sm:$0xff] }
 0x3c2   :  { %v2237_v52 = vmul.f32 %v5578_v44, %v12251_v49  ;;  %2576 = vmatprep.subr.mxu0 %v12253_v56  ;;  %2647 = vmatprep.subr.mxu1 %v12254_v59  ;;  %v5580_v43 = vpop.eup %5579  ;;  %v12289_v49 = vld [vmem:[#allocation113_spill] sm:$0xff]  ;;  %v12292_v56 = vld [vmem:[#allocation116_spill] sm:$0xff] }
 0x3c3   :  { %2577 = vmatpush1.msra.mxu0 %v12255_v60  ;;  %2648 = vmatpush1.msra.mxu1 %v12256_v62  ;;  %v12293_v59 = vld [vmem:[#allocation117_spill] sm:$0xff]  ;;  %v12294_v60 = vld [vmem:[#allocation118_spill] sm:$0xff]  ;;  %v12295_v62 = vld [vmem:[#allocation119_spill] sm:$0xff] }
 0x3c4   :  { %2578 = vmatprep.subr.mxu0 %v12257_v63  ;;  %v8719_v32 = vadd.f32 %v2238_v48, %v2237_v52  ;;  %2649 = vmatprep.subr.mxu1 %v12258_v61  ;;  %v12290_v52 = vld [vmem:[#allocation114_spill] sm:$0xff]  ;;  %v12296_v63 = vld [vmem:[#allocation120_spill] sm:$0xff]  ;;  %v12297_v61 = vld [vmem:[#allocation121_spill] sm:$0xff] }
 0x3c5   :  { %2579 = vmatpush1.msra.mxu0 %v12259_v5  ;;  %2650 = vmatpush1.msra.mxu1 %v12260_v16  ;;  %v12298_v5 = vld [vmem:[#allocation122_spill] sm:$0xff]  ;;  %v12299_v16 = vld [vmem:[#allocation123_spill] sm:$0xff] }
 0x3c6   :  { %2580 = vmatprep.subr.mxu0 %v12261_v11  ;;  %5581 = vtanh.f32 %v8719_v32  ;;  %2651 = vmatprep.subr.mxu1 %v12262_v3  ;;  %v12300_v11 = vld [vmem:[#allocation124_spill] sm:$0xff]  ;;  %v12301_v3 = vld [vmem:[#allocation125_spill] sm:$0xff] }
 0x3c7   :  { %2581 = vmatpush1.msra.mxu0 %v12263_v47  ;;  %2652 = vmatpush1.msra.mxu1 %v12264_v57  ;;  %v12302_v47 = vld [vmem:[#allocation126_spill] sm:$0xff]  ;;  %v12303_v57 = vld [vmem:[#allocation127_spill] sm:$0xff] }
 0x3c8   :  { %2582 = vmatprep.subr.mxu0 %v12265_v54  ;;  %2653 = vmatprep.subr.mxu1 %v12266_v29  ;;  %v12304_v54 = vld [vmem:[#allocation128_spill] sm:$0xff]  ;;  %v12305_v29 = vld [vmem:[#allocation129_spill] sm:$0xff] }
 0x3c9   :  { %2583 = vmatpush1.msra.mxu0 %v12267_v24  ;;  %2654 = vmatpush1.msra.mxu1 %v12268_v41  ;;  %v12306_v24 = vld [vmem:[#allocation130_spill] sm:$0xff]  ;;  %v12307_v41 = vld [vmem:[#allocation131_spill] sm:$0xff] }
 0x3ca   :  { %2584 = vmatprep.subr.mxu0 %v12269_v18  ;;  %2655 = vmatprep.subr.mxu1 %v12270_v2  ;;  %v12308_v18 = vld [vmem:[#allocation132_spill] sm:$0xff]  ;;  %v12309_v2 = vld [vmem:[#allocation133_spill] sm:$0xff] }
 0x3cb   :  { %2585 = vmatpush1.msra.mxu0 %v12271_v22  ;;  %2656 = vmatpush1.msra.mxu1 %v12272_v21  ;;  %v12310_v22 = vld [vmem:[#allocation134_spill] sm:$0xff]  ;;  %v12311_v21 = vld [vmem:[#allocation135_spill] sm:$0xff] }
 0x3cc   :  { %2586 = vmatprep.subr.mxu0 %v12273_v14  ;;  %2657 = vmatprep.subr.mxu1 %v12274_v26  ;;  %v12312_v14 = vld [vmem:[#allocation136_spill] sm:$0xff]  ;;  %v12313_v26 = vld [vmem:[#allocation137_spill] sm:$0xff] }
 0x3cd   :  { %2587 = vmatpush1.msra.mxu0 %v12275_v1  ;;  %2658 = vmatpush1.msra.mxu1 %v12276_v25  ;;  %v12314_v1 = vld [vmem:[#allocation138_spill] sm:$0xff]  ;;  %v12315_v25 = vld [vmem:[#allocation139_spill] sm:$0xff] }
 0x3ce   :  { %2588 = vmatprep.subr.mxu0 %v12277_v30  ;;  %2659 = vmatprep.subr.mxu1 %v12278_v33  ;;  %v12316_v30 = vld [vmem:[#allocation140_spill] sm:$0xff]  ;;  %v12317_v33 = vld [vmem:[#allocation141_spill] sm:$0xff] }
 0x3cf   :  { %2589 = vmatpush1.msra.mxu0 %v12279_v36  ;;  %2660 = vmatpush1.msra.mxu1 %v12280_v37  ;;  %v12318_v36 = vld [vmem:[#allocation142_spill] sm:$0xff]  ;;  %v12319_v37 = vld [vmem:[#allocation143_spill] sm:$0xff] }
 0x3d0   :  { %2590 = vmatprep.subr.mxu0 %v12281_v9  ;;  %2661 = vmatprep.subr.mxu1 %v12282_v45  ;;  %v12320_v9 = vld [vmem:[#allocation144_spill] sm:$0xff]  ;;  %v12321_v45 = vld [vmem:[#allocation145_spill] sm:$0xff] }
 0x3d1   :  { %2591 = vmatpush1.msra.mxu0 %v12283_v19  ;;  %2662 = vmatpush1.msra.mxu1 %v12284_v38  ;;  %v12322_v19 = vld [vmem:[#allocation146_spill] sm:$0xff]  ;;  %v12324_v38 = vld [vmem:[#allocation148_spill] sm:$0xff] }
 0x3d2   :  { %2592 = vmatprep.subr.mxu0 %v12285_v42  ;;  %2663 = vmatprep.subr.mxu1 %v12286_v23  ;;  %v12325_v42 = vld [vmem:[#allocation149_spill] sm:$0xff]  ;;  %v12327_v23 = vld [vmem:[#allocation151_spill] sm:$0xff] }
 0x3d3   :  { %v5582_v44 = vpop.eup %5581  ;;  %2593 = vmatpush1.msra.mxu0 %v12287_v6  ;;  %2664 = vmatpush1.msra.mxu1 %v12288_v39  ;;  %v12328_v6 = vld [vmem:[#allocation152_spill] sm:$0xff]  ;;  %v12329_v39 = vld [vmem:[#allocation153_spill] sm:$0xff] }
 0x3d4   :  { %2626 = vmatprep.mubr.f32.mxu0 %v11670_v10  ;;  %v2241_v48 = vmul.f32 %v5582_v44, %v5580_v43  ;;  %2697 = vmatprep.mubr.f32.mxu1 %v11670_v10  ;;  %v12323_v43 = vld [vmem:[#allocation147_spill] sm:$0xff]  ;;  %v12326_v44 = vld [vmem:[#allocation150_spill] sm:$0xff] }
 0x3d5   :  { %2704 = vmatprep.subr.mxu0 %v12289_v49  ;;  %2775 = vmatprep.subr.mxu1 %v12290_v52  ;;  %v12331_v49 = vld [vmem:[#allocation155_spill] sm:$0xff]  ;;  %v12332_v52 = vld [vmem:[#allocation156_spill] sm:$0xff] }
 0x3d6   :  { %5433 = vst [vmem:[%s10908_s5 + $0x14] sm:$0xf] %v2241_v48  ;;  %2627 = vmatmul.mubr.f32.vlgmr.msra.gmra.mxu0 %v2241_v48  ;;  %2698 = vmatmul.mubr.f32.vlgmr.msra.gmra.mxu1 %v2241_v48  ;;  %v12330_v48 = vld [vmem:[#allocation154_spill] sm:$0xff] }
 0x3d7   :  { %2705 = vmatpush1.msra.mxu0 %v12291_v55  ;;  %2776 = vmatpush1.msra.mxu1 %v12292_v56  ;;  %v12333_v55 = vld [vmem:[#allocation157_spill] sm:$0xff]  ;;  %v12334_v56 = vld [vmem:[#allocation158_spill] sm:$0xff] }
 0x3d8   :  { %2706 = vmatprep.subr.mxu0 %v12293_v59  ;;  %2777 = vmatprep.subr.mxu1 %v12294_v60  ;;  %v12335_v59 = vld [vmem:[#allocation159_spill] sm:$0xff]  ;;  %v12336_v60 = vld [vmem:[#allocation160_spill] sm:$0xff] }
 0x3d9   :  { %2707 = vmatpush1.msra.mxu0 %v12295_v62  ;;  %2778 = vmatpush1.msra.mxu1 %v12296_v63  ;;  %v12337_v62 = vld [vmem:[#allocation161_spill] sm:$0xff]  ;;  %v12338_v63 = vld [vmem:[#allocation162_spill] sm:$0xff] }
 0x3da   :  { %2708 = vmatprep.subr.mxu0 %v12297_v61  ;;  %2779 = vmatprep.subr.mxu1 %v12298_v5  ;;  %v12339_v61 = vld [vmem:[#allocation163_spill] sm:$0xff]  ;;  %v12340_v5 = vld [vmem:[#allocation164_spill] sm:$0xff] }
 0x3db   :  { %2709 = vmatpush1.msra.mxu0 %v12299_v16  ;;  %2780 = vmatpush1.msra.mxu1 %v12300_v11  ;;  %v12341_v16 = vld [vmem:[#allocation165_spill] sm:$0xff]  ;;  %v12342_v11 = vld [vmem:[#allocation166_spill] sm:$0xff] }
 0x3dc   :  { %2710 = vmatprep.subr.mxu0 %v12301_v3  ;;  %2781 = vmatprep.subr.mxu1 %v12302_v47  ;;  %v12343_v3 = vld [vmem:[#allocation167_spill] sm:$0xff]  ;;  %v12344_v47 = vld [vmem:[#allocation168_spill] sm:$0xff] }
 0x3dd   :  { %2711 = vmatpush1.msra.mxu0 %v12303_v57  ;;  %2782 = vmatpush1.msra.mxu1 %v12304_v54  ;;  %v12345_v57 = vld [vmem:[#allocation169_spill] sm:$0xff]  ;;  %v12346_v54 = vld [vmem:[#allocation170_spill] sm:$0xff] }
 0x3de   :  { %2712 = vmatprep.subr.mxu0 %v12305_v29  ;;  %2783 = vmatprep.subr.mxu1 %v12306_v24  ;;  %v12347_v29 = vld [vmem:[#allocation171_spill] sm:$0xff]  ;;  %v12348_v24 = vld [vmem:[#allocation172_spill] sm:$0xff] }
 0x3df   :  { %2713 = vmatpush1.msra.mxu0 %v12307_v41  ;;  %2784 = vmatpush1.msra.mxu1 %v12308_v18  ;;  %v12349_v41 = vld [vmem:[#allocation173_spill] sm:$0xff]  ;;  %v5439_v18 = vld [vmem:[%s10903_s0 + $0x10] sm:$0xf] }
 0x3e0   :  { %2714 = vmatprep.subr.mxu0 %v12309_v2  ;;  %2785 = vmatprep.subr.mxu1 %v12310_v22  ;;  %v12350_v2 = vld [vmem:[#allocation174_spill] sm:$0xff]  ;;  %v12351_v22 = vld [vmem:[#allocation175_spill] sm:$0xff] }
 0x3e1   :  { %2715 = vmatpush1.msra.mxu0 %v12311_v21  ;;  %2786 = vmatpush1.msra.mxu1 %v12312_v14  ;;  %v12352_v21 = vld [vmem:[#allocation176_spill] sm:$0xff]  ;;  %v12353_v14 = vld [vmem:[#allocation177_spill] sm:$0xff] }
 0x3e2   :  { %2716 = vmatprep.subr.mxu0 %v12313_v26  ;;  %2787 = vmatprep.subr.mxu1 %v12314_v1  ;;  %v12354_v26 = vld [vmem:[#allocation178_spill] sm:$0xff]  ;;  %v12355_v1 = vld [vmem:[#allocation179_spill] sm:$0xff] }
 0x3e3   :  { %2717 = vmatpush1.msra.mxu0 %v12315_v25  ;;  %2788 = vmatpush1.msra.mxu1 %v12316_v30  ;;  %v12356_v25 = vld [vmem:[#allocation180_spill] sm:$0xff]  ;;  %v12357_v30 = vld [vmem:[#allocation181_spill] sm:$0xff] }
 0x3e4   :  { %2718 = vmatprep.subr.mxu0 %v12317_v33  ;;  %2789 = vmatprep.subr.mxu1 %v12318_v36  ;;  %v12358_v33 = vld [vmem:[#allocation182_spill] sm:$0xff]  ;;  %v12359_v36 = vld [vmem:[#allocation183_spill] sm:$0xff] }
 0x3e5   :  { %2719 = vmatpush1.msra.mxu0 %v12319_v37  ;;  %2790 = vmatpush1.msra.mxu1 %v12320_v9  ;;  %v12360_v37 = vld [vmem:[#allocation184_spill] sm:$0xff]  ;;  %v12361_v9 = vld [vmem:[#allocation185_spill] sm:$0xff] }
 0x3e6   :  { %2720 = vmatprep.subr.mxu0 %v12321_v45  ;;  %2791 = vmatprep.subr.mxu1 %v12322_v19  ;;  %v12362_v45 = vld [vmem:[#allocation186_spill] sm:$0xff]  ;;  %v12363_v19 = vld [vmem:[#allocation187_spill] sm:$0xff] }
 0x3e7   :  { %2721 = vmatpush1.msra.mxu0 %v12323_v43  ;;  %2792 = vmatpush1.msra.mxu1 %v12324_v38  ;;  %v12364_v43 = vld [vmem:[#allocation188_spill] sm:$0xff]  ;;  %v12365_v38 = vld [vmem:[#allocation189_spill] sm:$0xff] }
 0x3e8   :  { %2722 = vmatprep.subr.mxu0 %v12325_v42  ;;  %2793 = vmatprep.subr.mxu1 %v12326_v44  ;;  %v12366_v42 = vld [vmem:[#allocation190_spill] sm:$0xff]  ;;  %v12367_v44 = vld [vmem:[#allocation191_spill] sm:$0xff] }
 0x3e9   :  { %2723 = vmatpush1.msra.mxu0 %v12327_v23  ;;  %2794 = vmatpush1.msra.mxu1 %v12328_v6  ;;  %v12368_v23 = vld [vmem:[#allocation192_spill] sm:$0xff]  ;;  %v12369_v6 = vld [vmem:[#allocation193_spill] sm:$0xff] }
 0x3ea   :  { %2724 = vmatprep.subr.mxu0 %v12329_v39  ;;  %2795 = vmatprep.subr.mxu1 %v12330_v48  ;;  %v12370_v39 = vld [vmem:[#allocation194_spill] sm:$0xff]  ;;  %v12371_v48 = vld [vmem:[#allocation195_spill] sm:$0xff] }
 0x3eb   :  { %2725 = vmatpush1.msra.mxu0 %v12331_v49  ;;  %2796 = vmatpush1.msra.mxu1 %v12332_v52  ;;  %v12372_v49 = vld [vmem:[#allocation196_spill] sm:$0xff]  ;;  %v12373_v52 = vld [vmem:[#allocation197_spill] sm:$0xff] }
 0x3ec   :  { %2726 = vmatprep.subr.mxu0 %v12333_v55  ;;  %2797 = vmatprep.subr.mxu1 %v12334_v56  ;;  %v12374_v55 = vld [vmem:[#allocation198_spill] sm:$0xff]  ;;  %v8849_v56 = vld [vmem:[#allocation4 + $0x140] sm:$0xff] }
 0x3ed   :  { %2727 = vmatpush1.msra.mxu0 %v12335_v59  ;;  %2798 = vmatpush1.msra.mxu1 %v12336_v60  ;;  %v8852_v59 = vld [vmem:[#allocation4 + $0x150] sm:$0xff]  ;;  %v8855_v60 = vld [vmem:[#allocation4 + $0x128] sm:$0xff] }
 0x3ee   :  { %2728 = vmatprep.subr.mxu0 %v12337_v62  ;;  %2799 = vmatprep.subr.mxu1 %v12338_v63  ;;  %v8858_v62 = vld [vmem:[#allocation4 + $0x138] sm:$0xff]  ;;  %v8861_v63 = vld [vmem:[#allocation4 + $0x120] sm:$0xff] }
 0x3ef   :  { %2729 = vmatpush1.msra.mxu0 %v12339_v61  ;;  %2800 = vmatpush1.msra.mxu1 %v12340_v5  ;;  %v8864_v61 = vld [vmem:[#allocation4 + $0x130] sm:$0xff]  ;;  %v8867_v5 = vld [vmem:[#allocation4 + $0x108] sm:$0xff] }
 0x3f0   :  { %2730 = vmatprep.subr.mxu0 %v12341_v16  ;;  %2801 = vmatprep.subr.mxu1 %v12342_v11  ;;  %v8870_v16 = vld [vmem:[#allocation4 + $0x118] sm:$0xff]  ;;  %v8873_v11 = vld [vmem:[#allocation4 + $0x100] sm:$0xff] }
 0x3f1   :  { %2731 = vmatpush1.msra.mxu0 %v12343_v3  ;;  %2802 = vmatpush1.msra.mxu1 %v12344_v47  ;;  %v8876_v3 = vld [vmem:[#allocation4 + $0x110] sm:$0xff]  ;;  %v8879_v47 = vld [vmem:[#allocation4 + $0xe8] sm:$0xff] }
 0x3f2   :  { %2732 = vmatprep.subr.mxu0 %v12345_v57  ;;  %2803 = vmatprep.subr.mxu1 %v12346_v54  ;;  %v8882_v57 = vld [vmem:[#allocation4 + $0xf8] sm:$0xff]  ;;  %v8885_v54 = vld [vmem:[#allocation4 + $0xe0] sm:$0xff] }
 0x3f3   :  { %2733 = vmatpush1.msra.mxu0 %v12347_v29  ;;  %2804 = vmatpush1.msra.mxu1 %v12348_v24  ;;  %v8888_v29 = vld [vmem:[#allocation4 + $0xf0] sm:$0xff]  ;;  %v8891_v24 = vld [vmem:[#allocation4 + $0xc8] sm:$0xff] }
 0x3f4   :  { %2734 = vmatprep.subr.mxu0 %v12349_v41  ;;  %2805 = vmatprep.subr.mxu1 %v12350_v2  ;;  %v8894_v41 = vld [vmem:[#allocation4 + $0xd8] sm:$0xff]  ;;  %v8900_v2 = vld [vmem:[#allocation4 + $0xd0] sm:$0xff] }
 0x3f5   :  { %2735 = vmatpush1.msra.mxu0 %v12351_v22  ;;  %2768 = vmatprep.mubr.f32.mxu0 %v11670_v10  ;;  %v8903_v22 = vld [vmem:[#allocation4 + $0xa8] sm:$0xff] }
 0x3f6   :  { %2806 = vmatpush1.msra.mxu1 %v12352_v21  ;;  %2839 = vmatprep.mubr.f32.mxu1 %v11670_v10  ;;  %v8906_v21 = vld [vmem:[#allocation4 + $0xb8] sm:$0xff] }
 0x3f7   :  { %2769 = vmatmul.mubr.f32.vlgmr.msra.gmra.mxu0 %v5439_v18  ;;  %2840 = vmatmul.mubr.f32.vlgmr.msra.gmra.mxu1 %v5439_v18  ;;  %v8897_v18 = vld [vmem:[#allocation4 + $0xc0] sm:$0xff] }
 0x3f8   :  { %2877 = vmatprep.subr.mxu0 %v12353_v14  ;;  %2948 = vmatprep.subr.mxu1 %v12354_v26  ;;  %v8909_v14 = vld [vmem:[#allocation4 + $0xa0] sm:$0xff]  ;;  %v8912_v26 = vld [vmem:[#allocation4 + $0xb0] sm:$0xff] }
 0x3f9   :  { %2878 = vmatpush1.msra.mxu0 %v12355_v1  ;;  %2949 = vmatpush1.msra.mxu1 %v12356_v25  ;;  %v8915_v1 = vld [vmem:[#allocation4 + $0x88] sm:$0xff]  ;;  %v8918_v25 = vld [vmem:[#allocation4 + $0x98] sm:$0xff] }
 0x3fa   :  { %2879 = vmatprep.subr.mxu0 %v12357_v30  ;;  %2950 = vmatprep.subr.mxu1 %v12358_v33  ;;  %12375 = vst [vmem:[#allocation24_spill] sm:$0xff] %v8915_v1  ;;  %12376 = vst [vmem:[#allocation25_spill] sm:$0xff] %v8918_v25  ;;  %v8921_v30 = vld [vmem:[#allocation4 + $0x80] sm:$0xff]  ;;  %v8924_v33 = vld [vmem:[#allocation4 + $0x90] sm:$0xff] }
 0x3fb   :  { %2880 = vmatpush1.msra.mxu0 %v12359_v36  ;;  %2951 = vmatpush1.msra.mxu1 %v12360_v37  ;;  %12377 = vst [vmem:[#allocation26_spill] sm:$0xff] %v8921_v30  ;;  %12378 = vst [vmem:[#allocation27_spill] sm:$0xff] %v8924_v33  ;;  %v8927_v36 = vld [vmem:[#allocation4 + $0x68] sm:$0xff]  ;;  %v8930_v37 = vld [vmem:[#allocation4 + $0x78] sm:$0xff] }
 0x3fc   :  { %2881 = vmatprep.subr.mxu0 %v12361_v9  ;;  %2952 = vmatprep.subr.mxu1 %v12362_v45  ;;  %12379 = vst [vmem:[#allocation28_spill] sm:$0xff] %v8927_v36  ;;  %12380 = vst [vmem:[#allocation29_spill] sm:$0xff] %v8930_v37  ;;  %v8933_v9 = vld [vmem:[#allocation4 + $0x60] sm:$0xff]  ;;  %v8936_v45 = vld [vmem:[#allocation4 + $0x70] sm:$0xff] }
 0x3fd   :  { %2882 = vmatpush1.msra.mxu0 %v12363_v19  ;;  %2953 = vmatpush1.msra.mxu1 %v12364_v43  ;;  %12381 = vst [vmem:[#allocation30_spill] sm:$0xff] %v8933_v9  ;;  %12382 = vst [vmem:[#allocation31_spill] sm:$0xff] %v8936_v45  ;;  %v8939_v19 = vld [vmem:[#allocation4 + $0x48] sm:$0xff]  ;;  %v8942_v43 = vld [vmem:[#allocation4 + $0x58] sm:$0xff] }
 0x3fe   :  { %2883 = vmatprep.subr.mxu0 %v12365_v38  ;;  %2954 = vmatprep.subr.mxu1 %v12366_v42  ;;  %12383 = vst [vmem:[#allocation32_spill] sm:$0xff] %v8939_v19  ;;  %12384 = vst [vmem:[#allocation33_spill] sm:$0xff] %v8942_v43  ;;  %v8945_v38 = vld [vmem:[#allocation4 + $0x40] sm:$0xff]  ;;  %v8948_v42 = vld [vmem:[#allocation4 + $0x50] sm:$0xff] }
 0x3ff   :  { %2884 = vmatpush1.msra.mxu0 %v12367_v44  ;;  %2955 = vmatpush1.msra.mxu1 %v12368_v23  ;;  %12385 = vst [vmem:[#allocation34_spill] sm:$0xff] %v8945_v38  ;;  %12386 = vst [vmem:[#allocation35_spill] sm:$0xff] %v8948_v42  ;;  %v8951_v44 = vld [vmem:[#allocation4 + $0x28] sm:$0xff]  ;;  %v8954_v23 = vld [vmem:[#allocation4 + $0x38] sm:$0xff] }
 0x400   :  { %2885 = vmatprep.subr.mxu0 %v12369_v6  ;;  %2956 = vmatprep.subr.mxu1 %v12370_v39  ;;  %12387 = vst [vmem:[#allocation36_spill] sm:$0xff] %v8951_v44  ;;  %12388 = vst [vmem:[#allocation37_spill] sm:$0xff] %v8954_v23  ;;  %v8957_v6 = vld [vmem:[#allocation4 + $0x20] sm:$0xff]  ;;  %v8960_v39 = vld [vmem:[#allocation4 + $0x30] sm:$0xff] }
 0x401   :  { %2886 = vmatpush1.msra.mxu0 %v12371_v48  ;;  %2957 = vmatpush1.msra.mxu1 %v12372_v49  ;;  %12389 = vst [vmem:[#allocation38_spill] sm:$0xff] %v8957_v6  ;;  %12390 = vst [vmem:[#allocation39_spill] sm:$0xff] %v8960_v39  ;;  %v8963_v48 = vld [vmem:[#allocation4 + $0x8] sm:$0xff]  ;;  %v8966_v49 = vld [vmem:[#allocation4 + $0x18] sm:$0xff] }
 0x402   :  { %2887 = vmatprep.subr.mxu0 %v12373_v52  ;;  %2958 = vmatprep.subr.mxu1 %v12374_v55  ;;  %12391 = vst [vmem:[#allocation40_spill] sm:$0xff] %v8963_v48  ;;  %12392 = vst [vmem:[#allocation41_spill] sm:$0xff] %v8966_v49  ;;  %v8969_v52 = vld [vmem:[#allocation4] sm:$0xff]  ;;  %v8972_v55 = vld [vmem:[#allocation4 + $0x10] sm:$0xff] }
 0x403   :  { %2888 = vmatpush1.msra.mxu0 %v8849_v56  ;;  %2959 = vmatpush1.msra.mxu1 %v8852_v59  ;;  %12393 = vst [vmem:[#allocation42_spill] sm:$0xff] %v8969_v52  ;;  %12394 = vst [vmem:[#allocation43_spill] sm:$0xff] %v8972_v55 }
 0x404   :  { %2889 = vmatprep.subr.mxu0 %v8855_v60  ;;  %2960 = vmatprep.subr.mxu1 %v8858_v62 }
 0x405   :  { %2890 = vmatpush1.msra.mxu0 %v8861_v63  ;;  %2961 = vmatpush1.msra.mxu1 %v8864_v61 }
 0x406   :  { %2891 = vmatprep.subr.mxu0 %v8867_v5  ;;  %2962 = vmatprep.subr.mxu1 %v8870_v16 }
 0x407   :  { %2892 = vmatpush1.msra.mxu0 %v8873_v11  ;;  %2963 = vmatpush1.msra.mxu1 %v8876_v3 }
 0x408   :  { %2893 = vmatprep.subr.mxu0 %v8879_v47  ;;  %2964 = vmatprep.subr.mxu1 %v8882_v57 }
 0x409   :  { %2894 = vmatpush1.msra.mxu0 %v8885_v54  ;;  %2965 = vmatpush1.msra.mxu1 %v8888_v29 }
 0x40a   :  { %2895 = vmatprep.subr.mxu0 %v8891_v24  ;;  %2966 = vmatprep.subr.mxu1 %v8894_v41 }
 0x40b   :  { %2896 = vmatpush1.msra.mxu0 %v8897_v18  ;;  %2967 = vmatpush1.msra.mxu1 %v8900_v2 }
 0x40c   :  { %2897 = vmatprep.subr.mxu0 %v8903_v22  ;;  %2968 = vmatprep.subr.mxu1 %v8906_v21 }
 0x40d   :  { %2898 = vmatpush1.msra.mxu0 %v8909_v14  ;;  %2969 = vmatpush1.msra.mxu1 %v8912_v26 }
 0x40e   :  { %2899 = vmatprep.subr.mxu0 %v8915_v1  ;;  %2970 = vmatprep.subr.mxu1 %v8918_v25 }
 0x40f   :  { %2900 = vmatpush1.msra.mxu0 %v8921_v30  ;;  %2971 = vmatpush1.msra.mxu1 %v8924_v33 }
 0x410   :  { %2901 = vmatprep.subr.mxu0 %v8927_v36  ;;  %2972 = vmatprep.subr.mxu1 %v8930_v37 }
 0x411   :  { %2902 = vmatpush1.msra.mxu0 %v8933_v9  ;;  %2973 = vmatpush1.msra.mxu1 %v8936_v45 }
 0x412   :  { %2903 = vmatprep.subr.mxu0 %v8939_v19  ;;  %2974 = vmatprep.subr.mxu1 %v8942_v43 }
 0x413   :  { %2904 = vmatpush1.msra.mxu0 %v8945_v38  ;;  %2975 = vmatpush1.msra.mxu1 %v8948_v42 }
 0x414   :  { %2905 = vmatprep.subr.mxu0 %v8951_v44  ;;  %2976 = vmatprep.subr.mxu1 %v8954_v23 }
 0x415   :  { %2906 = vmatpush1.msra.mxu0 %v8957_v6  ;;  %2977 = vmatpush1.msra.mxu1 %v8960_v39  ;;  %v8977_v39 = vld [vmem:[#allocation2 + $0x1e8] sm:$0xff] }
 0x416   :  { %2907 = vmatprep.subr.mxu0 %v8963_v48  ;;  %2978 = vmatprep.subr.mxu1 %v8966_v49  ;;  %12395 = vst [vmem:[#allocation44_spill] sm:$0xff] %v8977_v39  ;;  %v8980_v48 = vld [vmem:[#allocation2 + $0x1f8] sm:$0xff] }
 0x417   :  { %2908 = vmatpush1.msra.mxu0 %v8969_v52  ;;  %2979 = vmatpush1.msra.mxu1 %v8972_v55  ;;  %12396 = vst [vmem:[#allocation45_spill] sm:$0xff] %v8980_v48 }
 0x418   :  { %2941 = vmatprep.mubr.f32.mxu0 %v11670_v10  ;;  %3012 = vmatprep.mubr.f32.mxu1 %v11670_v10 }
 0x419   :  { %3019 = vmatprep.subr.mxu0 %v8977_v39  ;;  %3090 = vmatprep.subr.mxu1 %v8980_v48 }
 0x452   :  { %v2312_v49 = vpop.f32.mrf.mxu0  ;;  %v2383_v6 = vpop.f32.mrf.mxu1 }
 0x454   :  { %v2314_v23 = vpop.f32.mrf.mxu0  ;;  %v2385_v44 = vpop.f32.mrf.mxu1 }
 0x473   :  { %v2454_v52 = vpop.f32.mrf.mxu0  ;;  %v2525_v43 = vpop.f32.mrf.mxu1 }
 0x474   :  { %v2455_v42 = vadd.f32 %v2454_v52, %v2312_v49  ;;  %v2526_v33 = vadd.f32 %v2525_v43, %v2383_v6  ;;  %v12399_v6 = vld [vmem:[#allocation11_spill] sm:$0xff] }
 0x475   :  { %v2456_v38 = vpop.f32.mrf.mxu0  ;;  %v2527_v37 = vpop.f32.mrf.mxu1 }
 0x476   :  { %v2530_v55 = vadd.f32 %v2455_v42, %v7407_v31  ;;  %v2457_v19 = vadd.f32 %v2456_v38, %v2314_v23  ;;  %v2528_v36 = vadd.f32 %v2527_v37, %v2385_v44  ;;  %v2532_v49 = vadd.f32 %v2526_v33, %v7424_v50  ;;  %v12398_v44 = vld [vmem:[#allocation10_spill] sm:$0xff] }
 0x478   :  { %v5435_v45 = vmul.f32 -1.442695, %v2530_v55  ;;  %v2531_v9 = vadd.f32 %v2457_v19, %v7411_v35  ;;  %v2533_v48 = vadd.f32 %v2528_v36, %v7418_v46  ;;  %v12406_v55 = vld [vmem:[#allocation18_spill] sm:$0xff] }
 0x47a   :  { %5583 = vpow2.f32 %v5435_v45  ;;  %v5436_v39 = vmul.f32 -1.442695, %v2531_v9  ;;  %v5437_v30 = vmul.f32 -1.442695, %v2533_v48  ;;  %v12403_v48 = vld [vmem:[#allocation15_spill] sm:$0xff] }
 0x47c   :  { %5585 = vpow2.f32 %v5436_v39  ;;  %v12400_v39 = vld [vmem:[#allocation12_spill] sm:$0xff] }
 0x47d   :  { %5587 = vpow2.f32 %v5437_v30 }
 0x487   :  { %v5584_v25 = vpop.eup %5583 }
 0x488   :  { %v2537_v52 = vadd.f32 1.0, %v5584_v25 }
 0x489   :  { %v5586_v1 = vpop.eup %5585 }
 0x48a   :  { %5589 = vrcp.f32 %v2537_v52  ;;  %v2543_v38 = vadd.f32 1.0, %v5586_v1  ;;  %v5588_v19 = vpop.eup %5587  ;;  %v12397_v1 = vld [vmem:[#allocation9_spill] sm:$0xff]  ;;  %v12407_v52 = vld [vmem:[#allocation19_spill] sm:$0xff] }
 0x48b   :  { %5591 = vtanh.f32 %v2532_v49  ;;  %v2550_v23 = vadd.f32 1.0, %v5588_v19 }
 0x48c   :  { %5593 = vrcp.f32 %v2543_v38  ;;  %v12408_v38 = vld [vmem:[#allocation20_spill] sm:$0xff] }
 0x48d   :  { %5595 = vrcp.f32 %v2550_v23 }
 0x497   :  { %v5590_v45 = vpop.eup %5589 }
 0x498   :  { %v5592_v9 = vpop.eup %5591 }
 0x499   :  { %v5594_v42 = vpop.eup %5593  ;;  %v2554_v37 = vmul.f32 %v5592_v9, %v5590_v45  ;;  %v12409_v9 = vld [vmem:[#allocation21_spill] sm:$0xff] }
 0x49a   :  { %v2553_v36 = vmul.f32 %v5594_v42, %v8553_v20  ;;  %v5596_v25 = vpop.eup %5595  ;;  %v2628_v20 = vpop.f32.mrf.mxu0  ;;  %v12410_v42 = vld [vmem:[#allocation22_spill] sm:$0xff] }
 0x49c   :  { %v8988_v43 = vadd.f32 %v2554_v37, %v2553_v36  ;;  %v12411_v37 = vld [vmem:[#allocation23_spill] sm:$0xff] }
 0x49e   :  { %5597 = vtanh.f32 %v8988_v43 }
 0x4ab   :  { %v5598_v33 = vpop.eup %5597 }
 0x4ac   :  { %v2557_v30 = vmul.f32 %v5598_v33, %v5596_v25 }
 0x4ae   :  { %5438 = vst [vmem:[%s10907_s4 + $0xc] sm:$0xf] %v2557_v30  ;;  %2942 = vmatmul.mubr.f32.vlgmr.msra.gmra.mxu0 %v2557_v30  ;;  %3013 = vmatmul.mubr.f32.vlgmr.msra.gmra.mxu1 %v2557_v30  ;;  %v9021_v30 = vld [vmem:[#allocation2 + $0x120] sm:$0xff] }
 0x4af   :  { %3020 = vmatpush1.msra.mxu0 %v8559_v12  ;;  %3091 = vmatpush1.msra.mxu1 %v8562_v4  ;;  %v9004_v12 = vpop.f32.mrf.mxu1  ;;  %v12401_v4 = vld [vmem:[#allocation13_spill] sm:$0xff] }
 0x4b0   :  { %3021 = vmatprep.subr.mxu0 %v8565_v40  ;;  %3092 = vmatprep.subr.mxu1 %v8568_v34  ;;  %v12402_v40 = vld [vmem:[#allocation14_spill] sm:$0xff]  ;;  %v2630_v34 = vpop.f32.mrf.mxu0 }
 0x4b1   :  { %3022 = vmatpush1.msra.mxu0 %v8571_v27  ;;  %3093 = vmatpush1.msra.mxu1 %v8574_v28  ;;  %v12404_v27 = vld [vmem:[#allocation16_spill] sm:$0xff]  ;;  %v12405_v28 = vld [vmem:[#allocation17_spill] sm:$0xff]  ;;  %v2701_v19 = vpop.f32.mrf.mxu1 }
 0x4b2   :  { %3023 = vmatprep.subr.mxu0 %v12397_v1  ;;  %3094 = vmatprep.subr.mxu1 %v12398_v44  ;;  %v9026_v44 = vld [vmem:[#allocation2 + $0x108] sm:$0xff] }
 0x4b3   :  { %3024 = vmatpush1.msra.mxu0 %v12399_v6  ;;  %3095 = vmatpush1.msra.mxu1 %v12400_v39  ;;  %v9036_v6 = vld [vmem:[#allocation2 + $0xe8] sm:$0xff]  ;;  %v9039_v39 = vld [vmem:[#allocation2 + $0xf8] sm:$0xff] }
 0x4b4   :  { %3025 = vmatprep.subr.mxu0 %v12401_v4  ;;  %3096 = vmatprep.subr.mxu1 %v12402_v40  ;;  %v9042_v4 = vld [vmem:[#allocation2 + $0xe0] sm:$0xff]  ;;  %v9045_v40 = vld [vmem:[#allocation2 + $0xf0] sm:$0xff] }
 0x4b5   :  { %3026 = vmatpush1.msra.mxu0 %v12403_v48  ;;  %3097 = vmatpush1.msra.mxu1 %v12404_v27  ;;  %v9054_v27 = vld [vmem:[#allocation2 + $0xc0] sm:$0xff] }
 0x4b6   :  { %3027 = vmatprep.subr.mxu0 %v12405_v28  ;;  %3098 = vmatprep.subr.mxu1 %v12406_v55  ;;  %v9057_v28 = vld [vmem:[#allocation2 + $0xd0] sm:$0xff]  ;;  %v9060_v55 = vld [vmem:[#allocation2 + $0xa8] sm:$0xff] }
 0x4b7   :  { %v2770_v49 = vpop.f32.mrf.mxu0  ;;  %3028 = vmatpush1.msra.mxu0 %v12407_v52  ;;  %3099 = vmatpush1.msra.mxu1 %v12408_v38  ;;  %v2841_v25 = vpop.f32.mrf.mxu1  ;;  %v9066_v52 = vld [vmem:[#allocation2 + $0xa0] sm:$0xff]  ;;  %v9069_v38 = vld [vmem:[#allocation2 + $0xb0] sm:$0xff] }
 0x4b8   :  { %v2771_v45 = vadd.f32 %v2770_v49, %v2628_v20  ;;  %3029 = vmatprep.subr.mxu0 %v12409_v9  ;;  %3100 = vmatprep.subr.mxu1 %v12410_v42  ;;  %v9063_v49 = vld [vmem:[#allocation2 + $0xb8] sm:$0xff]  ;;  %v9079_v42 = vld [vmem:[#allocation2 + $0x80] sm:$0xff] }
 0x4b9   :  { %v2772_v23 = vpop.f32.mrf.mxu0  ;;  %3030 = vmatpush1.msra.mxu0 %v12411_v37  ;;  %3101 = vmatpush1.msra.mxu1 %v8624_v53  ;;  %v9029_v53 = vld [vmem:[#allocation2 + $0x118] sm:$0xff]  ;;  %v9085_v37 = vld [vmem:[#allocation2 + $0x68] sm:$0xff] }
 0x4ba   :  { %v2846_v36 = vadd.f32 %v2771_v45, %v7485_v51  ;;  %v2773_v33 = vadd.f32 %v2772_v23, %v2630_v34  ;;  %3031 = vmatprep.subr.mxu0 %v8628_v8  ;;  %3102 = vmatprep.subr.mxu1 %v8631_v0  ;;  %v9032_v8 = vld [vmem:[#allocation2 + $0x100] sm:$0xff]  ;;  %v9051_v34 = vld [vmem:[#allocation2 + $0xd8] sm:$0xff]  ;;  %v9082_v23 = vld [vmem:[#allocation2 + $0x90] sm:$0xff]  ;;  %12412 = vst [vmem:[#allocation46_spill] sm:$0xff] %v9085_v37 }
 0x4bb   :  { %3032 = vmatpush1.msra.mxu0 %v9021_v30  ;;  %3103 = vmatpush1.msra.mxu1 %v8636_v17  ;;  %v2843_v17 = vpop.f32.mrf.mxu1  ;;  %v9075_v45 = vld [vmem:[#allocation2 + $0x98] sm:$0xff] }
 0x4bc   :  { %v5440_v20 = vmul.f32 -1.442695, %v2846_v36  ;;  %v2847_v1 = vadd.f32 %v2773_v33, %v7502_v58  ;;  %3033 = vmatprep.subr.mxu0 %v9026_v44  ;;  %3104 = vmatprep.subr.mxu1 %v9029_v53  ;;  %v2844_v48 = vadd.f32 %v2843_v17, %v2701_v19  ;;  %v9072_v19 = vld [vmem:[#allocation2 + $0x88] sm:$0xff]  ;;  %v9088_v36 = vld [vmem:[#allocation2 + $0x78] sm:$0xff]  ;;  %v2842_v33 = vadd.f32 %v2841_v25, %v9004_v12  ;;  %v9107_v12 = vld [vmem:[#allocation2 + $0x50] sm:$0xff] }
 0x4bd   :  { %3034 = vmatpush1.msra.mxu0 %v9032_v8  ;;  %3105 = vmatpush1.msra.mxu1 %v8642_v7  ;;  %v9048_v7 = vld [vmem:[#allocation2 + $0xc8] sm:$0xff]  ;;  %12413 = vst [vmem:[#allocation47_spill] sm:$0xff] %v9088_v36  ;;  %v9101_v17 = vld [vmem:[#allocation2 + $0x58] sm:$0xff]  ;;  %12419 = vst [vmem:[#allocation53_spill] sm:$0xff] %v9107_v12 }
 0x4be   :  { %5599 = vpow2.f32 %v5440_v20  ;;  %v5441_v0 = vmul.f32 -1.442695, %v2847_v1  ;;  %3035 = vmatprep.subr.mxu0 %v9036_v6  ;;  %3106 = vmatprep.subr.mxu1 %v9039_v39  ;;  %v2849_v9 = vadd.f32 %v2844_v48, %v7542_v13  ;;  %v9092_v20 = vld [vmem:[#allocation2 + $0x60] sm:$0xff]  ;;  %v9095_v1 = vld [vmem:[#allocation2 + $0x70] sm:$0xff]  ;;  %12417 = vst [vmem:[#allocation51_spill] sm:$0xff] %v9101_v17  ;;  %v9110_v25 = vld [vmem:[#allocation2 + $0x28] sm:$0xff] }
 0x4bf   :  { %3036 = vmatpush1.msra.mxu0 %v9042_v4  ;;  %3107 = vmatpush1.msra.mxu1 %v9045_v40  ;;  %12414 = vst [vmem:[#allocation48_spill] sm:$0xff] %v9092_v20  ;;  %12415 = vst [vmem:[#allocation49_spill] sm:$0xff] %v9095_v1 }
 0x4c0   :  { %5601 = vpow2.f32 %v5441_v0  ;;  %3037 = vmatprep.subr.mxu0 %v9048_v7  ;;  %3108 = vmatprep.subr.mxu1 %v9051_v34  ;;  %v9098_v0 = vld [vmem:[#allocation2 + $0x48] sm:$0xff]  ;;  %v5442_v48 = vmul.f32 -1.442695, %v2849_v9  ;;  %12420 = vst [vmem:[#allocation54_spill] sm:$0xff] %v9110_v25  ;;  %v9117_v9 = vld [vmem:[#allocation2 + $0x20] sm:$0xff] }
 0x4c1   :  { %3038 = vmatpush1.msra.mxu0 %v9054_v27  ;;  %3109 = vmatpush1.msra.mxu1 %v9057_v28  ;;  %12416 = vst [vmem:[#allocation50_spill] sm:$0xff] %v9098_v0  ;;  %12422 = vst [vmem:[#allocation56_spill] sm:$0xff] %v9117_v9 }
 0x4c2   :  { %3039 = vmatprep.subr.mxu0 %v9060_v55  ;;  %3110 = vmatprep.subr.mxu1 %v9063_v49  ;;  %5603 = vpow2.f32 %v5442_v48  ;;  %v9143_v48 = vld [vmem:[#allocation4 + $0x3f8] sm:$0xff] }
 0x4c3   :  { %3040 = vmatpush1.msra.mxu0 %v9066_v52  ;;  %3111 = vmatpush1.msra.mxu1 %v9069_v38  ;;  %12429 = vst [vmem:[#allocation63_spill] sm:$0xff] %v9143_v48 }
 0x4c4   :  { %3041 = vmatprep.subr.mxu0 %v9072_v19  ;;  %3112 = vmatprep.subr.mxu1 %v9075_v45 }
 0x4c5   :  { %3042 = vmatpush1.msra.mxu0 %v9079_v42  ;;  %3113 = vmatpush1.msra.mxu1 %v9082_v23 }
 0x4c6   :  { %3043 = vmatprep.subr.mxu0 %v9085_v37  ;;  %3114 = vmatprep.subr.mxu1 %v9088_v36  ;;  %v9104_v36 = vld [vmem:[#allocation2 + $0x40] sm:$0xff]  ;;  %v9225_v37 = vld [vmem:[#allocation4 + $0x308] sm:$0xff] }
 0x4c7   :  { %3044 = vmatpush1.msra.mxu0 %v9092_v20  ;;  %3115 = vmatpush1.msra.mxu1 %v9095_v1  ;;  %12418 = vst [vmem:[#allocation52_spill] sm:$0xff] %v9104_v36  ;;  %v9113_v1 = vld [vmem:[#allocation2 + $0x38] sm:$0xff]  ;;  %v9123_v20 = vld [vmem:[#allocation2 + $0x8] sm:$0xff] }
 0x4c8   :  { %3045 = vmatprep.subr.mxu0 %v9098_v0  ;;  %3116 = vmatprep.subr.mxu1 %v9101_v17  ;;  %12421 = vst [vmem:[#allocation55_spill] sm:$0xff] %v9113_v1  ;;  %v2848_v17 = vadd.f32 %v2842_v33, %v7561_v15  ;;  %12424 = vst [vmem:[#allocation58_spill] sm:$0xff] %v9123_v20  ;;  %v5444_v33 = vld [vmem:[%s10903_s0 + $0x10] sm:$0xf] }
 0x4c9   :  { %3046 = vmatpush1.msra.mxu0 %v9104_v36  ;;  %3117 = vmatpush1.msra.mxu1 %v9107_v12  ;;  %v9120_v36 = vld [vmem:[#allocation2 + $0x30] sm:$0xff] }
 0x4ca   :  { %3047 = vmatprep.subr.mxu0 %v9110_v25  ;;  %3118 = vmatprep.subr.mxu1 %v9113_v1  ;;  %12423 = vst [vmem:[#allocation57_spill] sm:$0xff] %v9120_v36  ;;  %v9126_v25 = vld [vmem:[#allocation2 + $0x18] sm:$0xff] }
 0x4cb   :  { %v5600_v0 = vpop.eup %5599  ;;  %3048 = vmatpush1.msra.mxu0 %v9117_v9  ;;  %3119 = vmatpush1.msra.mxu1 %v9120_v36  ;;  %12425 = vst [vmem:[#allocation59_spill] sm:$0xff] %v9126_v25  ;;  %v9132_v9 = vld [vmem:[#allocation2] sm:$0xff]  ;;  %v9136_v36 = vld [vmem:[#allocation2 + $0x10] sm:$0xff] }
 0x4cc   :  { %v2853_v12 = vadd.f32 1.0, %v5600_v0  ;;  %3049 = vmatprep.subr.mxu0 %v9123_v20  ;;  %3120 = vmatprep.subr.mxu1 %v9126_v25  ;;  %12426 = vst [vmem:[#allocation60_spill] sm:$0xff] %v9132_v9  ;;  %12427 = vst [vmem:[#allocation61_spill] sm:$0xff] %v9136_v36  ;;  %v9140_v25 = vld [vmem:[#allocation4 + $0x3e8] sm:$0xff]  ;;  %v9218_v20 = vld [vmem:[#allocation4 + $0x320] sm:$0xff] }
 0x4cd   :  { %v5602_v1 = vpop.eup %5601  ;;  %3050 = vmatpush1.msra.mxu0 %v9132_v9  ;;  %3083 = vmatprep.mubr.f32.mxu0 %v11670_v10  ;;  %12428 = vst [vmem:[#allocation62_spill] sm:$0xff] %v9140_v25  ;;  %v9215_v9 = vld [vmem:[#allocation4 + $0x338] sm:$0xff]  ;;  %12453 = vst [vmem:[#allocation87_spill] sm:$0xff] %v9218_v20 }
 0x4ce   :  { %5605 = vrcp.f32 %v2853_v12  ;;  %v2859_v0 = vadd.f32 1.0, %v5602_v1  ;;  %3121 = vmatpush1.msra.mxu1 %v9136_v36  ;;  %3154 = vmatprep.mubr.f32.mxu1 %v11670_v10  ;;  %v9146_v12 = vld [vmem:[#allocation4 + $0x3e0] sm:$0xff]  ;;  %v9149_v1 = vld [vmem:[#allocation4 + $0x3f0] sm:$0xff] }
 0x4cf   :  { %5607 = vtanh.f32 %v2848_v17  ;;  %3084 = vmatmul.mubr.f32.vlgmr.msra.gmra.mxu0 %v5444_v33  ;;  %3155 = vmatmul.mubr.f32.vlgmr.msra.gmra.mxu1 %v5444_v33  ;;  %12430 = vst [vmem:[#allocation64_spill] sm:$0xff] %v9146_v12  ;;  %12431 = vst [vmem:[#allocation65_spill] sm:$0xff] %v9149_v1  ;;  %v9152_v17 = vld [vmem:[#allocation4 + $0x3c8] sm:$0xff]  ;;  %v9155_v33 = vld [vmem:[#allocation4 + $0x3d8] sm:$0xff] }
 0x4d0   :  { %5609 = vrcp.f32 %v2859_v0  ;;  %3192 = vmatprep.subr.mxu0 %v9140_v25  ;;  %3263 = vmatprep.subr.mxu1 %v9143_v48  ;;  %12432 = vst [vmem:[#allocation66_spill] sm:$0xff] %v9152_v17  ;;  %12433 = vst [vmem:[#allocation67_spill] sm:$0xff] %v9155_v33  ;;  %v9158_v0 = vld [vmem:[#allocation4 + $0x3c0] sm:$0xff]  ;;  %v9161_v48 = vld [vmem:[#allocation4 + $0x3d0] sm:$0xff] }
 0x4d1   :  { %3193 = vmatpush1.msra.mxu0 %v9146_v12  ;;  %3264 = vmatpush1.msra.mxu1 %v9149_v1  ;;  %12434 = vst [vmem:[#allocation68_spill] sm:$0xff] %v9158_v0  ;;  %12435 = vst [vmem:[#allocation69_spill] sm:$0xff] %v9161_v48  ;;  %v9164_v12 = vld [vmem:[#allocation4 + $0x3a8] sm:$0xff]  ;;  %v9167_v1 = vld [vmem:[#allocation4 + $0x3b8] sm:$0xff] }
 0x4d2   :  { %3194 = vmatprep.subr.mxu0 %v9152_v17  ;;  %3265 = vmatprep.subr.mxu1 %v9155_v33  ;;  %12436 = vst [vmem:[#allocation70_spill] sm:$0xff] %v9164_v12  ;;  %12437 = vst [vmem:[#allocation71_spill] sm:$0xff] %v9167_v1  ;;  %v9170_v17 = vld [vmem:[#allocation4 + $0x3a0] sm:$0xff]  ;;  %v9173_v33 = vld [vmem:[#allocation4 + $0x3b0] sm:$0xff] }
 0x4d3   :  { %3195 = vmatpush1.msra.mxu0 %v9158_v0  ;;  %3266 = vmatpush1.msra.mxu1 %v9161_v48  ;;  %12438 = vst [vmem:[#allocation72_spill] sm:$0xff] %v9170_v17  ;;  %12439 = vst [vmem:[#allocation73_spill] sm:$0xff] %v9173_v33  ;;  %v9176_v0 = vld [vmem:[#allocation4 + $0x388] sm:$0xff]  ;;  %v9179_v48 = vld [vmem:[#allocation4 + $0x398] sm:$0xff] }
 0x4d4   :  { %3196 = vmatprep.subr.mxu0 %v9164_v12  ;;  %3267 = vmatprep.subr.mxu1 %v9167_v1  ;;  %12440 = vst [vmem:[#allocation74_spill] sm:$0xff] %v9176_v0  ;;  %12441 = vst [vmem:[#allocation82_spill] sm:$0xff] %v9179_v48  ;;  %v9182_v12 = vld [vmem:[#allocation4 + $0x380] sm:$0xff]  ;;  %v9185_v1 = vld [vmem:[#allocation4 + $0x390] sm:$0xff] }
 0x4d5   :  { %3197 = vmatpush1.msra.mxu0 %v9170_v17  ;;  %3268 = vmatpush1.msra.mxu1 %v9173_v33  ;;  %12442 = vst [vmem:[#allocation75_spill] sm:$0xff] %v9182_v12  ;;  %12443 = vst [vmem:[#allocation76_spill] sm:$0xff] %v9185_v1  ;;  %v9188_v17 = vld [vmem:[#allocation4 + $0x368] sm:$0xff]  ;;  %v9191_v33 = vld [vmem:[#allocation4 + $0x378] sm:$0xff] }
 0x4d6   :  { %3198 = vmatprep.subr.mxu0 %v9176_v0  ;;  %3269 = vmatprep.subr.mxu1 %v9179_v48  ;;  %12444 = vst [vmem:[#allocation77_spill] sm:$0xff] %v9188_v17  ;;  %12445 = vst [vmem:[#allocation78_spill] sm:$0xff] %v9191_v33  ;;  %v9194_v0 = vld [vmem:[#allocation4 + $0x360] sm:$0xff]  ;;  %v9197_v48 = vld [vmem:[#allocation4 + $0x370] sm:$0xff] }
 0x4d7   :  { %3199 = vmatpush1.msra.mxu0 %v9182_v12  ;;  %3270 = vmatpush1.msra.mxu1 %v9185_v1  ;;  %12446 = vst [vmem:[#allocation79_spill] sm:$0xff] %v9194_v0  ;;  %12447 = vst [vmem:[#allocation80_spill] sm:$0xff] %v9197_v48  ;;  %v5604_v12 = vpop.eup %5603  ;;  %v9200_v25 = vld [vmem:[#allocation4 + $0x348] sm:$0xff]  ;;  %v9203_v1 = vld [vmem:[#allocation4 + $0x358] sm:$0xff] }
 0x4d8   :  { %3200 = vmatprep.subr.mxu0 %v9188_v17  ;;  %3271 = vmatprep.subr.mxu1 %v9191_v33  ;;  %12448 = vst [vmem:[#allocation81_spill] sm:$0xff] %v9200_v25  ;;  %12449 = vst [vmem:[#allocation83_spill] sm:$0xff] %v9203_v1  ;;  %v9206_v36 = vld [vmem:[#allocation4 + $0x340] sm:$0xff]  ;;  %v9209_v33 = vld [vmem:[#allocation4 + $0x350] sm:$0xff] }
 0x4d9   :  { %3201 = vmatpush1.msra.mxu0 %v9194_v0  ;;  %3272 = vmatpush1.msra.mxu1 %v9197_v48  ;;  %12450 = vst [vmem:[#allocation84_spill] sm:$0xff] %v9206_v36  ;;  %12451 = vst [vmem:[#allocation85_spill] sm:$0xff] %v9209_v33  ;;  %v9212_v48 = vld [vmem:[#allocation4 + $0x328] sm:$0xff] }
 0x4da   :  { %3202 = vmatprep.subr.mxu0 %v9200_v25  ;;  %3273 = vmatprep.subr.mxu1 %v9203_v1  ;;  %12452 = vst [vmem:[#allocation86_spill] sm:$0xff] %v9212_v48  ;;  %v2866_v1 = vadd.f32 1.0, %v5604_v12  ;;  %v9231_v12 = vld [vmem:[#allocation4 + $0x300] sm:$0xff] }
 0x4db   :  { %v5606_v17 = vpop.eup %5605  ;;  %3203 = vmatpush1.msra.mxu0 %v9206_v36  ;;  %3274 = vmatpush1.msra.mxu1 %v9209_v33  ;;  %v9221_v36 = vld [vmem:[#allocation4 + $0x330] sm:$0xff] }
 0x4dc   :  { %v5608_v0 = vpop.eup %5607  ;;  %3204 = vmatprep.subr.mxu0 %v9212_v48  ;;  %3275 = vmatprep.subr.mxu1 %v9215_v9  ;;  %12454 = vst [vmem:[#allocation88_spill] sm:$0xff] %v9221_v36  ;;  %v9228_v48 = vld [vmem:[#allocation4 + $0x318] sm:$0xff]  ;;  %5611 = vrcp.f32 %v2866_v1  ;;  %v9261_v1 = vld [vmem:[#allocation4 + $0x2d0] sm:$0xff] }
 0x4dd   :  { %v5610_v25 = vpop.eup %5609  ;;  %3205 = vmatpush1.msra.mxu0 %v9218_v20  ;;  %3276 = vmatpush1.msra.mxu1 %v9221_v36  ;;  %v2870_v33 = vmul.f32 %v5608_v0, %v5606_v17  ;;  %v9234_v20 = vld [vmem:[#allocation4 + $0x310] sm:$0xff]  ;;  %v9237_v36 = vld [vmem:[#allocation4 + $0x2e8] sm:$0xff]  ;;  %v9245_v17 = vld [vmem:[#allocation4 + $0x2e0] sm:$0xff]  ;;  %12463 = vst [vmem:[#allocation97_spill] sm:$0xff] %v9261_v1 }
 0x4de   :  { %v2869_v15 = vmul.f32 %v5610_v25, %v8719_v32  ;;  %3206 = vmatprep.subr.mxu0 %v9225_v37  ;;  %3277 = vmatprep.subr.mxu1 %v9228_v48  ;;  %12455 = vst [vmem:[#allocation89_spill] sm:$0xff] %v9234_v20  ;;  %12456 = vst [vmem:[#allocation90_spill] sm:$0xff] %v9237_v36  ;;  %v9240_v32 = vld [vmem:[#allocation4 + $0x2f8] sm:$0xff]  ;;  %v9248_v0 = vld [vmem:[#allocation4 + $0x2f0] sm:$0xff] }
 0x4df   :  { %3207 = vmatpush1.msra.mxu0 %v9231_v12  ;;  %3278 = vmatpush1.msra.mxu1 %v9234_v20  ;;  %12457 = vst [vmem:[#allocation91_spill] sm:$0xff] %v9240_v32  ;;  %12458 = vst [vmem:[#allocation92_spill] sm:$0xff] %v9245_v17  ;;  %v9251_v20 = vld [vmem:[#allocation4 + $0x2c8] sm:$0xff] }
 0x4e0   :  { %3208 = vmatprep.subr.mxu0 %v9237_v36  ;;  %3279 = vmatprep.subr.mxu1 %v9240_v32  ;;  %v9243_v25 = vadd.f32 %v2870_v33, %v2869_v15  ;;  %12459 = vst [vmem:[#allocation93_spill] sm:$0xff] %v9248_v0  ;;  %12460 = vst [vmem:[#allocation94_spill] sm:$0xff] %v9251_v20  ;;  %v9254_v36 = vld [vmem:[#allocation4 + $0x2d8] sm:$0xff]  ;;  %v9258_v15 = vld [vmem:[#allocation4 + $0x2c0] sm:$0xff] }
 0x4e1   :  { %3209 = vmatpush1.msra.mxu0 %v9245_v17  ;;  %3280 = vmatpush1.msra.mxu1 %v9248_v0  ;;  %12461 = vst [vmem:[#allocation95_spill] sm:$0xff] %v9254_v36  ;;  %12462 = vst [vmem:[#allocation96_spill] sm:$0xff] %v9258_v15  ;;  %v9264_v33 = vld [vmem:[#allocation4 + $0x2a8] sm:$0xff]  ;;  %v9267_v0 = vld [vmem:[#allocation4 + $0x2b8] sm:$0xff] }
 0x4e2   :  { %3210 = vmatprep.subr.mxu0 %v9251_v20  ;;  %3281 = vmatprep.subr.mxu1 %v9254_v36  ;;  %5613 = vtanh.f32 %v9243_v25  ;;  %12464 = vst [vmem:[#allocation98_spill] sm:$0xff] %v9264_v33  ;;  %12465 = vst [vmem:[#allocation99_spill] sm:$0xff] %v9267_v0  ;;  %v9270_v20 = vld [vmem:[#allocation4 + $0x2a0] sm:$0xff]  ;;  %v9273_v36 = vld [vmem:[#allocation4 + $0x2b0] sm:$0xff] }
 0x4e3   :  { %3211 = vmatpush1.msra.mxu0 %v9258_v15  ;;  %3282 = vmatpush1.msra.mxu1 %v9261_v1  ;;  %12466 = vst [vmem:[#allocation100_spill] sm:$0xff] %v9270_v20  ;;  %12467 = vst [vmem:[#allocation101_spill] sm:$0xff] %v9273_v36  ;;  %v9276_v15 = vld [vmem:[#allocation4 + $0x288] sm:$0xff]  ;;  %v9279_v1 = vld [vmem:[#allocation4 + $0x298] sm:$0xff] }
 0x4e4   :  { %3212 = vmatprep.subr.mxu0 %v9264_v33  ;;  %3283 = vmatprep.subr.mxu1 %v9267_v0  ;;  %12468 = vst [vmem:[#allocation102_spill] sm:$0xff] %v9276_v15  ;;  %12469 = vst [vmem:[#allocation103_spill] sm:$0xff] %v9279_v1  ;;  %v9282_v33 = vld [vmem:[#allocation4 + $0x280] sm:$0xff]  ;;  %v9285_v0 = vld [vmem:[#allocation4 + $0x290] sm:$0xff] }
 0x4e5   :  { %3213 = vmatpush1.msra.mxu0 %v9270_v20  ;;  %3284 = vmatpush1.msra.mxu1 %v9273_v36  ;;  %12470 = vst [vmem:[#allocation104_spill] sm:$0xff] %v9282_v33  ;;  %12471 = vst [vmem:[#allocation105_spill] sm:$0xff] %v9285_v0  ;;  %v9288_v20 = vld [vmem:[#allocation4 + $0x268] sm:$0xff]  ;;  %v9291_v36 = vld [vmem:[#allocation4 + $0x278] sm:$0xff] }
 0x4e6   :  { %3214 = vmatprep.subr.mxu0 %v9276_v15  ;;  %3285 = vmatprep.subr.mxu1 %v9279_v1  ;;  %12472 = vst [vmem:[#allocation106_spill] sm:$0xff] %v9288_v20  ;;  %12473 = vst [vmem:[#allocation107_spill] sm:$0xff] %v9291_v36  ;;  %v9294_v15 = vld [vmem:[#allocation4 + $0x260] sm:$0xff]  ;;  %v9297_v1 = vld [vmem:[#allocation4 + $0x270] sm:$0xff] }
 0x4e7   :  { %3215 = vmatpush1.msra.mxu0 %v9282_v33  ;;  %3286 = vmatpush1.msra.mxu1 %v9285_v0  ;;  %12474 = vst [vmem:[#allocation108_spill] sm:$0xff] %v9294_v15  ;;  %12475 = vst [vmem:[#allocation109_spill] sm:$0xff] %v9297_v1  ;;  %v9300_v33 = vld [vmem:[#allocation4 + $0x248] sm:$0xff]  ;;  %v9303_v0 = vld [vmem:[#allocation4 + $0x258] sm:$0xff] }
 0x4e8   :  { %3216 = vmatprep.subr.mxu0 %v9288_v20  ;;  %3287 = vmatprep.subr.mxu1 %v9291_v36  ;;  %12476 = vst [vmem:[#allocation110_spill] sm:$0xff] %v9300_v33  ;;  %12477 = vst [vmem:[#allocation111_spill] sm:$0xff] %v9303_v0  ;;  %v9306_v20 = vld [vmem:[#allocation4 + $0x240] sm:$0xff]  ;;  %v9309_v36 = vld [vmem:[#allocation4 + $0x250] sm:$0xff] }
 0x4e9   :  { %3217 = vmatpush1.msra.mxu0 %v9294_v15  ;;  %3288 = vmatpush1.msra.mxu1 %v9297_v1  ;;  %12478 = vst [vmem:[#allocation112_spill] sm:$0xff] %v9306_v20  ;;  %12479 = vst [vmem:[#allocation113_spill] sm:$0xff] %v9309_v36  ;;  %v9312_v15 = vld [vmem:[#allocation4 + $0x228] sm:$0xff]  ;;  %v9315_v1 = vld [vmem:[#allocation4 + $0x238] sm:$0xff] }
 0x4ea   :  { %3218 = vmatprep.subr.mxu0 %v9300_v33  ;;  %3289 = vmatprep.subr.mxu1 %v9303_v0  ;;  %12480 = vst [vmem:[#allocation114_spill] sm:$0xff] %v9312_v15  ;;  %12481 = vst [vmem:[#allocation115_spill] sm:$0xff] %v9315_v1  ;;  %v9318_v33 = vld [vmem:[#allocation4 + $0x220] sm:$0xff]  ;;  %v9321_v0 = vld [vmem:[#allocation4 + $0x230] sm:$0xff] }
 0x4eb   :  { %3219 = vmatpush1.msra.mxu0 %v9306_v20  ;;  %3290 = vmatpush1.msra.mxu1 %v9309_v36  ;;  %12482 = vst [vmem:[#allocation116_spill] sm:$0xff] %v9318_v33  ;;  %12483 = vst [vmem:[#allocation117_spill] sm:$0xff] %v9321_v0  ;;  %v5612_v20 = vpop.eup %5611  ;;  %v9324_v17 = vld [vmem:[#allocation4 + $0x208] sm:$0xff]  ;;  %v9327_v36 = vld [vmem:[#allocation4 + $0x218] sm:$0xff] }
 0x4ec   :  { %3220 = vmatprep.subr.mxu0 %v9312_v15  ;;  %3291 = vmatprep.subr.mxu1 %v9315_v1  ;;  %12484 = vst [vmem:[#allocation118_spill] sm:$0xff] %v9324_v17  ;;  %v9330_v32 = vld [vmem:[#allocation4 + $0x200] sm:$0xff]  ;;  %v9333_v1 = vld [vmem:[#allocation4 + $0x210] sm:$0xff] }
 0x4ed   :  { %3221 = vmatpush1.msra.mxu0 %v9318_v33  ;;  %3292 = vmatpush1.msra.mxu1 %v9321_v0  ;;  %12485 = vst [vmem:[#allocation119_spill] sm:$0xff] %v9330_v32  ;;  %12486 = vst [vmem:[#allocation120_spill] sm:$0xff] %v9333_v1  ;;  %v9338_v33 = vld [vmem:[#allocation2 + $0x3e8] sm:$0xff] }
 0x4ee   :  { %3222 = vmatprep.subr.mxu0 %v9324_v17  ;;  %3293 = vmatprep.subr.mxu1 %v9327_v36  ;;  %v9341_v17 = vld [vmem:[#allocation2 + $0x3f8] sm:$0xff] }
 0x4ef   :  { %v5614_v15 = vpop.eup %5613  ;;  %3223 = vmatpush1.msra.mxu0 %v9330_v32  ;;  %3294 = vmatpush1.msra.mxu1 %v9333_v1  ;;  %12487 = vst [vmem:[#allocation121_spill] sm:$0xff] %v9341_v17  ;;  %v9347_v1 = vld [vmem:[#allocation2 + $0x3e0] sm:$0xff]  ;;  %v9350_v32 = vld [vmem:[#allocation2 + $0x3f0] sm:$0xff] }
 0x4f0   :  { %3256 = vmatprep.mubr.f32.mxu0 %v11670_v10  ;;  %3327 = vmatprep.mubr.f32.mxu1 %v11670_v10  ;;  %v2873_v0 = vmul.f32 %v5614_v15, %v5612_v20  ;;  %12488 = vst [vmem:[#allocation122_spill] sm:$0xff] %v9347_v1  ;;  %12489 = vst [vmem:[#allocation123_spill] sm:$0xff] %v9350_v32  ;;  %v9353_v20 = vld [vmem:[#allocation2 + $0x3c8] sm:$0xff]  ;;  %v9356_v15 = vld [vmem:[#allocation2 + $0x3d8] sm:$0xff] }
 0x4f1   :  { %3334 = vmatprep.subr.mxu0 %v9338_v33  ;;  %3405 = vmatprep.subr.mxu1 %v9341_v17  ;;  %12490 = vst [vmem:[#allocation124_spill] sm:$0xff] %v9353_v20  ;;  %12491 = vst [vmem:[#allocation125_spill] sm:$0xff] %v9356_v15  ;;  %v9359_v17 = vld [vmem:[#allocation2 + $0x3c0] sm:$0xff] }
 0x4f2   :  { %5443 = vst [vmem:[%s10908_s5 + $0x10] sm:$0xf] %v2873_v0  ;;  %3257 = vmatmul.mubr.f32.vlgmr.msra.gmra.mxu0 %v2873_v0  ;;  %3328 = vmatmul.mubr.f32.vlgmr.msra.gmra.mxu1 %v2873_v0  ;;  %12492 = vst [vmem:[#allocation126_spill] sm:$0xff] %v9359_v17  ;;  %v9362_v0 = vld [vmem:[#allocation2 + $0x3d0] sm:$0xff] }
 0x4f3   :  { %3335 = vmatpush1.msra.mxu0 %v9347_v1  ;;  %3406 = vmatpush1.msra.mxu1 %v9350_v32  ;;  %12493 = vst [vmem:[#allocation127_spill] sm:$0xff] %v9362_v0  ;;  %v9365_v1 = vld [vmem:[#allocation2 + $0x3a8] sm:$0xff]  ;;  %v9368_v32 = vld [vmem:[#allocation2 + $0x3b8] sm:$0xff] }
 0x4f4   :  { %3336 = vmatprep.subr.mxu0 %v9353_v20  ;;  %3407 = vmatprep.subr.mxu1 %v9356_v15  ;;  %12494 = vst [vmem:[#allocation128_spill] sm:$0xff] %v9365_v1  ;;  %12495 = vst [vmem:[#allocation129_spill] sm:$0xff] %v9368_v32  ;;  %v9371_v20 = vld [vmem:[#allocation2 + $0x3a0] sm:$0xff]  ;;  %v9374_v15 = vld [vmem:[#allocation2 + $0x3b0] sm:$0xff] }
 0x4f5   :  { %3337 = vmatpush1.msra.mxu0 %v9359_v17  ;;  %3408 = vmatpush1.msra.mxu1 %v9362_v0  ;;  %12496 = vst [vmem:[#allocation130_spill] sm:$0xff] %v9371_v20  ;;  %12497 = vst [vmem:[#allocation131_spill] sm:$0xff] %v9374_v15  ;;  %v9377_v17 = vld [vmem:[#allocation2 + $0x388] sm:$0xff]  ;;  %v9380_v0 = vld [vmem:[#allocation2 + $0x398] sm:$0xff] }
 0x4f6   :  { %3338 = vmatprep.subr.mxu0 %v9365_v1  ;;  %3409 = vmatprep.subr.mxu1 %v9368_v32  ;;  %12498 = vst [vmem:[#allocation132_spill] sm:$0xff] %v9377_v17  ;;  %12499 = vst [vmem:[#allocation133_spill] sm:$0xff] %v9380_v0  ;;  %v9383_v1 = vld [vmem:[#allocation2 + $0x380] sm:$0xff]  ;;  %v9386_v32 = vld [vmem:[#allocation2 + $0x390] sm:$0xff] }
 0x4f7   :  { %3339 = vmatpush1.msra.mxu0 %v9371_v20  ;;  %3410 = vmatpush1.msra.mxu1 %v9374_v15  ;;  %12500 = vst [vmem:[#allocation134_spill] sm:$0xff] %v9383_v1  ;;  %12501 = vst [vmem:[#allocation135_spill] sm:$0xff] %v9386_v32  ;;  %v9389_v20 = vld [vmem:[#allocation2 + $0x368] sm:$0xff]  ;;  %v9392_v15 = vld [vmem:[#allocation2 + $0x378] sm:$0xff] }
 0x4f8   :  { %3340 = vmatprep.subr.mxu0 %v9377_v17  ;;  %3411 = vmatprep.subr.mxu1 %v9380_v0  ;;  %12502 = vst [vmem:[#allocation136_spill] sm:$0xff] %v9389_v20  ;;  %12503 = vst [vmem:[#allocation137_spill] sm:$0xff] %v9392_v15  ;;  %v9395_v17 = vld [vmem:[#allocation2 + $0x360] sm:$0xff]  ;;  %v9398_v0 = vld [vmem:[#allocation2 + $0x370] sm:$0xff] }
 0x4f9   :  { %3341 = vmatpush1.msra.mxu0 %v9383_v1  ;;  %3412 = vmatpush1.msra.mxu1 %v9386_v32  ;;  %12504 = vst [vmem:[#allocation138_spill] sm:$0xff] %v9395_v17  ;;  %12505 = vst [vmem:[#allocation139_spill] sm:$0xff] %v9398_v0  ;;  %v9401_v1 = vld [vmem:[#allocation2 + $0x348] sm:$0xff]  ;;  %v9404_v32 = vld [vmem:[#allocation2 + $0x358] sm:$0xff] }
 0x4fa   :  { %3342 = vmatprep.subr.mxu0 %v9389_v20  ;;  %3413 = vmatprep.subr.mxu1 %v9392_v15  ;;  %12506 = vst [vmem:[#allocation140_spill] sm:$0xff] %v9401_v1  ;;  %12507 = vst [vmem:[#allocation141_spill] sm:$0xff] %v9404_v32  ;;  %v9407_v20 = vld [vmem:[#allocation2 + $0x340] sm:$0xff]  ;;  %v9410_v15 = vld [vmem:[#allocation2 + $0x350] sm:$0xff] }
 0x4fb   :  { %3343 = vmatpush1.msra.mxu0 %v9395_v17  ;;  %3414 = vmatpush1.msra.mxu1 %v9398_v0  ;;  %12508 = vst [vmem:[#allocation142_spill] sm:$0xff] %v9407_v20  ;;  %12509 = vst [vmem:[#allocation143_spill] sm:$0xff] %v9410_v15  ;;  %v9413_v17 = vld [vmem:[#allocation2 + $0x328] sm:$0xff]  ;;  %v9416_v0 = vld [vmem:[#allocation2 + $0x338] sm:$0xff] }
 0x4fc   :  { %3344 = vmatprep.subr.mxu0 %v9401_v1  ;;  %3415 = vmatprep.subr.mxu1 %v9404_v32  ;;  %12510 = vst [vmem:[#allocation144_spill] sm:$0xff] %v9413_v17  ;;  %12511 = vst [vmem:[#allocation145_spill] sm:$0xff] %v9416_v0  ;;  %v9419_v1 = vld [vmem:[#allocation2 + $0x320] sm:$0xff]  ;;  %v9422_v32 = vld [vmem:[#allocation2 + $0x330] sm:$0xff] }
 0x4fd   :  { %3345 = vmatpush1.msra.mxu0 %v9407_v20  ;;  %3416 = vmatpush1.msra.mxu1 %v9410_v15  ;;  %12512 = vst [vmem:[#allocation146_spill] sm:$0xff] %v9419_v1  ;;  %12513 = vst [vmem:[#allocation147_spill] sm:$0xff] %v9422_v32  ;;  %v9425_v20 = vld [vmem:[#allocation2 + $0x308] sm:$0xff]  ;;  %v9428_v15 = vld [vmem:[#allocation2 + $0x318] sm:$0xff] }
 0x4fe   :  { %3346 = vmatprep.subr.mxu0 %v9413_v17  ;;  %3417 = vmatprep.subr.mxu1 %v9416_v0  ;;  %12514 = vst [vmem:[#allocation148_spill] sm:$0xff] %v9425_v20  ;;  %12515 = vst [vmem:[#allocation149_spill] sm:$0xff] %v9428_v15  ;;  %v9431_v17 = vld [vmem:[#allocation2 + $0x300] sm:$0xff]  ;;  %v9434_v0 = vld [vmem:[#allocation2 + $0x310] sm:$0xff] }
 0x4ff   :  { %3347 = vmatpush1.msra.mxu0 %v9419_v1  ;;  %3418 = vmatpush1.msra.mxu1 %v9422_v32  ;;  %12516 = vst [vmem:[#allocation150_spill] sm:$0xff] %v9431_v17  ;;  %12517 = vst [vmem:[#allocation151_spill] sm:$0xff] %v9434_v0  ;;  %v9437_v1 = vld [vmem:[#allocation2 + $0x2e8] sm:$0xff]  ;;  %v9440_v32 = vld [vmem:[#allocation2 + $0x2f8] sm:$0xff] }
 0x500   :  { %3348 = vmatprep.subr.mxu0 %v9425_v20  ;;  %3419 = vmatprep.subr.mxu1 %v9428_v15  ;;  %12518 = vst [vmem:[#allocation152_spill] sm:$0xff] %v9437_v1  ;;  %12519 = vst [vmem:[#allocation153_spill] sm:$0xff] %v9440_v32  ;;  %v9443_v20 = vld [vmem:[#allocation2 + $0x2e0] sm:$0xff]  ;;  %v9446_v15 = vld [vmem:[#allocation2 + $0x2f0] sm:$0xff] }
 0x501   :  { %3349 = vmatpush1.msra.mxu0 %v9431_v17  ;;  %3420 = vmatpush1.msra.mxu1 %v9434_v0  ;;  %12520 = vst [vmem:[#allocation154_spill] sm:$0xff] %v9443_v20  ;;  %12521 = vst [vmem:[#allocation155_spill] sm:$0xff] %v9446_v15  ;;  %v9449_v17 = vld [vmem:[#allocation2 + $0x2c8] sm:$0xff]  ;;  %v9452_v0 = vld [vmem:[#allocation2 + $0x2d8] sm:$0xff] }
 0x502   :  { %3350 = vmatprep.subr.mxu0 %v9437_v1  ;;  %3421 = vmatprep.subr.mxu1 %v9440_v32  ;;  %12522 = vst [vmem:[#allocation156_spill] sm:$0xff] %v9449_v17  ;;  %12523 = vst [vmem:[#allocation157_spill] sm:$0xff] %v9452_v0  ;;  %v9455_v1 = vld [vmem:[#allocation2 + $0x2c0] sm:$0xff]  ;;  %v9458_v32 = vld [vmem:[#allocation2 + $0x2d0] sm:$0xff] }
 0x503   :  { %3351 = vmatpush1.msra.mxu0 %v9443_v20  ;;  %3422 = vmatpush1.msra.mxu1 %v9446_v15  ;;  %12524 = vst [vmem:[#allocation158_spill] sm:$0xff] %v9455_v1  ;;  %12525 = vst [vmem:[#allocation159_spill] sm:$0xff] %v9458_v32  ;;  %v9461_v20 = vld [vmem:[#allocation2 + $0x2a8] sm:$0xff]  ;;  %v9464_v15 = vld [vmem:[#allocation2 + $0x2b8] sm:$0xff] }
 0x504   :  { %3352 = vmatprep.subr.mxu0 %v9449_v17  ;;  %3423 = vmatprep.subr.mxu1 %v9452_v0  ;;  %12526 = vst [vmem:[#allocation160_spill] sm:$0xff] %v9461_v20  ;;  %12527 = vst [vmem:[#allocation161_spill] sm:$0xff] %v9464_v15  ;;  %v9467_v17 = vld [vmem:[#allocation2 + $0x2a0] sm:$0xff]  ;;  %v9470_v0 = vld [vmem:[#allocation2 + $0x2b0] sm:$0xff] }
 0x505   :  { %3353 = vmatpush1.msra.mxu0 %v9455_v1  ;;  %3424 = vmatpush1.msra.mxu1 %v9458_v32  ;;  %12528 = vst [vmem:[#allocation162_spill] sm:$0xff] %v9467_v17  ;;  %12529 = vst [vmem:[#allocation163_spill] sm:$0xff] %v9470_v0  ;;  %v9473_v1 = vld [vmem:[#allocation2 + $0x288] sm:$0xff]  ;;  %v9476_v32 = vld [vmem:[#allocation2 + $0x298] sm:$0xff] }
 0x506   :  { %3354 = vmatprep.subr.mxu0 %v9461_v20  ;;  %3425 = vmatprep.subr.mxu1 %v9464_v15  ;;  %12530 = vst [vmem:[#allocation164_spill] sm:$0xff] %v9473_v1  ;;  %12531 = vst [vmem:[#allocation165_spill] sm:$0xff] %v9476_v32  ;;  %v9479_v20 = vld [vmem:[#allocation2 + $0x280] sm:$0xff]  ;;  %v9482_v15 = vld [vmem:[#allocation2 + $0x290] sm:$0xff] }
 0x507   :  { %3355 = vmatpush1.msra.mxu0 %v9467_v17  ;;  %3426 = vmatpush1.msra.mxu1 %v9470_v0  ;;  %12532 = vst [vmem:[#allocation166_spill] sm:$0xff] %v9479_v20  ;;  %12533 = vst [vmem:[#allocation167_spill] sm:$0xff] %v9482_v15  ;;  %v9485_v17 = vld [vmem:[#allocation2 + $0x268] sm:$0xff]  ;;  %v9488_v0 = vld [vmem:[#allocation2 + $0x278] sm:$0xff] }
 0x508   :  { %3356 = vmatprep.subr.mxu0 %v9473_v1  ;;  %3427 = vmatprep.subr.mxu1 %v9476_v32  ;;  %12534 = vst [vmem:[#allocation168_spill] sm:$0xff] %v9485_v17  ;;  %12535 = vst [vmem:[#allocation169_spill] sm:$0xff] %v9488_v0  ;;  %v9491_v1 = vld [vmem:[#allocation2 + $0x260] sm:$0xff]  ;;  %v9494_v32 = vld [vmem:[#allocation2 + $0x270] sm:$0xff] }
 0x509   :  { %3357 = vmatpush1.msra.mxu0 %v9479_v20  ;;  %3428 = vmatpush1.msra.mxu1 %v9482_v15  ;;  %12536 = vst [vmem:[#allocation170_spill] sm:$0xff] %v9491_v1  ;;  %12537 = vst [vmem:[#allocation171_spill] sm:$0xff] %v9494_v32  ;;  %v9497_v20 = vld [vmem:[#allocation2 + $0x248] sm:$0xff]  ;;  %v9500_v15 = vld [vmem:[#allocation2 + $0x258] sm:$0xff] }
 0x50a   :  { %3358 = vmatprep.subr.mxu0 %v9485_v17  ;;  %3429 = vmatprep.subr.mxu1 %v9488_v0  ;;  %12538 = vst [vmem:[#allocation172_spill] sm:$0xff] %v9497_v20  ;;  %12539 = vst [vmem:[#allocation173_spill] sm:$0xff] %v9500_v15  ;;  %v9503_v17 = vld [vmem:[#allocation2 + $0x240] sm:$0xff]  ;;  %v9506_v0 = vld [vmem:[#allocation2 + $0x250] sm:$0xff] }
 0x50b   :  { %3359 = vmatpush1.msra.mxu0 %v9491_v1  ;;  %3430 = vmatpush1.msra.mxu1 %v9494_v32  ;;  %12540 = vst [vmem:[#allocation174_spill] sm:$0xff] %v9503_v17  ;;  %12541 = vst [vmem:[#allocation175_spill] sm:$0xff] %v9506_v0  ;;  %v9509_v1 = vld [vmem:[#allocation2 + $0x228] sm:$0xff]  ;;  %v9512_v32 = vld [vmem:[#allocation2 + $0x238] sm:$0xff] }
 0x50c   :  { %3360 = vmatprep.subr.mxu0 %v9497_v20  ;;  %3431 = vmatprep.subr.mxu1 %v9500_v15  ;;  %12542 = vst [vmem:[#allocation176_spill] sm:$0xff] %v9509_v1  ;;  %12543 = vst [vmem:[#allocation177_spill] sm:$0xff] %v9512_v32  ;;  %v9515_v20 = vld [vmem:[#allocation2 + $0x220] sm:$0xff]  ;;  %v9518_v15 = vld [vmem:[#allocation2 + $0x230] sm:$0xff] }
 0x50d   :  { %3361 = vmatpush1.msra.mxu0 %v9503_v17  ;;  %3432 = vmatpush1.msra.mxu1 %v9506_v0  ;;  %12544 = vst [vmem:[#allocation178_spill] sm:$0xff] %v9515_v20  ;;  %12545 = vst [vmem:[#allocation179_spill] sm:$0xff] %v9518_v15  ;;  %v9521_v17 = vld [vmem:[#allocation2 + $0x208] sm:$0xff]  ;;  %v9524_v0 = vld [vmem:[#allocation2 + $0x218] sm:$0xff] }
 0x50e   :  { %3362 = vmatprep.subr.mxu0 %v9509_v1  ;;  %3433 = vmatprep.subr.mxu1 %v9512_v32  ;;  %12546 = vst [vmem:[#allocation180_spill] sm:$0xff] %v9521_v17  ;;  %12547 = vst [vmem:[#allocation181_spill] sm:$0xff] %v9524_v0  ;;  %v5449_v32 = vld [vmem:[%s10903_s0 + $0xc] sm:$0xf]  ;;  %v9530_v1 = vld [vmem:[#allocation2 + $0x200] sm:$0xff] }
 0x50f   :  { %3363 = vmatpush1.msra.mxu0 %v9515_v20  ;;  %3434 = vmatpush1.msra.mxu1 %v9518_v15  ;;  %12548 = vst [vmem:[#allocation182_spill] sm:$0xff] %v9530_v1  ;;  %v9534_v20 = vld [vmem:[#allocation2 + $0x210] sm:$0xff]  ;;  %v9544_v15 = vld [vmem:[#allocation4 + $0x1e0] sm:$0xff] }
 0x510   :  { %3364 = vmatprep.subr.mxu0 %v9521_v17  ;;  %3435 = vmatprep.subr.mxu1 %v9524_v0  ;;  %12549 = vst [vmem:[#allocation183_spill] sm:$0xff] %v9534_v20  ;;  %v9538_v17 = vld [vmem:[#allocation4 + $0x1e8] sm:$0xff]  ;;  %v9541_v0 = vld [vmem:[#allocation4 + $0x1f8] sm:$0xff]  ;;  %12552 = vst [vmem:[#allocation186_spill] sm:$0xff] %v9544_v15 }
 0x511   :  { %3365 = vmatpush1.msra.mxu0 %v9530_v1  ;;  %3398 = vmatprep.mubr.f32.mxu0 %v11670_v10  ;;  %12550 = vst [vmem:[#allocation184_spill] sm:$0xff] %v9538_v17  ;;  %12551 = vst [vmem:[#allocation185_spill] sm:$0xff] %v9541_v0  ;;  %v9547_v1 = vld [vmem:[#allocation4 + $0x1f0] sm:$0xff] }
 0x512   :  { %3436 = vmatpush1.msra.mxu1 %v9534_v20  ;;  %3469 = vmatprep.mubr.f32.mxu1 %v11670_v10  ;;  %12553 = vst [vmem:[#allocation187_spill] sm:$0xff] %v9547_v1  ;;  %v9550_v20 = vld [vmem:[#allocation4 + $0x1c8] sm:$0xff] }
 0x513   :  { %3399 = vmatmul.mubr.f32.vlgmr.msra.gmra.mxu0 %v5449_v32  ;;  %3470 = vmatmul.mubr.f32.vlgmr.msra.gmra.mxu1 %v5449_v32  ;;  %12554 = vst [vmem:[#allocation188_spill] sm:$0xff] %v9550_v20  ;;  %v9553_v32 = vld [vmem:[#allocation4 + $0x1d8] sm:$0xff] }
 0x514   :  { %3507 = vmatprep.subr.mxu0 %v9538_v17  ;;  %3578 = vmatprep.subr.mxu1 %v9541_v0  ;;  %12555 = vst [vmem:[#allocation189_spill] sm:$0xff] %v9553_v32  ;;  %v9556_v17 = vld [vmem:[#allocation4 + $0x1c0] sm:$0xff]  ;;  %v9559_v0 = vld [vmem:[#allocation4 + $0x1d0] sm:$0xff] }
 0x515   :  { %3508 = vmatpush1.msra.mxu0 %v9544_v15  ;;  %3579 = vmatpush1.msra.mxu1 %v9547_v1  ;;  %12556 = vst [vmem:[#allocation190_spill] sm:$0xff] %v9556_v17  ;;  %12557 = vst [vmem:[#allocation191_spill] sm:$0xff] %v9559_v0  ;;  %v9562_v15 = vld [vmem:[#allocation4 + $0x1a8] sm:$0xff]  ;;  %v9565_v1 = vld [vmem:[#allocation4 + $0x1b8] sm:$0xff] }
 0x516   :  { %3509 = vmatprep.subr.mxu0 %v9550_v20  ;;  %3580 = vmatprep.subr.mxu1 %v9553_v32  ;;  %12558 = vst [vmem:[#allocation192_spill] sm:$0xff] %v9562_v15  ;;  %12559 = vst [vmem:[#allocation193_spill] sm:$0xff] %v9565_v1  ;;  %v9568_v20 = vld [vmem:[#allocation4 + $0x1a0] sm:$0xff]  ;;  %v9571_v32 = vld [vmem:[#allocation4 + $0x1b0] sm:$0xff] }
 0x517   :  { %3510 = vmatpush1.msra.mxu0 %v9556_v17  ;;  %3581 = vmatpush1.msra.mxu1 %v9559_v0  ;;  %12560 = vst [vmem:[#allocation194_spill] sm:$0xff] %v9568_v20  ;;  %12561 = vst [vmem:[#allocation195_spill] sm:$0xff] %v9571_v32  ;;  %v9574_v17 = vld [vmem:[#allocation4 + $0x188] sm:$0xff]  ;;  %v9577_v0 = vld [vmem:[#allocation4 + $0x198] sm:$0xff] }
 0x518   :  { %3511 = vmatprep.subr.mxu0 %v9562_v15  ;;  %3582 = vmatprep.subr.mxu1 %v9565_v1  ;;  %12562 = vst [vmem:[#allocation196_spill] sm:$0xff] %v9574_v17  ;;  %12563 = vst [vmem:[#allocation197_spill] sm:$0xff] %v9577_v0  ;;  %v9580_v15 = vld [vmem:[#allocation4 + $0x180] sm:$0xff]  ;;  %v9583_v1 = vld [vmem:[#allocation4 + $0x190] sm:$0xff] }
 0x519   :  { %3512 = vmatpush1.msra.mxu0 %v9568_v20  ;;  %3583 = vmatpush1.msra.mxu1 %v9571_v32  ;;  %12564 = vst [vmem:[#allocation198_spill] sm:$0xff] %v9580_v15  ;;  %12565 = vst [vmem:[#allocation9_spill] sm:$0xff] %v9583_v1  ;;  %v9586_v20 = vld [vmem:[#allocation4 + $0x168] sm:$0xff]  ;;  %v9589_v32 = vld [vmem:[#allocation4 + $0x178] sm:$0xff] }
 0x51a   :  { %3513 = vmatprep.subr.mxu0 %v9574_v17  ;;  %3584 = vmatprep.subr.mxu1 %v9577_v0  ;;  %v9592_v17 = vld [vmem:[#allocation4 + $0x160] sm:$0xff]  ;;  %v9595_v0 = vld [vmem:[#allocation4 + $0x170] sm:$0xff] }
 0x51b   :  { %3514 = vmatpush1.msra.mxu0 %v9580_v15  ;;  %3585 = vmatpush1.msra.mxu1 %v9583_v1  ;;  %v9598_v15 = vld [vmem:[#allocation4 + $0x148] sm:$0xff]  ;;  %v9601_v1 = vld [vmem:[#allocation4 + $0x158] sm:$0xff] }
 0x51c   :  { %3515 = vmatprep.subr.mxu0 %v9586_v20  ;;  %3586 = vmatprep.subr.mxu1 %v9589_v32 }
 0x51d   :  { %3516 = vmatpush1.msra.mxu0 %v9592_v17  ;;  %3587 = vmatpush1.msra.mxu1 %v9595_v0 }
 0x51e   :  { %3517 = vmatprep.subr.mxu0 %v9598_v15  ;;  %3588 = vmatprep.subr.mxu1 %v9601_v1 }
 0x51f   :  { %3518 = vmatpush1.msra.mxu0 %v8849_v56  ;;  %3589 = vmatpush1.msra.mxu1 %v8852_v59  ;;  %v12566_v56 = vld [vmem:[#allocation24_spill] sm:$0xff]  ;;  %v12567_v59 = vld [vmem:[#allocation25_spill] sm:$0xff] }
 0x520   :  { %3519 = vmatprep.subr.mxu0 %v8855_v60  ;;  %3590 = vmatprep.subr.mxu1 %v8858_v62  ;;  %v12568_v60 = vld [vmem:[#allocation26_spill] sm:$0xff]  ;;  %v12569_v62 = vld [vmem:[#allocation27_spill] sm:$0xff] }
 0x521   :  { %3520 = vmatpush1.msra.mxu0 %v8861_v63  ;;  %3591 = vmatpush1.msra.mxu1 %v8864_v61  ;;  %v12570_v63 = vld [vmem:[#allocation28_spill] sm:$0xff]  ;;  %v12571_v61 = vld [vmem:[#allocation29_spill] sm:$0xff] }
 0x522   :  { %3521 = vmatprep.subr.mxu0 %v8867_v5  ;;  %3592 = vmatprep.subr.mxu1 %v8870_v16  ;;  %v12572_v5 = vld [vmem:[#allocation30_spill] sm:$0xff]  ;;  %v12573_v16 = vld [vmem:[#allocation31_spill] sm:$0xff] }
 0x523   :  { %3522 = vmatpush1.msra.mxu0 %v8873_v11  ;;  %3593 = vmatpush1.msra.mxu1 %v8876_v3  ;;  %v12574_v11 = vld [vmem:[#allocation32_spill] sm:$0xff]  ;;  %v12575_v3 = vld [vmem:[#allocation33_spill] sm:$0xff] }
 0x524   :  { %3523 = vmatprep.subr.mxu0 %v8879_v47  ;;  %3594 = vmatprep.subr.mxu1 %v8882_v57  ;;  %v12576_v47 = vld [vmem:[#allocation34_spill] sm:$0xff]  ;;  %v12577_v57 = vld [vmem:[#allocation35_spill] sm:$0xff] }
 0x525   :  { %3524 = vmatpush1.msra.mxu0 %v8885_v54  ;;  %3595 = vmatpush1.msra.mxu1 %v8888_v29  ;;  %v12578_v54 = vld [vmem:[#allocation36_spill] sm:$0xff]  ;;  %v12579_v29 = vld [vmem:[#allocation37_spill] sm:$0xff] }
 0x526   :  { %3525 = vmatprep.subr.mxu0 %v8891_v24  ;;  %3596 = vmatprep.subr.mxu1 %v8894_v41  ;;  %v12580_v24 = vld [vmem:[#allocation38_spill] sm:$0xff]  ;;  %v12581_v41 = vld [vmem:[#allocation39_spill] sm:$0xff] }
 0x527   :  { %3526 = vmatpush1.msra.mxu0 %v8897_v18  ;;  %3597 = vmatpush1.msra.mxu1 %v8900_v2  ;;  %v12582_v18 = vld [vmem:[#allocation40_spill] sm:$0xff]  ;;  %v12583_v2 = vld [vmem:[#allocation41_spill] sm:$0xff] }
 0x528   :  { %3527 = vmatprep.subr.mxu0 %v8903_v22  ;;  %3598 = vmatprep.subr.mxu1 %v8906_v21  ;;  %v12584_v22 = vld [vmem:[#allocation42_spill] sm:$0xff]  ;;  %v12585_v21 = vld [vmem:[#allocation43_spill] sm:$0xff] }
 0x529   :  { %3528 = vmatpush1.msra.mxu0 %v8909_v14  ;;  %3599 = vmatpush1.msra.mxu1 %v8912_v26  ;;  %v12586_v14 = vld [vmem:[#allocation44_spill] sm:$0xff]  ;;  %v12587_v26 = vld [vmem:[#allocation45_spill] sm:$0xff] }
 0x52a   :  { %3529 = vmatprep.subr.mxu0 %v12566_v56  ;;  %3600 = vmatprep.subr.mxu1 %v12567_v59 }
 0x52b   :  { %3530 = vmatpush1.msra.mxu0 %v12568_v60  ;;  %3601 = vmatpush1.msra.mxu1 %v12569_v62 }
 0x52c   :  { %3531 = vmatprep.subr.mxu0 %v12570_v63  ;;  %3602 = vmatprep.subr.mxu1 %v12571_v61 }
 0x52d   :  { %3532 = vmatpush1.msra.mxu0 %v12572_v5  ;;  %3603 = vmatpush1.msra.mxu1 %v12573_v16 }
 0x52e   :  { %3533 = vmatprep.subr.mxu0 %v12574_v11  ;;  %3604 = vmatprep.subr.mxu1 %v12575_v3 }
 0x52f   :  { %3534 = vmatpush1.msra.mxu0 %v12576_v47  ;;  %3605 = vmatpush1.msra.mxu1 %v12577_v57 }
 0x530   :  { %3535 = vmatprep.subr.mxu0 %v12578_v54  ;;  %3606 = vmatprep.subr.mxu1 %v12579_v29 }
 0x531   :  { %3536 = vmatpush1.msra.mxu0 %v12580_v24  ;;  %3607 = vmatpush1.msra.mxu1 %v12581_v41 }
 0x532   :  { %3537 = vmatprep.subr.mxu0 %v12582_v18  ;;  %3608 = vmatprep.subr.mxu1 %v12583_v2 }
 0x533   :  { %3538 = vmatpush1.msra.mxu0 %v12584_v22  ;;  %3609 = vmatpush1.msra.mxu1 %v12585_v21 }
 0x534   :  { %3571 = vmatprep.mubr.f32.mxu0 %v11670_v10  ;;  %3642 = vmatprep.mubr.f32.mxu1 %v11670_v10 }
 0x535   :  { %3649 = vmatprep.subr.mxu0 %v12586_v14  ;;  %3720 = vmatprep.subr.mxu1 %v12587_v26 }
 0x56e   :  { %v2943_v56 = vpop.f32.mrf.mxu0  ;;  %v3014_v59 = vpop.f32.mrf.mxu1 }
 0x570   :  { %v2945_v60 = vpop.f32.mrf.mxu0  ;;  %v3016_v63 = vpop.f32.mrf.mxu1 }
 0x58f   :  { %v3085_v62 = vpop.f32.mrf.mxu0  ;;  %v3156_v11 = vpop.f32.mrf.mxu1 }
 0x590   :  { %v3086_v61 = vadd.f32 %v3085_v62, %v2943_v56  ;;  %v3157_v18 = vadd.f32 %v3156_v11, %v3014_v59 }
 0x591   :  { %v3087_v5 = vpop.f32.mrf.mxu0  ;;  %v3158_v29 = vpop.f32.mrf.mxu1 }
 0x592   :  { %v3161_v16 = vadd.f32 %v3086_v61, %v7407_v31  ;;  %v3088_v3 = vadd.f32 %v3087_v5, %v2945_v60  ;;  %v3159_v24 = vadd.f32 %v3158_v29, %v3016_v63  ;;  %v3163_v21 = vadd.f32 %v3157_v18, %v7424_v50  ;;  %v9664_v29 = vld [vmem:[#allocation2 + $0x1f0] sm:$0xff]  ;;  %v9673_v18 = vld [vmem:[#allocation2 + $0x1c0] sm:$0xff] }
 0x594   :  { %v5445_v47 = vmul.f32 -1.442695, %v3161_v16  ;;  %v3162_v57 = vadd.f32 %v3088_v3, %v7411_v35  ;;  %v3164_v41 = vadd.f32 %v3159_v24, %v7418_v46  ;;  %v9670_v24 = vld [vmem:[#allocation2 + $0x1d8] sm:$0xff] }
 0x596   :  { %5615 = vpow2.f32 %v5445_v47  ;;  %v5446_v54 = vmul.f32 -1.442695, %v3162_v57  ;;  %v5447_v2 = vmul.f32 -1.442695, %v3164_v41 }
 0x598   :  { %5617 = vpow2.f32 %v5446_v54  ;;  %v9661_v54 = vld [vmem:[#allocation2 + $0x1e0] sm:$0xff] }
 0x599   :  { %5619 = vpow2.f32 %v5447_v2  ;;  %v9676_v2 = vld [vmem:[#allocation2 + $0x1d0] sm:$0xff] }
 0x5a3   :  { %v5616_v22 = vpop.eup %5615 }
 0x5a4   :  { %v3168_v14 = vadd.f32 1.0, %v5616_v22  ;;  %v9679_v22 = vld [vmem:[#allocation2 + $0x1a8] sm:$0xff] }
 0x5a5   :  { %v5618_v26 = vpop.eup %5617 }
 0x5a6   :  { %5621 = vrcp.f32 %v3168_v14  ;;  %v3174_v56 = vadd.f32 1.0, %v5618_v26  ;;  %v5620_v60 = vpop.eup %5619  ;;  %v9685_v14 = vld [vmem:[#allocation2 + $0x1a0] sm:$0xff]  ;;  %v9688_v26 = vld [vmem:[#allocation2 + $0x1b0] sm:$0xff] }
 0x5a7   :  { %5623 = vtanh.f32 %v3163_v21  ;;  %v3181_v16 = vadd.f32 1.0, %v5620_v60  ;;  %v9682_v21 = vld [vmem:[#allocation2 + $0x1b8] sm:$0xff]  ;;  %12588 = vst [vmem:[#allocation10_spill] sm:$0xff] %v9685_v14  ;;  %12589 = vst [vmem:[#allocation11_spill] sm:$0xff] %v9688_v26  ;;  %v9693_v60 = vld [vmem:[#allocation2 + $0x188] sm:$0xff] }
 0x5a8   :  { %5625 = vrcp.f32 %v3174_v56  ;;  %12590 = vst [vmem:[#allocation12_spill] sm:$0xff] %v9693_v60 }
 0x5a9   :  { %5627 = vrcp.f32 %v3181_v16  ;;  %v9702_v16 = vld [vmem:[#allocation2 + $0x190] sm:$0xff] }
 0x5aa   :  { %12593 = vst [vmem:[#allocation15_spill] sm:$0xff] %v9702_v16 }
 0x5b2   :  { %v3258_v41 = vpop.f32.mrf.mxu0  ;;  %v9691_v56 = vpop.f32.mrf.mxu1 }
 0x5b3   :  { %v5622_v62 = vpop.eup %5621 }
 0x5b4   :  { %v5624_v61 = vpop.eup %5623 }
 0x5b5   :  { %v5626_v5 = vpop.eup %5625  ;;  %v3185_v63 = vmul.f32 %v5624_v61, %v5622_v62  ;;  %v9696_v62 = vld [vmem:[#allocation2 + $0x198] sm:$0xff]  ;;  %v3260_v61 = vpop.f32.mrf.mxu0 }
 0x5b6   :  { %v3184_v3 = vmul.f32 %v5626_v5, %v8988_v43  ;;  %v5628_v11 = vpop.eup %5627  ;;  %v9667_v43 = vld [vmem:[#allocation2 + $0x1c8] sm:$0xff]  ;;  %12591 = vst [vmem:[#allocation13_spill] sm:$0xff] %v9696_v62  ;;  %v9699_v5 = vld [vmem:[#allocation2 + $0x180] sm:$0xff] }
 0x5b7   :  { %12592 = vst [vmem:[#allocation14_spill] sm:$0xff] %v9699_v5 }
 0x5b8   :  { %v9655_v59 = vadd.f32 %v3185_v63, %v3184_v3  ;;  %v9705_v63 = vld [vmem:[#allocation2 + $0x168] sm:$0xff]  ;;  %v9708_v3 = vld [vmem:[#allocation2 + $0x178] sm:$0xff] }
 0x5b9   :  { %12594 = vst [vmem:[#allocation16_spill] sm:$0xff] %v9705_v63  ;;  %12595 = vst [vmem:[#allocation17_spill] sm:$0xff] %v9708_v3 }
 0x5ba   :  { %5629 = vtanh.f32 %v9655_v59 }
 0x5c7   :  { %v5630_v47 = vpop.eup %5629 }
 0x5c8   :  { %v3188_v57 = vmul.f32 %v5630_v47, %v5628_v11  ;;  %v9711_v47 = vld [vmem:[#allocation2 + $0x160] sm:$0xff] }
 0x5c9   :  { %12596 = vst [vmem:[#allocation18_spill] sm:$0xff] %v9711_v47 }
 0x5ca   :  { %5448 = vst [vmem:[%s10907_s4 + $0x10] sm:$0xf] %v3188_v57  ;;  %3572 = vmatmul.mubr.f32.vlgmr.msra.gmra.mxu0 %v3188_v57  ;;  %3643 = vmatmul.mubr.f32.vlgmr.msra.gmra.mxu1 %v3188_v57  ;;  %v9714_v57 = vld [vmem:[#allocation2 + $0x170] sm:$0xff] }
 0x5cb   :  { %3650 = vmatpush1.msra.mxu0 %v9661_v54  ;;  %3721 = vmatpush1.msra.mxu1 %v9664_v29  ;;  %12597 = vst [vmem:[#allocation19_spill] sm:$0xff] %v9714_v57 }
 0x5cc   :  { %3651 = vmatprep.subr.mxu0 %v9667_v43  ;;  %3722 = vmatprep.subr.mxu1 %v9670_v24 }
 0x5cd   :  { %3652 = vmatpush1.msra.mxu0 %v9673_v18  ;;  %3723 = vmatpush1.msra.mxu1 %v9676_v2 }
 0x5ce   :  { %3653 = vmatprep.subr.mxu0 %v9679_v22  ;;  %3724 = vmatprep.subr.mxu1 %v9682_v21 }
 0x5cf   :  { %3654 = vmatpush1.msra.mxu0 %v9685_v14  ;;  %3725 = vmatpush1.msra.mxu1 %v9688_v26  ;;  %v9730_v26 = vld [vmem:[#allocation2 + $0x128] sm:$0xff]  ;;  %v9738_v14 = vld [vmem:[#allocation2 + $0x130] sm:$0xff] }
 0x5d0   :  { %3655 = vmatprep.subr.mxu0 %v9693_v60  ;;  %3726 = vmatprep.subr.mxu1 %v9696_v62  ;;  %v9723_v60 = vld [vmem:[#allocation2 + $0x140] sm:$0xff] }
 0x5d1   :  { %3656 = vmatpush1.msra.mxu0 %v9699_v5  ;;  %3727 = vmatpush1.msra.mxu1 %v9702_v16  ;;  %v3331_v5 = vpop.f32.mrf.mxu1  ;;  %v9717_v16 = vld [vmem:[#allocation2 + $0x148] sm:$0xff]  ;;  %12600 = vst [vmem:[#allocation22_spill] sm:$0xff] %v9723_v60 }
 0x5d2   :  { %3657 = vmatprep.subr.mxu0 %v9705_v63  ;;  %3728 = vmatprep.subr.mxu1 %v9708_v3  ;;  %12598 = vst [vmem:[#allocation20_spill] sm:$0xff] %v9717_v16  ;;  %v9720_v63 = vld [vmem:[#allocation2 + $0x158] sm:$0xff] }
 0x5d3   :  { %v3400_v11 = vpop.f32.mrf.mxu0  ;;  %3658 = vmatpush1.msra.mxu0 %v9711_v47  ;;  %3729 = vmatpush1.msra.mxu1 %v9714_v57  ;;  %12599 = vst [vmem:[#allocation21_spill] sm:$0xff] %v9720_v63  ;;  %v9726_v47 = vld [vmem:[#allocation2 + $0x150] sm:$0xff] }
 0x5d4   :  { %v3401_v62 = vadd.f32 %v3400_v11, %v3258_v41  ;;  %3659 = vmatprep.subr.mxu0 %v9717_v16  ;;  %3730 = vmatprep.subr.mxu1 %v9720_v63  ;;  %v3471_v41 = vpop.f32.mrf.mxu1  ;;  %v9733_v16 = vld [vmem:[#allocation2 + $0x138] sm:$0xff] }
 0x5d5   :  { %v3402_v3 = vpop.f32.mrf.mxu0  ;;  %3660 = vmatpush1.msra.mxu0 %v9723_v60  ;;  %3731 = vmatpush1.msra.mxu1 %v9726_v47 }
 0x5d6   :  { %v3476_v57 = vadd.f32 %v3401_v62, %v7485_v51  ;;  %v3403_v11 = vadd.f32 %v3402_v3, %v3260_v61  ;;  %3661 = vmatprep.subr.mxu0 %v9730_v26  ;;  %3732 = vmatprep.subr.mxu1 %v9733_v16  ;;  %v3473_v61 = vpop.f32.mrf.mxu1  ;;  %v9744_v3 = vld [vmem:[#allocation2 + $0x110] sm:$0xff] }
 0x5d7   :  { %3662 = vmatpush1.msra.mxu0 %v9021_v30  ;;  %3733 = vmatpush1.msra.mxu1 %v9738_v14  ;;  %v3474_v30 = vadd.f32 %v3473_v61, %v3331_v5  ;;  %v12619_v61 = vld [vmem:[#allocation63_spill] sm:$0xff] }
 0x5d8   :  { %v5450_v63 = vmul.f32 -1.442695, %v3476_v57  ;;  %v3477_v60 = vadd.f32 %v3403_v11, %v7502_v58  ;;  %3663 = vmatprep.subr.mxu0 %v9026_v44  ;;  %3734 = vmatprep.subr.mxu1 %v9029_v53  ;;  %v12601_v53 = vld [vmem:[#allocation46_spill] sm:$0xff]  ;;  %v12616_v57 = vld [vmem:[#allocation60_spill] sm:$0xff]  ;;  %v12617_v11 = vld [vmem:[#allocation61_spill] sm:$0xff] }
 0x5d9   :  { %3664 = vmatpush1.msra.mxu0 %v9032_v8  ;;  %3735 = vmatpush1.msra.mxu1 %v9744_v3  ;;  %v3479_v44 = vadd.f32 %v3474_v30, %v7542_v13  ;;  %v3472_v8 = vadd.f32 %v3471_v41, %v9691_v56  ;;  %v12614_v56 = vld [vmem:[#allocation58_spill] sm:$0xff]  ;;  %v12620_v30 = vld [vmem:[#allocation64_spill] sm:$0xff] }
 0x5da   :  { %5631 = vpow2.f32 %v5450_v63  ;;  %v5451_v62 = vmul.f32 -1.442695, %v3477_v60  ;;  %3665 = vmatprep.subr.mxu0 %v9036_v6  ;;  %3736 = vmatprep.subr.mxu1 %v9039_v39  ;;  %v12602_v6 = vld [vmem:[#allocation47_spill] sm:$0xff]  ;;  %v12603_v39 = vld [vmem:[#allocation48_spill] sm:$0xff]  ;;  %v5454_v60 = vld [vmem:[%s10903_s0 + $0x14] sm:$0xf] }
 0x5db   :  { %3666 = vmatpush1.msra.mxu0 %v9042_v4  ;;  %3737 = vmatpush1.msra.mxu1 %v9045_v40  ;;  %v12604_v4 = vld [vmem:[#allocation49_spill] sm:$0xff]  ;;  %v12605_v40 = vld [vmem:[#allocation50_spill] sm:$0xff]  ;;  %v12615_v63 = vld [vmem:[#allocation59_spill] sm:$0xff] }
 0x5dc   :  { %5633 = vpow2.f32 %v5451_v62  ;;  %3667 = vmatprep.subr.mxu0 %v9048_v7  ;;  %3738 = vmatprep.subr.mxu1 %v9051_v34  ;;  %v5452_v7 = vmul.f32 -1.442695, %v3479_v44  ;;  %v12606_v34 = vld [vmem:[#allocation51_spill] sm:$0xff]  ;;  %v12618_v62 = vld [vmem:[#allocation62_spill] sm:$0xff]  ;;  %v12621_v44 = vld [vmem:[#allocation65_spill] sm:$0xff] }
 0x5dd   :  { %3668 = vmatpush1.msra.mxu0 %v9054_v27  ;;  %3739 = vmatpush1.msra.mxu1 %v9057_v28  ;;  %v12607_v27 = vld [vmem:[#allocation52_spill] sm:$0xff]  ;;  %v12608_v28 = vld [vmem:[#allocation53_spill] sm:$0xff] }
 0x5de   :  { %3669 = vmatprep.subr.mxu0 %v9060_v55  ;;  %3740 = vmatprep.subr.mxu1 %v9063_v49  ;;  %v12609_v55 = vld [vmem:[#allocation54_spill] sm:$0xff]  ;;  %5635 = vpow2.f32 %v5452_v7  ;;  %v12628_v7 = vld [vmem:[#allocation72_spill] sm:$0xff] }
 0x5df   :  { %3670 = vmatpush1.msra.mxu0 %v9066_v52  ;;  %3741 = vmatpush1.msra.mxu1 %v9069_v38  ;;  %v12610_v52 = vld [vmem:[#allocation8_spill] sm:$0xff] }
 0x5e0   :  { %3671 = vmatprep.subr.mxu0 %v9072_v19  ;;  %3742 = vmatprep.subr.mxu1 %v9075_v45  ;;  %v3478_v38 = vadd.f32 %v3472_v8, %v12610_v52  ;;  %v12611_v19 = vld [vmem:[#allocation55_spill] sm:$0xff]  ;;  %v12612_v45 = vld [vmem:[#allocation56_spill] sm:$0xff] }
 0x5e1   :  { %3672 = vmatpush1.msra.mxu0 %v9079_v42  ;;  %3743 = vmatpush1.msra.mxu1 %v9082_v23  ;;  %v12613_v23 = vld [vmem:[#allocation57_spill] sm:$0xff]  ;;  %v12623_v8 = vld [vmem:[#allocation67_spill] sm:$0xff] }
 0x5e2   :  { %3673 = vmatprep.subr.mxu0 %v12601_v53  ;;  %3744 = vmatprep.subr.mxu1 %v12602_v6  ;;  %v12622_v53 = vld [vmem:[#allocation66_spill] sm:$0xff]  ;;  %v12624_v6 = vld [vmem:[#allocation68_spill] sm:$0xff] }
 0x5e3   :  { %3674 = vmatpush1.msra.mxu0 %v12603_v39  ;;  %3745 = vmatpush1.msra.mxu1 %v12604_v4  ;;  %v12625_v39 = vld [vmem:[#allocation69_spill] sm:$0xff]  ;;  %v12626_v4 = vld [vmem:[#allocation70_spill] sm:$0xff] }
 0x5e4   :  { %3675 = vmatprep.subr.mxu0 %v12605_v40  ;;  %3746 = vmatprep.subr.mxu1 %v12606_v34  ;;  %v12627_v40 = vld [vmem:[#allocation71_spill] sm:$0xff]  ;;  %v12629_v34 = vld [vmem:[#allocation73_spill] sm:$0xff] }
 0x5e5   :  { %3676 = vmatpush1.msra.mxu0 %v12607_v27  ;;  %3747 = vmatpush1.msra.mxu1 %v12608_v28  ;;  %v12630_v27 = vld [vmem:[#allocation74_spill] sm:$0xff] }
 0x5e6   :  { %3677 = vmatprep.subr.mxu0 %v12609_v55  ;;  %3748 = vmatprep.subr.mxu1 %v12611_v19  ;;  %v12631_v28 = vld [vmem:[#allocation82_spill] sm:$0xff]  ;;  %v12632_v55 = vld [vmem:[#allocation75_spill] sm:$0xff] }
 0x5e7   :  { %v5632_v49 = vpop.eup %5631  ;;  %3678 = vmatpush1.msra.mxu0 %v12612_v45  ;;  %3749 = vmatpush1.msra.mxu1 %v12613_v23  ;;  %v12635_v19 = vld [vmem:[#allocation78_spill] sm:$0xff]  ;;  %v12636_v45 = vld [vmem:[#allocation79_spill] sm:$0xff]  ;;  %v12637_v23 = vld [vmem:[#allocation80_spill] sm:$0xff] }
 0x5e8   :  { %v3483_v42 = vadd.f32 1.0, %v5632_v49  ;;  %3679 = vmatprep.subr.mxu0 %v12614_v56  ;;  %3750 = vmatprep.subr.mxu1 %v12615_v63  ;;  %v12633_v49 = vld [vmem:[#allocation76_spill] sm:$0xff]  ;;  %v12638_v56 = vld [vmem:[#allocation81_spill] sm:$0xff] }
 0x5e9   :  { %v5634_v5 = vpop.eup %5633  ;;  %3680 = vmatpush1.msra.mxu0 %v12616_v57  ;;  %3713 = vmatprep.mubr.f32.mxu0 %v11670_v10  ;;  %v12640_v63 = vld [vmem:[#allocation84_spill] sm:$0xff] }
 0x5ea   :  { %5637 = vrcp.f32 %v3483_v42  ;;  %v3489_v41 = vadd.f32 1.0, %v5634_v5  ;;  %3751 = vmatpush1.msra.mxu1 %v12617_v11  ;;  %3784 = vmatprep.mubr.f32.mxu1 %v11670_v10  ;;  %v12639_v5 = vld [vmem:[#allocation83_spill] sm:$0xff]  ;;  %v12642_v11 = vld [vmem:[#allocation86_spill] sm:$0xff] }
 0x5eb   :  { %5639 = vtanh.f32 %v3478_v38  ;;  %3714 = vmatmul.mubr.f32.vlgmr.msra.gmra.mxu0 %v5454_v60  ;;  %3785 = vmatmul.mubr.f32.vlgmr.msra.gmra.mxu1 %v5454_v60  ;;  %v12634_v38 = vld [vmem:[#allocation77_spill] sm:$0xff]  ;;  %v5636_v42 = vpop.eup %5635 }
 0x5ec   :  { %5641 = vrcp.f32 %v3489_v41  ;;  %3822 = vmatprep.subr.mxu0 %v12618_v62  ;;  %3893 = vmatprep.subr.mxu1 %v12619_v61  ;;  %v12641_v41 = vld [vmem:[#allocation85_spill] sm:$0xff]  ;;  %v3496_v61 = vadd.f32 1.0, %v5636_v42  ;;  %v12662_v42 = vld [vmem:[#allocation106_spill] sm:$0xff] }
 0x5ed   :  { %3823 = vmatpush1.msra.mxu0 %v12620_v30  ;;  %3894 = vmatpush1.msra.mxu1 %v12621_v44  ;;  %v12643_v30 = vld [vmem:[#allocation87_spill] sm:$0xff] }
 0x5ee   :  { %3824 = vmatprep.subr.mxu0 %v12622_v53  ;;  %3895 = vmatprep.subr.mxu1 %v12623_v8  ;;  %v12644_v8 = vld [vmem:[#allocation88_spill] sm:$0xff]  ;;  %5643 = vrcp.f32 %v3496_v61 }
 0x5ef   :  { %3825 = vmatpush1.msra.mxu0 %v12624_v6  ;;  %3896 = vmatpush1.msra.mxu1 %v12625_v39  ;;  %v12645_v6 = vld [vmem:[#allocation89_spill] sm:$0xff]  ;;  %v12646_v39 = vld [vmem:[#allocation90_spill] sm:$0xff]  ;;  %v12672_v61 = vld [vmem:[#allocation116_spill] sm:$0xff] }
 0x5f0   :  { %3826 = vmatprep.subr.mxu0 %v12626_v4  ;;  %3897 = vmatprep.subr.mxu1 %v12627_v40  ;;  %v12648_v40 = vld [vmem:[#allocation92_spill] sm:$0xff] }
 0x5f1   :  { %3827 = vmatpush1.msra.mxu0 %v12628_v7  ;;  %3898 = vmatpush1.msra.mxu1 %v12629_v34  ;;  %v12650_v7 = vld [vmem:[#allocation94_spill] sm:$0xff] }
 0x5f2   :  { %3828 = vmatprep.subr.mxu0 %v12630_v27  ;;  %3899 = vmatprep.subr.mxu1 %v12631_v28  ;;  %v12654_v34 = vld [vmem:[#allocation98_spill] sm:$0xff]  ;;  %v12655_v27 = vld [vmem:[#allocation99_spill] sm:$0xff]  ;;  %v12656_v28 = vld [vmem:[#allocation100_spill] sm:$0xff] }
 0x5f3   :  { %3829 = vmatpush1.msra.mxu0 %v12632_v55  ;;  %3900 = vmatpush1.msra.mxu1 %v12633_v49  ;;  %v12657_v55 = vld [vmem:[#allocation101_spill] sm:$0xff]  ;;  %v12658_v49 = vld [vmem:[#allocation102_spill] sm:$0xff] }
 0x5f4   :  { %3830 = vmatprep.subr.mxu0 %v12634_v38  ;;  %3901 = vmatprep.subr.mxu1 %v12635_v19  ;;  %v12659_v38 = vld [vmem:[#allocation103_spill] sm:$0xff]  ;;  %v12660_v19 = vld [vmem:[#allocation104_spill] sm:$0xff] }
 0x5f5   :  { %3831 = vmatpush1.msra.mxu0 %v12636_v45  ;;  %3902 = vmatpush1.msra.mxu1 %v12637_v23  ;;  %v12661_v45 = vld [vmem:[#allocation105_spill] sm:$0xff]  ;;  %v12663_v23 = vld [vmem:[#allocation107_spill] sm:$0xff] }
 0x5f6   :  { %3832 = vmatprep.subr.mxu0 %v12638_v56  ;;  %3903 = vmatprep.subr.mxu1 %v12639_v5  ;;  %v12664_v56 = vld [vmem:[#allocation108_spill] sm:$0xff]  ;;  %v12666_v5 = vld [vmem:[#allocation110_spill] sm:$0xff] }
 0x5f7   :  { %v5638_v60 = vpop.eup %5637  ;;  %3833 = vmatpush1.msra.mxu0 %v12640_v63  ;;  %3904 = vmatpush1.msra.mxu1 %v12641_v41  ;;  %v12667_v63 = vld [vmem:[#allocation111_spill] sm:$0xff]  ;;  %v12669_v41 = vld [vmem:[#allocation113_spill] sm:$0xff] }
 0x5f8   :  { %v5640_v57 = vpop.eup %5639  ;;  %3834 = vmatprep.subr.mxu0 %v12642_v11  ;;  %3905 = vmatprep.subr.mxu1 %v9215_v9  ;;  %v12647_v9 = vld [vmem:[#allocation91_spill] sm:$0xff]  ;;  %v12670_v11 = vld [vmem:[#allocation114_spill] sm:$0xff] }
 0x5f9   :  { %v5642_v62 = vpop.eup %5641  ;;  %3835 = vmatpush1.msra.mxu0 %v12643_v30  ;;  %v3500_v44 = vmul.f32 %v5640_v57, %v5638_v60  ;;  %3906 = vmatpush1.msra.mxu1 %v12644_v8  ;;  %v12665_v60 = vld [vmem:[#allocation109_spill] sm:$0xff]  ;;  %v12668_v57 = vld [vmem:[#allocation112_spill] sm:$0xff] }
 0x5fa   :  { %v3499_v53 = vmul.f32 %v5642_v62, %v9243_v25  ;;  %3836 = vmatprep.subr.mxu0 %v9225_v37  ;;  %3907 = vmatprep.subr.mxu1 %v9228_v48  ;;  %v12649_v25 = vld [vmem:[#allocation93_spill] sm:$0xff]  ;;  %v12651_v37 = vld [vmem:[#allocation95_spill] sm:$0xff]  ;;  %v12652_v48 = vld [vmem:[#allocation96_spill] sm:$0xff] }
 0x5fb   :  { %3837 = vmatpush1.msra.mxu0 %v9231_v12  ;;  %3908 = vmatpush1.msra.mxu1 %v12645_v6  ;;  %v12653_v12 = vld [vmem:[#allocation97_spill] sm:$0xff]  ;;  %v12671_v62 = vld [vmem:[#allocation115_spill] sm:$0xff]  ;;  %v5644_v30 = vpop.eup %5643 }
 0x5fc   :  { %3838 = vmatprep.subr.mxu0 %v12646_v39  ;;  %v9821_v4 = vadd.f32 %v3500_v44, %v3499_v53  ;;  %3909 = vmatprep.subr.mxu1 %v12647_v9  ;;  %v12673_v44 = vld [vmem:[#allocation117_spill] sm:$0xff]  ;;  %v12674_v53 = vld [vmem:[#allocation118_spill] sm:$0xff]  ;;  %v12675_v6 = vld [vmem:[#allocation119_spill] sm:$0xff] }
 0x5fd   :  { %3839 = vmatpush1.msra.mxu0 %v12648_v40  ;;  %3910 = vmatpush1.msra.mxu1 %v12649_v25  ;;  %v12676_v39 = vld [vmem:[#allocation120_spill] sm:$0xff]  ;;  %v12677_v40 = vld [vmem:[#allocation121_spill] sm:$0xff]  ;;  %v12679_v25 = vld [vmem:[#allocation123_spill] sm:$0xff] }
 0x5fe   :  { %3840 = vmatprep.subr.mxu0 %v12650_v7  ;;  %5645 = vtanh.f32 %v9821_v4  ;;  %3911 = vmatprep.subr.mxu1 %v12651_v37  ;;  %v12680_v7 = vld [vmem:[#allocation124_spill] sm:$0xff]  ;;  %v12681_v37 = vld [vmem:[#allocation125_spill] sm:$0xff] }
 0x5ff   :  { %3841 = vmatpush1.msra.mxu0 %v12652_v48  ;;  %3912 = vmatpush1.msra.mxu1 %v12653_v12  ;;  %v12682_v48 = vld [vmem:[#allocation126_spill] sm:$0xff]  ;;  %v12683_v12 = vld [vmem:[#allocation127_spill] sm:$0xff] }
 0x600   :  { %3842 = vmatprep.subr.mxu0 %v12654_v34  ;;  %3913 = vmatprep.subr.mxu1 %v12655_v27  ;;  %v12685_v34 = vld [vmem:[#allocation129_spill] sm:$0xff]  ;;  %v12686_v27 = vld [vmem:[#allocation130_spill] sm:$0xff] }
 0x601   :  { %3843 = vmatpush1.msra.mxu0 %v12656_v28  ;;  %3914 = vmatpush1.msra.mxu1 %v12657_v55  ;;  %v12687_v28 = vld [vmem:[#allocation131_spill] sm:$0xff]  ;;  %v12688_v55 = vld [vmem:[#allocation132_spill] sm:$0xff] }
 0x602   :  { %3844 = vmatprep.subr.mxu0 %v12658_v49  ;;  %3915 = vmatprep.subr.mxu1 %v12659_v38  ;;  %v12689_v49 = vld [vmem:[#allocation133_spill] sm:$0xff]  ;;  %v12690_v38 = vld [vmem:[#allocation134_spill] sm:$0xff] }
 0x603   :  { %3845 = vmatpush1.msra.mxu0 %v12660_v19  ;;  %3916 = vmatpush1.msra.mxu1 %v12661_v45  ;;  %v12691_v19 = vld [vmem:[#allocation135_spill] sm:$0xff]  ;;  %v12692_v45 = vld [vmem:[#allocation136_spill] sm:$0xff] }
 0x604   :  { %3846 = vmatprep.subr.mxu0 %v12662_v42  ;;  %3917 = vmatprep.subr.mxu1 %v12663_v23  ;;  %v12693_v42 = vld [vmem:[#allocation137_spill] sm:$0xff]  ;;  %v12694_v23 = vld [vmem:[#allocation138_spill] sm:$0xff] }
 0x605   :  { %3847 = vmatpush1.msra.mxu0 %v12664_v56  ;;  %3918 = vmatpush1.msra.mxu1 %v12665_v60  ;;  %v12695_v56 = vld [vmem:[#allocation139_spill] sm:$0xff]  ;;  %v12696_v60 = vld [vmem:[#allocation140_spill] sm:$0xff] }
 0x606   :  { %3848 = vmatprep.subr.mxu0 %v12666_v5  ;;  %3919 = vmatprep.subr.mxu1 %v12667_v63  ;;  %v12697_v5 = vld [vmem:[#allocation141_spill] sm:$0xff]  ;;  %v12698_v63 = vld [vmem:[#allocation142_spill] sm:$0xff] }
 0x607   :  { %3849 = vmatpush1.msra.mxu0 %v12668_v57  ;;  %3920 = vmatpush1.msra.mxu1 %v12669_v41  ;;  %v12699_v57 = vld [vmem:[#allocation143_spill] sm:$0xff]  ;;  %v12700_v41 = vld [vmem:[#allocation144_spill] sm:$0xff] }
 0x608   :  { %3850 = vmatprep.subr.mxu0 %v12670_v11  ;;  %3921 = vmatprep.subr.mxu1 %v12671_v62  ;;  %v12701_v11 = vld [vmem:[#allocation145_spill] sm:$0xff]  ;;  %v12702_v62 = vld [vmem:[#allocation146_spill] sm:$0xff] }
 0x609   :  { %3851 = vmatpush1.msra.mxu0 %v12672_v61  ;;  %3922 = vmatpush1.msra.mxu1 %v12673_v44  ;;  %v12703_v61 = vld [vmem:[#allocation147_spill] sm:$0xff]  ;;  %v12705_v44 = vld [vmem:[#allocation149_spill] sm:$0xff] }
 0x60a   :  { %3852 = vmatprep.subr.mxu0 %v12674_v53  ;;  %3923 = vmatprep.subr.mxu1 %v9327_v36  ;;  %v12678_v36 = vld [vmem:[#allocation122_spill] sm:$0xff] }
 0x60b   :  { %v5646_v8 = vpop.eup %5645  ;;  %3853 = vmatpush1.msra.mxu0 %v12675_v6  ;;  %3924 = vmatpush1.msra.mxu1 %v12676_v39  ;;  %v12706_v53 = vld [vmem:[#allocation150_spill] sm:$0xff]  ;;  %v12708_v6 = vld [vmem:[#allocation152_spill] sm:$0xff]  ;;  %v12709_v39 = vld [vmem:[#allocation153_spill] sm:$0xff] }
 0x60c   :  { %3886 = vmatprep.mubr.f32.mxu0 %v11670_v10  ;;  %v3503_v9 = vmul.f32 %v5646_v8, %v5644_v30  ;;  %3957 = vmatprep.mubr.f32.mxu1 %v11670_v10  ;;  %v12704_v30 = vld [vmem:[#allocation148_spill] sm:$0xff]  ;;  %v12707_v8 = vld [vmem:[#allocation151_spill] sm:$0xff] }
 0x60d   :  { %3964 = vmatprep.subr.mxu0 %v9338_v33  ;;  %4035 = vmatprep.subr.mxu1 %v12677_v40  ;;  %v12684_v33 = vld [vmem:[#allocation128_spill] sm:$0xff]  ;;  %v12711_v40 = vld [vmem:[#allocation155_spill] sm:$0xff] }
 0x60e   :  { %5453 = vst [vmem:[%s10908_s5 + $0xc] sm:$0xf] %v3503_v9  ;;  %3887 = vmatmul.mubr.f32.vlgmr.msra.gmra.mxu0 %v3503_v9  ;;  %3958 = vmatmul.mubr.f32.vlgmr.msra.gmra.mxu1 %v3503_v9  ;;  %v12710_v9 = vld [vmem:[#allocation154_spill] sm:$0xff] }
 0x60f   :  { %3965 = vmatpush1.msra.mxu0 %v12678_v36  ;;  %4036 = vmatpush1.msra.mxu1 %v12679_v25  ;;  %v12712_v36 = vld [vmem:[#allocation156_spill] sm:$0xff]  ;;  %v12713_v25 = vld [vmem:[#allocation157_spill] sm:$0xff] }
 0x610   :  { %3966 = vmatprep.subr.mxu0 %v12680_v7  ;;  %4037 = vmatprep.subr.mxu1 %v12681_v37  ;;  %v12714_v7 = vld [vmem:[#allocation158_spill] sm:$0xff]  ;;  %v12715_v37 = vld [vmem:[#allocation159_spill] sm:$0xff] }
 0x611   :  { %3967 = vmatpush1.msra.mxu0 %v12682_v48  ;;  %4038 = vmatpush1.msra.mxu1 %v12683_v12  ;;  %v12716_v48 = vld [vmem:[#allocation160_spill] sm:$0xff]  ;;  %v12717_v12 = vld [vmem:[#allocation161_spill] sm:$0xff] }
 0x612   :  { %3968 = vmatprep.subr.mxu0 %v12684_v33  ;;  %4039 = vmatprep.subr.mxu1 %v12685_v34  ;;  %v12718_v33 = vld [vmem:[#allocation162_spill] sm:$0xff]  ;;  %v12719_v34 = vld [vmem:[#allocation163_spill] sm:$0xff] }
 0x613   :  { %3969 = vmatpush1.msra.mxu0 %v12686_v27  ;;  %4040 = vmatpush1.msra.mxu1 %v12687_v28  ;;  %v12720_v27 = vld [vmem:[#allocation164_spill] sm:$0xff]  ;;  %v12721_v28 = vld [vmem:[#allocation165_spill] sm:$0xff] }
 0x614   :  { %3970 = vmatprep.subr.mxu0 %v12688_v55  ;;  %4041 = vmatprep.subr.mxu1 %v12689_v49  ;;  %v12722_v55 = vld [vmem:[#allocation166_spill] sm:$0xff]  ;;  %v12723_v49 = vld [vmem:[#allocation167_spill] sm:$0xff] }
 0x615   :  { %3971 = vmatpush1.msra.mxu0 %v12690_v38  ;;  %4042 = vmatpush1.msra.mxu1 %v12691_v19  ;;  %v12724_v38 = vld [vmem:[#allocation168_spill] sm:$0xff]  ;;  %v12725_v19 = vld [vmem:[#allocation169_spill] sm:$0xff] }
 0x616   :  { %3972 = vmatprep.subr.mxu0 %v12692_v45  ;;  %4043 = vmatprep.subr.mxu1 %v12693_v42  ;;  %v12726_v45 = vld [vmem:[#allocation170_spill] sm:$0xff]  ;;  %v12727_v42 = vld [vmem:[#allocation171_spill] sm:$0xff] }
 0x617   :  { %3973 = vmatpush1.msra.mxu0 %v12694_v23  ;;  %4044 = vmatpush1.msra.mxu1 %v12695_v56  ;;  %v12728_v23 = vld [vmem:[#allocation172_spill] sm:$0xff]  ;;  %v12729_v56 = vld [vmem:[#allocation173_spill] sm:$0xff] }
 0x618   :  { %3974 = vmatprep.subr.mxu0 %v12696_v60  ;;  %4045 = vmatprep.subr.mxu1 %v12697_v5  ;;  %v12730_v60 = vld [vmem:[#allocation174_spill] sm:$0xff]  ;;  %v12731_v5 = vld [vmem:[#allocation175_spill] sm:$0xff] }
 0x619   :  { %3975 = vmatpush1.msra.mxu0 %v12698_v63  ;;  %4046 = vmatpush1.msra.mxu1 %v12699_v57  ;;  %v12732_v63 = vld [vmem:[#allocation176_spill] sm:$0xff]  ;;  %v12733_v57 = vld [vmem:[#allocation177_spill] sm:$0xff] }
 0x61a   :  { %3976 = vmatprep.subr.mxu0 %v12700_v41  ;;  %4047 = vmatprep.subr.mxu1 %v12701_v11  ;;  %v12734_v41 = vld [vmem:[#allocation178_spill] sm:$0xff]  ;;  %v12735_v11 = vld [vmem:[#allocation179_spill] sm:$0xff] }
 0x61b   :  { %3977 = vmatpush1.msra.mxu0 %v12702_v62  ;;  %4048 = vmatpush1.msra.mxu1 %v12703_v61  ;;  %v12736_v62 = vld [vmem:[#allocation180_spill] sm:$0xff]  ;;  %v5459_v61 = vld [vmem:[%s10903_s0 + $0x8] sm:$0xf] }
 0x61c   :  { %3978 = vmatprep.subr.mxu0 %v12704_v30  ;;  %4049 = vmatprep.subr.mxu1 %v12705_v44  ;;  %v12737_v30 = vld [vmem:[#allocation181_spill] sm:$0xff]  ;;  %v12738_v44 = vld [vmem:[#allocation182_spill] sm:$0xff] }
 0x61d   :  { %3979 = vmatpush1.msra.mxu0 %v12706_v53  ;;  %4050 = vmatpush1.msra.mxu1 %v12707_v8  ;;  %v12739_v53 = vld [vmem:[#allocation183_spill] sm:$0xff]  ;;  %v12740_v8 = vld [vmem:[#allocation184_spill] sm:$0xff] }
 0x61e   :  { %3980 = vmatprep.subr.mxu0 %v12708_v6  ;;  %4051 = vmatprep.subr.mxu1 %v12709_v39  ;;  %v12741_v6 = vld [vmem:[#allocation185_spill] sm:$0xff]  ;;  %v12742_v39 = vld [vmem:[#allocation186_spill] sm:$0xff] }
 0x61f   :  { %3981 = vmatpush1.msra.mxu0 %v12710_v9  ;;  %4052 = vmatpush1.msra.mxu1 %v12711_v40  ;;  %v12743_v9 = vld [vmem:[#allocation187_spill] sm:$0xff]  ;;  %v12744_v40 = vld [vmem:[#allocation188_spill] sm:$0xff] }
 0x620   :  { %3982 = vmatprep.subr.mxu0 %v12712_v36  ;;  %4053 = vmatprep.subr.mxu1 %v12713_v25  ;;  %v12745_v36 = vld [vmem:[#allocation189_spill] sm:$0xff]  ;;  %v12746_v25 = vld [vmem:[#allocation190_spill] sm:$0xff] }
 0x621   :  { %3983 = vmatpush1.msra.mxu0 %v12714_v7  ;;  %4054 = vmatpush1.msra.mxu1 %v12715_v37  ;;  %v12747_v7 = vld [vmem:[#allocation191_spill] sm:$0xff]  ;;  %v12748_v37 = vld [vmem:[#allocation192_spill] sm:$0xff] }
 0x622   :  { %3984 = vmatprep.subr.mxu0 %v12716_v48  ;;  %4055 = vmatprep.subr.mxu1 %v12717_v12  ;;  %v12749_v48 = vld [vmem:[#allocation193_spill] sm:$0xff]  ;;  %v12750_v12 = vld [vmem:[#allocation194_spill] sm:$0xff] }
 0x623   :  { %3985 = vmatpush1.msra.mxu0 %v12718_v33  ;;  %4056 = vmatpush1.msra.mxu1 %v12719_v34  ;;  %v12751_v33 = vld [vmem:[#allocation195_spill] sm:$0xff]  ;;  %v12752_v34 = vld [vmem:[#allocation196_spill] sm:$0xff] }
 0x624   :  { %3986 = vmatprep.subr.mxu0 %v12720_v27  ;;  %4057 = vmatprep.subr.mxu1 %v12721_v28  ;;  %v12753_v27 = vld [vmem:[#allocation197_spill] sm:$0xff]  ;;  %v12754_v28 = vld [vmem:[#allocation198_spill] sm:$0xff] }
 0x625   :  { %3987 = vmatpush1.msra.mxu0 %v12722_v55  ;;  %4058 = vmatpush1.msra.mxu1 %v12723_v49  ;;  %v12755_v55 = vld [vmem:[#allocation9_spill] sm:$0xff]  ;;  %v9951_v49 = vld [vmem:[#allocation4 + $0x140] sm:$0xff] }
 0x626   :  { %3988 = vmatprep.subr.mxu0 %v12724_v38  ;;  %4059 = vmatprep.subr.mxu1 %v12725_v19  ;;  %v9954_v38 = vld [vmem:[#allocation4 + $0x150] sm:$0xff]  ;;  %v9957_v19 = vld [vmem:[#allocation4 + $0x128] sm:$0xff] }
 0x627   :  { %3989 = vmatpush1.msra.mxu0 %v12726_v45  ;;  %4060 = vmatpush1.msra.mxu1 %v12727_v42  ;;  %v9978_v45 = vld [vmem:[#allocation4 + $0x110] sm:$0xff]  ;;  %v9981_v42 = vld [vmem:[#allocation4 + $0xe8] sm:$0xff] }
 0x628   :  { %3990 = vmatprep.subr.mxu0 %v12728_v23  ;;  %4061 = vmatprep.subr.mxu1 %v12729_v56  ;;  %v9984_v23 = vld [vmem:[#allocation4 + $0xf8] sm:$0xff]  ;;  %v9987_v56 = vld [vmem:[#allocation4 + $0xe0] sm:$0xff] }
 0x629   :  { %3991 = vmatpush1.msra.mxu0 %v12730_v60  ;;  %4062 = vmatpush1.msra.mxu1 %v12731_v5  ;;  %v9990_v60 = vld [vmem:[#allocation4 + $0xf0] sm:$0xff]  ;;  %v9993_v5 = vld [vmem:[#allocation4 + $0xc8] sm:$0xff] }
 0x62a   :  { %3992 = vmatprep.subr.mxu0 %v12732_v63  ;;  %4063 = vmatprep.subr.mxu1 %v12733_v57  ;;  %v9996_v63 = vld [vmem:[#allocation4 + $0xd8] sm:$0xff]  ;;  %v9999_v57 = vld [vmem:[#allocation4 + $0xc0] sm:$0xff] }
 0x62b   :  { %3993 = vmatpush1.msra.mxu0 %v12734_v41  ;;  %4064 = vmatpush1.msra.mxu1 %v12735_v11  ;;  %v10002_v41 = vld [vmem:[#allocation4 + $0xd0] sm:$0xff]  ;;  %v10005_v11 = vld [vmem:[#allocation4 + $0xa8] sm:$0xff] }
 0x62c   :  { %3994 = vmatprep.subr.mxu0 %v12736_v62  ;;  %4065 = vmatprep.subr.mxu1 %v12737_v30  ;;  %v10008_v62 = vld [vmem:[#allocation4 + $0xb8] sm:$0xff]  ;;  %v10014_v30 = vld [vmem:[#allocation4 + $0xb0] sm:$0xff] }
 0x62d   :  { %3995 = vmatpush1.msra.mxu0 %v12738_v44  ;;  %4028 = vmatprep.mubr.f32.mxu0 %v11670_v10  ;;  %12757 = vst [vmem:[#allocation24_spill] sm:$0xff] %v10014_v30  ;;  %v10017_v44 = vld [vmem:[#allocation4 + $0x88] sm:$0xff] }
 0x62e   :  { %4066 = vmatpush1.msra.mxu1 %v12739_v53  ;;  %4099 = vmatprep.mubr.f32.mxu1 %v11670_v10  ;;  %12758 = vst [vmem:[#allocation25_spill] sm:$0xff] %v10017_v44  ;;  %v10020_v53 = vld [vmem:[#allocation4 + $0x98] sm:$0xff] }
 0x62f   :  { %4029 = vmatmul.mubr.f32.vlgmr.msra.gmra.mxu0 %v5459_v61  ;;  %4100 = vmatmul.mubr.f32.vlgmr.msra.gmra.mxu1 %v5459_v61  ;;  %v10011_v61 = vld [vmem:[#allocation4 + $0xa0] sm:$0xff]  ;;  %12759 = vst [vmem:[#allocation26_spill] sm:$0xff] %v10020_v53 }
 0x630   :  { %4137 = vmatprep.subr.mxu0 %v12740_v8  ;;  %4208 = vmatprep.subr.mxu1 %v12741_v6  ;;  %12756 = vst [vmem:[#allocation23_spill] sm:$0xff] %v10011_v61  ;;  %v10023_v8 = vld [vmem:[#allocation4 + $0x80] sm:$0xff]  ;;  %v10026_v6 = vld [vmem:[#allocation4 + $0x90] sm:$0xff] }
 0x631   :  { %4138 = vmatpush1.msra.mxu0 %v12742_v39  ;;  %4209 = vmatpush1.msra.mxu1 %v12743_v9  ;;  %12760 = vst [vmem:[#allocation27_spill] sm:$0xff] %v10023_v8  ;;  %12761 = vst [vmem:[#allocation28_spill] sm:$0xff] %v10026_v6  ;;  %v10029_v39 = vld [vmem:[#allocation4 + $0x68] sm:$0xff]  ;;  %v10032_v9 = vld [vmem:[#allocation4 + $0x78] sm:$0xff] }
 0x632   :  { %4139 = vmatprep.subr.mxu0 %v12744_v40  ;;  %4210 = vmatprep.subr.mxu1 %v12745_v36  ;;  %12762 = vst [vmem:[#allocation29_spill] sm:$0xff] %v10029_v39  ;;  %12763 = vst [vmem:[#allocation30_spill] sm:$0xff] %v10032_v9  ;;  %v10035_v40 = vld [vmem:[#allocation4 + $0x60] sm:$0xff]  ;;  %v10038_v36 = vld [vmem:[#allocation4 + $0x70] sm:$0xff] }
 0x633   :  { %4140 = vmatpush1.msra.mxu0 %v12746_v25  ;;  %4211 = vmatpush1.msra.mxu1 %v12747_v7  ;;  %12764 = vst [vmem:[#allocation31_spill] sm:$0xff] %v10035_v40  ;;  %12765 = vst [vmem:[#allocation32_spill] sm:$0xff] %v10038_v36  ;;  %v10041_v25 = vld [vmem:[#allocation4 + $0x48] sm:$0xff]  ;;  %v10044_v7 = vld [vmem:[#allocation4 + $0x58] sm:$0xff] }
 0x634   :  { %4141 = vmatprep.subr.mxu0 %v12748_v37  ;;  %4212 = vmatprep.subr.mxu1 %v12749_v48  ;;  %12766 = vst [vmem:[#allocation33_spill] sm:$0xff] %v10041_v25  ;;  %12767 = vst [vmem:[#allocation34_spill] sm:$0xff] %v10044_v7  ;;  %v10047_v37 = vld [vmem:[#allocation4 + $0x40] sm:$0xff]  ;;  %v10050_v48 = vld [vmem:[#allocation4 + $0x50] sm:$0xff] }
 0x635   :  { %4142 = vmatpush1.msra.mxu0 %v12750_v12  ;;  %4213 = vmatpush1.msra.mxu1 %v12751_v33  ;;  %12768 = vst [vmem:[#allocation35_spill] sm:$0xff] %v10047_v37  ;;  %12769 = vst [vmem:[#allocation36_spill] sm:$0xff] %v10050_v48  ;;  %v10053_v12 = vld [vmem:[#allocation4 + $0x28] sm:$0xff]  ;;  %v10056_v33 = vld [vmem:[#allocation4 + $0x38] sm:$0xff] }
 0x636   :  { %4143 = vmatprep.subr.mxu0 %v12752_v34  ;;  %4214 = vmatprep.subr.mxu1 %v12753_v27  ;;  %12770 = vst [vmem:[#allocation37_spill] sm:$0xff] %v10053_v12  ;;  %12771 = vst [vmem:[#allocation38_spill] sm:$0xff] %v10056_v33  ;;  %v10059_v34 = vld [vmem:[#allocation4 + $0x20] sm:$0xff]  ;;  %v10062_v27 = vld [vmem:[#allocation4 + $0x30] sm:$0xff] }
 0x637   :  { %4144 = vmatpush1.msra.mxu0 %v12754_v28  ;;  %4215 = vmatpush1.msra.mxu1 %v12755_v55  ;;  %12772 = vst [vmem:[#allocation39_spill] sm:$0xff] %v10059_v34  ;;  %12773 = vst [vmem:[#allocation40_spill] sm:$0xff] %v10062_v27  ;;  %v10065_v28 = vld [vmem:[#allocation4 + $0x8] sm:$0xff]  ;;  %v10068_v55 = vld [vmem:[#allocation4 + $0x18] sm:$0xff] }
 0x638   :  { %4145 = vmatprep.subr.mxu0 %v9586_v20  ;;  %4216 = vmatprep.subr.mxu1 %v9589_v32  ;;  %v9960_v20 = vld [vmem:[#allocation4 + $0x138] sm:$0xff]  ;;  %v9975_v32 = vld [vmem:[#allocation4 + $0x100] sm:$0xff]  ;;  %12774 = vst [vmem:[#allocation41_spill] sm:$0xff] %v10065_v28  ;;  %12775 = vst [vmem:[#allocation42_spill] sm:$0xff] %v10068_v55 }
 0x639   :  { %4146 = vmatpush1.msra.mxu0 %v9592_v17  ;;  %4217 = vmatpush1.msra.mxu1 %v9595_v0  ;;  %v9963_v17 = vld [vmem:[#allocation4 + $0x120] sm:$0xff]  ;;  %v9972_v0 = vld [vmem:[#allocation4 + $0x118] sm:$0xff] }
 0x63a   :  { %4147 = vmatprep.subr.mxu0 %v9598_v15  ;;  %4218 = vmatprep.subr.mxu1 %v9601_v1  ;;  %v9966_v1 = vld [vmem:[#allocation4 + $0x130] sm:$0xff]  ;;  %v9969_v15 = vld [vmem:[#allocation4 + $0x108] sm:$0xff] }
 0x63b   :  { %4148 = vmatpush1.msra.mxu0 %v9951_v49  ;;  %4219 = vmatpush1.msra.mxu1 %v9954_v38 }
 0x63c   :  { %4149 = vmatprep.subr.mxu0 %v9957_v19  ;;  %4220 = vmatprep.subr.mxu1 %v9960_v20 }
 0x63d   :  { %4150 = vmatpush1.msra.mxu0 %v9963_v17  ;;  %4221 = vmatpush1.msra.mxu1 %v9966_v1 }
 0x63e   :  { %4151 = vmatprep.subr.mxu0 %v9969_v15  ;;  %4222 = vmatprep.subr.mxu1 %v9972_v0 }
 0x63f   :  { %4152 = vmatpush1.msra.mxu0 %v9975_v32  ;;  %4223 = vmatpush1.msra.mxu1 %v9978_v45 }
 0x640   :  { %4153 = vmatprep.subr.mxu0 %v9981_v42  ;;  %4224 = vmatprep.subr.mxu1 %v9984_v23 }
 0x641   :  { %4154 = vmatpush1.msra.mxu0 %v9987_v56  ;;  %4225 = vmatpush1.msra.mxu1 %v9990_v60 }
 0x642   :  { %4155 = vmatprep.subr.mxu0 %v9993_v5  ;;  %4226 = vmatprep.subr.mxu1 %v9996_v63 }
 0x643   :  { %4156 = vmatpush1.msra.mxu0 %v9999_v57  ;;  %4227 = vmatpush1.msra.mxu1 %v10002_v41 }
 0x644   :  { %4157 = vmatprep.subr.mxu0 %v10005_v11  ;;  %4228 = vmatprep.subr.mxu1 %v10008_v62 }
 0x645   :  { %4158 = vmatpush1.msra.mxu0 %v10011_v61  ;;  %4229 = vmatpush1.msra.mxu1 %v10014_v30 }
 0x646   :  { %4159 = vmatprep.subr.mxu0 %v10017_v44  ;;  %4230 = vmatprep.subr.mxu1 %v10020_v53 }
 0x647   :  { %4160 = vmatpush1.msra.mxu0 %v10023_v8  ;;  %4231 = vmatpush1.msra.mxu1 %v10026_v6 }
 0x648   :  { %4161 = vmatprep.subr.mxu0 %v10029_v39  ;;  %4232 = vmatprep.subr.mxu1 %v10032_v9 }
 0x649   :  { %4162 = vmatpush1.msra.mxu0 %v10035_v40  ;;  %4233 = vmatpush1.msra.mxu1 %v10038_v36 }
 0x64a   :  { %4163 = vmatprep.subr.mxu0 %v10041_v25  ;;  %4234 = vmatprep.subr.mxu1 %v10044_v7 }
 0x64b   :  { %4164 = vmatpush1.msra.mxu0 %v10047_v37  ;;  %4235 = vmatpush1.msra.mxu1 %v10050_v48 }
 0x64c   :  { %4165 = vmatprep.subr.mxu0 %v10053_v12  ;;  %4236 = vmatprep.subr.mxu1 %v10056_v33  ;;  %v10071_v12 = vld [vmem:[#allocation4] sm:$0xff]  ;;  %v10074_v33 = vld [vmem:[#allocation4 + $0x10] sm:$0xff] }
 0x64d   :  { %4166 = vmatpush1.msra.mxu0 %v10059_v34  ;;  %4237 = vmatpush1.msra.mxu1 %v10062_v27  ;;  %12776 = vst [vmem:[#allocation43_spill] sm:$0xff] %v10071_v12  ;;  %12777 = vst [vmem:[#allocation44_spill] sm:$0xff] %v10074_v33  ;;  %v10079_v27 = vld [vmem:[#allocation2 + $0x1e8] sm:$0xff] }
 0x64e   :  { %4167 = vmatprep.subr.mxu0 %v10065_v28  ;;  %4238 = vmatprep.subr.mxu1 %v10068_v55  ;;  %12778 = vst [vmem:[#allocation45_spill] sm:$0xff] %v10079_v27  ;;  %v10082_v28 = vld [vmem:[#allocation2 + $0x1f8] sm:$0xff] }
 0x64f   :  { %4168 = vmatpush1.msra.mxu0 %v10071_v12  ;;  %4239 = vmatpush1.msra.mxu1 %v10074_v33  ;;  %12779 = vst [vmem:[#allocation46_spill] sm:$0xff] %v10082_v28 }
 0x650   :  { %4201 = vmatprep.mubr.f32.mxu0 %v11670_v10  ;;  %4272 = vmatprep.mubr.f32.mxu1 %v11670_v10 }
 0x651   :  { %4279 = vmatprep.subr.mxu0 %v10079_v27  ;;  %4350 = vmatprep.subr.mxu1 %v10082_v28 }
 0x68a   :  { %v3573_v55 = vpop.f32.mrf.mxu0  ;;  %v3644_v34 = vpop.f32.mrf.mxu1 }
 0x68c   :  { %v3575_v48 = vpop.f32.mrf.mxu0  ;;  %v3646_v37 = vpop.f32.mrf.mxu1 }
 0x6ab   :  { %v3715_v12 = vpop.f32.mrf.mxu0  ;;  %v3786_v36 = vpop.f32.mrf.mxu1 }
 0x6ac   :  { %v3716_v7 = vadd.f32 %v3715_v12, %v3573_v55  ;;  %v3787_v53 = vadd.f32 %v3786_v36, %v3644_v34  ;;  %v12788_v34 = vld [vmem:[#allocation18_spill] sm:$0xff] }
 0x6ad   :  { %v3717_v25 = vpop.f32.mrf.mxu0  ;;  %v3788_v6 = vpop.f32.mrf.mxu1 }
 0x6ae   :  { %v3791_v33 = vadd.f32 %v3716_v7, %v7407_v31  ;;  %v3718_v40 = vadd.f32 %v3717_v25, %v3575_v48  ;;  %v3789_v8 = vadd.f32 %v3788_v6, %v3646_v37  ;;  %v3793_v12 = vadd.f32 %v3787_v53, %v7424_v50  ;;  %v12781_v37 = vld [vmem:[#allocation11_spill] sm:$0xff] }
 0x6b0   :  { %v5455_v9 = vmul.f32 -1.442695, %v3791_v33  ;;  %v3792_v39 = vadd.f32 %v3718_v40, %v7411_v35  ;;  %v3794_v28 = vadd.f32 %v3789_v8, %v7418_v46  ;;  %v12784_v33 = vld [vmem:[#allocation14_spill] sm:$0xff] }
 0x6b2   :  { %5647 = vpow2.f32 %v5455_v9  ;;  %v5456_v27 = vmul.f32 -1.442695, %v3792_v39  ;;  %v5457_v44 = vmul.f32 -1.442695, %v3794_v28 }
 0x6b4   :  { %5649 = vpow2.f32 %v5456_v27  ;;  %v12789_v27 = vld [vmem:[#allocation19_spill] sm:$0xff] }
 0x6b5   :  { %5651 = vpow2.f32 %v5457_v44 }
 0x6bf   :  { %v5648_v30 = vpop.eup %5647 }
 0x6c0   :  { %v3798_v55 = vadd.f32 1.0, %v5648_v30 }
 0x6c1   :  { %v5650_v61 = vpop.eup %5649 }
 0x6c2   :  { %5653 = vrcp.f32 %v3798_v55  ;;  %v3804_v25 = vadd.f32 1.0, %v5650_v61  ;;  %v5652_v40 = vpop.eup %5651  ;;  %v12780_v61 = vld [vmem:[#allocation10_spill] sm:$0xff]  ;;  %v12790_v55 = vld [vmem:[#allocation20_spill] sm:$0xff] }
 0x6c3   :  { %5655 = vtanh.f32 %v3793_v12  ;;  %v3811_v48 = vadd.f32 1.0, %v5652_v40 }
 0x6c4   :  { %5657 = vrcp.f32 %v3804_v25  ;;  %v12791_v25 = vld [vmem:[#allocation21_spill] sm:$0xff] }
 0x6c5   :  { %5659 = vrcp.f32 %v3811_v48 }
 0x6cf   :  { %v5654_v9 = vpop.eup %5653 }
 0x6d0   :  { %v5656_v39 = vpop.eup %5655 }
 0x6d1   :  { %v5658_v7 = vpop.eup %5657  ;;  %v3815_v6 = vmul.f32 %v5656_v39, %v5654_v9  ;;  %v12792_v9 = vld [vmem:[#allocation22_spill] sm:$0xff] }
 0x6d2   :  { %v3814_v8 = vmul.f32 %v5658_v7, %v9655_v59  ;;  %v5660_v30 = vpop.eup %5659  ;;  %v3888_v59 = vpop.f32.mrf.mxu0 }
 0x6d4   :  { %v10090_v36 = vadd.f32 %v3815_v6, %v3814_v8  ;;  %v10123_v6 = vld [vmem:[#allocation2 + $0x120] sm:$0xff] }
 0x6d6   :  { %5661 = vtanh.f32 %v10090_v36 }
 0x6e3   :  { %v5662_v53 = vpop.eup %5661 }
 0x6e4   :  { %v3818_v44 = vmul.f32 %v5662_v53, %v5660_v30  ;;  %v10128_v53 = vld [vmem:[#allocation2 + $0x108] sm:$0xff] }
 0x6e6   :  { %5458 = vst [vmem:[%s10907_s4 + $0x14] sm:$0xf] %v3818_v44  ;;  %4202 = vmatmul.mubr.f32.vlgmr.msra.gmra.mxu0 %v3818_v44  ;;  %4273 = vmatmul.mubr.f32.vlgmr.msra.gmra.mxu1 %v3818_v44  ;;  %v10138_v44 = vld [vmem:[#allocation2 + $0xe8] sm:$0xff] }
 0x6e7   :  { %4280 = vmatpush1.msra.mxu0 %v9661_v54  ;;  %4351 = vmatpush1.msra.mxu1 %v9664_v29  ;;  %v10106_v54 = vpop.f32.mrf.mxu1  ;;  %v12782_v29 = vld [vmem:[#allocation12_spill] sm:$0xff] }
 0x6e8   :  { %4281 = vmatprep.subr.mxu0 %v9667_v43  ;;  %4352 = vmatprep.subr.mxu1 %v9670_v24  ;;  %v12783_v43 = vld [vmem:[#allocation13_spill] sm:$0xff]  ;;  %v3890_v24 = vpop.f32.mrf.mxu0 }
 0x6e9   :  { %4282 = vmatpush1.msra.mxu0 %v9673_v18  ;;  %4353 = vmatpush1.msra.mxu1 %v9676_v2  ;;  %v12785_v18 = vld [vmem:[#allocation15_spill] sm:$0xff]  ;;  %v12786_v2 = vld [vmem:[#allocation16_spill] sm:$0xff]  ;;  %v3961_v28 = vpop.f32.mrf.mxu1 }
 0x6ea   :  { %4283 = vmatprep.subr.mxu0 %v9679_v22  ;;  %4354 = vmatprep.subr.mxu1 %v9682_v21  ;;  %v12787_v22 = vld [vmem:[#allocation17_spill] sm:$0xff] }
 0x6eb   :  { %4284 = vmatpush1.msra.mxu0 %v12780_v61  ;;  %4355 = vmatpush1.msra.mxu1 %v12781_v37  ;;  %v10144_v61 = vld [vmem:[#allocation2 + $0xe0] sm:$0xff]  ;;  %v10147_v37 = vld [vmem:[#allocation2 + $0xf0] sm:$0xff] }
 0x6ec   :  { %4285 = vmatprep.subr.mxu0 %v12782_v29  ;;  %4356 = vmatprep.subr.mxu1 %v12783_v43  ;;  %v10153_v29 = vld [vmem:[#allocation2 + $0xd8] sm:$0xff] }
 0x6ed   :  { %4286 = vmatpush1.msra.mxu0 %v12784_v33  ;;  %4357 = vmatpush1.msra.mxu1 %v12785_v18  ;;  %v10159_v33 = vld [vmem:[#allocation2 + $0xd0] sm:$0xff]  ;;  %v10162_v18 = vld [vmem:[#allocation2 + $0xa8] sm:$0xff] }
 0x6ee   :  { %4287 = vmatprep.subr.mxu0 %v12786_v2  ;;  %4358 = vmatprep.subr.mxu1 %v12787_v22  ;;  %v10165_v2 = vld [vmem:[#allocation2 + $0xb8] sm:$0xff]  ;;  %v10168_v22 = vld [vmem:[#allocation2 + $0xa0] sm:$0xff] }
 0x6ef   :  { %v4030_v21 = vpop.f32.mrf.mxu0  ;;  %4288 = vmatpush1.msra.mxu0 %v12788_v34  ;;  %4359 = vmatpush1.msra.mxu1 %v12789_v27  ;;  %v4101_v7 = vpop.f32.mrf.mxu1  ;;  %v10174_v34 = vld [vmem:[#allocation2 + $0x88] sm:$0xff]  ;;  %v10177_v27 = vld [vmem:[#allocation2 + $0x98] sm:$0xff] }
 0x6f0   :  { %v4031_v12 = vadd.f32 %v4030_v21, %v3888_v59  ;;  %4289 = vmatprep.subr.mxu0 %v12790_v55  ;;  %4360 = vmatprep.subr.mxu1 %v12791_v25  ;;  %v10141_v59 = vld [vmem:[#allocation2 + $0xf8] sm:$0xff]  ;;  %v10171_v21 = vld [vmem:[#allocation2 + $0xb0] sm:$0xff]  ;;  %v10187_v25 = vld [vmem:[#allocation2 + $0x68] sm:$0xff] }
 0x6f1   :  { %v4032_v40 = vpop.f32.mrf.mxu0  ;;  %4290 = vmatpush1.msra.mxu0 %v12792_v9  ;;  %4361 = vmatpush1.msra.mxu1 %v9726_v47  ;;  %v10131_v47 = vld [vmem:[#allocation2 + $0x118] sm:$0xff]  ;;  %v10184_v55 = vld [vmem:[#allocation2 + $0x90] sm:$0xff]  ;;  %v4102_v9 = vadd.f32 %v4101_v7, %v10106_v54  ;;  %v10212_v7 = vld [vmem:[#allocation2 + $0x28] sm:$0xff] }
 0x6f2   :  { %v4106_v39 = vadd.f32 %v4031_v12, %v7485_v51  ;;  %v4033_v48 = vadd.f32 %v4032_v40, %v3890_v24  ;;  %4291 = vmatprep.subr.mxu0 %v9730_v26  ;;  %4362 = vmatprep.subr.mxu1 %v9733_v16  ;;  %v10134_v26 = vld [vmem:[#allocation2 + $0x100] sm:$0xff]  ;;  %v10190_v40 = vld [vmem:[#allocation2 + $0x78] sm:$0xff]  ;;  %v10209_v54 = vld [vmem:[#allocation2 + $0x50] sm:$0xff]  ;;  %12799 = vst [vmem:[#allocation53_spill] sm:$0xff] %v10212_v7 }
 0x6f3   :  { %4292 = vmatpush1.msra.mxu0 %v10123_v6  ;;  %4363 = vmatpush1.msra.mxu1 %v9738_v14  ;;  %v4103_v14 = vpop.f32.mrf.mxu1  ;;  %v10156_v24 = vld [vmem:[#allocation2 + $0xc0] sm:$0xff]  ;;  %12798 = vst [vmem:[#allocation52_spill] sm:$0xff] %v10209_v54 }
 0x6f4   :  { %v5460_v8 = vmul.f32 -1.442695, %v4106_v39  ;;  %v4107_v30 = vadd.f32 %v4033_v48, %v7502_v58  ;;  %4293 = vmatprep.subr.mxu0 %v10128_v53  ;;  %4364 = vmatprep.subr.mxu1 %v10131_v47  ;;  %v4104_v43 = vadd.f32 %v4103_v14, %v3961_v28  ;;  %v10181_v12 = vld [vmem:[#allocation2 + $0x80] sm:$0xff]  ;;  %v10197_v48 = vld [vmem:[#allocation2 + $0x70] sm:$0xff] }
 0x6f5   :  { %4294 = vmatpush1.msra.mxu0 %v10134_v26  ;;  %4365 = vmatpush1.msra.mxu1 %v9744_v3  ;;  %v10150_v3 = vld [vmem:[#allocation2 + $0xc8] sm:$0xff]  ;;  %v10194_v39 = vld [vmem:[#allocation2 + $0x60] sm:$0xff]  ;;  %12794 = vst [vmem:[#allocation48_spill] sm:$0xff] %v10197_v48 }
 0x6f6   :  { %5663 = vpow2.f32 %v5460_v8  ;;  %v5461_v16 = vmul.f32 -1.442695, %v4107_v30  ;;  %4295 = vmatprep.subr.mxu0 %v10138_v44  ;;  %4366 = vmatprep.subr.mxu1 %v10141_v59  ;;  %v4109_v28 = vadd.f32 %v4104_v43, %v7542_v13  ;;  %12793 = vst [vmem:[#allocation47_spill] sm:$0xff] %v10194_v39  ;;  %v10200_v8 = vld [vmem:[#allocation2 + $0x48] sm:$0xff]  ;;  %v10203_v30 = vld [vmem:[#allocation2 + $0x58] sm:$0xff]  ;;  %v10206_v14 = vld [vmem:[#allocation2 + $0x40] sm:$0xff] }
 0x6f7   :  { %4296 = vmatpush1.msra.mxu0 %v10144_v61  ;;  %4367 = vmatpush1.msra.mxu1 %v10147_v37  ;;  %12795 = vst [vmem:[#allocation49_spill] sm:$0xff] %v10200_v8  ;;  %12796 = vst [vmem:[#allocation50_spill] sm:$0xff] %v10203_v30  ;;  %v10215_v43 = vld [vmem:[#allocation2 + $0x38] sm:$0xff] }
 0x6f8   :  { %5665 = vpow2.f32 %v5461_v16  ;;  %4297 = vmatprep.subr.mxu0 %v10150_v3  ;;  %4368 = vmatprep.subr.mxu1 %v10153_v29  ;;  %v5462_v16 = vmul.f32 -1.442695, %v4109_v28  ;;  %12797 = vst [vmem:[#allocation51_spill] sm:$0xff] %v10206_v14  ;;  %12800 = vst [vmem:[#allocation54_spill] sm:$0xff] %v10215_v43  ;;  %v10219_v28 = vld [vmem:[#allocation2 + $0x20] sm:$0xff] }
 0x6f9   :  { %4298 = vmatpush1.msra.mxu0 %v10156_v24  ;;  %4369 = vmatpush1.msra.mxu1 %v10159_v33  ;;  %12801 = vst [vmem:[#allocation55_spill] sm:$0xff] %v10219_v28 }
 0x6fa   :  { %4299 = vmatprep.subr.mxu0 %v10162_v18  ;;  %4370 = vmatprep.subr.mxu1 %v10165_v2  ;;  %5667 = vpow2.f32 %v5462_v16  ;;  %v10245_v16 = vld [vmem:[#allocation4 + $0x3f8] sm:$0xff] }
 0x6fb   :  { %4300 = vmatpush1.msra.mxu0 %v10168_v22  ;;  %4371 = vmatpush1.msra.mxu1 %v10171_v21  ;;  %12808 = vst [vmem:[#allocation62_spill] sm:$0xff] %v10245_v16 }
 0x6fc   :  { %4301 = vmatprep.subr.mxu0 %v10174_v34  ;;  %4372 = vmatprep.subr.mxu1 %v10177_v27 }
 0x6fd   :  { %4302 = vmatpush1.msra.mxu0 %v10181_v12  ;;  %4373 = vmatpush1.msra.mxu1 %v10184_v55 }
 0x6fe   :  { %4303 = vmatprep.subr.mxu0 %v10187_v25  ;;  %4374 = vmatprep.subr.mxu1 %v10190_v40 }
 0x6ff   :  { %4304 = vmatpush1.msra.mxu0 %v10194_v39  ;;  %4375 = vmatpush1.msra.mxu1 %v10197_v48  ;;  %v10225_v48 = vld [vmem:[#allocation2 + $0x8] sm:$0xff] }
 0x700   :  { %4305 = vmatprep.subr.mxu0 %v10200_v8  ;;  %4376 = vmatprep.subr.mxu1 %v10203_v30  ;;  %v4108_v30 = vadd.f32 %v4102_v9, %v12610_v52  ;;  %12803 = vst [vmem:[#allocation57_spill] sm:$0xff] %v10225_v48  ;;  %v5464_v9 = vld [vmem:[%s10903_s0 + $0x18] sm:$0xf]  ;;  %v10327_v39 = vld [vmem:[#allocation4 + $0x308] sm:$0xff] }
 0x701   :  { %4306 = vmatpush1.msra.mxu0 %v10206_v14  ;;  %4377 = vmatpush1.msra.mxu1 %v10209_v54  ;;  %v10222_v14 = vld [vmem:[#allocation2 + $0x30] sm:$0xff]  ;;  %12834 = vst [vmem:[#allocation88_spill] sm:$0xff] %v10327_v39 }
 0x702   :  { %4307 = vmatprep.subr.mxu0 %v10212_v7  ;;  %4378 = vmatprep.subr.mxu1 %v10215_v43  ;;  %12802 = vst [vmem:[#allocation56_spill] sm:$0xff] %v10222_v14  ;;  %v10228_v7 = vld [vmem:[#allocation2 + $0x18] sm:$0xff] }
 0x703   :  { %v5664_v8 = vpop.eup %5663  ;;  %4308 = vmatpush1.msra.mxu0 %v10219_v28  ;;  %4379 = vmatpush1.msra.mxu1 %v10222_v14  ;;  %12804 = vst [vmem:[#allocation58_spill] sm:$0xff] %v10228_v7  ;;  %v10234_v28 = vld [vmem:[#allocation2] sm:$0xff]  ;;  %v10238_v14 = vld [vmem:[#allocation2 + $0x10] sm:$0xff] }
 0x704   :  { %v4113_v54 = vadd.f32 1.0, %v5664_v8  ;;  %4309 = vmatprep.subr.mxu0 %v10225_v48  ;;  %4380 = vmatprep.subr.mxu1 %v10228_v7  ;;  %12805 = vst [vmem:[#allocation59_spill] sm:$0xff] %v10234_v28  ;;  %12806 = vst [vmem:[#allocation60_spill] sm:$0xff] %v10238_v14  ;;  %v10242_v7 = vld [vmem:[#allocation4 + $0x3e8] sm:$0xff]  ;;  %v10320_v48 = vld [vmem:[#allocation4 + $0x320] sm:$0xff] }
 0x705   :  { %v5666_v43 = vpop.eup %5665  ;;  %4310 = vmatpush1.msra.mxu0 %v10234_v28  ;;  %4343 = vmatprep.mubr.f32.mxu0 %v11670_v10  ;;  %12807 = vst [vmem:[#allocation61_spill] sm:$0xff] %v10242_v7  ;;  %v10317_v28 = vld [vmem:[#allocation4 + $0x338] sm:$0xff]  ;;  %12832 = vst [vmem:[#allocation86_spill] sm:$0xff] %v10320_v48 }
 0x706   :  { %5669 = vrcp.f32 %v4113_v54  ;;  %v4119_v8 = vadd.f32 1.0, %v5666_v43  ;;  %4381 = vmatpush1.msra.mxu1 %v10238_v14  ;;  %4414 = vmatprep.mubr.f32.mxu1 %v11670_v10  ;;  %v10248_v54 = vld [vmem:[#allocation4 + $0x3e0] sm:$0xff]  ;;  %v10251_v43 = vld [vmem:[#allocation4 + $0x3f0] sm:$0xff] }
 0x707   :  { %5671 = vtanh.f32 %v4108_v30  ;;  %4344 = vmatmul.mubr.f32.vlgmr.msra.gmra.mxu0 %v5464_v9  ;;  %4415 = vmatmul.mubr.f32.vlgmr.msra.gmra.mxu1 %v5464_v9  ;;  %12809 = vst [vmem:[#allocation63_spill] sm:$0xff] %v10248_v54  ;;  %12810 = vst [vmem:[#allocation64_spill] sm:$0xff] %v10251_v43  ;;  %v10254_v30 = vld [vmem:[#allocation4 + $0x3c8] sm:$0xff]  ;;  %v10257_v9 = vld [vmem:[#allocation4 + $0x3d8] sm:$0xff] }
 0x708   :  { %5673 = vrcp.f32 %v4119_v8  ;;  %4452 = vmatprep.subr.mxu0 %v10242_v7  ;;  %4523 = vmatprep.subr.mxu1 %v10245_v16  ;;  %12811 = vst [vmem:[#allocation65_spill] sm:$0xff] %v10254_v30  ;;  %12812 = vst [vmem:[#allocation66_spill] sm:$0xff] %v10257_v9  ;;  %v10260_v8 = vld [vmem:[#allocation4 + $0x3c0] sm:$0xff]  ;;  %v10263_v16 = vld [vmem:[#allocation4 + $0x3d0] sm:$0xff] }
 0x709   :  { %4453 = vmatpush1.msra.mxu0 %v10248_v54  ;;  %4524 = vmatpush1.msra.mxu1 %v10251_v43  ;;  %12813 = vst [vmem:[#allocation67_spill] sm:$0xff] %v10260_v8  ;;  %12814 = vst [vmem:[#allocation68_spill] sm:$0xff] %v10263_v16  ;;  %v10266_v54 = vld [vmem:[#allocation4 + $0x3a8] sm:$0xff]  ;;  %v10269_v43 = vld [vmem:[#allocation4 + $0x3b8] sm:$0xff] }
 0x70a   :  { %4454 = vmatprep.subr.mxu0 %v10254_v30  ;;  %4525 = vmatprep.subr.mxu1 %v10257_v9  ;;  %12815 = vst [vmem:[#allocation69_spill] sm:$0xff] %v10266_v54  ;;  %12816 = vst [vmem:[#allocation70_spill] sm:$0xff] %v10269_v43  ;;  %v10272_v30 = vld [vmem:[#allocation4 + $0x3a0] sm:$0xff]  ;;  %v10275_v9 = vld [vmem:[#allocation4 + $0x3b0] sm:$0xff] }
 0x70b   :  { %4455 = vmatpush1.msra.mxu0 %v10260_v8  ;;  %4526 = vmatpush1.msra.mxu1 %v10263_v16  ;;  %12817 = vst [vmem:[#allocation71_spill] sm:$0xff] %v10272_v30  ;;  %12818 = vst [vmem:[#allocation72_spill] sm:$0xff] %v10275_v9  ;;  %v10278_v8 = vld [vmem:[#allocation4 + $0x388] sm:$0xff]  ;;  %v10281_v16 = vld [vmem:[#allocation4 + $0x398] sm:$0xff] }
 0x70c   :  { %4456 = vmatprep.subr.mxu0 %v10266_v54  ;;  %4527 = vmatprep.subr.mxu1 %v10269_v43  ;;  %12819 = vst [vmem:[#allocation73_spill] sm:$0xff] %v10278_v8  ;;  %12820 = vst [vmem:[#allocation74_spill] sm:$0xff] %v10281_v16  ;;  %v10284_v54 = vld [vmem:[#allocation4 + $0x380] sm:$0xff]  ;;  %v10287_v43 = vld [vmem:[#allocation4 + $0x390] sm:$0xff] }
 0x70d   :  { %4457 = vmatpush1.msra.mxu0 %v10272_v30  ;;  %4528 = vmatpush1.msra.mxu1 %v10275_v9  ;;  %12821 = vst [vmem:[#allocation82_spill] sm:$0xff] %v10284_v54  ;;  %12822 = vst [vmem:[#allocation75_spill] sm:$0xff] %v10287_v43  ;;  %v10290_v30 = vld [vmem:[#allocation4 + $0x368] sm:$0xff]  ;;  %v10293_v9 = vld [vmem:[#allocation4 + $0x378] sm:$0xff] }
 0x70e   :  { %4458 = vmatprep.subr.mxu0 %v10278_v8  ;;  %4529 = vmatprep.subr.mxu1 %v10281_v16  ;;  %12823 = vst [vmem:[#allocation76_spill] sm:$0xff] %v10290_v30  ;;  %12824 = vst [vmem:[#allocation77_spill] sm:$0xff] %v10293_v9  ;;  %v10296_v8 = vld [vmem:[#allocation4 + $0x360] sm:$0xff]  ;;  %v10299_v16 = vld [vmem:[#allocation4 + $0x370] sm:$0xff] }
 0x70f   :  { %4459 = vmatpush1.msra.mxu0 %v10284_v54  ;;  %4530 = vmatpush1.msra.mxu1 %v10287_v43  ;;  %12825 = vst [vmem:[#allocation78_spill] sm:$0xff] %v10296_v8  ;;  %12826 = vst [vmem:[#allocation79_spill] sm:$0xff] %v10299_v16  ;;  %v5668_v54 = vpop.eup %5667  ;;  %v10302_v7 = vld [vmem:[#allocation4 + $0x348] sm:$0xff]  ;;  %v10305_v43 = vld [vmem:[#allocation4 + $0x358] sm:$0xff] }
 0x710   :  { %4460 = vmatprep.subr.mxu0 %v10290_v30  ;;  %4531 = vmatprep.subr.mxu1 %v10293_v9  ;;  %12827 = vst [vmem:[#allocation80_spill] sm:$0xff] %v10302_v7  ;;  %12828 = vst [vmem:[#allocation81_spill] sm:$0xff] %v10305_v43  ;;  %v10308_v14 = vld [vmem:[#allocation4 + $0x340] sm:$0xff]  ;;  %v10311_v9 = vld [vmem:[#allocation4 + $0x350] sm:$0xff] }
 0x711   :  { %4461 = vmatpush1.msra.mxu0 %v10296_v8  ;;  %4532 = vmatpush1.msra.mxu1 %v10299_v16  ;;  %12829 = vst [vmem:[#allocation83_spill] sm:$0xff] %v10308_v14  ;;  %12830 = vst [vmem:[#allocation84_spill] sm:$0xff] %v10311_v9  ;;  %v10314_v16 = vld [vmem:[#allocation4 + $0x328] sm:$0xff] }
 0x712   :  { %4462 = vmatprep.subr.mxu0 %v10302_v7  ;;  %4533 = vmatprep.subr.mxu1 %v10305_v43  ;;  %12831 = vst [vmem:[#allocation85_spill] sm:$0xff] %v10314_v16  ;;  %v4126_v43 = vadd.f32 1.0, %v5668_v54  ;;  %v10333_v54 = vld [vmem:[#allocation4 + $0x300] sm:$0xff] }
 0x713   :  { %v5670_v30 = vpop.eup %5669  ;;  %4463 = vmatpush1.msra.mxu0 %v10308_v14  ;;  %4534 = vmatpush1.msra.mxu1 %v10311_v9  ;;  %v10323_v14 = vld [vmem:[#allocation4 + $0x330] sm:$0xff]  ;;  %12836 = vst [vmem:[#allocation90_spill] sm:$0xff] %v10333_v54 }
 0x714   :  { %v5672_v8 = vpop.eup %5671  ;;  %4464 = vmatprep.subr.mxu0 %v10314_v16  ;;  %4535 = vmatprep.subr.mxu1 %v10317_v28  ;;  %12833 = vst [vmem:[#allocation87_spill] sm:$0xff] %v10323_v14  ;;  %v10330_v16 = vld [vmem:[#allocation4 + $0x318] sm:$0xff]  ;;  %5675 = vrcp.f32 %v4126_v43  ;;  %v10363_v43 = vld [vmem:[#allocation4 + $0x2d0] sm:$0xff] }
 0x715   :  { %v5674_v7 = vpop.eup %5673  ;;  %4465 = vmatpush1.msra.mxu0 %v10320_v48  ;;  %4536 = vmatpush1.msra.mxu1 %v10323_v14  ;;  %v4130_v9 = vmul.f32 %v5672_v8, %v5670_v30  ;;  %12835 = vst [vmem:[#allocation89_spill] sm:$0xff] %v10330_v16  ;;  %v10336_v48 = vld [vmem:[#allocation4 + $0x310] sm:$0xff]  ;;  %v10339_v14 = vld [vmem:[#allocation4 + $0x2e8] sm:$0xff]  ;;  %v10347_v30 = vld [vmem:[#allocation4 + $0x2e0] sm:$0xff] }
 0x716   :  { %v4129_v52 = vmul.f32 %v5674_v7, %v9821_v4  ;;  %4466 = vmatprep.subr.mxu0 %v10327_v39  ;;  %4537 = vmatprep.subr.mxu1 %v10330_v16  ;;  %12837 = vst [vmem:[#allocation91_spill] sm:$0xff] %v10336_v48  ;;  %12838 = vst [vmem:[#allocation92_spill] sm:$0xff] %v10339_v14  ;;  %v10342_v4 = vld [vmem:[#allocation4 + $0x2f8] sm:$0xff]  ;;  %v10350_v8 = vld [vmem:[#allocation4 + $0x2f0] sm:$0xff] }
 0x717   :  { %4467 = vmatpush1.msra.mxu0 %v10333_v54  ;;  %4538 = vmatpush1.msra.mxu1 %v10336_v48  ;;  %12839 = vst [vmem:[#allocation93_spill] sm:$0xff] %v10342_v4  ;;  %12840 = vst [vmem:[#allocation94_spill] sm:$0xff] %v10347_v30  ;;  %v10353_v48 = vld [vmem:[#allocation4 + $0x2c8] sm:$0xff]  ;;  %v6517_v54 = vld [vmem:[#allocation4 + $0x1c0] sm:$0xff] }
 0x718   :  { %4468 = vmatprep.subr.mxu0 %v10339_v14  ;;  %4539 = vmatprep.subr.mxu1 %v10342_v4  ;;  %v10345_v7 = vadd.f32 %v4130_v9, %v4129_v52  ;;  %12841 = vst [vmem:[#allocation95_spill] sm:$0xff] %v10350_v8  ;;  %12842 = vst [vmem:[#allocation96_spill] sm:$0xff] %v10353_v48  ;;  %v10356_v14 = vld [vmem:[#allocation4 + $0x2d8] sm:$0xff]  ;;  %v10360_v52 = vld [vmem:[#allocation4 + $0x2c0] sm:$0xff] }
 0x719   :  { %4469 = vmatpush1.msra.mxu0 %v10347_v30  ;;  %4540 = vmatpush1.msra.mxu1 %v10350_v8  ;;  %12843 = vst [vmem:[#allocation97_spill] sm:$0xff] %v10356_v14  ;;  %12844 = vst [vmem:[#allocation98_spill] sm:$0xff] %v10360_v52  ;;  %v10366_v9 = vld [vmem:[#allocation4 + $0x2a8] sm:$0xff]  ;;  %v10369_v8 = vld [vmem:[#allocation4 + $0x2b8] sm:$0xff] }
 0x71a   :  { %4470 = vmatprep.subr.mxu0 %v10353_v48  ;;  %4541 = vmatprep.subr.mxu1 %v10356_v14  ;;  %5677 = vtanh.f32 %v10345_v7  ;;  %12845 = vst [vmem:[#allocation99_spill] sm:$0xff] %v10363_v43  ;;  %12846 = vst [vmem:[#allocation100_spill] sm:$0xff] %v10366_v9  ;;  %v10372_v48 = vld [vmem:[#allocation4 + $0x2a0] sm:$0xff]  ;;  %v10375_v14 = vld [vmem:[#allocation4 + $0x2b0] sm:$0xff] }
 0x71b   :  { %4471 = vmatpush1.msra.mxu0 %v10360_v52  ;;  %4542 = vmatpush1.msra.mxu1 %v10363_v43  ;;  %12847 = vst [vmem:[#allocation101_spill] sm:$0xff] %v10369_v8  ;;  %12848 = vst [vmem:[#allocation102_spill] sm:$0xff] %v10372_v48  ;;  %v10378_v52 = vld [vmem:[#allocation4 + $0x288] sm:$0xff]  ;;  %v10381_v43 = vld [vmem:[#allocation4 + $0x298] sm:$0xff] }
 0x71c   :  { %4472 = vmatprep.subr.mxu0 %v10366_v9  ;;  %4543 = vmatprep.subr.mxu1 %v10369_v8  ;;  %12849 = vst [vmem:[#allocation103_spill] sm:$0xff] %v10375_v14  ;;  %12850 = vst [vmem:[#allocation104_spill] sm:$0xff] %v10378_v52  ;;  %v10384_v9 = vld [vmem:[#allocation4 + $0x280] sm:$0xff]  ;;  %v10387_v8 = vld [vmem:[#allocation4 + $0x290] sm:$0xff] }
 0x71d   :  { %4473 = vmatpush1.msra.mxu0 %v10372_v48  ;;  %4544 = vmatpush1.msra.mxu1 %v10375_v14  ;;  %12851 = vst [vmem:[#allocation105_spill] sm:$0xff] %v10381_v43  ;;  %12852 = vst [vmem:[#allocation106_spill] sm:$0xff] %v10384_v9  ;;  %v10390_v48 = vld [vmem:[#allocation4 + $0x268] sm:$0xff]  ;;  %v10393_v14 = vld [vmem:[#allocation4 + $0x278] sm:$0xff] }
 0x71e   :  { %4474 = vmatprep.subr.mxu0 %v10378_v52  ;;  %4545 = vmatprep.subr.mxu1 %v10381_v43  ;;  %12853 = vst [vmem:[#allocation107_spill] sm:$0xff] %v10387_v8  ;;  %12854 = vst [vmem:[#allocation108_spill] sm:$0xff] %v10390_v48  ;;  %v10396_v52 = vld [vmem:[#allocation4 + $0x260] sm:$0xff]  ;;  %v10399_v43 = vld [vmem:[#allocation4 + $0x270] sm:$0xff] }
 0x71f   :  { %4475 = vmatpush1.msra.mxu0 %v10384_v9  ;;  %4546 = vmatpush1.msra.mxu1 %v10387_v8  ;;  %12855 = vst [vmem:[#allocation109_spill] sm:$0xff] %v10393_v14  ;;  %12856 = vst [vmem:[#allocation110_spill] sm:$0xff] %v10396_v52  ;;  %v10402_v9 = vld [vmem:[#allocation4 + $0x248] sm:$0xff]  ;;  %v10405_v8 = vld [vmem:[#allocation4 + $0x258] sm:$0xff] }
 0x720   :  { %4476 = vmatprep.subr.mxu0 %v10390_v48  ;;  %4547 = vmatprep.subr.mxu1 %v10393_v14  ;;  %12857 = vst [vmem:[#allocation111_spill] sm:$0xff] %v10399_v43  ;;  %12858 = vst [vmem:[#allocation112_spill] sm:$0xff] %v10402_v9  ;;  %v10408_v48 = vld [vmem:[#allocation4 + $0x240] sm:$0xff]  ;;  %v10411_v14 = vld [vmem:[#allocation4 + $0x250] sm:$0xff] }
 0x721   :  { %4477 = vmatpush1.msra.mxu0 %v10396_v52  ;;  %4548 = vmatpush1.msra.mxu1 %v10399_v43  ;;  %12859 = vst [vmem:[#allocation113_spill] sm:$0xff] %v10405_v8  ;;  %12860 = vst [vmem:[#allocation114_spill] sm:$0xff] %v10408_v48  ;;  %v10414_v52 = vld [vmem:[#allocation4 + $0x228] sm:$0xff]  ;;  %v10417_v43 = vld [vmem:[#allocation4 + $0x238] sm:$0xff] }
 0x722   :  { %4478 = vmatprep.subr.mxu0 %v10402_v9  ;;  %4549 = vmatprep.subr.mxu1 %v10405_v8  ;;  %12861 = vst [vmem:[#allocation115_spill] sm:$0xff] %v10411_v14  ;;  %12862 = vst [vmem:[#allocation116_spill] sm:$0xff] %v10414_v52  ;;  %v10420_v9 = vld [vmem:[#allocation4 + $0x220] sm:$0xff]  ;;  %v10423_v8 = vld [vmem:[#allocation4 + $0x230] sm:$0xff] }
 0x723   :  { %4479 = vmatpush1.msra.mxu0 %v10408_v48  ;;  %4550 = vmatpush1.msra.mxu1 %v10411_v14  ;;  %12863 = vst [vmem:[#allocation117_spill] sm:$0xff] %v10417_v43  ;;  %12864 = vst [vmem:[#allocation118_spill] sm:$0xff] %v10420_v9  ;;  %v5676_v48 = vpop.eup %5675  ;;  %v10426_v30 = vld [vmem:[#allocation4 + $0x208] sm:$0xff]  ;;  %v10429_v14 = vld [vmem:[#allocation4 + $0x218] sm:$0xff] }
 0x724   :  { %4480 = vmatprep.subr.mxu0 %v10414_v52  ;;  %4551 = vmatprep.subr.mxu1 %v10417_v43  ;;  %12865 = vst [vmem:[#allocation119_spill] sm:$0xff] %v10423_v8  ;;  %12866 = vst [vmem:[#allocation120_spill] sm:$0xff] %v10426_v30  ;;  %v10432_v4 = vld [vmem:[#allocation4 + $0x200] sm:$0xff]  ;;  %v10435_v43 = vld [vmem:[#allocation4 + $0x210] sm:$0xff] }
 0x725   :  { %4481 = vmatpush1.msra.mxu0 %v10420_v9  ;;  %4552 = vmatpush1.msra.mxu1 %v10423_v8  ;;  %12867 = vst [vmem:[#allocation121_spill] sm:$0xff] %v10429_v14  ;;  %12868 = vst [vmem:[#allocation122_spill] sm:$0xff] %v10432_v4  ;;  %v10440_v9 = vld [vmem:[#allocation2 + $0x3e8] sm:$0xff]  ;;  %v6518_v16 = vld [vmem:[#allocation4 + $0x1d0] sm:$0xff] }
 0x726   :  { %4482 = vmatprep.subr.mxu0 %v10426_v30  ;;  %4553 = vmatprep.subr.mxu1 %v10429_v14  ;;  %12869 = vst [vmem:[#allocation123_spill] sm:$0xff] %v10435_v43  ;;  %12870 = vst [vmem:[#allocation124_spill] sm:$0xff] %v10440_v9  ;;  %v10443_v30 = vld [vmem:[#allocation2 + $0x3f8] sm:$0xff]  ;;  %v6515_v14 = vld [vmem:[#allocation4 + $0x1c8] sm:$0xff] }
 0x727   :  { %v5678_v52 = vpop.eup %5677  ;;  %4483 = vmatpush1.msra.mxu0 %v10432_v4  ;;  %4554 = vmatpush1.msra.mxu1 %v10435_v43  ;;  %12871 = vst [vmem:[#allocation125_spill] sm:$0xff] %v10443_v30  ;;  %v10449_v43 = vld [vmem:[#allocation2 + $0x3e0] sm:$0xff]  ;;  %v10452_v4 = vld [vmem:[#allocation2 + $0x3f0] sm:$0xff]  ;;  %v6520_v39 = vld [vmem:[#allocation4 + $0x1b8] sm:$0xff] }
 0x728   :  { %4516 = vmatprep.mubr.f32.mxu0 %v11670_v10  ;;  %4587 = vmatprep.mubr.f32.mxu1 %v11670_v10  ;;  %v4133_v8 = vmul.f32 %v5678_v52, %v5676_v48  ;;  %12872 = vst [vmem:[#allocation126_spill] sm:$0xff] %v10449_v43  ;;  %12873 = vst [vmem:[#allocation127_spill] sm:$0xff] %v10452_v4  ;;  %v10455_v48 = vld [vmem:[#allocation2 + $0x3c8] sm:$0xff]  ;;  %v10458_v52 = vld [vmem:[#allocation2 + $0x3d8] sm:$0xff] }
 0x729   :  { %4594 = vmatprep.subr.mxu0 %v10440_v9  ;;  %4665 = vmatprep.subr.mxu1 %v10443_v30  ;;  %12874 = vst [vmem:[#allocation128_spill] sm:$0xff] %v10455_v48  ;;  %12875 = vst [vmem:[#allocation129_spill] sm:$0xff] %v10458_v52  ;;  %v10461_v30 = vld [vmem:[#allocation2 + $0x3c0] sm:$0xff]  ;;  %v6514_v9 = vld [vmem:[#allocation4 + $0x1f0] sm:$0xff] }
 0x72a   :  { %5463 = vst [vmem:[%s10908_s5 + $0x8] sm:$0xf] %v4133_v8  ;;  %4517 = vmatmul.mubr.f32.vlgmr.msra.gmra.mxu0 %v4133_v8  ;;  %4588 = vmatmul.mubr.f32.vlgmr.msra.gmra.mxu1 %v4133_v8  ;;  %12876 = vst [vmem:[#allocation130_spill] sm:$0xff] %v10461_v30  ;;  %v10464_v8 = vld [vmem:[#allocation2 + $0x3d0] sm:$0xff] }
 0x72b   :  { %4595 = vmatpush1.msra.mxu0 %v10449_v43  ;;  %4666 = vmatpush1.msra.mxu1 %v10452_v4  ;;  %12877 = vst [vmem:[#allocation131_spill] sm:$0xff] %v10464_v8  ;;  %v10467_v43 = vld [vmem:[#allocation2 + $0x3a8] sm:$0xff]  ;;  %v10470_v4 = vld [vmem:[#allocation2 + $0x3b8] sm:$0xff] }
 0x72c   :  { %4596 = vmatprep.subr.mxu0 %v10455_v48  ;;  %4667 = vmatprep.subr.mxu1 %v10458_v52  ;;  %12878 = vst [vmem:[#allocation132_spill] sm:$0xff] %v10467_v43  ;;  %12879 = vst [vmem:[#allocation133_spill] sm:$0xff] %v10470_v4  ;;  %v10473_v48 = vld [vmem:[#allocation2 + $0x3a0] sm:$0xff]  ;;  %v10476_v52 = vld [vmem:[#allocation2 + $0x3b0] sm:$0xff] }
 0x72d   :  { %4597 = vmatpush1.msra.mxu0 %v10461_v30  ;;  %4668 = vmatpush1.msra.mxu1 %v10464_v8  ;;  %12880 = vst [vmem:[#allocation134_spill] sm:$0xff] %v10473_v48  ;;  %12881 = vst [vmem:[#allocation135_spill] sm:$0xff] %v10476_v52  ;;  %v10479_v30 = vld [vmem:[#allocation2 + $0x388] sm:$0xff]  ;;  %v10482_v8 = vld [vmem:[#allocation2 + $0x398] sm:$0xff] }
 0x72e   :  { %4598 = vmatprep.subr.mxu0 %v10467_v43  ;;  %4669 = vmatprep.subr.mxu1 %v10470_v4  ;;  %12882 = vst [vmem:[#allocation136_spill] sm:$0xff] %v10479_v30  ;;  %12883 = vst [vmem:[#allocation137_spill] sm:$0xff] %v10482_v8  ;;  %v10485_v43 = vld [vmem:[#allocation2 + $0x380] sm:$0xff]  ;;  %v10488_v4 = vld [vmem:[#allocation2 + $0x390] sm:$0xff] }
 0x72f   :  { %4599 = vmatpush1.msra.mxu0 %v10473_v48  ;;  %4670 = vmatpush1.msra.mxu1 %v10476_v52  ;;  %12884 = vst [vmem:[#allocation138_spill] sm:$0xff] %v10485_v43  ;;  %12885 = vst [vmem:[#allocation139_spill] sm:$0xff] %v10488_v4  ;;  %v10491_v48 = vld [vmem:[#allocation2 + $0x368] sm:$0xff]  ;;  %v10494_v52 = vld [vmem:[#allocation2 + $0x378] sm:$0xff] }
 0x730   :  { %4600 = vmatprep.subr.mxu0 %v10479_v30  ;;  %4671 = vmatprep.subr.mxu1 %v10482_v8  ;;  %12886 = vst [vmem:[#allocation140_spill] sm:$0xff] %v10491_v48  ;;  %12887 = vst [vmem:[#allocation141_spill] sm:$0xff] %v10494_v52  ;;  %v10497_v30 = vld [vmem:[#allocation2 + $0x360] sm:$0xff]  ;;  %v10500_v8 = vld [vmem:[#allocation2 + $0x370] sm:$0xff] }
 0x731   :  { %4601 = vmatpush1.msra.mxu0 %v10485_v43  ;;  %4672 = vmatpush1.msra.mxu1 %v10488_v4  ;;  %12888 = vst [vmem:[#allocation142_spill] sm:$0xff] %v10497_v30  ;;  %12889 = vst [vmem:[#allocation143_spill] sm:$0xff] %v10500_v8  ;;  %v10503_v43 = vld [vmem:[#allocation2 + $0x348] sm:$0xff]  ;;  %v10506_v4 = vld [vmem:[#allocation2 + $0x358] sm:$0xff] }
 0x732   :  { %4602 = vmatprep.subr.mxu0 %v10491_v48  ;;  %4673 = vmatprep.subr.mxu1 %v10494_v52  ;;  %12890 = vst [vmem:[#allocation144_spill] sm:$0xff] %v10503_v43  ;;  %12891 = vst [vmem:[#allocation145_spill] sm:$0xff] %v10506_v4  ;;  %v10509_v48 = vld [vmem:[#allocation2 + $0x340] sm:$0xff]  ;;  %v10512_v52 = vld [vmem:[#allocation2 + $0x350] sm:$0xff] }
 0x733   :  { %4603 = vmatpush1.msra.mxu0 %v10497_v30  ;;  %4674 = vmatpush1.msra.mxu1 %v10500_v8  ;;  %12892 = vst [vmem:[#allocation146_spill] sm:$0xff] %v10509_v48  ;;  %12893 = vst [vmem:[#allocation147_spill] sm:$0xff] %v10512_v52  ;;  %v10515_v30 = vld [vmem:[#allocation2 + $0x328] sm:$0xff]  ;;  %v10518_v8 = vld [vmem:[#allocation2 + $0x338] sm:$0xff] }
 0x734   :  { %4604 = vmatprep.subr.mxu0 %v10503_v43  ;;  %4675 = vmatprep.subr.mxu1 %v10506_v4  ;;  %12894 = vst [vmem:[#allocation148_spill] sm:$0xff] %v10515_v30  ;;  %12895 = vst [vmem:[#allocation149_spill] sm:$0xff] %v10518_v8  ;;  %v10521_v43 = vld [vmem:[#allocation2 + $0x320] sm:$0xff]  ;;  %v10524_v4 = vld [vmem:[#allocation2 + $0x330] sm:$0xff] }
 0x735   :  { %4605 = vmatpush1.msra.mxu0 %v10509_v48  ;;  %4676 = vmatpush1.msra.mxu1 %v10512_v52  ;;  %12896 = vst [vmem:[#allocation150_spill] sm:$0xff] %v10521_v43  ;;  %12897 = vst [vmem:[#allocation151_spill] sm:$0xff] %v10524_v4  ;;  %v10527_v48 = vld [vmem:[#allocation2 + $0x308] sm:$0xff]  ;;  %v10530_v52 = vld [vmem:[#allocation2 + $0x318] sm:$0xff] }
 0x736   :  { %4606 = vmatprep.subr.mxu0 %v10515_v30  ;;  %4677 = vmatprep.subr.mxu1 %v10518_v8  ;;  %12898 = vst [vmem:[#allocation152_spill] sm:$0xff] %v10527_v48  ;;  %12899 = vst [vmem:[#allocation153_spill] sm:$0xff] %v10530_v52  ;;  %v10533_v30 = vld [vmem:[#allocation2 + $0x300] sm:$0xff]  ;;  %v10536_v8 = vld [vmem:[#allocation2 + $0x310] sm:$0xff] }
 0x737   :  { %4607 = vmatpush1.msra.mxu0 %v10521_v43  ;;  %4678 = vmatpush1.msra.mxu1 %v10524_v4  ;;  %12900 = vst [vmem:[#allocation154_spill] sm:$0xff] %v10533_v30  ;;  %12901 = vst [vmem:[#allocation155_spill] sm:$0xff] %v10536_v8  ;;  %v10539_v43 = vld [vmem:[#allocation2 + $0x2e8] sm:$0xff]  ;;  %v10542_v4 = vld [vmem:[#allocation2 + $0x2f8] sm:$0xff] }
 0x738   :  { %4608 = vmatprep.subr.mxu0 %v10527_v48  ;;  %4679 = vmatprep.subr.mxu1 %v10530_v52  ;;  %12902 = vst [vmem:[#allocation156_spill] sm:$0xff] %v10539_v43  ;;  %12903 = vst [vmem:[#allocation157_spill] sm:$0xff] %v10542_v4  ;;  %v10545_v48 = vld [vmem:[#allocation2 + $0x2e0] sm:$0xff]  ;;  %v10548_v52 = vld [vmem:[#allocation2 + $0x2f0] sm:$0xff] }
 0x739   :  { %4609 = vmatpush1.msra.mxu0 %v10533_v30  ;;  %4680 = vmatpush1.msra.mxu1 %v10536_v8  ;;  %12904 = vst [vmem:[#allocation158_spill] sm:$0xff] %v10545_v48  ;;  %12905 = vst [vmem:[#allocation159_spill] sm:$0xff] %v10548_v52  ;;  %v10551_v30 = vld [vmem:[#allocation2 + $0x2c8] sm:$0xff]  ;;  %v10554_v8 = vld [vmem:[#allocation2 + $0x2d8] sm:$0xff] }
 0x73a   :  { %4610 = vmatprep.subr.mxu0 %v10539_v43  ;;  %4681 = vmatprep.subr.mxu1 %v10542_v4  ;;  %12906 = vst [vmem:[#allocation160_spill] sm:$0xff] %v10551_v30  ;;  %12907 = vst [vmem:[#allocation161_spill] sm:$0xff] %v10554_v8  ;;  %v10557_v43 = vld [vmem:[#allocation2 + $0x2c0] sm:$0xff]  ;;  %v10560_v4 = vld [vmem:[#allocation2 + $0x2d0] sm:$0xff] }
 0x73b   :  { %4611 = vmatpush1.msra.mxu0 %v10545_v48  ;;  %4682 = vmatpush1.msra.mxu1 %v10548_v52  ;;  %12908 = vst [vmem:[#allocation162_spill] sm:$0xff] %v10557_v43  ;;  %12909 = vst [vmem:[#allocation163_spill] sm:$0xff] %v10560_v4  ;;  %v10563_v48 = vld [vmem:[#allocation2 + $0x2a8] sm:$0xff]  ;;  %v10566_v52 = vld [vmem:[#allocation2 + $0x2b8] sm:$0xff] }
 0x73c   :  { %4612 = vmatprep.subr.mxu0 %v10551_v30  ;;  %4683 = vmatprep.subr.mxu1 %v10554_v8  ;;  %12910 = vst [vmem:[#allocation164_spill] sm:$0xff] %v10563_v48  ;;  %12911 = vst [vmem:[#allocation165_spill] sm:$0xff] %v10566_v52  ;;  %v10569_v30 = vld [vmem:[#allocation2 + $0x2a0] sm:$0xff]  ;;  %v10572_v8 = vld [vmem:[#allocation2 + $0x2b0] sm:$0xff] }
 0x73d   :  { %4613 = vmatpush1.msra.mxu0 %v10557_v43  ;;  %4684 = vmatpush1.msra.mxu1 %v10560_v4  ;;  %12912 = vst [vmem:[#allocation166_spill] sm:$0xff] %v10569_v30  ;;  %12913 = vst [vmem:[#allocation167_spill] sm:$0xff] %v10572_v8  ;;  %v10575_v43 = vld [vmem:[#allocation2 + $0x288] sm:$0xff]  ;;  %v10578_v4 = vld [vmem:[#allocation2 + $0x298] sm:$0xff] }
 0x73e   :  { %4614 = vmatprep.subr.mxu0 %v10563_v48  ;;  %4685 = vmatprep.subr.mxu1 %v10566_v52  ;;  %12914 = vst [vmem:[#allocation168_spill] sm:$0xff] %v10575_v43  ;;  %12915 = vst [vmem:[#allocation169_spill] sm:$0xff] %v10578_v4  ;;  %v10581_v48 = vld [vmem:[#allocation2 + $0x280] sm:$0xff]  ;;  %v10584_v52 = vld [vmem:[#allocation2 + $0x290] sm:$0xff] }
 0x73f   :  { %4615 = vmatpush1.msra.mxu0 %v10569_v30  ;;  %4686 = vmatpush1.msra.mxu1 %v10572_v8  ;;  %12916 = vst [vmem:[#allocation170_spill] sm:$0xff] %v10581_v48  ;;  %12917 = vst [vmem:[#allocation171_spill] sm:$0xff] %v10584_v52  ;;  %v10587_v30 = vld [vmem:[#allocation2 + $0x268] sm:$0xff]  ;;  %v10590_v8 = vld [vmem:[#allocation2 + $0x278] sm:$0xff] }
 0x740   :  { %4616 = vmatprep.subr.mxu0 %v10575_v43  ;;  %4687 = vmatprep.subr.mxu1 %v10578_v4  ;;  %12918 = vst [vmem:[#allocation172_spill] sm:$0xff] %v10587_v30  ;;  %12919 = vst [vmem:[#allocation173_spill] sm:$0xff] %v10590_v8  ;;  %v10593_v43 = vld [vmem:[#allocation2 + $0x260] sm:$0xff]  ;;  %v10596_v4 = vld [vmem:[#allocation2 + $0x270] sm:$0xff] }
 0x741   :  { %4617 = vmatpush1.msra.mxu0 %v10581_v48  ;;  %4688 = vmatpush1.msra.mxu1 %v10584_v52  ;;  %12920 = vst [vmem:[#allocation174_spill] sm:$0xff] %v10593_v43  ;;  %12921 = vst [vmem:[#allocation175_spill] sm:$0xff] %v10596_v4  ;;  %v10599_v48 = vld [vmem:[#allocation2 + $0x248] sm:$0xff]  ;;  %v10602_v52 = vld [vmem:[#allocation2 + $0x258] sm:$0xff] }
 0x742   :  { %4618 = vmatprep.subr.mxu0 %v10587_v30  ;;  %4689 = vmatprep.subr.mxu1 %v10590_v8  ;;  %12922 = vst [vmem:[#allocation176_spill] sm:$0xff] %v10599_v48  ;;  %12923 = vst [vmem:[#allocation177_spill] sm:$0xff] %v10602_v52  ;;  %v10605_v30 = vld [vmem:[#allocation2 + $0x240] sm:$0xff]  ;;  %v10608_v8 = vld [vmem:[#allocation2 + $0x250] sm:$0xff] }
 0x743   :  { %4619 = vmatpush1.msra.mxu0 %v10593_v43  ;;  %4690 = vmatpush1.msra.mxu1 %v10596_v4  ;;  %12924 = vst [vmem:[#allocation178_spill] sm:$0xff] %v10605_v30  ;;  %12925 = vst [vmem:[#allocation179_spill] sm:$0xff] %v10608_v8  ;;  %v10611_v43 = vld [vmem:[#allocation2 + $0x228] sm:$0xff]  ;;  %v10614_v4 = vld [vmem:[#allocation2 + $0x238] sm:$0xff] }
 0x744   :  { %4620 = vmatprep.subr.mxu0 %v10599_v48  ;;  %4691 = vmatprep.subr.mxu1 %v10602_v52  ;;  %12926 = vst [vmem:[#allocation180_spill] sm:$0xff] %v10611_v43  ;;  %12927 = vst [vmem:[#allocation181_spill] sm:$0xff] %v10614_v4  ;;  %v10617_v48 = vld [vmem:[#allocation2 + $0x220] sm:$0xff]  ;;  %v10620_v52 = vld [vmem:[#allocation2 + $0x230] sm:$0xff] }
 0x745   :  { %4621 = vmatpush1.msra.mxu0 %v10605_v30  ;;  %4692 = vmatpush1.msra.mxu1 %v10608_v8  ;;  %12928 = vst [vmem:[#allocation182_spill] sm:$0xff] %v10617_v48  ;;  %12929 = vst [vmem:[#allocation183_spill] sm:$0xff] %v10620_v52  ;;  %v10623_v30 = vld [vmem:[#allocation2 + $0x208] sm:$0xff]  ;;  %v10626_v8 = vld [vmem:[#allocation2 + $0x218] sm:$0xff] }
 0x746   :  { %4622 = vmatprep.subr.mxu0 %v10611_v43  ;;  %4693 = vmatprep.subr.mxu1 %v10614_v4  ;;  %12930 = vst [vmem:[#allocation184_spill] sm:$0xff] %v10623_v30  ;;  %12931 = vst [vmem:[#allocation185_spill] sm:$0xff] %v10626_v8  ;;  %v5469_v4 = vld [vmem:[%s10903_s0 + $0x4] sm:$0xf] }
 0x747   :  { %4623 = vmatpush1.msra.mxu0 %v10617_v48  ;;  %4694 = vmatpush1.msra.mxu1 %v10620_v52  ;;  %v10632_v43 = vld [vmem:[#allocation2 + $0x200] sm:$0xff]  ;;  %v10636_v48 = vld [vmem:[#allocation2 + $0x210] sm:$0xff] }
 0x748   :  { %4624 = vmatprep.subr.mxu0 %v10623_v30  ;;  %4695 = vmatprep.subr.mxu1 %v10626_v8  ;;  %12932 = vst [vmem:[#allocation186_spill] sm:$0xff] %v10632_v43  ;;  %12933 = vst [vmem:[#allocation187_spill] sm:$0xff] %v10636_v48  ;;  %v6511_v30 = vld [vmem:[#allocation4 + $0x1e8] sm:$0xff]  ;;  %v6512_v8 = vld [vmem:[#allocation4 + $0x1f8] sm:$0xff] }
 0x749   :  { %4625 = vmatpush1.msra.mxu0 %v10632_v43  ;;  %4658 = vmatprep.mubr.f32.mxu0 %v11670_v10  ;;  %v6513_v52 = vld [vmem:[#allocation4 + $0x1e0] sm:$0xff]  ;;  %v6516_v43 = vld [vmem:[#allocation4 + $0x1d8] sm:$0xff] }
 0x74a   :  { %4696 = vmatpush1.msra.mxu1 %v10636_v48  ;;  %4729 = vmatprep.mubr.f32.mxu1 %v11670_v10  ;;  %v6519_v48 = vld [vmem:[#allocation4 + $0x1a8] sm:$0xff] }
 0x74b   :  { %4659 = vmatmul.mubr.f32.vlgmr.msra.gmra.mxu0 %v5469_v4  ;;  %4730 = vmatmul.mubr.f32.vlgmr.msra.gmra.mxu1 %v5469_v4  ;;  %v6521_v4 = vld [vmem:[#allocation4 + $0x1a0] sm:$0xff] }
 0x74c   :  { %4767 = vmatprep.subr.mxu0 %v6511_v30  ;;  %4838 = vmatprep.subr.mxu1 %v6512_v8  ;;  %v6522_v30 = vld [vmem:[#allocation4 + $0x1b0] sm:$0xff]  ;;  %v6523_v8 = vld [vmem:[#allocation4 + $0x188] sm:$0xff] }
 0x74d   :  { %4768 = vmatpush1.msra.mxu0 %v6513_v52  ;;  %4839 = vmatpush1.msra.mxu1 %v6514_v9  ;;  %v6524_v52 = vld [vmem:[#allocation4 + $0x198] sm:$0xff]  ;;  %v6525_v9 = vld [vmem:[#allocation4 + $0x180] sm:$0xff] }
 0x74e   :  { %4769 = vmatprep.subr.mxu0 %v6515_v14  ;;  %4840 = vmatprep.subr.mxu1 %v6516_v43  ;;  %v6526_v14 = vld [vmem:[#allocation4 + $0x190] sm:$0xff]  ;;  %v6527_v43 = vld [vmem:[#allocation4 + $0x168] sm:$0xff] }
 0x74f   :  { %4770 = vmatpush1.msra.mxu0 %v6517_v54  ;;  %4841 = vmatpush1.msra.mxu1 %v6518_v16  ;;  %v6528_v54 = vld [vmem:[#allocation4 + $0x178] sm:$0xff]  ;;  %v6529_v16 = vld [vmem:[#allocation4 + $0x160] sm:$0xff] }
 0x750   :  { %4771 = vmatprep.subr.mxu0 %v6519_v48  ;;  %4842 = vmatprep.subr.mxu1 %v6520_v39  ;;  %v6530_v48 = vld [vmem:[#allocation4 + $0x170] sm:$0xff]  ;;  %v6531_v39 = vld [vmem:[#allocation4 + $0x148] sm:$0xff] }
 0x751   :  { %4772 = vmatpush1.msra.mxu0 %v6521_v4  ;;  %4843 = vmatpush1.msra.mxu1 %v6522_v30  ;;  %v6532_v4 = vld [vmem:[#allocation4 + $0x158] sm:$0xff] }
 0x752   :  { %4773 = vmatprep.subr.mxu0 %v6523_v8  ;;  %4844 = vmatprep.subr.mxu1 %v6524_v52  ;;  %v12954_v30 = vld [vmem:[#allocation43_spill] sm:$0xff]  ;;  %v12955_v8 = vld [vmem:[#allocation44_spill] sm:$0xff]  ;;  %v12956_v52 = vld [vmem:[#allocation45_spill] sm:$0xff] }
 0x753   :  { %4774 = vmatpush1.msra.mxu0 %v6525_v9  ;;  %4845 = vmatpush1.msra.mxu1 %v6526_v14  ;;  %v12957_v9 = vld [vmem:[#allocation46_spill] sm:$0xff] }
 0x754   :  { %4775 = vmatprep.subr.mxu0 %v6527_v43  ;;  %4846 = vmatprep.subr.mxu1 %v6528_v54 }
 0x755   :  { %4776 = vmatpush1.msra.mxu0 %v6529_v16  ;;  %4847 = vmatpush1.msra.mxu1 %v6530_v48 }
 0x756   :  { %4777 = vmatprep.subr.mxu0 %v6531_v39  ;;  %4848 = vmatprep.subr.mxu1 %v6532_v4 }
 0x757   :  { %4778 = vmatpush1.msra.mxu0 %v9951_v49  ;;  %4849 = vmatpush1.msra.mxu1 %v9954_v38  ;;  %v12934_v49 = vld [vmem:[#allocation23_spill] sm:$0xff]  ;;  %v12935_v38 = vld [vmem:[#allocation24_spill] sm:$0xff] }
 0x758   :  { %4779 = vmatprep.subr.mxu0 %v9957_v19  ;;  %4850 = vmatprep.subr.mxu1 %v9960_v20  ;;  %v12936_v19 = vld [vmem:[#allocation25_spill] sm:$0xff]  ;;  %v12937_v20 = vld [vmem:[#allocation26_spill] sm:$0xff] }
 0x759   :  { %4780 = vmatpush1.msra.mxu0 %v9963_v17  ;;  %4851 = vmatpush1.msra.mxu1 %v9966_v1  ;;  %v12938_v17 = vld [vmem:[#allocation27_spill] sm:$0xff]  ;;  %v12939_v1 = vld [vmem:[#allocation28_spill] sm:$0xff] }
 0x75a   :  { %4781 = vmatprep.subr.mxu0 %v9969_v15  ;;  %4852 = vmatprep.subr.mxu1 %v9972_v0  ;;  %v12940_v15 = vld [vmem:[#allocation29_spill] sm:$0xff]  ;;  %v12941_v0 = vld [vmem:[#allocation30_spill] sm:$0xff] }
 0x75b   :  { %4782 = vmatpush1.msra.mxu0 %v9975_v32  ;;  %4853 = vmatpush1.msra.mxu1 %v9978_v45  ;;  %v12942_v32 = vld [vmem:[#allocation31_spill] sm:$0xff]  ;;  %v12943_v45 = vld [vmem:[#allocation32_spill] sm:$0xff] }
 0x75c   :  { %4783 = vmatprep.subr.mxu0 %v9981_v42  ;;  %4854 = vmatprep.subr.mxu1 %v9984_v23  ;;  %v12944_v42 = vld [vmem:[#allocation33_spill] sm:$0xff]  ;;  %v12945_v23 = vld [vmem:[#allocation34_spill] sm:$0xff] }
 0x75d   :  { %4784 = vmatpush1.msra.mxu0 %v9987_v56  ;;  %4855 = vmatpush1.msra.mxu1 %v9990_v60  ;;  %v12946_v56 = vld [vmem:[#allocation35_spill] sm:$0xff]  ;;  %v12947_v60 = vld [vmem:[#allocation36_spill] sm:$0xff] }
 0x75e   :  { %4785 = vmatprep.subr.mxu0 %v9993_v5  ;;  %4856 = vmatprep.subr.mxu1 %v9996_v63  ;;  %v12948_v5 = vld [vmem:[#allocation37_spill] sm:$0xff]  ;;  %v12949_v63 = vld [vmem:[#allocation38_spill] sm:$0xff] }
 0x75f   :  { %4786 = vmatpush1.msra.mxu0 %v9999_v57  ;;  %4857 = vmatpush1.msra.mxu1 %v10002_v41  ;;  %v12950_v57 = vld [vmem:[#allocation39_spill] sm:$0xff]  ;;  %v12951_v41 = vld [vmem:[#allocation40_spill] sm:$0xff] }
 0x760   :  { %4787 = vmatprep.subr.mxu0 %v10005_v11  ;;  %4858 = vmatprep.subr.mxu1 %v10008_v62  ;;  %v12952_v11 = vld [vmem:[#allocation41_spill] sm:$0xff]  ;;  %v12953_v62 = vld [vmem:[#allocation42_spill] sm:$0xff] }
 0x761   :  { %4788 = vmatpush1.msra.mxu0 %v12934_v49  ;;  %4859 = vmatpush1.msra.mxu1 %v12935_v38 }
 0x762   :  { %4789 = vmatprep.subr.mxu0 %v12936_v19  ;;  %4860 = vmatprep.subr.mxu1 %v12937_v20 }
 0x763   :  { %4790 = vmatpush1.msra.mxu0 %v12938_v17  ;;  %4861 = vmatpush1.msra.mxu1 %v12939_v1 }
 0x764   :  { %4791 = vmatprep.subr.mxu0 %v12940_v15  ;;  %4862 = vmatprep.subr.mxu1 %v12941_v0 }
 0x765   :  { %4792 = vmatpush1.msra.mxu0 %v12942_v32  ;;  %4863 = vmatpush1.msra.mxu1 %v12943_v45 }
 0x766   :  { %4793 = vmatprep.subr.mxu0 %v12944_v42  ;;  %4864 = vmatprep.subr.mxu1 %v12945_v23 }
 0x767   :  { %4794 = vmatpush1.msra.mxu0 %v12946_v56  ;;  %4865 = vmatpush1.msra.mxu1 %v12947_v60 }
 0x768   :  { %4795 = vmatprep.subr.mxu0 %v12948_v5  ;;  %4866 = vmatprep.subr.mxu1 %v12949_v63 }
 0x769   :  { %4796 = vmatpush1.msra.mxu0 %v12950_v57  ;;  %4867 = vmatpush1.msra.mxu1 %v12951_v41 }
 0x76a   :  { %4797 = vmatprep.subr.mxu0 %v12952_v11  ;;  %4868 = vmatprep.subr.mxu1 %v12953_v62 }
 0x76b   :  { %4798 = vmatpush1.msra.mxu0 %v12954_v30  ;;  %4869 = vmatpush1.msra.mxu1 %v12955_v8 }
 0x76c   :  { %4831 = vmatprep.mubr.f32.mxu0 %v11670_v10  ;;  %4902 = vmatprep.mubr.f32.mxu1 %v11670_v10 }
 0x76d   :  { %4909 = vmatprep.subr.mxu0 %v12956_v52  ;;  %4980 = vmatprep.subr.mxu1 %v12957_v9 }
 0x7a6   :  { %v4203_v14 = vpop.f32.mrf.mxu0  ;;  %v4274_v43 = vpop.f32.mrf.mxu1 }
 0x7a8   :  { %v4205_v54 = vpop.f32.mrf.mxu0  ;;  %v4276_v48 = vpop.f32.mrf.mxu1 }
 0x7c7   :  { %v4345_v16 = vpop.f32.mrf.mxu0  ;;  %v4416_v38 = vpop.f32.mrf.mxu1 }
 0x7c8   :  { %v4346_v39 = vadd.f32 %v4345_v16, %v4203_v14  ;;  %v4417_v45 = vadd.f32 %v4416_v38, %v4274_v43  ;;  %v6533_v16 = vld [vmem:[#allocation2 + $0x1e0] sm:$0xff]  ;;  %v6538_v38 = vld [vmem:[#allocation2 + $0x1d0] sm:$0xff] }
 0x7c9   :  { %v4347_v4 = vpop.f32.mrf.mxu0  ;;  %v4418_v15 = vpop.f32.mrf.mxu1 }
 0x7ca   :  { %v4421_v49 = vadd.f32 %v4346_v39, %v7407_v31  ;;  %v4348_v19 = vadd.f32 %v4347_v4, %v4205_v54  ;;  %v4419_v0 = vadd.f32 %v4418_v15, %v4276_v48  ;;  %v4423_v56 = vadd.f32 %v4417_v45, %v7424_v50  ;;  %v6534_v48 = vld [vmem:[#allocation2 + $0x1f0] sm:$0xff]  ;;  %v6535_v39 = vld [vmem:[#allocation2 + $0x1c8] sm:$0xff] }
 0x7cc   :  { %v5465_v20 = vmul.f32 -1.442695, %v4421_v49  ;;  %v4422_v17 = vadd.f32 %v4348_v19, %v7411_v35  ;;  %v4424_v32 = vadd.f32 %v4419_v0, %v7418_v46  ;;  %v6537_v49 = vld [vmem:[#allocation2 + $0x1c0] sm:$0xff]  ;;  %v6539_v19 = vld [vmem:[#allocation2 + $0x1a8] sm:$0xff] }
 0x7cd   :  { %v6543_v0 = vld [vmem:[#allocation2 + $0x188] sm:$0xff] }
 0x7ce   :  { %5679 = vpow2.f32 %v5465_v20  ;;  %v5466_v1 = vmul.f32 -1.442695, %v4422_v17  ;;  %v5467_v42 = vmul.f32 -1.442695, %v4424_v32  ;;  %v6540_v20 = vld [vmem:[#allocation2 + $0x1b8] sm:$0xff]  ;;  %v6541_v17 = vld [vmem:[#allocation2 + $0x1a0] sm:$0xff] }
 0x7cf   :  { %v6544_v32 = vld [vmem:[#allocation2 + $0x198] sm:$0xff] }
 0x7d0   :  { %5681 = vpow2.f32 %v5466_v1  ;;  %v6542_v1 = vld [vmem:[#allocation2 + $0x1b0] sm:$0xff] }
 0x7d1   :  { %5683 = vpow2.f32 %v5467_v42  ;;  %v6545_v42 = vld [vmem:[#allocation2 + $0x180] sm:$0xff] }
 0x7db   :  { %v5680_v23 = vpop.eup %5679 }
 0x7dc   :  { %v4428_v60 = vadd.f32 1.0, %v5680_v23  ;;  %v6546_v23 = vld [vmem:[#allocation2 + $0x190] sm:$0xff] }
 0x7dd   :  { %v5682_v5 = vpop.eup %5681 }
 0x7de   :  { %5685 = vrcp.f32 %v4428_v60  ;;  %v4434_v63 = vadd.f32 1.0, %v5682_v5  ;;  %v5684_v57 = vpop.eup %5683  ;;  %v6548_v60 = vld [vmem:[#allocation2 + $0x178] sm:$0xff] }
 0x7df   :  { %5687 = vtanh.f32 %v4423_v56  ;;  %v4441_v30 = vadd.f32 1.0, %v5684_v57  ;;  %v6547_v56 = vld [vmem:[#allocation2 + $0x168] sm:$0xff]  ;;  %v6550_v57 = vld [vmem:[#allocation2 + $0x170] sm:$0xff] }
 0x7e0   :  { %5689 = vrcp.f32 %v4434_v63  ;;  %v6549_v63 = vld [vmem:[#allocation2 + $0x160] sm:$0xff] }
 0x7e1   :  { %5691 = vrcp.f32 %v4441_v30  ;;  %v6552_v30 = vld [vmem:[#allocation2 + $0x158] sm:$0xff] }
 0x7ea   :  { %v4518_v4 = vpop.f32.mrf.mxu0  ;;  %v10697_v15 = vpop.f32.mrf.mxu1 }
 0x7eb   :  { %v5686_v41 = vpop.eup %5685 }
 0x7ec   :  { %v5688_v11 = vpop.eup %5687  ;;  %v4520_v45 = vpop.f32.mrf.mxu0 }
 0x7ed   :  { %v5690_v62 = vpop.eup %5689  ;;  %v4445_v8 = vmul.f32 %v5688_v11, %v5686_v41  ;;  %v4591_v41 = vpop.f32.mrf.mxu1 }
 0x7ee   :  { %v4444_v52 = vmul.f32 %v5690_v62, %v10090_v36  ;;  %v5692_v14 = vpop.eup %5691  ;;  %v6536_v36 = vld [vmem:[#allocation2 + $0x1d8] sm:$0xff]  ;;  %v6551_v62 = vld [vmem:[#allocation2 + $0x148] sm:$0xff] }
 0x7f0   :  { %v10691_v9 = vadd.f32 %v4445_v8, %v4444_v52  ;;  %v6553_v52 = vld [vmem:[#allocation2 + $0x140] sm:$0xff] }
 0x7f2   :  { %5693 = vtanh.f32 %v10691_v9 }
 0x7ff   :  { %v5694_v43 = vpop.eup %5693 }
 0x800   :  { %v4448_v54 = vmul.f32 %v5694_v43, %v5692_v14  ;;  %v6554_v14 = vld [vmem:[#allocation2 + $0x150] sm:$0xff] }
 0x802   :  { %5468 = vst [vmem:[%s10907_s4 + $0x18] sm:$0xf] %v4448_v54  ;;  %4832 = vmatmul.mubr.f32.vlgmr.msra.gmra.mxu0 %v4448_v54  ;;  %4903 = vmatmul.mubr.f32.vlgmr.msra.gmra.mxu1 %v4448_v54 }
 0x803   :  { %4910 = vmatpush1.msra.mxu0 %v6533_v16  ;;  %4981 = vmatpush1.msra.mxu1 %v6534_v48  ;;  %v6555_v48 = vld [vmem:[#allocation2 + $0x128] sm:$0xff] }
 0x804   :  { %4911 = vmatprep.subr.mxu0 %v6535_v39  ;;  %4982 = vmatprep.subr.mxu1 %v6536_v36  ;;  %v6556_v39 = vld [vmem:[#allocation2 + $0x138] sm:$0xff] }
 0x805   :  { %4912 = vmatpush1.msra.mxu0 %v6537_v49  ;;  %4983 = vmatpush1.msra.mxu1 %v6538_v38  ;;  %v6557_v49 = vld [vmem:[#allocation2 + $0x130] sm:$0xff] }
 0x806   :  { %4913 = vmatprep.subr.mxu0 %v6539_v19  ;;  %4984 = vmatprep.subr.mxu1 %v6540_v20  ;;  %v6558_v20 = vld [vmem:[#allocation2 + $0x110] sm:$0xff] }
 0x807   :  { %4914 = vmatpush1.msra.mxu0 %v6541_v17  ;;  %4985 = vmatpush1.msra.mxu1 %v6542_v1  ;;  %v12971_v17 = vld [vmem:[#allocation59_spill] sm:$0xff] }
 0x808   :  { %4915 = vmatprep.subr.mxu0 %v6543_v0  ;;  %4986 = vmatprep.subr.mxu1 %v6544_v32  ;;  %v12973_v0 = vld [vmem:[#allocation61_spill] sm:$0xff]  ;;  %v12974_v32 = vld [vmem:[#allocation62_spill] sm:$0xff] }
 0x809   :  { %4916 = vmatpush1.msra.mxu0 %v6545_v42  ;;  %4987 = vmatpush1.msra.mxu1 %v6546_v23  ;;  %v12976_v42 = vld [vmem:[#allocation64_spill] sm:$0xff]  ;;  %v12977_v23 = vld [vmem:[#allocation65_spill] sm:$0xff] }
 0x80a   :  { %4917 = vmatprep.subr.mxu0 %v6547_v56  ;;  %4988 = vmatprep.subr.mxu1 %v6548_v60  ;;  %v12978_v56 = vld [vmem:[#allocation66_spill] sm:$0xff]  ;;  %v12979_v60 = vld [vmem:[#allocation67_spill] sm:$0xff] }
 0x80b   :  { %v4660_v5 = vpop.f32.mrf.mxu0  ;;  %4918 = vmatpush1.msra.mxu0 %v6549_v63  ;;  %4989 = vmatpush1.msra.mxu1 %v6550_v57  ;;  %v4731_v54 = vpop.f32.mrf.mxu1  ;;  %v12981_v63 = vld [vmem:[#allocation69_spill] sm:$0xff]  ;;  %v12982_v57 = vld [vmem:[#allocation70_spill] sm:$0xff] }
 0x80c   :  { %v4661_v11 = vadd.f32 %v4660_v5, %v4518_v4  ;;  %4919 = vmatprep.subr.mxu0 %v6551_v62  ;;  %4990 = vmatprep.subr.mxu1 %v6552_v30  ;;  %v12980_v5 = vld [vmem:[#allocation68_spill] sm:$0xff]  ;;  %v12985_v62 = vld [vmem:[#allocation73_spill] sm:$0xff]  ;;  %v12986_v30 = vld [vmem:[#allocation74_spill] sm:$0xff] }
 0x80d   :  { %v4662_v8 = vpop.f32.mrf.mxu0  ;;  %4920 = vmatpush1.msra.mxu0 %v6553_v52  ;;  %4991 = vmatpush1.msra.mxu1 %v6554_v14  ;;  %v4733_v19 = vpop.f32.mrf.mxu1  ;;  %v12988_v52 = vld [vmem:[#allocation75_spill] sm:$0xff]  ;;  %v12989_v14 = vld [vmem:[#allocation76_spill] sm:$0xff] }
 0x80e   :  { %v4736_v43 = vadd.f32 %v4661_v11, %v7485_v51  ;;  %v4663_v16 = vadd.f32 %v4662_v8, %v4520_v45  ;;  %4921 = vmatprep.subr.mxu0 %v6555_v48  ;;  %4992 = vmatprep.subr.mxu1 %v6556_v39  ;;  %v12975_v45 = vld [vmem:[#allocation63_spill] sm:$0xff]  ;;  %v12984_v11 = vld [vmem:[#allocation72_spill] sm:$0xff]  ;;  %v12987_v8 = vld [vmem:[#allocation82_spill] sm:$0xff] }
 0x80f   :  { %4922 = vmatpush1.msra.mxu0 %v10123_v6  ;;  %4993 = vmatpush1.msra.mxu1 %v6557_v49  ;;  %v4734_v6 = vadd.f32 %v4733_v19, %v4591_v41  ;;  %v12983_v41 = vld [vmem:[#allocation71_spill] sm:$0xff]  ;;  %v12993_v39 = vld [vmem:[#allocation80_spill] sm:$0xff] }
 0x810   :  { %v5470_v36 = vmul.f32 -1.442695, %v4736_v43  ;;  %v4737_v4 = vadd.f32 %v4663_v16, %v7502_v58  ;;  %4923 = vmatprep.subr.mxu0 %v10128_v53  ;;  %4994 = vmatprep.subr.mxu1 %v10131_v47  ;;  %v4732_v47 = vadd.f32 %v4731_v54, %v10697_v15  ;;  %v12972_v15 = vld [vmem:[#allocation60_spill] sm:$0xff]  ;;  %v12990_v43 = vld [vmem:[#allocation77_spill] sm:$0xff]  ;;  %v12991_v54 = vld [vmem:[#allocation78_spill] sm:$0xff] }
 0x811   :  { %4924 = vmatpush1.msra.mxu0 %v10134_v26  ;;  %4995 = vmatpush1.msra.mxu1 %v6558_v20  ;;  %v4739_v53 = vadd.f32 %v4734_v6, %v7542_v13  ;;  %v12958_v26 = vld [vmem:[#allocation47_spill] sm:$0xff]  ;;  %v12996_v19 = vld [vmem:[#allocation84_spill] sm:$0xff]  ;;  %v12997_v20 = vld [vmem:[#allocation85_spill] sm:$0xff] }
 0x812   :  { %5695 = vpow2.f32 %v5470_v36  ;;  %v5471_v38 = vmul.f32 -1.442695, %v4737_v4  ;;  %4925 = vmatprep.subr.mxu0 %v10138_v44  ;;  %4996 = vmatprep.subr.mxu1 %v10141_v59  ;;  %v12959_v44 = vld [vmem:[#allocation48_spill] sm:$0xff]  ;;  %v12960_v59 = vld [vmem:[#allocation49_spill] sm:$0xff]  ;;  %v12992_v48 = vld [vmem:[#allocation79_spill] sm:$0xff] }
 0x813   :  { %4926 = vmatpush1.msra.mxu0 %v10144_v61  ;;  %4997 = vmatpush1.msra.mxu1 %v10147_v37  ;;  %v5472_v61 = vmul.f32 -1.442695, %v4739_v53  ;;  %v12961_v37 = vld [vmem:[#allocation50_spill] sm:$0xff]  ;;  %v12994_v4 = vld [vmem:[#allocation81_spill] sm:$0xff]  ;;  %v12995_v49 = vld [vmem:[#allocation83_spill] sm:$0xff] }
 0x814   :  { %5697 = vpow2.f32 %v5471_v38  ;;  %4927 = vmatprep.subr.mxu0 %v10150_v3  ;;  %4998 = vmatprep.subr.mxu1 %v10153_v29  ;;  %v12962_v3 = vld [vmem:[#allocation51_spill] sm:$0xff]  ;;  %v12963_v29 = vld [vmem:[#allocation52_spill] sm:$0xff] }
 0x815   :  { %4928 = vmatpush1.msra.mxu0 %v10156_v24  ;;  %4999 = vmatpush1.msra.mxu1 %v10159_v33  ;;  %v12964_v24 = vld [vmem:[#allocation53_spill] sm:$0xff]  ;;  %5699 = vpow2.f32 %v5472_v61  ;;  %v13000_v61 = vld [vmem:[#allocation88_spill] sm:$0xff] }
 0x816   :  { %4929 = vmatprep.subr.mxu0 %v10162_v18  ;;  %5000 = vmatprep.subr.mxu1 %v10165_v2  ;;  %v12965_v18 = vld [vmem:[#allocation8_spill] sm:$0xff] }
 0x817   :  { %4930 = vmatpush1.msra.mxu0 %v10168_v22  ;;  %5001 = vmatpush1.msra.mxu1 %v10171_v21  ;;  %v4738_v2 = vadd.f32 %v4732_v47, %v12965_v18  ;;  %v12966_v22 = vld [vmem:[#allocation54_spill] sm:$0xff]  ;;  %v12967_v21 = vld [vmem:[#allocation55_spill] sm:$0xff] }
 0x818   :  { %4931 = vmatprep.subr.mxu0 %v10174_v34  ;;  %5002 = vmatprep.subr.mxu1 %v10177_v27  ;;  %v12968_v27 = vld [vmem:[#allocation56_spill] sm:$0xff]  ;;  %v12998_v47 = vld [vmem:[#allocation86_spill] sm:$0xff] }
 0x819   :  { %4932 = vmatpush1.msra.mxu0 %v10181_v12  ;;  %5003 = vmatpush1.msra.mxu1 %v10184_v55  ;;  %v12969_v12 = vld [vmem:[#allocation57_spill] sm:$0xff]  ;;  %v5474_v55 = vld [vmem:[%s10903_s0 + $0x1c] sm:$0xf] }
 0x81a   :  { %4933 = vmatprep.subr.mxu0 %v10187_v25  ;;  %5004 = vmatprep.subr.mxu1 %v10190_v40  ;;  %v12970_v40 = vld [vmem:[#allocation58_spill] sm:$0xff] }
 0x81b   :  { %4934 = vmatpush1.msra.mxu0 %v12958_v26  ;;  %5005 = vmatpush1.msra.mxu1 %v12959_v44 }
 0x81c   :  { %4935 = vmatprep.subr.mxu0 %v12960_v59  ;;  %5006 = vmatprep.subr.mxu1 %v12961_v37  ;;  %v12999_v59 = vld [vmem:[#allocation87_spill] sm:$0xff]  ;;  %v13001_v37 = vld [vmem:[#allocation89_spill] sm:$0xff] }
 0x81d   :  { %4936 = vmatpush1.msra.mxu0 %v12962_v3  ;;  %5007 = vmatpush1.msra.mxu1 %v12963_v29  ;;  %v13002_v3 = vld [vmem:[#allocation90_spill] sm:$0xff]  ;;  %v13003_v29 = vld [vmem:[#allocation91_spill] sm:$0xff] }
 0x81e   :  { %4937 = vmatprep.subr.mxu0 %v12964_v24  ;;  %5008 = vmatprep.subr.mxu1 %v12966_v22  ;;  %v13004_v24 = vld [vmem:[#allocation92_spill] sm:$0xff] }
 0x81f   :  { %v5696_v33 = vpop.eup %5695  ;;  %4938 = vmatpush1.msra.mxu0 %v12967_v21  ;;  %5009 = vmatpush1.msra.mxu1 %v12968_v27  ;;  %v13008_v22 = vld [vmem:[#allocation96_spill] sm:$0xff]  ;;  %v13009_v21 = vld [vmem:[#allocation97_spill] sm:$0xff]  ;;  %v13011_v27 = vld [vmem:[#allocation99_spill] sm:$0xff] }
 0x820   :  { %v4743_v34 = vadd.f32 1.0, %v5696_v33  ;;  %4939 = vmatprep.subr.mxu0 %v12969_v12  ;;  %5010 = vmatprep.subr.mxu1 %v12970_v40  ;;  %v13012_v12 = vld [vmem:[#allocation100_spill] sm:$0xff]  ;;  %v13015_v40 = vld [vmem:[#allocation103_spill] sm:$0xff] }
 0x821   :  { %v5698_v25 = vpop.eup %5697  ;;  %4940 = vmatpush1.msra.mxu0 %v12971_v17  ;;  %4973 = vmatprep.mubr.f32.mxu0 %v11670_v10  ;;  %v13016_v17 = vld [vmem:[#allocation104_spill] sm:$0xff] }
 0x822   :  { %5701 = vrcp.f32 %v4743_v34  ;;  %v4749_v1 = vadd.f32 1.0, %v5698_v25  ;;  %5011 = vmatpush1.msra.mxu1 %v12972_v15  ;;  %5044 = vmatprep.mubr.f32.mxu1 %v11670_v10  ;;  %v5700_v16 = vpop.eup %5699  ;;  %v13010_v34 = vld [vmem:[#allocation98_spill] sm:$0xff] }
 0x823   :  { %5703 = vtanh.f32 %v4738_v2  ;;  %4974 = vmatmul.mubr.f32.vlgmr.msra.gmra.mxu0 %v5474_v55  ;;  %5045 = vmatmul.mubr.f32.vlgmr.msra.gmra.mxu1 %v5474_v55  ;;  %v4756_v53 = vadd.f32 1.0, %v5700_v16  ;;  %v13006_v2 = vld [vmem:[#allocation94_spill] sm:$0xff]  ;;  %v13013_v55 = vld [vmem:[#allocation101_spill] sm:$0xff] }
 0x824   :  { %5705 = vrcp.f32 %v4749_v1  ;;  %5082 = vmatprep.subr.mxu0 %v12973_v0  ;;  %5153 = vmatprep.subr.mxu1 %v12974_v32  ;;  %v13014_v25 = vld [vmem:[#allocation102_spill] sm:$0xff]  ;;  %v13017_v1 = vld [vmem:[#allocation105_spill] sm:$0xff]  ;;  %v13019_v0 = vld [vmem:[#allocation107_spill] sm:$0xff] }
 0x825   :  { %5083 = vmatpush1.msra.mxu0 %v12975_v45  ;;  %5154 = vmatpush1.msra.mxu1 %v12976_v42  ;;  %5707 = vrcp.f32 %v4756_v53  ;;  %v13018_v15 = vld [vmem:[#allocation106_spill] sm:$0xff]  ;;  %v13020_v32 = vld [vmem:[#allocation108_spill] sm:$0xff]  ;;  %v13021_v45 = vld [vmem:[#allocation109_spill] sm:$0xff] }
 0x826   :  { %5084 = vmatprep.subr.mxu0 %v12977_v23  ;;  %5155 = vmatprep.subr.mxu1 %v12978_v56  ;;  %v13022_v42 = vld [vmem:[#allocation110_spill] sm:$0xff]  ;;  %v13023_v23 = vld [vmem:[#allocation111_spill] sm:$0xff]  ;;  %v13024_v56 = vld [vmem:[#allocation112_spill] sm:$0xff] }
 0x827   :  { %5085 = vmatpush1.msra.mxu0 %v12979_v60  ;;  %5156 = vmatpush1.msra.mxu1 %v12980_v5  ;;  %v13025_v60 = vld [vmem:[#allocation113_spill] sm:$0xff]  ;;  %v13026_v5 = vld [vmem:[#allocation114_spill] sm:$0xff] }
 0x828   :  { %5086 = vmatprep.subr.mxu0 %v12981_v63  ;;  %5157 = vmatprep.subr.mxu1 %v12982_v57  ;;  %v13027_v63 = vld [vmem:[#allocation115_spill] sm:$0xff]  ;;  %v13028_v57 = vld [vmem:[#allocation116_spill] sm:$0xff]  ;;  %v13045_v53 = vld [vmem:[#allocation133_spill] sm:$0xff] }
 0x829   :  { %5087 = vmatpush1.msra.mxu0 %v12983_v41  ;;  %5158 = vmatpush1.msra.mxu1 %v12984_v11  ;;  %v13029_v41 = vld [vmem:[#allocation117_spill] sm:$0xff]  ;;  %v13030_v11 = vld [vmem:[#allocation118_spill] sm:$0xff] }
 0x82a   :  { %5088 = vmatprep.subr.mxu0 %v12985_v62  ;;  %5159 = vmatprep.subr.mxu1 %v12986_v30  ;;  %v13031_v30 = vld [vmem:[#allocation119_spill] sm:$0xff] }
 0x82b   :  { %5089 = vmatpush1.msra.mxu0 %v12987_v8  ;;  %5160 = vmatpush1.msra.mxu1 %v12988_v52  ;;  %v13032_v8 = vld [vmem:[#allocation120_spill] sm:$0xff] }
 0x82c   :  { %5090 = vmatprep.subr.mxu0 %v12989_v14  ;;  %5161 = vmatprep.subr.mxu1 %v12990_v43  ;;  %v13033_v14 = vld [vmem:[#allocation121_spill] sm:$0xff]  ;;  %v13034_v43 = vld [vmem:[#allocation122_spill] sm:$0xff] }
 0x82d   :  { %5091 = vmatpush1.msra.mxu0 %v12991_v54  ;;  %5162 = vmatpush1.msra.mxu1 %v12992_v48  ;;  %v13035_v54 = vld [vmem:[#allocation123_spill] sm:$0xff]  ;;  %v13036_v48 = vld [vmem:[#allocation124_spill] sm:$0xff] }
 0x82e   :  { %5092 = vmatprep.subr.mxu0 %v12993_v39  ;;  %5163 = vmatprep.subr.mxu1 %v12994_v4  ;;  %v13037_v39 = vld [vmem:[#allocation125_spill] sm:$0xff]  ;;  %v13039_v4 = vld [vmem:[#allocation127_spill] sm:$0xff] }
 0x82f   :  { %v5702_v36 = vpop.eup %5701  ;;  %5093 = vmatpush1.msra.mxu0 %v12995_v49  ;;  %5164 = vmatpush1.msra.mxu1 %v12996_v19  ;;  %v13040_v49 = vld [vmem:[#allocation128_spill] sm:$0xff]  ;;  %v13042_v19 = vld [vmem:[#allocation130_spill] sm:$0xff] }
 0x830   :  { %v5704_v38 = vpop.eup %5703  ;;  %5094 = vmatprep.subr.mxu0 %v12997_v20  ;;  %5165 = vmatprep.subr.mxu1 %v10317_v28  ;;  %v13005_v28 = vld [vmem:[#allocation93_spill] sm:$0xff]  ;;  %v13043_v20 = vld [vmem:[#allocation131_spill] sm:$0xff] }
 0x831   :  { %v5706_v6 = vpop.eup %5705  ;;  %5095 = vmatpush1.msra.mxu0 %v12998_v47  ;;  %v4760_v26 = vmul.f32 %v5704_v38, %v5702_v36  ;;  %5166 = vmatpush1.msra.mxu1 %v12999_v59  ;;  %v13038_v36 = vld [vmem:[#allocation126_spill] sm:$0xff]  ;;  %v13041_v38 = vld [vmem:[#allocation129_spill] sm:$0xff] }
 0x832   :  { %v4759_v44 = vmul.f32 %v5706_v6, %v10345_v7  ;;  %5096 = vmatprep.subr.mxu0 %v13000_v61  ;;  %5167 = vmatprep.subr.mxu1 %v13001_v37  ;;  %v13007_v7 = vld [vmem:[#allocation95_spill] sm:$0xff]  ;;  %v5708_v62 = vpop.eup %5707  ;;  %v13044_v6 = vld [vmem:[#allocation132_spill] sm:$0xff]  ;;  %v13046_v47 = vld [vmem:[#allocation134_spill] sm:$0xff] }
 0x833   :  { %5097 = vmatpush1.msra.mxu0 %v13002_v3  ;;  %5168 = vmatpush1.msra.mxu1 %v13003_v29  ;;  %v13049_v59 = vld [vmem:[#allocation137_spill] sm:$0xff]  ;;  %v13050_v61 = vld [vmem:[#allocation138_spill] sm:$0xff]  ;;  %v13051_v37 = vld [vmem:[#allocation139_spill] sm:$0xff] }
 0x834   :  { %5098 = vmatprep.subr.mxu0 %v13004_v24  ;;  %v10779_v33 = vadd.f32 %v4760_v26, %v4759_v44  ;;  %5169 = vmatprep.subr.mxu1 %v13005_v28  ;;  %v13047_v26 = vld [vmem:[#allocation135_spill] sm:$0xff]  ;;  %v13048_v44 = vld [vmem:[#allocation136_spill] sm:$0xff]  ;;  %v13053_v29 = vld [vmem:[#allocation141_spill] sm:$0xff] }
 0x835   :  { %5099 = vmatpush1.msra.mxu0 %v13006_v2  ;;  %5170 = vmatpush1.msra.mxu1 %v13007_v7  ;;  %v13052_v3 = vld [vmem:[#allocation140_spill] sm:$0xff]  ;;  %v13054_v24 = vld [vmem:[#allocation142_spill] sm:$0xff]  ;;  %v13055_v28 = vld [vmem:[#allocation143_spill] sm:$0xff] }
 0x836   :  { %5100 = vmatprep.subr.mxu0 %v13008_v22  ;;  %5709 = vtanh.f32 %v10779_v33  ;;  %5171 = vmatprep.subr.mxu1 %v13009_v21  ;;  %v13056_v2 = vld [vmem:[#allocation144_spill] sm:$0xff]  ;;  %v13057_v7 = vld [vmem:[#allocation145_spill] sm:$0xff]  ;;  %v13058_v22 = vld [vmem:[#allocation146_spill] sm:$0xff] }
 0x837   :  { %5101 = vmatpush1.msra.mxu0 %v13010_v34  ;;  %5172 = vmatpush1.msra.mxu1 %v13011_v27  ;;  %v13059_v21 = vld [vmem:[#allocation147_spill] sm:$0xff]  ;;  %v13060_v34 = vld [vmem:[#allocation148_spill] sm:$0xff]  ;;  %v13061_v27 = vld [vmem:[#allocation149_spill] sm:$0xff] }
 0x838   :  { %5102 = vmatprep.subr.mxu0 %v13012_v12  ;;  %5173 = vmatprep.subr.mxu1 %v13013_v55  ;;  %v13062_v12 = vld [vmem:[#allocation150_spill] sm:$0xff]  ;;  %v13063_v55 = vld [vmem:[#allocation151_spill] sm:$0xff] }
 0x839   :  { %5103 = vmatpush1.msra.mxu0 %v13014_v25  ;;  %5174 = vmatpush1.msra.mxu1 %v13015_v40  ;;  %v13064_v25 = vld [vmem:[#allocation152_spill] sm:$0xff]  ;;  %v13065_v40 = vld [vmem:[#allocation153_spill] sm:$0xff] }
 0x83a   :  { %5104 = vmatprep.subr.mxu0 %v13016_v17  ;;  %5175 = vmatprep.subr.mxu1 %v13017_v1  ;;  %v13066_v17 = vld [vmem:[#allocation154_spill] sm:$0xff]  ;;  %v13067_v1 = vld [vmem:[#allocation155_spill] sm:$0xff] }
 0x83b   :  { %5105 = vmatpush1.msra.mxu0 %v13018_v15  ;;  %5176 = vmatpush1.msra.mxu1 %v13019_v0  ;;  %v13068_v15 = vld [vmem:[#allocation156_spill] sm:$0xff]  ;;  %v13069_v0 = vld [vmem:[#allocation157_spill] sm:$0xff] }
 0x83c   :  { %5106 = vmatprep.subr.mxu0 %v13020_v32  ;;  %5177 = vmatprep.subr.mxu1 %v13021_v45  ;;  %v13070_v32 = vld [vmem:[#allocation158_spill] sm:$0xff]  ;;  %v13071_v45 = vld [vmem:[#allocation159_spill] sm:$0xff] }
 0x83d   :  { %5107 = vmatpush1.msra.mxu0 %v13022_v42  ;;  %5178 = vmatpush1.msra.mxu1 %v13023_v23  ;;  %v13072_v42 = vld [vmem:[#allocation160_spill] sm:$0xff]  ;;  %v13073_v23 = vld [vmem:[#allocation161_spill] sm:$0xff] }
 0x83e   :  { %5108 = vmatprep.subr.mxu0 %v13024_v56  ;;  %5179 = vmatprep.subr.mxu1 %v13025_v60  ;;  %v13074_v56 = vld [vmem:[#allocation162_spill] sm:$0xff]  ;;  %v13075_v60 = vld [vmem:[#allocation163_spill] sm:$0xff] }
 0x83f   :  { %5109 = vmatpush1.msra.mxu0 %v13026_v5  ;;  %5180 = vmatpush1.msra.mxu1 %v13027_v63  ;;  %v13076_v5 = vld [vmem:[#allocation164_spill] sm:$0xff]  ;;  %v13077_v63 = vld [vmem:[#allocation165_spill] sm:$0xff] }
 0x840   :  { %5110 = vmatprep.subr.mxu0 %v13028_v57  ;;  %5181 = vmatprep.subr.mxu1 %v13029_v41  ;;  %v13078_v57 = vld [vmem:[#allocation166_spill] sm:$0xff]  ;;  %v13079_v41 = vld [vmem:[#allocation167_spill] sm:$0xff] }
 0x841   :  { %5111 = vmatpush1.msra.mxu0 %v13030_v11  ;;  %5182 = vmatpush1.msra.mxu1 %v13031_v30  ;;  %v13080_v11 = vld [vmem:[#allocation168_spill] sm:$0xff]  ;;  %v13082_v30 = vld [vmem:[#allocation170_spill] sm:$0xff] }
 0x842   :  { %5112 = vmatprep.subr.mxu0 %v13032_v8  ;;  %5183 = vmatprep.subr.mxu1 %v13033_v14  ;;  %v13083_v8 = vld [vmem:[#allocation171_spill] sm:$0xff]  ;;  %v13085_v14 = vld [vmem:[#allocation173_spill] sm:$0xff] }
 0x843   :  { %v5710_v52 = vpop.eup %5709  ;;  %5113 = vmatpush1.msra.mxu0 %v13034_v43  ;;  %5184 = vmatpush1.msra.mxu1 %v13035_v54  ;;  %v13086_v43 = vld [vmem:[#allocation174_spill] sm:$0xff]  ;;  %v13087_v54 = vld [vmem:[#allocation175_spill] sm:$0xff] }
 0x844   :  { %5146 = vmatprep.mubr.f32.mxu0 %v11670_v10  ;;  %v4763_v16 = vmul.f32 %v5710_v52, %v5708_v62  ;;  %5217 = vmatprep.mubr.f32.mxu1 %v11670_v10  ;;  %v13081_v62 = vld [vmem:[#allocation169_spill] sm:$0xff]  ;;  %v13084_v52 = vld [vmem:[#allocation172_spill] sm:$0xff] }
 0x845   :  { %5224 = vmatprep.subr.mxu0 %v13036_v48  ;;  %5295 = vmatprep.subr.mxu1 %v13037_v39  ;;  %v13089_v48 = vld [vmem:[#allocation177_spill] sm:$0xff]  ;;  %v13090_v39 = vld [vmem:[#allocation178_spill] sm:$0xff] }
 0x846   :  { %5473 = vst [vmem:[%s10908_s5 + $0x4] sm:$0xf] %v4763_v16  ;;  %5147 = vmatmul.mubr.f32.vlgmr.msra.gmra.mxu0 %v4763_v16  ;;  %5218 = vmatmul.mubr.f32.vlgmr.msra.gmra.mxu1 %v4763_v16  ;;  %v13088_v16 = vld [vmem:[#allocation176_spill] sm:$0xff] }
 0x847   :  { %5225 = vmatpush1.msra.mxu0 %v13038_v36  ;;  %5296 = vmatpush1.msra.mxu1 %v13039_v4  ;;  %v13091_v36 = vld [vmem:[#allocation179_spill] sm:$0xff]  ;;  %v13092_v4 = vld [vmem:[#allocation180_spill] sm:$0xff] }
 0x848   :  { %5226 = vmatprep.subr.mxu0 %v13040_v49  ;;  %5297 = vmatprep.subr.mxu1 %v13041_v38  ;;  %v13093_v49 = vld [vmem:[#allocation181_spill] sm:$0xff]  ;;  %v13094_v38 = vld [vmem:[#allocation182_spill] sm:$0xff] }
 0x849   :  { %5227 = vmatpush1.msra.mxu0 %v13042_v19  ;;  %5298 = vmatpush1.msra.mxu1 %v13043_v20  ;;  %v13095_v19 = vld [vmem:[#allocation183_spill] sm:$0xff]  ;;  %v13096_v20 = vld [vmem:[#allocation184_spill] sm:$0xff] }
 0x84a   :  { %5228 = vmatprep.subr.mxu0 %v13044_v6  ;;  %5299 = vmatprep.subr.mxu1 %v13045_v53  ;;  %v5081_v6 = vld [vmem:[%s10903_s0] sm:$0xf]  ;;  %v13097_v53 = vld [vmem:[#allocation185_spill] sm:$0xff] }
 0x84b   :  { %5229 = vmatpush1.msra.mxu0 %v13046_v47  ;;  %5300 = vmatpush1.msra.mxu1 %v13047_v26  ;;  %v13098_v47 = vld [vmem:[#allocation186_spill] sm:$0xff]  ;;  %v13099_v26 = vld [vmem:[#allocation187_spill] sm:$0xff] }
 0x84c   :  { %5230 = vmatprep.subr.mxu0 %v13048_v44  ;;  %5301 = vmatprep.subr.mxu1 %v13049_v59 }
 0x84d   :  { %5231 = vmatpush1.msra.mxu0 %v13050_v61  ;;  %5302 = vmatpush1.msra.mxu1 %v13051_v37 }
 0x84e   :  { %5232 = vmatprep.subr.mxu0 %v13052_v3  ;;  %5303 = vmatprep.subr.mxu1 %v13053_v29 }
 0x84f   :  { %5233 = vmatpush1.msra.mxu0 %v13054_v24  ;;  %5304 = vmatpush1.msra.mxu1 %v13055_v28 }
 0x850   :  { %5234 = vmatprep.subr.mxu0 %v13056_v2  ;;  %5305 = vmatprep.subr.mxu1 %v13057_v7 }
 0x851   :  { %5235 = vmatpush1.msra.mxu0 %v13058_v22  ;;  %5306 = vmatpush1.msra.mxu1 %v13059_v21 }
 0x852   :  { %5236 = vmatprep.subr.mxu0 %v13060_v34  ;;  %5307 = vmatprep.subr.mxu1 %v13061_v27 }
 0x853   :  { %5237 = vmatpush1.msra.mxu0 %v13062_v12  ;;  %5308 = vmatpush1.msra.mxu1 %v13063_v55 }
 0x854   :  { %5238 = vmatprep.subr.mxu0 %v13064_v25  ;;  %5309 = vmatprep.subr.mxu1 %v13065_v40 }
 0x855   :  { %5239 = vmatpush1.msra.mxu0 %v13066_v17  ;;  %5310 = vmatpush1.msra.mxu1 %v13067_v1 }
 0x856   :  { %5240 = vmatprep.subr.mxu0 %v13068_v15  ;;  %5311 = vmatprep.subr.mxu1 %v13069_v0 }
 0x857   :  { %5241 = vmatpush1.msra.mxu0 %v13070_v32  ;;  %5312 = vmatpush1.msra.mxu1 %v13071_v45 }
 0x858   :  { %5242 = vmatprep.subr.mxu0 %v13072_v42  ;;  %5313 = vmatprep.subr.mxu1 %v13073_v23 }
 0x859   :  { %5243 = vmatpush1.msra.mxu0 %v13074_v56  ;;  %5314 = vmatpush1.msra.mxu1 %v13075_v60 }
 0x85a   :  { %5244 = vmatprep.subr.mxu0 %v13076_v5  ;;  %5315 = vmatprep.subr.mxu1 %v13077_v63 }
 0x85b   :  { %5245 = vmatpush1.msra.mxu0 %v13078_v57  ;;  %5316 = vmatpush1.msra.mxu1 %v13079_v41 }
 0x85c   :  { %5246 = vmatprep.subr.mxu0 %v13080_v11  ;;  %5317 = vmatprep.subr.mxu1 %v13081_v62 }
 0x85d   :  { %5247 = vmatpush1.msra.mxu0 %v13082_v30  ;;  %5318 = vmatpush1.msra.mxu1 %v13083_v8 }
 0x85e   :  { %5248 = vmatprep.subr.mxu0 %v13084_v52  ;;  %5319 = vmatprep.subr.mxu1 %v13085_v14 }
 0x85f   :  { %5249 = vmatpush1.msra.mxu0 %v13086_v43  ;;  %5320 = vmatpush1.msra.mxu1 %v13087_v54 }
 0x860   :  { %5250 = vmatprep.subr.mxu0 %v13088_v16  ;;  %5321 = vmatprep.subr.mxu1 %v13089_v48 }
 0x861   :  { %5251 = vmatpush1.msra.mxu0 %v13090_v39  ;;  %5322 = vmatpush1.msra.mxu1 %v13091_v36 }
 0x862   :  { %5252 = vmatprep.subr.mxu0 %v13092_v4  ;;  %5323 = vmatprep.subr.mxu1 %v13093_v49 }
 0x863   :  { %5253 = vmatpush1.msra.mxu0 %v13094_v38  ;;  %5324 = vmatpush1.msra.mxu1 %v13095_v19 }
 0x864   :  { %5254 = vmatprep.subr.mxu0 %v13096_v20  ;;  %5325 = vmatprep.subr.mxu1 %v13097_v53 }
 0x865   :  { %5255 = vmatpush1.msra.mxu0 %v13098_v47  ;;  %5288 = vmatprep.mubr.f32.mxu0 %v11670_v10 }
 0x866   :  { %5326 = vmatpush1.msra.mxu1 %v13099_v26  ;;  %5359 = vmatprep.mubr.f32.mxu1 %v11670_v10 }
 0x867   :  { %5289 = vmatmul.mubr.f32.vlgmr.msra.gmra.mxu0 %v5081_v6  ;;  %5360 = vmatmul.mubr.f32.vlgmr.msra.gmra.mxu1 %v5081_v6 }
 0x8c2   :  { %v4833_v44 = vpop.f32.mrf.mxu0  ;;  %v4904_v59 = vpop.f32.mrf.mxu1 }
 0x8c4   :  { %v4835_v61 = vpop.f32.mrf.mxu0  ;;  %v4906_v3 = vpop.f32.mrf.mxu1 }
 0x8e3   :  { %v4975_v37 = vpop.f32.mrf.mxu0  ;;  %v5046_v2 = vpop.f32.mrf.mxu1 }
 0x8e4   :  { %v4976_v29 = vadd.f32 %v4975_v37, %v4833_v44  ;;  %v5047_v55 = vadd.f32 %v5046_v2, %v4904_v59 }
 0x8e5   :  { %v4977_v24 = vpop.f32.mrf.mxu0  ;;  %v5048_v27 = vpop.f32.mrf.mxu1 }
 0x8e6   :  { %v5051_v28 = vadd.f32 %v4976_v29, %v7407_v31  ;;  %v4978_v7 = vadd.f32 %v4977_v24, %v4835_v61  ;;  %v5049_v10 = vadd.f32 %v5048_v27, %v4906_v3  ;;  %v5053_v17 = vadd.f32 %v5047_v55, %v7424_v50 }
 0x8e8   :  { %v5475_v22 = vmul.f32 -1.442695, %v5051_v28  ;;  %v5052_v21 = vadd.f32 %v4978_v7, %v7411_v35  ;;  %v5054_v12 = vadd.f32 %v5049_v10, %v7418_v46 }
 0x8ea   :  { %5711 = vpow2.f32 %v5475_v22  ;;  %v5476_v34 = vmul.f32 -1.442695, %v5052_v21  ;;  %v5477_v25 = vmul.f32 -1.442695, %v5054_v12 }
 0x8ec   :  { %5713 = vpow2.f32 %v5476_v34 }
 0x8ed   :  { %5715 = vpow2.f32 %v5477_v25 }
 0x8f7   :  { %v5712_v40 = vpop.eup %5711 }
 0x8f8   :  { %v5058_v1 = vadd.f32 1.0, %v5712_v40 }
 0x8f9   :  { %v5714_v15 = vpop.eup %5713 }
 0x8fa   :  { %5717 = vrcp.f32 %v5058_v1  ;;  %v5064_v31 = vadd.f32 1.0, %v5714_v15  ;;  %v5716_v35 = vpop.eup %5715 }
 0x8fb   :  { %5719 = vtanh.f32 %v5053_v17  ;;  %v5071_v42 = vadd.f32 1.0, %v5716_v35 }
 0x8fc   :  { %5721 = vrcp.f32 %v5064_v31 }
 0x8fd   :  { %5723 = vrcp.f32 %v5071_v42 }
 0x906   :  { %v5148_v63 = vpop.f32.mrf.mxu0  ;;  %v5219_v57 = vpop.f32.mrf.mxu1 }
 0x907   :  { %v5718_v0 = vpop.eup %5717 }
 0x908   :  { %v5720_v32 = vpop.eup %5719  ;;  %v5150_v41 = vpop.f32.mrf.mxu0 }
 0x909   :  { %v5722_v45 = vpop.eup %5721  ;;  %v5075_v23 = vmul.f32 %v5720_v32, %v5718_v0  ;;  %v5221_v62 = vpop.f32.mrf.mxu1 }
 0x90a   :  { %v5074_v46 = vmul.f32 %v5722_v45, %v10691_v9  ;;  %v5724_v60 = vpop.eup %5723 }
 0x90c   :  { %v5076_v56 = vadd.f32 %v5075_v23, %v5074_v46 }
 0x90e   :  { %5725 = vtanh.f32 %v5076_v56 }
 0x91b   :  { %v5726_v50 = vpop.eup %5725 }
 0x91c   :  { %v5078_v5 = vmul.f32 %v5726_v50, %v5724_v60 }
 0x91e   :  { %5478 = vst [vmem:[%s10907_s4 + $0x1c] sm:$0xf] %v5078_v5 }
 0x927   :  { %v5290_v11 = vpop.f32.mrf.mxu0  ;;  %v5361_v9 = vpop.f32.mrf.mxu1 }
 0x928   :  { %v5291_v30 = vadd.f32 %v5290_v11, %v5148_v63  ;;  %v5362_v4 = vadd.f32 %v5361_v9, %v5219_v57 }
 0x929   :  { %v5292_v8 = vpop.f32.mrf.mxu0  ;;  %v5363_v48 = vpop.f32.mrf.mxu1 }
 0x92a   :  { %v5366_v52 = vadd.f32 %v5291_v30, %v7485_v51  ;;  %v5293_v14 = vadd.f32 %v5292_v8, %v5150_v41  ;;  %v5364_v39 = vadd.f32 %v5363_v48, %v5221_v62  ;;  %v5368_v19 = vadd.f32 %v5362_v4, %v12965_v18 }
 0x92c   :  { %v5479_v43 = vmul.f32 -1.442695, %v5366_v52  ;;  %v5367_v54 = vadd.f32 %v5293_v14, %v7502_v58  ;;  %v5369_v36 = vadd.f32 %v5364_v39, %v7542_v13 }
 0x92e   :  { %5727 = vpow2.f32 %v5479_v43  ;;  %v5480_v16 = vmul.f32 -1.442695, %v5367_v54  ;;  %v5481_v49 = vmul.f32 -1.442695, %v5369_v36 }
 0x930   :  { %5729 = vpow2.f32 %v5480_v16 }
 0x931   :  { %5731 = vpow2.f32 %v5481_v49 }
 0x93b   :  { %v5728_v38 = vpop.eup %5727 }
 0x93c   :  { %v5373_v20 = vadd.f32 1.0, %v5728_v38 }
 0x93d   :  { %v5730_v6 = vpop.eup %5729 }
 0x93e   :  { %5733 = vrcp.f32 %v5373_v20  ;;  %v5379_v51 = vadd.f32 1.0, %v5730_v6  ;;  %v5732_v58 = vpop.eup %5731 }
 0x93f   :  { %5735 = vtanh.f32 %v5368_v19  ;;  %v5386_v44 = vadd.f32 1.0, %v5732_v58 }
 0x940   :  { %5737 = vrcp.f32 %v5379_v51 }
 0x941   :  { %5739 = vrcp.f32 %v5386_v44 }
 0x94b   :  { %v5734_v53 = vpop.eup %5733 }
 0x94c   :  { %v5736_v47 = vpop.eup %5735 }
 0x94d   :  { %v5738_v26 = vpop.eup %5737  ;;  %v5390_v59 = vmul.f32 %v5736_v47, %v5734_v53 }
 0x94e   :  { %v5389_v13 = vmul.f32 %v5738_v26, %v10779_v33  ;;  %v5740_v37 = vpop.eup %5739 }
 0x950   :  { %v5391_v61 = vadd.f32 %v5390_v59, %v5389_v13 }
 0x952   :  { %5741 = vtanh.f32 %v5391_v61 }
 0x95f   :  { %v5742_v18 = vpop.eup %5741 }
 0x960   :  { %v5393_v3 = vmul.f32 %v5742_v18, %v5740_v37 }
 0x962   :  { %5394 = vst [vmem:[%s10908_s5] sm:$0xf] %v5393_v3 }
 0x963   :  { %5403 = vsyncpa [#allocation3], 1 }
 0x964   :  { %5404 = vsyncpa [#allocation5], 1 }

</bundles_post_ra>
